<compile_context>
chip_gen: v7x
topology: tpu7x:2x2x1
jax: 0.10.0
libtpu: 0.0.40
codegen_flags: <defaults>
</compile_context>

<pallas_src>
import functools

import jax
import jax.numpy as jnp
from jax import lax
from jax.experimental import pallas as pl
from jax.experimental.pallas import tpu as pltpu

EPS = 1e-5
TAPS = tuple((dh, dw) for dh in (-1, 0, 1) for dw in (-1, 0, 1))


def _tree_sum(terms):
    terms = list(terms)
    while len(terms) > 1:
        nxt = [terms[i] + terms[i + 1] for i in range(0, len(terms) - 1, 2)]
        if len(terms) % 2:
            nxt.append(terms[-1])
        terms = nxt
    return terms[0]


# ----------------------------------------------------------------------------
# Single fused kernel: all layernorms (conv-layout group-sum trick), q/k/v
# conv blocks (1x1 on the MXU + depthwise/grouped 3x3 via a zero-padded flat
# scratch), cross attention, norm2, FFN, conv_last and both residuals — for
# one batch element per grid step.
# ----------------------------------------------------------------------------
def _craa_kernel(Wimg, x_ref, xc_ref, lnv_ref, w1c_ref, b1c_ref, wff_ref,
                 bff_ref, wkv_ref, bkv_ref, dwc_ref, dbc_ref, dwg_ref, dbg_ref,
                 hm_ref, o_ref, pad_ref):
    f32, bf16 = jnp.float32, jnp.bfloat16
    C = x_ref.shape[1]
    C2 = xc_ref.shape[1]
    Nsp = x_ref.shape[2]
    NgC, Ng2 = Nsp // C, Nsp // C2
    LPAD = (pad_ref.shape[1] - Nsp) // 2        # 128-aligned, >= Wimg + 1

    # --- zero only the pad columns the shifted reads can touch (centre is
    #     always overwritten by dw3x3 before being read) ---
    pad_ref[:, LPAD - (Wimg + 1):LPAD] = jnp.zeros((C2, Wimg + 1), f32)
    pad_ref[:, LPAD + Nsp:LPAD + Nsp + Wimg + 1] = jnp.zeros((C2, Wimg + 1), f32)

    # --- in-kernel 0/1 group-sum (G) and group-expand (Gt) matrices ---
    def gmats(gsize, ng):
        r = lax.broadcasted_iota(jnp.int32, (Nsp, ng), 0)
        c = lax.broadcasted_iota(jnp.int32, (Nsp, ng), 1) * gsize
        G = jnp.where((r >= c) & (r < c + gsize), 1.0, 0.0).astype(f32)
        rt = lax.broadcasted_iota(jnp.int32, (ng, Nsp), 1)
        ct = lax.broadcasted_iota(jnp.int32, (ng, Nsp), 0) * gsize
        Gt = jnp.where((rt >= ct) & (rt < ct + gsize), 1.0, 0.0).astype(f32)
        return G, Gt

    GC, GCt = gmats(C, NgC)       # token = C consecutive lanes
    G2, G2t = gmats(C2, Ng2)      # token = 2C consecutive lanes

    def gnorm(v, G, Gt, gsize):
        # per-token LayerNorm stats in conv layout (kept f32: feeds rsqrt).
        inv_n = 1.0 / gsize
        mu = jnp.dot(jnp.dot(v, G, preferred_element_type=f32) * inv_n, Gt,
                     preferred_element_type=f32)
        d = v - mu
        var_g = jnp.dot(d * d, G, preferred_element_type=f32) * inv_n
        inv = jnp.dot(lax.rsqrt(var_g + EPS), Gt, preferred_element_type=f32)
        return d * inv

    # --- depthwise 3x3 via zero-padded flat scratch + shifted slice reads ---
    hm_l = hm_ref[0]              # (1, Nsp) valid mask for dw = -1
    hm_r = hm_ref[1]              # (1, Nsp) valid mask for dw = +1

    def dw3x3(y, taps_ref, tidx, nch):
        pad_ref[0:nch, LPAD:LPAD + Nsp] = y
        terms = []
        for t, (dh, dw) in enumerate(TAPS):
            s = dh * Wimg + dw
            sh = pad_ref[0:nch, LPAD + s:LPAD + s + Nsp]
            contrib = taps_ref[tidx, t] * sh
            if dw == -1:
                contrib = contrib * hm_l
            elif dw == 1:
                contrib = contrib * hm_r
            terms.append(contrib)
        return _tree_sum(terms)   # tree-summed: short VPU dependency chain

    # ================================ forward ================================
    x = x_ref[0].astype(f32)            # (C,  Nsp)  raw input == shortcut
    xc = xc_ref[0].astype(f32)          # (2C, Nsp)  concat(x_pre, x), raw reshape

    # token-layout layernorms, computed in the conv layout via group sums
    x1 = gnorm(x, GC, GCt, C) * lnv_ref[0] + lnv_ref[1]            # norm1
    xqn = gnorm(x1, GC, GCt, C) * lnv_ref[2] + lnv_ref[3]          # norm_q
    xcr = gnorm(xc, G2, G2t, C2) * lnv_ref[6] + lnv_ref[7]         # norm_pre
    n2 = gnorm(xcr, G2, G2t, C2)                                   # shared k/v stats
    nk = n2 * lnv_ref[8] + lnv_ref[9]                              # norm_k
    nv = n2 * lnv_ref[10] + lnv_ref[11]                            # norm_v

    # q conv block: 1x1 (bf16 MXU) + depthwise 3x3
    yq = jnp.dot(w1c_ref[0], xqn.astype(bf16),
                 preferred_element_type=f32) + b1c_ref[0]
    q = dw3x3(yq, dwc_ref, 0, C) + dbc_ref[0]                      # (C, Nsp)

    # k / v conv blocks: both partner 1x1s fused into one (4C, 2C) matmul,
    # then two depthwise passes with the grouped-conv partner taps.
    def conv_g(xin, kv_idx):
        y = jnp.dot(wkv_ref[kv_idx], xin.astype(bf16),
                    preferred_element_type=f32) + bkv_ref[kv_idx]  # (4C, Nsp)
        out = dw3x3(y[0:C2], dwg_ref, 2 * kv_idx, C2)
        out = out + dw3x3(y[C2:2 * C2], dwg_ref, 2 * kv_idx + 1, C2)
        return out + dbg_ref[kv_idx]                               # (2C, Nsp)

    k = conv_g(nk, 0)
    v = conv_g(nv, 1)

    # cross attention: softmax(relu(q @ k^T)) @ v + shortcut
    # TODO(synk): this dot_general contracts the lane dim of both operands;
    # check the bundle dump for an XLU transpose of k before restructuring.
    s = lax.dot_general(q.astype(bf16), k.astype(bf16),
                        (((1,), (1,)), ((), ())),
                        preferred_element_type=f32)                # (C, 2C)
    s = jnp.maximum(s, 0.0)
    s = s - jnp.max(s, axis=-1, keepdims=True)
    e = jnp.exp(s)
    pattn = e * pl.reciprocal(jnp.sum(e, axis=-1, keepdims=True), approx=True)
    x2 = jnp.dot(pattn.astype(bf16), v.astype(bf16),
                 preferred_element_type=f32) + x                   # (C, Nsp)

    # norm2 (conv layout, groups of C lanes)
    x3 = gnorm(x2, GC, GCt, C) * lnv_ref[4] + lnv_ref[5]

    # FFN: ff1/ff2 1x1s fused into one (2C, C) matmul; gate; conv_last + res
    yff = jnp.dot(wff_ref[...], x3.astype(bf16),
                  preferred_element_type=f32) + bff_ref[...]       # (2C, Nsp)
    ff1 = dw3x3(yff[0:C], dwc_ref, 1, C) + dbc_ref[1]
    ff2 = dw3x3(yff[C:2 * C], dwc_ref, 2, C) + dbc_ref[2]
    z = ff1 * jax.nn.sigmoid(ff2)
    out = jnp.dot(w1c_ref[1], z.astype(bf16),
                  preferred_element_type=f32) + b1c_ref[1] + x2
    o_ref[0] = out.astype(o_ref.dtype)


# ----------------------------------------------------------------------------
# CRAA forward (Pallas)
# ----------------------------------------------------------------------------
def craa_forward(p, x_pre, x, x_size):
    B, N, C = x.shape
    H, W = x_size
    Nsp = H * W
    C2 = 2 * C
    assert N == Nsp and Nsp % C == 0 and Nsp % C2 == 0
    dt = x.dtype
    f32, bf16 = jnp.float32, jnp.bfloat16
    NgC, Ng2 = Nsp // C, Nsp // C2
    LPAD = ((W + 1 + 127) // 128) * 128

    # conv-layout views: the (B,N,C)->(B,C,H,W) conversions in the PyTorch
    # module are raw reshapes, so these are free bitcasts.  The only real data
    # movement is one XLA concatenate for the x_cross input.
    x_c = x.reshape(B, C, Nsp)
    xc_c = jnp.concatenate([x_pre, x], axis=-1).reshape(B, C2, Nsp)

    # ---------------- parameter packing ----------------
    def oi(w):                      # torch (Cout, Cin, 1, 1) -> (Cout, Cin)
        return w[:, :, 0, 0].astype(f32)

    def taps(w, j):                 # torch (ch, per_group, 3, 3) -> (9, ch, 1)
        ch = w.shape[0]
        return jnp.transpose(w[:, j].reshape(ch, 9), (1, 0)).reshape(9, ch, 1).astype(f32)

    idx_a = 2 * (jnp.arange(C2) // 2)   # even partner input per output channel
    idx_b = idx_a + 1                   # odd partner input per output channel

    w1c = jnp.stack([oi(p['q_w1']), oi(p['last_w'])]).astype(bf16)      # (2,C,C)
    b1c = jnp.stack([p['q_b1'], p['last_b']]).reshape(2, C, 1).astype(f32)
    wff = jnp.concatenate([oi(p['ff1_w1']), oi(p['ff2_w1'])], 0).astype(bf16)   # (2C,C)
    bff = jnp.concatenate([p['ff1_b1'], p['ff2_b1']]).reshape(C2, 1).astype(f32)
    kw1, vw1 = oi(p['k_w1']), oi(p['v_w1'])
    wkv = jnp.stack([jnp.concatenate([kw1[idx_a], kw1[idx_b]], 0),
                     jnp.concatenate([vw1[idx_a], vw1[idx_b]], 0)]).astype(bf16)  # (2,4C,2C)
    bkv = jnp.stack([jnp.concatenate([p['k_b1'][idx_a], p['k_b1'][idx_b]]),
                     jnp.concatenate([p['v_b1'][idx_a], p['v_b1'][idx_b]])]
                    ).reshape(2, 4 * C, 1).astype(f32)
    dwc = jnp.stack([taps(p['q_w2'], 0), taps(p['ff1_w2'], 0), taps(p['ff2_w2'], 0)])
    dbc = jnp.stack([p['q_b2'], p['ff1_b2'], p['ff2_b2']]).reshape(3, C, 1).astype(f32)
    dwg = jnp.stack([taps(p['k_w2'], 0), taps(p['k_w2'], 1),
                     taps(p['v_w2'], 0), taps(p['v_w2'], 1)])
    dbg = jnp.stack([p['k_b2'], p['v_b2']]).reshape(2, C2, 1).astype(f32)

    # per-feature layernorm affines, tiled along lanes (period C or 2C)
    lnv = jnp.stack([
        jnp.tile(p['norm1_g'], NgC), jnp.tile(p['norm1_b'], NgC),
        jnp.tile(p['norm_q_g'], NgC), jnp.tile(p['norm_q_b'], NgC),
        jnp.tile(p['norm2_g'], NgC), jnp.tile(p['norm2_b'], NgC),
        jnp.tile(p['norm_pre_g'], Ng2), jnp.tile(p['norm_pre_b'], Ng2),
        jnp.tile(p['norm_k_g'], Ng2), jnp.tile(p['norm_k_b'], Ng2),
        jnp.tile(p['norm_v_g'], Ng2), jnp.tile(p['norm_v_b'], Ng2),
    ]).reshape(12, 1, Nsp).astype(f32)

    wpos = jnp.arange(Nsp) % W
    hmask = jnp.stack([(wpos >= 1).astype(f32),
                       (wpos <= W - 2).astype(f32)]).reshape(2, 1, Nsp)

    # explicit VMEM budget (double-buffered blocks + constants + scratch)
    blk_bytes = 4 * (C * Nsp + C2 * Nsp + C * Nsp)
    const_bytes = 4 * (lnv.size + b1c.size + bff.size + bkv.size + dbc.size +
                       dbg.size + dwc.size + dwg.size + hmask.size) \
        + 2 * (w1c.size + wff.size + wkv.size)
    scratch_bytes = 4 * C2 * (Nsp + 2 * LPAD)
    vmem_limit = int(2 * blk_bytes + 2 * const_bytes + scratch_bytes + (16 << 20))

    out_c = pl.pallas_call(
        functools.partial(_craa_kernel, W),
        out_shape=jax.ShapeDtypeStruct((B, C, Nsp), dt),
        grid=(B,),
        in_specs=[
            pl.BlockSpec((1, C, Nsp), lambda i: (i, 0, 0)),
            pl.BlockSpec((1, C2, Nsp), lambda i: (i, 0, 0)),
            pl.BlockSpec((12, 1, Nsp), lambda i: (0, 0, 0)),
            pl.BlockSpec((2, C, C), lambda i: (0, 0, 0)),
            pl.BlockSpec((2, C, 1), lambda i: (0, 0, 0)),
            pl.BlockSpec((C2, C), lambda i: (0, 0)),
            pl.BlockSpec((C2, 1), lambda i: (0, 0)),
            pl.BlockSpec((2, 4 * C, C2), lambda i: (0, 0, 0)),
            pl.BlockSpec((2, 4 * C, 1), lambda i: (0, 0, 0)),
            pl.BlockSpec((3, 9, C, 1), lambda i: (0, 0, 0, 0)),
            pl.BlockSpec((3, C, 1), lambda i: (0, 0, 0)),
            pl.BlockSpec((4, 9, C2, 1), lambda i: (0, 0, 0, 0)),
            pl.BlockSpec((2, C2, 1), lambda i: (0, 0, 0)),
            pl.BlockSpec((2, 1, Nsp), lambda i: (0, 0, 0)),
        ],
        out_specs=pl.BlockSpec((1, C, Nsp), lambda i: (i, 0, 0)),
        scratch_shapes=[pltpu.VMEM((C2, Nsp + 2 * LPAD), jnp.float32)],
        compiler_params=pltpu.CompilerParams(
            dimension_semantics=("parallel",),
            vmem_limit_bytes=vmem_limit),
    )(x_c, xc_c, lnv, w1c, b1c, wff, bff, wkv, bkv, dwc, dbc, dwg, dbg, hmask)

    return out_c.reshape(B, N, C)


# ----------------------------------------------------------------------------
# Pure-JAX reference (mirrors PyTorch semantics) for verification
# ----------------------------------------------------------------------------
def _ref_ln(x, g, b):
    mu = jnp.mean(x, -1, keepdims=True)
    var = jnp.mean((x - mu) ** 2, -1, keepdims=True)
    return (x - mu) / jnp.sqrt(var + EPS) * g + b


def _ref_conv_block(x, w1, b1, w2, b2, groups):
    dn = ('NCHW', 'OIHW', 'NCHW')
    y = lax.conv_general_dilated(x, w1, (1, 1), 'VALID', dimension_numbers=dn,
                                 precision=lax.Precision.HIGHEST) + b1[None, :, None, None]
    y = lax.conv_general_dilated(y, w2, (1, 1), ((1, 1), (1, 1)), dimension_numbers=dn,
                                 feature_group_count=groups,
                                 precision=lax.Precision.HIGHEST) + b2[None, :, None, None]
    return y


def ref_forward(p, x_pre, x, x_size):
    B, N, C = x.shape
    H, W = x_size
    shortcut = x.reshape(B, C, H, W)
    x_cross = _ref_ln(jnp.concatenate([x_pre, x], -1), p['norm_pre_g'], p['norm_pre_b'])
    x1 = _ref_ln(x, p['norm1_g'], p['norm1_b'])
    q = _ref_conv_block(_ref_ln(x1, p['norm_q_g'], p['norm_q_b']).reshape(B, C, H, W),
                        p['q_w1'], p['q_b1'], p['q_w2'], p['q_b2'], C).reshape(B, C, N)
    k = _ref_conv_block(_ref_ln(x_cross, p['norm_k_g'], p['norm_k_b']).reshape(B, 2 * C, H, W),
                        p['k_w1'], p['k_b1'], p['k_w2'], p['k_b2'], C).reshape(B, 2 * C, N)
    v = _ref_conv_block(_ref_ln(x_cross, p['norm_v_g'], p['norm_v_b']).reshape(B, 2 * C, H, W),
                        p['v_w1'], p['v_b1'], p['v_w2'], p['v_b2'], C).reshape(B, 2 * C, N)
    attn = jax.nn.softmax(jax.nn.relu(
        jnp.einsum('bcn,bdn->bcd', q, k, precision=lax.Precision.HIGHEST)), axis=-1)
    x2 = jnp.einsum('bcd,bdn->bcn', attn, v,
                    precision=lax.Precision.HIGHEST).reshape(B, C, H, W) + shortcut
    sc2 = x2
    x3 = _ref_ln(x2.reshape(B, N, C), p['norm2_g'], p['norm2_b']).reshape(B, C, H, W)
    ff1 = _ref_conv_block(x3, p['ff1_w1'], p['ff1_b1'], p['ff1_w2'], p['ff1_b2'], C)
    ff2 = jax.nn.sigmoid(_ref_conv_block(x3, p['ff2_w1'], p['ff2_b1'], p['ff2_w2'], p['ff2_b2'], C))
    xf = ff1 * ff2
    xf = lax.conv_general_dilated(xf, p['last_w'], (1, 1), 'VALID',
                                  dimension_numbers=('NCHW', 'OIHW', 'NCHW'),
                                  precision=lax.Precision.HIGHEST) + p['last_b'][None, :, None, None]
    xf = xf + sc2
    return xf.reshape(B, N, C)


# ----------------------------------------------------------------------------
# Deterministic parameter init (shapes from CRAA.__init__)
# ----------------------------------------------------------------------------
def init_params(key, dim):
    C = dim
    keys = iter(jax.random.split(key, 64))

    def nrm(shape, scale=0.1):
        return (scale * jax.random.normal(next(keys), shape)).astype(jnp.float32)

    p = {}

    def ln(name, d):
        p[name + '_g'] = (1.0 + nrm((d,)))
        p[name + '_b'] = nrm((d,))

    ln('norm_pre', 2 * C); ln('norm1', C); ln('norm_q', C)
    ln('norm_k', 2 * C); ln('norm_v', 2 * C); ln('norm2', C)

    def conv_pair(name, cin):
        per_group = cin // C  # 1 (depthwise) or 2 (grouped)
        p[name + '_w1'] = nrm((cin, cin, 1, 1))
        p[name + '_b1'] = nrm((cin,), 0.05)
        p[name + '_w2'] = nrm((cin, per_group, 3, 3))
        p[name + '_b2'] = nrm((cin,), 0.05)

    conv_pair('q', C); conv_pair('k', 2 * C); conv_pair('v', 2 * C)
    conv_pair('ff1', C); conv_pair('ff2', C)
    p['last_w'] = nrm((C, C, 1, 1))
    p['last_b'] = nrm((C,), 0.05)
    return p


# ----------------------------------------------------------------------------
if __name__ == "__main__":
    key = jax.random.PRNGKey(0)
    B, dim, H, W = 2, 8, 16, 16
    N = H * W
    k1, k2, k3 = jax.random.split(key, 3)
    x_pre = jax.random.normal(k1, (B, N, dim), jnp.float32)
    x = jax.random.normal(k2, (B, N, dim), jnp.float32)
    params = init_params(k3, dim)

    fwd = jax.jit(functools.partial(craa_forward, x_size=(H, W)))
    out = jax.block_until_ready(fwd(params, x_pre, x))

    ref = ref_forward(params, x_pre, x, (H, W))
    err = float(jnp.max(jnp.abs(out - ref)))
    # Tolerance reflects bf16 MXU operands on the conv/attention matmuls plus
    # the approximate softmax reciprocal (LN-stat matmuls are kept in f32).
    if not (err < 2e-2):
        raise SystemExit(f"mismatch vs reference: max abs err = {err}")
    print("KERNEL_OK")
</pallas_src>

<mosaic_0001>
module attributes {stable_mosaic.version = 11 : i64} {
  func.func @_craa_kernel(%arg0: i32, %arg1: memref<1x8x256xf32, #tpu.memory_space<vmem>>, %arg2: memref<1x16x256xf32, #tpu.memory_space<vmem>>, %arg3: memref<12x1x256xf32, #tpu.memory_space<vmem>>, %arg4: memref<2x8x8xbf16, #tpu.memory_space<vmem>>, %arg5: memref<2x8x1xf32, #tpu.memory_space<vmem>>, %arg6: memref<16x8xbf16, #tpu.memory_space<vmem>>, %arg7: memref<16x1xf32, #tpu.memory_space<vmem>>, %arg8: memref<2x32x16xbf16, #tpu.memory_space<vmem>>, %arg9: memref<2x32x1xf32, #tpu.memory_space<vmem>>, %arg10: memref<3x9x8x1xf32, #tpu.memory_space<vmem>>, %arg11: memref<3x8x1xf32, #tpu.memory_space<vmem>>, %arg12: memref<4x9x16x1xf32, #tpu.memory_space<vmem>>, %arg13: memref<2x16x1xf32, #tpu.memory_space<vmem>>, %arg14: memref<2x1x256xf32, #tpu.memory_space<vmem>>, %arg15: memref<1x8x256xf32, #tpu.memory_space<vmem>>, %arg16: memref<16x512xf32, #tpu.memory_space<vmem>>) attributes {dimension_semantics = [#tpu.dimension_semantics<parallel>], iteration_bounds = array<i64: 2>, scalar_prefetch = 0 : i64, scratch_operands = 1 : i64, tpu.core_type = #tpu.core_type<tc>, window_params = [{transform_indices = @transform_0, window_bounds = array<i64: 1, 8, 256>}, {transform_indices = @transform_1, window_bounds = array<i64: 1, 16, 256>}, {pipeline_mode = #tpu.pipeline_mode<synchronous>, transform_indices = @transform_2, window_bounds = array<i64: 12, 1, 256>}, {pipeline_mode = #tpu.pipeline_mode<synchronous>, transform_indices = @transform_3, window_bounds = array<i64: 2, 8, 8>}, {pipeline_mode = #tpu.pipeline_mode<synchronous>, transform_indices = @transform_4, window_bounds = array<i64: 2, 8, 1>}, {pipeline_mode = #tpu.pipeline_mode<synchronous>, transform_indices = @transform_5, window_bounds = array<i64: 16, 8>}, {pipeline_mode = #tpu.pipeline_mode<synchronous>, transform_indices = @transform_6, window_bounds = array<i64: 16, 1>}, {pipeline_mode = #tpu.pipeline_mode<synchronous>, transform_indices = @transform_7, window_bounds = array<i64: 2, 32, 16>}, {pipeline_mode = #tpu.pipeline_mode<synchronous>, transform_indices = @transform_8, window_bounds = array<i64: 2, 32, 1>}, {pipeline_mode = #tpu.pipeline_mode<synchronous>, transform_indices = @transform_9, window_bounds = array<i64: 3, 9, 8, 1>}, {pipeline_mode = #tpu.pipeline_mode<synchronous>, transform_indices = @transform_10, window_bounds = array<i64: 3, 8, 1>}, {pipeline_mode = #tpu.pipeline_mode<synchronous>, transform_indices = @transform_11, window_bounds = array<i64: 4, 9, 16, 1>}, {pipeline_mode = #tpu.pipeline_mode<synchronous>, transform_indices = @transform_12, window_bounds = array<i64: 2, 16, 1>}, {pipeline_mode = #tpu.pipeline_mode<synchronous>, transform_indices = @transform_13, window_bounds = array<i64: 2, 1, 256>}, {transform_indices = @transform_14, window_bounds = array<i64: 1, 8, 256>}]} {
    %cst = arith.constant 0.000000e+00 : f32
    %0 = vector.broadcast %cst : f32 to vector<16x17xf32>
    %c0 = arith.constant 0 : index
    %c111 = arith.constant 111 : index
    %1 = vector.load %arg16[%c0, %c111] : memref<16x512xf32, #tpu.memory_space<vmem>>, vector<16x17xf32>
    tpu.vector_store %arg16[%c0, %c111], %0 {strides = array<i32>} : memref<16x512xf32, #tpu.memory_space<vmem>>, vector<16x17xf32>,
    %cst_0 = arith.constant 0.000000e+00 : f32
    %2 = vector.broadcast %cst_0 : f32 to vector<16x17xf32>
    %c0_1 = arith.constant 0 : index
    %c384 = arith.constant 384 : index
    %3 = vector.load %arg16[%c0_1, %c384] : memref<16x512xf32, #tpu.memory_space<vmem>>, vector<16x17xf32>
    tpu.vector_store %arg16[%c0_1, %c384], %2 {strides = array<i32>} : memref<16x512xf32, #tpu.memory_space<vmem>>, vector<16x17xf32>,
    %4 = tpu.iota {dimensions = array<i32: 0>} : vector<256x32xi32>
    %5 = tpu.iota {dimensions = array<i32: 1>} : vector<256x32xi32>
    %c8_i32 = arith.constant 8 : i32
    %6 = vector.broadcast %c8_i32 : i32 to vector<256x32xi32>
    %7 = arith.muli %5, %6 : vector<256x32xi32>
    %8 = arith.cmpi sge, %4, %7 : vector<256x32xi32>
    %c8_i32_2 = arith.constant 8 : i32
    %9 = vector.broadcast %c8_i32_2 : i32 to vector<256x32xi32>
    %10 = arith.addi %7, %9 : vector<256x32xi32>
    %11 = arith.cmpi slt, %4, %10 : vector<256x32xi32>
    %12 = arith.andi %8, %11 : vector<256x32xi1>
    %cst_3 = arith.constant 1.000000e+00 : f32
    %cst_4 = arith.constant 0.000000e+00 : f32
    %13 = vector.broadcast %cst_3 : f32 to vector<256x32xf32>
    %14 = vector.broadcast %cst_4 : f32 to vector<256x32xf32>
    %15 = arith.select %12, %13, %14 : vector<256x32xi1>, vector<256x32xf32>
    %16 = tpu.iota {dimensions = array<i32: 1>} : vector<32x256xi32>
    %17 = tpu.iota {dimensions = array<i32: 0>} : vector<32x256xi32>
    %c8_i32_5 = arith.constant 8 : i32
    %18 = vector.broadcast %c8_i32_5 : i32 to vector<32x256xi32>
    %19 = arith.muli %17, %18 : vector<32x256xi32>
    %20 = arith.cmpi sge, %16, %19 : vector<32x256xi32>
    %c8_i32_6 = arith.constant 8 : i32
    %21 = vector.broadcast %c8_i32_6 : i32 to vector<32x256xi32>
    %22 = arith.addi %19, %21 : vector<32x256xi32>
    %23 = arith.cmpi slt, %16, %22 : vector<32x256xi32>
    %24 = arith.andi %20, %23 : vector<32x256xi1>
    %cst_7 = arith.constant 1.000000e+00 : f32
    %cst_8 = arith.constant 0.000000e+00 : f32
    %25 = vector.broadcast %cst_7 : f32 to vector<32x256xf32>
    %26 = vector.broadcast %cst_8 : f32 to vector<32x256xf32>
    %27 = arith.select %24, %25, %26 : vector<32x256xi1>, vector<32x256xf32>
    %28 = tpu.iota {dimensions = array<i32: 0>} : vector<256x16xi32>
    %29 = tpu.iota {dimensions = array<i32: 1>} : vector<256x16xi32>
    %c16_i32 = arith.constant 16 : i32
    %30 = vector.broadcast %c16_i32 : i32 to vector<256x16xi32>
    %31 = arith.muli %29, %30 : vector<256x16xi32>
    %32 = arith.cmpi sge, %28, %31 : vector<256x16xi32>
    %c16_i32_9 = arith.constant 16 : i32
    %33 = vector.broadcast %c16_i32_9 : i32 to vector<256x16xi32>
    %34 = arith.addi %31, %33 : vector<256x16xi32>
    %35 = arith.cmpi slt, %28, %34 : vector<256x16xi32>
    %36 = arith.andi %32, %35 : vector<256x16xi1>
    %cst_10 = arith.constant 1.000000e+00 : f32
    %cst_11 = arith.constant 0.000000e+00 : f32
    %37 = vector.broadcast %cst_10 : f32 to vector<256x16xf32>
    %38 = vector.broadcast %cst_11 : f32 to vector<256x16xf32>
    %39 = arith.select %36, %37, %38 : vector<256x16xi1>, vector<256x16xf32>
    %40 = tpu.iota {dimensions = array<i32: 1>} : vector<16x256xi32>
    %41 = tpu.iota {dimensions = array<i32: 0>} : vector<16x256xi32>
    %c16_i32_12 = arith.constant 16 : i32
    %42 = vector.broadcast %c16_i32_12 : i32 to vector<16x256xi32>
    %43 = arith.muli %41, %42 : vector<16x256xi32>
    %44 = arith.cmpi sge, %40, %43 : vector<16x256xi32>
    %c16_i32_13 = arith.constant 16 : i32
    %45 = vector.broadcast %c16_i32_13 : i32 to vector<16x256xi32>
    %46 = arith.addi %43, %45 : vector<16x256xi32>
    %47 = arith.cmpi slt, %40, %46 : vector<16x256xi32>
    %48 = arith.andi %44, %47 : vector<16x256xi1>
    %cst_14 = arith.constant 1.000000e+00 : f32
    %cst_15 = arith.constant 0.000000e+00 : f32
    %49 = vector.broadcast %cst_14 : f32 to vector<16x256xf32>
    %50 = vector.broadcast %cst_15 : f32 to vector<16x256xf32>
    %51 = arith.select %48, %49, %50 : vector<16x256xi1>, vector<16x256xf32>
    %c0_16 = arith.constant 0 : index
    %c0_17 = arith.constant 0 : index
    %c0_18 = arith.constant 0 : index
    %52 = vector.load %arg14[%c0_16, %c0_17, %c0_18] : memref<2x1x256xf32, #tpu.memory_space<vmem>>, vector<1x1x256xf32>
    %53 = vector.shape_cast %52 : vector<1x1x256xf32> to vector<1x256xf32>
    %c1 = arith.constant 1 : index
    %c0_19 = arith.constant 0 : index
    %c0_20 = arith.constant 0 : index
    %54 = vector.load %arg14[%c1, %c0_19, %c0_20] : memref<2x1x256xf32, #tpu.memory_space<vmem>>, vector<1x1x256xf32>
    %55 = vector.shape_cast %54 : vector<1x1x256xf32> to vector<1x256xf32>
    %c0_21 = arith.constant 0 : index
    %c0_22 = arith.constant 0 : index
    %c0_23 = arith.constant 0 : index
    %56 = vector.load %arg1[%c0_21, %c0_22, %c0_23] : memref<1x8x256xf32, #tpu.memory_space<vmem>>, vector<1x8x256xf32>
    %57 = vector.shape_cast %56 : vector<1x8x256xf32> to vector<8x256xf32>
    %c0_24 = arith.constant 0 : index
    %c0_25 = arith.constant 0 : index
    %c0_26 = arith.constant 0 : index
    %58 = vector.load %arg2[%c0_24, %c0_25, %c0_26] : memref<1x16x256xf32, #tpu.memory_space<vmem>>, vector<1x16x256xf32>
    %59 = vector.shape_cast %58 : vector<1x16x256xf32> to vector<16x256xf32>
    %cst_27 = arith.constant dense<0.000000e+00> : vector<8x32xf32>
    %60 = tpu.matmul %57, %15, %cst_27 {dimension_numbers = #tpu.dot_dimension_numbers<[1], [0], [0], [1], [0, 0, 1, 1], [], []>} : vector<8x256xf32>, vector<256x32xf32>, vector<8x32xf32> -> vector<8x32xf32>
    %cst_28 = arith.constant 1.250000e-01 : f32
    %61 = vector.broadcast %cst_28 : f32 to vector<8x32xf32>
    %62 = arith.mulf %60, %61 : vector<8x32xf32>
    %cst_29 = arith.constant dense<0.000000e+00> : vector<8x256xf32>
    %63 = tpu.matmul %62, %27, %cst_29 {dimension_numbers = #tpu.dot_dimension_numbers<[1], [0], [0], [1], [0, 0, 1, 1], [], []>} : vector<8x32xf32>, vector<32x256xf32>, vector<8x256xf32> -> vector<8x256xf32>
    %64 = arith.subf %57, %63 : vector<8x256xf32>
    %65 = arith.mulf %64, %64 : vector<8x256xf32>
    %cst_30 = arith.constant dense<0.000000e+00> : vector<8x32xf32>
    %66 = tpu.matmul %65, %15, %cst_30 {dimension_numbers = #tpu.dot_dimension_numbers<[1], [0], [0], [1], [0, 0, 1, 1], [], []>} : vector<8x256xf32>, vector<256x32xf32>, vector<8x32xf32> -> vector<8x32xf32>
    %cst_31 = arith.constant 1.250000e-01 : f32
    %67 = vector.broadcast %cst_31 : f32 to vector<8x32xf32>
    %68 = arith.mulf %66, %67 : vector<8x32xf32>
    %cst_32 = arith.constant 9.99999974E-6 : f32
    %69 = vector.broadcast %cst_32 : f32 to vector<8x32xf32>
    %70 = arith.addf %68, %69 : vector<8x32xf32>
    %71 = math.rsqrt %70 : vector<8x32xf32>
    %cst_33 = arith.constant dense<0.000000e+00> : vector<8x256xf32>
    %72 = tpu.matmul %71, %27, %cst_33 {dimension_numbers = #tpu.dot_dimension_numbers<[1], [0], [0], [1], [0, 0, 1, 1], [], []>} : vector<8x32xf32>, vector<32x256xf32>, vector<8x256xf32> -> vector<8x256xf32>
    %73 = arith.mulf %64, %72 : vector<8x256xf32>
    %c0_34 = arith.constant 0 : index
    %c0_35 = arith.constant 0 : index
    %c0_36 = arith.constant 0 : index
    %74 = vector.load %arg3[%c0_34, %c0_35, %c0_36] : memref<12x1x256xf32, #tpu.memory_space<vmem>>, vector<1x1x256xf32>
    %75 = vector.shape_cast %74 : vector<1x1x256xf32> to vector<1x256xf32>
    %76 = vector.broadcast %75 : vector<1x256xf32> to vector<8x256xf32>
    %77 = arith.mulf %73, %76 : vector<8x256xf32>
    %c1_37 = arith.constant 1 : index
    %c0_38 = arith.constant 0 : index
    %c0_39 = arith.constant 0 : index
    %78 = vector.load %arg3[%c1_37, %c0_38, %c0_39] : memref<12x1x256xf32, #tpu.memory_space<vmem>>, vector<1x1x256xf32>
    %79 = vector.shape_cast %78 : vector<1x1x256xf32> to vector<1x256xf32>
    %80 = vector.broadcast %79 : vector<1x256xf32> to vector<8x256xf32>
    %81 = arith.addf %77, %80 : vector<8x256xf32>
    %cst_40 = arith.constant dense<0.000000e+00> : vector<8x32xf32>
    %82 = tpu.matmul %81, %15, %cst_40 {dimension_numbers = #tpu.dot_dimension_numbers<[1], [0], [0], [1], [0, 0, 1, 1], [], []>} : vector<8x256xf32>, vector<256x32xf32>, vector<8x32xf32> -> vector<8x32xf32>
    %cst_41 = arith.constant 1.250000e-01 : f32
    %83 = vector.broadcast %cst_41 : f32 to vector<8x32xf32>
    %84 = arith.mulf %82, %83 : vector<8x32xf32>
    %cst_42 = arith.constant dense<0.000000e+00> : vector<8x256xf32>
    %85 = tpu.matmul %84, %27, %cst_42 {dimension_numbers = #tpu.dot_dimension_numbers<[1], [0], [0], [1], [0, 0, 1, 1], [], []>} : vector<8x32xf32>, vector<32x256xf32>, vector<8x256xf32> -> vector<8x256xf32>
    %86 = arith.subf %81, %85 : vector<8x256xf32>
    %87 = arith.mulf %86, %86 : vector<8x256xf32>
    %cst_43 = arith.constant dense<0.000000e+00> : vector<8x32xf32>
    %88 = tpu.matmul %87, %15, %cst_43 {dimension_numbers = #tpu.dot_dimension_numbers<[1], [0], [0], [1], [0, 0, 1, 1], [], []>} : vector<8x256xf32>, vector<256x32xf32>, vector<8x32xf32> -> vector<8x32xf32>
    %cst_44 = arith.constant 1.250000e-01 : f32
    %89 = vector.broadcast %cst_44 : f32 to vector<8x32xf32>
    %90 = arith.mulf %88, %89 : vector<8x32xf32>
    %cst_45 = arith.constant 9.99999974E-6 : f32
    %91 = vector.broadcast %cst_45 : f32 to vector<8x32xf32>
    %92 = arith.addf %90, %91 : vector<8x32xf32>
    %93 = math.rsqrt %92 : vector<8x32xf32>
    %cst_46 = arith.constant dense<0.000000e+00> : vector<8x256xf32>
    %94 = tpu.matmul %93, %27, %cst_46 {dimension_numbers = #tpu.dot_dimension_numbers<[1], [0], [0], [1], [0, 0, 1, 1], [], []>} : vector<8x32xf32>, vector<32x256xf32>, vector<8x256xf32> -> vector<8x256xf32>
    %95 = arith.mulf %86, %94 : vector<8x256xf32>
    %c2 = arith.constant 2 : index
    %c0_47 = arith.constant 0 : index
    %c0_48 = arith.constant 0 : index
    %96 = vector.load %arg3[%c2, %c0_47, %c0_48] : memref<12x1x256xf32, #tpu.memory_space<vmem>>, vector<1x1x256xf32>
    %97 = vector.shape_cast %96 : vector<1x1x256xf32> to vector<1x256xf32>
    %98 = vector.broadcast %97 : vector<1x256xf32> to vector<8x256xf32>
    %99 = arith.mulf %95, %98 : vector<8x256xf32>
    %c3 = arith.constant 3 : index
    %c0_49 = arith.constant 0 : index
    %c0_50 = arith.constant 0 : index
    %100 = vector.load %arg3[%c3, %c0_49, %c0_50] : memref<12x1x256xf32, #tpu.memory_space<vmem>>, vector<1x1x256xf32>
    %101 = vector.shape_cast %100 : vector<1x1x256xf32> to vector<1x256xf32>
    %102 = vector.broadcast %101 : vector<1x256xf32> to vector<8x256xf32>
    %103 = arith.addf %99, %102 : vector<8x256xf32>
    %cst_51 = arith.constant dense<0.000000e+00> : vector<16x16xf32>
    %104 = tpu.matmul %59, %39, %cst_51 {dimension_numbers = #tpu.dot_dimension_numbers<[1], [0], [0], [1], [0, 0, 1, 1], [], []>} : vector<16x256xf32>, vector<256x16xf32>, vector<16x16xf32> -> vector<16x16xf32>
    %cst_52 = arith.constant 6.250000e-02 : f32
    %105 = vector.broadcast %cst_52 : f32 to vector<16x16xf32>
    %106 = arith.mulf %104, %105 : vector<16x16xf32>
    %cst_53 = arith.constant dense<0.000000e+00> : vector<16x256xf32>
    %107 = tpu.matmul %106, %51, %cst_53 {dimension_numbers = #tpu.dot_dimension_numbers<[1], [0], [0], [1], [0, 0, 1, 1], [], []>} : vector<16x16xf32>, vector<16x256xf32>, vector<16x256xf32> -> vector<16x256xf32>
    %108 = arith.subf %59, %107 : vector<16x256xf32>
    %109 = arith.mulf %108, %108 : vector<16x256xf32>
    %cst_54 = arith.constant dense<0.000000e+00> : vector<16x16xf32>
    %110 = tpu.matmul %109, %39, %cst_54 {dimension_numbers = #tpu.dot_dimension_numbers<[1], [0], [0], [1], [0, 0, 1, 1], [], []>} : vector<16x256xf32>, vector<256x16xf32>, vector<16x16xf32> -> vector<16x16xf32>
    %cst_55 = arith.constant 6.250000e-02 : f32
    %111 = vector.broadcast %cst_55 : f32 to vector<16x16xf32>
    %112 = arith.mulf %110, %111 : vector<16x16xf32>
    %cst_56 = arith.constant 9.99999974E-6 : f32
    %113 = vector.broadcast %cst_56 : f32 to vector<16x16xf32>
    %114 = arith.addf %112, %113 : vector<16x16xf32>
    %115 = math.rsqrt %114 : vector<16x16xf32>
    %cst_57 = arith.constant dense<0.000000e+00> : vector<16x256xf32>
    %116 = tpu.matmul %115, %51, %cst_57 {dimension_numbers = #tpu.dot_dimension_numbers<[1], [0], [0], [1], [0, 0, 1, 1], [], []>} : vector<16x16xf32>, vector<16x256xf32>, vector<16x256xf32> -> vector<16x256xf32>
    %117 = arith.mulf %108, %116 : vector<16x256xf32>
    %c6 = arith.constant 6 : index
    %c0_58 = arith.constant 0 : index
    %c0_59 = arith.constant 0 : index
    %118 = vector.load %arg3[%c6, %c0_58, %c0_59] : memref<12x1x256xf32, #tpu.memory_space<vmem>>, vector<1x1x256xf32>
    %119 = vector.shape_cast %118 : vector<1x1x256xf32> to vector<1x256xf32>
    %120 = vector.broadcast %119 : vector<1x256xf32> to vector<16x256xf32>
    %121 = arith.mulf %117, %120 : vector<16x256xf32>
    %c7 = arith.constant 7 : index
    %c0_60 = arith.constant 0 : index
    %c0_61 = arith.constant 0 : index
    %122 = vector.load %arg3[%c7, %c0_60, %c0_61] : memref<12x1x256xf32, #tpu.memory_space<vmem>>, vector<1x1x256xf32>
    %123 = vector.shape_cast %122 : vector<1x1x256xf32> to vector<1x256xf32>
    %124 = vector.broadcast %123 : vector<1x256xf32> to vector<16x256xf32>
    %125 = arith.addf %121, %124 : vector<16x256xf32>
    %cst_62 = arith.constant dense<0.000000e+00> : vector<16x16xf32>
    %126 = tpu.matmul %125, %39, %cst_62 {dimension_numbers = #tpu.dot_dimension_numbers<[1], [0], [0], [1], [0, 0, 1, 1], [], []>} : vector<16x256xf32>, vector<256x16xf32>, vector<16x16xf32> -> vector<16x16xf32>
    %cst_63 = arith.constant 6.250000e-02 : f32
    %127 = vector.broadcast %cst_63 : f32 to vector<16x16xf32>
    %128 = arith.mulf %126, %127 : vector<16x16xf32>
    %cst_64 = arith.constant dense<0.000000e+00> : vector<16x256xf32>
    %129 = tpu.matmul %128, %51, %cst_64 {dimension_numbers = #tpu.dot_dimension_numbers<[1], [0], [0], [1], [0, 0, 1, 1], [], []>} : vector<16x16xf32>, vector<16x256xf32>, vector<16x256xf32> -> vector<16x256xf32>
    %130 = arith.subf %125, %129 : vector<16x256xf32>
    %131 = arith.mulf %130, %130 : vector<16x256xf32>
    %cst_65 = arith.constant dense<0.000000e+00> : vector<16x16xf32>
    %132 = tpu.matmul %131, %39, %cst_65 {dimension_numbers = #tpu.dot_dimension_numbers<[1], [0], [0], [1], [0, 0, 1, 1], [], []>} : vector<16x256xf32>, vector<256x16xf32>, vector<16x16xf32> -> vector<16x16xf32>
    %cst_66 = arith.constant 6.250000e-02 : f32
    %133 = vector.broadcast %cst_66 : f32 to vector<16x16xf32>
    %134 = arith.mulf %132, %133 : vector<16x16xf32>
    %cst_67 = arith.constant 9.99999974E-6 : f32
    %135 = vector.broadcast %cst_67 : f32 to vector<16x16xf32>
    %136 = arith.addf %134, %135 : vector<16x16xf32>
    %137 = math.rsqrt %136 : vector<16x16xf32>
    %cst_68 = arith.constant dense<0.000000e+00> : vector<16x256xf32>
    %138 = tpu.matmul %137, %51, %cst_68 {dimension_numbers = #tpu.dot_dimension_numbers<[1], [0], [0], [1], [0, 0, 1, 1], [], []>} : vector<16x16xf32>, vector<16x256xf32>, vector<16x256xf32> -> vector<16x256xf32>
    %139 = arith.mulf %130, %138 : vector<16x256xf32>
    %c8 = arith.constant 8 : index
    %c0_69 = arith.constant 0 : index
    %c0_70 = arith.constant 0 : index
    %140 = vector.load %arg3[%c8, %c0_69, %c0_70] : memref<12x1x256xf32, #tpu.memory_space<vmem>>, vector<1x1x256xf32>
    %141 = vector.shape_cast %140 : vector<1x1x256xf32> to vector<1x256xf32>
    %142 = vector.broadcast %141 : vector<1x256xf32> to vector<16x256xf32>
    %143 = arith.mulf %139, %142 : vector<16x256xf32>
    %c9 = arith.constant 9 : index
    %c0_71 = arith.constant 0 : index
    %c0_72 = arith.constant 0 : index
    %144 = vector.load %arg3[%c9, %c0_71, %c0_72] : memref<12x1x256xf32, #tpu.memory_space<vmem>>, vector<1x1x256xf32>
    %145 = vector.shape_cast %144 : vector<1x1x256xf32> to vector<1x256xf32>
    %146 = vector.broadcast %145 : vector<1x256xf32> to vector<16x256xf32>
    %147 = arith.addf %143, %146 : vector<16x256xf32>
    %c10 = arith.constant 10 : index
    %c0_73 = arith.constant 0 : index
    %c0_74 = arith.constant 0 : index
    %148 = vector.load %arg3[%c10, %c0_73, %c0_74] : memref<12x1x256xf32, #tpu.memory_space<vmem>>, vector<1x1x256xf32>
    %149 = vector.shape_cast %148 : vector<1x1x256xf32> to vector<1x256xf32>
    %150 = vector.broadcast %149 : vector<1x256xf32> to vector<16x256xf32>
    %151 = arith.mulf %139, %150 : vector<16x256xf32>
    %c11 = arith.constant 11 : index
    %c0_75 = arith.constant 0 : index
    %c0_76 = arith.constant 0 : index
    %152 = vector.load %arg3[%c11, %c0_75, %c0_76] : memref<12x1x256xf32, #tpu.memory_space<vmem>>, vector<1x1x256xf32>
    %153 = vector.shape_cast %152 : vector<1x1x256xf32> to vector<1x256xf32>
    %154 = vector.broadcast %153 : vector<1x256xf32> to vector<16x256xf32>
    %155 = arith.addf %151, %154 : vector<16x256xf32>
    %c0_77 = arith.constant 0 : index
    %c0_78 = arith.constant 0 : index
    %c0_79 = arith.constant 0 : index
    %156 = vector.load %arg4[%c0_77, %c0_78, %c0_79] : memref<2x8x8xbf16, #tpu.memory_space<vmem>>, vector<1x8x8xbf16>
    %157 = vector.shape_cast %156 : vector<1x8x8xbf16> to vector<8x8xbf16>
    %158 = arith.truncf %103 : vector<8x256xf32> to vector<8x256xbf16>
    %cst_80 = arith.constant dense<0.000000e+00> : vector<8x256xf32>
    %159 = tpu.matmul %157, %158, %cst_80 {dimension_numbers = #tpu.dot_dimension_numbers<[1], [0], [0], [1], [0, 0, 1, 1], [], []>} : vector<8x8xbf16>, vector<8x256xbf16>, vector<8x256xf32> -> vector<8x256xf32>
    %c0_81 = arith.constant 0 : index
    %c0_82 = arith.constant 0 : index
    %c0_83 = arith.constant 0 : index
    %160 = vector.load %arg5[%c0_81, %c0_82, %c0_83] : memref<2x8x1xf32, #tpu.memory_space<vmem>>, vector<1x8x1xf32>
    %161 = vector.shape_cast %160 : vector<1x8x1xf32> to vector<8x1xf32>
    %162 = vector.broadcast %161 : vector<8x1xf32> to vector<8x256xf32>
    %163 = arith.addf %159, %162 : vector<8x256xf32>
    %c0_84 = arith.constant 0 : index
    %c128 = arith.constant 128 : index
    %164 = vector.load %arg16[%c0_84, %c128] : memref<16x512xf32, #tpu.memory_space<vmem>>, vector<8x256xf32>
    tpu.vector_store %arg16[%c0_84, %c128], %163 {strides = array<i32>} : memref<16x512xf32, #tpu.memory_space<vmem>>, vector<8x256xf32>,
    %c0_85 = arith.constant 0 : index
    %c111_86 = arith.constant 111 : index
    %165 = vector.load %arg16[%c0_85, %c111_86] : memref<16x512xf32, #tpu.memory_space<vmem>>, vector<8x256xf32>
    %c0_87 = arith.constant 0 : index
    %c0_88 = arith.constant 0 : index
    %c0_89 = arith.constant 0 : index
    %c0_90 = arith.constant 0 : index
    %166 = vector.load %arg10[%c0_87, %c0_88, %c0_89, %c0_90] : memref<3x9x8x1xf32, #tpu.memory_space<vmem>>, vector<1x1x8x1xf32>
    %167 = vector.shape_cast %166 : vector<1x1x8x1xf32> to vector<8x1xf32>
    %168 = vector.broadcast %167 : vector<8x1xf32> to vector<8x256xf32>
    %169 = arith.mulf %168, %165 : vector<8x256xf32>
    %170 = vector.broadcast %53 : vector<1x256xf32> to vector<8x256xf32>
    %171 = arith.mulf %169, %170 : vector<8x256xf32>
    %c0_91 = arith.constant 0 : index
    %c112 = arith.constant 112 : index
    %172 = vector.load %arg16[%c0_91, %c112] : memref<16x512xf32, #tpu.memory_space<vmem>>, vector<8x256xf32>
    %c0_92 = arith.constant 0 : index
    %c1_93 = arith.constant 1 : index
    %c0_94 = arith.constant 0 : index
    %c0_95 = arith.constant 0 : index
    %173 = vector.load %arg10[%c0_92, %c1_93, %c0_94, %c0_95] : memref<3x9x8x1xf32, #tpu.memory_space<vmem>>, vector<1x1x8x1xf32>
    %174 = vector.shape_cast %173 : vector<1x1x8x1xf32> to vector<8x1xf32>
    %175 = vector.broadcast %174 : vector<8x1xf32> to vector<8x256xf32>
    %176 = arith.mulf %175, %172 : vector<8x256xf32>
    %c0_96 = arith.constant 0 : index
    %c113 = arith.constant 113 : index
    %177 = vector.load %arg16[%c0_96, %c113] : memref<16x512xf32, #tpu.memory_space<vmem>>, vector<8x256xf32>
    %c0_97 = arith.constant 0 : index
    %c2_98 = arith.constant 2 : index
    %c0_99 = arith.constant 0 : index
    %c0_100 = arith.constant 0 : index
    %178 = vector.load %arg10[%c0_97, %c2_98, %c0_99, %c0_100] : memref<3x9x8x1xf32, #tpu.memory_space<vmem>>, vector<1x1x8x1xf32>
    %179 = vector.shape_cast %178 : vector<1x1x8x1xf32> to vector<8x1xf32>
    %180 = vector.broadcast %179 : vector<8x1xf32> to vector<8x256xf32>
    %181 = arith.mulf %180, %177 : vector<8x256xf32>
    %182 = vector.broadcast %55 : vector<1x256xf32> to vector<8x256xf32>
    %183 = arith.mulf %181, %182 : vector<8x256xf32>
    %c0_101 = arith.constant 0 : index
    %c127 = arith.constant 127 : index
    %184 = vector.load %arg16[%c0_101, %c127] : memref<16x512xf32, #tpu.memory_space<vmem>>, vector<8x256xf32>
    %c0_102 = arith.constant 0 : index
    %c3_103 = arith.constant 3 : index
    %c0_104 = arith.constant 0 : index
    %c0_105 = arith.constant 0 : index
    %185 = vector.load %arg10[%c0_102, %c3_103, %c0_104, %c0_105] : memref<3x9x8x1xf32, #tpu.memory_space<vmem>>, vector<1x1x8x1xf32>
    %186 = vector.shape_cast %185 : vector<1x1x8x1xf32> to vector<8x1xf32>
    %187 = vector.broadcast %186 : vector<8x1xf32> to vector<8x256xf32>
    %188 = arith.mulf %187, %184 : vector<8x256xf32>
    %189 = vector.broadcast %53 : vector<1x256xf32> to vector<8x256xf32>
    %190 = arith.mulf %188, %189 : vector<8x256xf32>
    %c0_106 = arith.constant 0 : index
    %c128_107 = arith.constant 128 : index
    %191 = vector.load %arg16[%c0_106, %c128_107] : memref<16x512xf32, #tpu.memory_space<vmem>>, vector<8x256xf32>
    %c0_108 = arith.constant 0 : index
    %c4 = arith.constant 4 : index
    %c0_109 = arith.constant 0 : index
    %c0_110 = arith.constant 0 : index
    %192 = vector.load %arg10[%c0_108, %c4, %c0_109, %c0_110] : memref<3x9x8x1xf32, #tpu.memory_space<vmem>>, vector<1x1x8x1xf32>
    %193 = vector.shape_cast %192 : vector<1x1x8x1xf32> to vector<8x1xf32>
    %194 = vector.broadcast %193 : vector<8x1xf32> to vector<8x256xf32>
    %195 = arith.mulf %194, %191 : vector<8x256xf32>
    %c0_111 = arith.constant 0 : index
    %c129 = arith.constant 129 : index
    %196 = vector.load %arg16[%c0_111, %c129] : memref<16x512xf32, #tpu.memory_space<vmem>>, vector<8x256xf32>
    %c0_112 = arith.constant 0 : index
    %c5 = arith.constant 5 : index
    %c0_113 = arith.constant 0 : index
    %c0_114 = arith.constant 0 : index
    %197 = vector.load %arg10[%c0_112, %c5, %c0_113, %c0_114] : memref<3x9x8x1xf32, #tpu.memory_space<vmem>>, vector<1x1x8x1xf32>
    %198 = vector.shape_cast %197 : vector<1x1x8x1xf32> to vector<8x1xf32>
    %199 = vector.broadcast %198 : vector<8x1xf32> to vector<8x256xf32>
    %200 = arith.mulf %199, %196 : vector<8x256xf32>
    %201 = vector.broadcast %55 : vector<1x256xf32> to vector<8x256xf32>
    %202 = arith.mulf %200, %201 : vector<8x256xf32>
    %c0_115 = arith.constant 0 : index
    %c143 = arith.constant 143 : index
    %203 = vector.load %arg16[%c0_115, %c143] : memref<16x512xf32, #tpu.memory_space<vmem>>, vector<8x256xf32>
    %c0_116 = arith.constant 0 : index
    %c6_117 = arith.constant 6 : index
    %c0_118 = arith.constant 0 : index
    %c0_119 = arith.constant 0 : index
    %204 = vector.load %arg10[%c0_116, %c6_117, %c0_118, %c0_119] : memref<3x9x8x1xf32, #tpu.memory_space<vmem>>, vector<1x1x8x1xf32>
    %205 = vector.shape_cast %204 : vector<1x1x8x1xf32> to vector<8x1xf32>
    %206 = vector.broadcast %205 : vector<8x1xf32> to vector<8x256xf32>
    %207 = arith.mulf %206, %203 : vector<8x256xf32>
    %208 = vector.broadcast %53 : vector<1x256xf32> to vector<8x256xf32>
    %209 = arith.mulf %207, %208 : vector<8x256xf32>
    %c0_120 = arith.constant 0 : index
    %c144 = arith.constant 144 : index
    %210 = vector.load %arg16[%c0_120, %c144] : memref<16x512xf32, #tpu.memory_space<vmem>>, vector<8x256xf32>
    %c0_121 = arith.constant 0 : index
    %c7_122 = arith.constant 7 : index
    %c0_123 = arith.constant 0 : index
    %c0_124 = arith.constant 0 : index
    %211 = vector.load %arg10[%c0_121, %c7_122, %c0_123, %c0_124] : memref<3x9x8x1xf32, #tpu.memory_space<vmem>>, vector<1x1x8x1xf32>
    %212 = vector.shape_cast %211 : vector<1x1x8x1xf32> to vector<8x1xf32>
    %213 = vector.broadcast %212 : vector<8x1xf32> to vector<8x256xf32>
    %214 = arith.mulf %213, %210 : vector<8x256xf32>
    %c0_125 = arith.constant 0 : index
    %c145 = arith.constant 145 : index
    %215 = vector.load %arg16[%c0_125, %c145] : memref<16x512xf32, #tpu.memory_space<vmem>>, vector<8x256xf32>
    %c0_126 = arith.constant 0 : index
    %c8_127 = arith.constant 8 : index
    %c0_128 = arith.constant 0 : index
    %c0_129 = arith.constant 0 : index
    %216 = vector.load %arg10[%c0_126, %c8_127, %c0_128, %c0_129] : memref<3x9x8x1xf32, #tpu.memory_space<vmem>>, vector<1x1x8x1xf32>
    %217 = vector.shape_cast %216 : vector<1x1x8x1xf32> to vector<8x1xf32>
    %218 = vector.broadcast %217 : vector<8x1xf32> to vector<8x256xf32>
    %219 = arith.mulf %218, %215 : vector<8x256xf32>
    %220 = vector.broadcast %55 : vector<1x256xf32> to vector<8x256xf32>
    %221 = arith.mulf %219, %220 : vector<8x256xf32>
    %222 = arith.addf %171, %176 : vector<8x256xf32>
    %223 = arith.addf %183, %190 : vector<8x256xf32>
    %224 = arith.addf %195, %202 : vector<8x256xf32>
    %225 = arith.addf %209, %214 : vector<8x256xf32>
    %226 = arith.addf %222, %223 : vector<8x256xf32>
    %227 = arith.addf %224, %225 : vector<8x256xf32>
    %228 = arith.addf %226, %227 : vector<8x256xf32>
    %229 = arith.addf %228, %221 : vector<8x256xf32>
    %c0_130 = arith.constant 0 : index
    %c0_131 = arith.constant 0 : index
    %c0_132 = arith.constant 0 : index
    %230 = vector.load %arg11[%c0_130, %c0_131, %c0_132] : memref<3x8x1xf32, #tpu.memory_space<vmem>>, vector<1x8x1xf32>
    %231 = vector.shape_cast %230 : vector<1x8x1xf32> to vector<8x1xf32>
    %232 = vector.broadcast %231 : vector<8x1xf32> to vector<8x256xf32>
    %233 = arith.addf %229, %232 : vector<8x256xf32>
    %c0_133 = arith.constant 0 : index
    %c0_134 = arith.constant 0 : index
    %c0_135 = arith.constant 0 : index
    %234 = vector.load %arg8[%c0_133, %c0_134, %c0_135] : memref<2x32x16xbf16, #tpu.memory_space<vmem>>, vector<1x32x16xbf16>
    %235 = vector.shape_cast %234 : vector<1x32x16xbf16> to vector<32x16xbf16>
    %236 = arith.truncf %147 : vector<16x256xf32> to vector<16x256xbf16>
    %cst_136 = arith.constant dense<0.000000e+00> : vector<32x256xf32>
    %237 = tpu.matmul %235, %236, %cst_136 {dimension_numbers = #tpu.dot_dimension_numbers<[1], [0], [0], [1], [0, 0, 1, 1], [], []>} : vector<32x16xbf16>, vector<16x256xbf16>, vector<32x256xf32> -> vector<32x256xf32>
    %c0_137 = arith.constant 0 : index
    %c0_138 = arith.constant 0 : index
    %c0_139 = arith.constant 0 : index
    %238 = vector.load %arg9[%c0_137, %c0_138, %c0_139] : memref<2x32x1xf32, #tpu.memory_space<vmem>>, vector<1x32x1xf32>
    %239 = vector.shape_cast %238 : vector<1x32x1xf32> to vector<32x1xf32>
    %240 = vector.broadcast %239 : vector<32x1xf32> to vector<32x256xf32>
    %241 = arith.addf %237, %240 : vector<32x256xf32>
    %242 = vector.extract_strided_slice %241 {offsets = [0, 0], sizes = [16, 256], strides = [1, 1]} : vector<32x256xf32> to vector<16x256xf32>
    %c0_140 = arith.constant 0 : index
    %c128_141 = arith.constant 128 : index
    %243 = vector.load %arg16[%c0_140, %c128_141] : memref<16x512xf32, #tpu.memory_space<vmem>>, vector<16x256xf32>
    tpu.vector_store %arg16[%c0_140, %c128_141], %242 {strides = array<i32>} : memref<16x512xf32, #tpu.memory_space<vmem>>, vector<16x256xf32>,
    %c0_142 = arith.constant 0 : index
    %c111_143 = arith.constant 111 : index
    %244 = vector.load %arg16[%c0_142, %c111_143] : memref<16x512xf32, #tpu.memory_space<vmem>>, vector<16x256xf32>
    %c0_144 = arith.constant 0 : index
    %c0_145 = arith.constant 0 : index
    %c0_146 = arith.constant 0 : index
    %c0_147 = arith.constant 0 : index
    %245 = vector.load %arg12[%c0_144, %c0_145, %c0_146, %c0_147] : memref<4x9x16x1xf32, #tpu.memory_space<vmem>>, vector<1x1x16x1xf32>
    %246 = vector.shape_cast %245 : vector<1x1x16x1xf32> to vector<16x1xf32>
    %247 = vector.broadcast %246 : vector<16x1xf32> to vector<16x256xf32>
    %248 = arith.mulf %247, %244 : vector<16x256xf32>
    %249 = vector.broadcast %53 : vector<1x256xf32> to vector<16x256xf32>
    %250 = arith.mulf %248, %249 : vector<16x256xf32>
    %c0_148 = arith.constant 0 : index
    %c112_149 = arith.constant 112 : index
    %251 = vector.load %arg16[%c0_148, %c112_149] : memref<16x512xf32, #tpu.memory_space<vmem>>, vector<16x256xf32>
    %c0_150 = arith.constant 0 : index
    %c1_151 = arith.constant 1 : index
    %c0_152 = arith.constant 0 : index
    %c0_153 = arith.constant 0 : index
    %252 = vector.load %arg12[%c0_150, %c1_151, %c0_152, %c0_153] : memref<4x9x16x1xf32, #tpu.memory_space<vmem>>, vector<1x1x16x1xf32>
    %253 = vector.shape_cast %252 : vector<1x1x16x1xf32> to vector<16x1xf32>
    %254 = vector.broadcast %253 : vector<16x1xf32> to vector<16x256xf32>
    %255 = arith.mulf %254, %251 : vector<16x256xf32>
    %c0_154 = arith.constant 0 : index
    %c113_155 = arith.constant 113 : index
    %256 = vector.load %arg16[%c0_154, %c113_155] : memref<16x512xf32, #tpu.memory_space<vmem>>, vector<16x256xf32>
    %c0_156 = arith.constant 0 : index
    %c2_157 = arith.constant 2 : index
    %c0_158 = arith.constant 0 : index
    %c0_159 = arith.constant 0 : index
    %257 = vector.load %arg12[%c0_156, %c2_157, %c0_158, %c0_159] : memref<4x9x16x1xf32, #tpu.memory_space<vmem>>, vector<1x1x16x1xf32>
    %258 = vector.shape_cast %257 : vector<1x1x16x1xf32> to vector<16x1xf32>
    %259 = vector.broadcast %258 : vector<16x1xf32> to vector<16x256xf32>
    %260 = arith.mulf %259, %256 : vector<16x256xf32>
    %261 = vector.broadcast %55 : vector<1x256xf32> to vector<16x256xf32>
    %262 = arith.mulf %260, %261 : vector<16x256xf32>
    %c0_160 = arith.constant 0 : index
    %c127_161 = arith.constant 127 : index
    %263 = vector.load %arg16[%c0_160, %c127_161] : memref<16x512xf32, #tpu.memory_space<vmem>>, vector<16x256xf32>
    %c0_162 = arith.constant 0 : index
    %c3_163 = arith.constant 3 : index
    %c0_164 = arith.constant 0 : index
    %c0_165 = arith.constant 0 : index
    %264 = vector.load %arg12[%c0_162, %c3_163, %c0_164, %c0_165] : memref<4x9x16x1xf32, #tpu.memory_space<vmem>>, vector<1x1x16x1xf32>
    %265 = vector.shape_cast %264 : vector<1x1x16x1xf32> to vector<16x1xf32>
    %266 = vector.broadcast %265 : vector<16x1xf32> to vector<16x256xf32>
    %267 = arith.mulf %266, %263 : vector<16x256xf32>
    %268 = vector.broadcast %53 : vector<1x256xf32> to vector<16x256xf32>
    %269 = arith.mulf %267, %268 : vector<16x256xf32>
    %c0_166 = arith.constant 0 : index
    %c128_167 = arith.constant 128 : index
    %270 = vector.load %arg16[%c0_166, %c128_167] : memref<16x512xf32, #tpu.memory_space<vmem>>, vector<16x256xf32>
    %c0_168 = arith.constant 0 : index
    %c4_169 = arith.constant 4 : index
    %c0_170 = arith.constant 0 : index
    %c0_171 = arith.constant 0 : index
    %271 = vector.load %arg12[%c0_168, %c4_169, %c0_170, %c0_171] : memref<4x9x16x1xf32, #tpu.memory_space<vmem>>, vector<1x1x16x1xf32>
    %272 = vector.shape_cast %271 : vector<1x1x16x1xf32> to vector<16x1xf32>
    %273 = vector.broadcast %272 : vector<16x1xf32> to vector<16x256xf32>
    %274 = arith.mulf %273, %270 : vector<16x256xf32>
    %c0_172 = arith.constant 0 : index
    %c129_173 = arith.constant 129 : index
    %275 = vector.load %arg16[%c0_172, %c129_173] : memref<16x512xf32, #tpu.memory_space<vmem>>, vector<16x256xf32>
    %c0_174 = arith.constant 0 : index
    %c5_175 = arith.constant 5 : index
    %c0_176 = arith.constant 0 : index
    %c0_177 = arith.constant 0 : index
    %276 = vector.load %arg12[%c0_174, %c5_175, %c0_176, %c0_177] : memref<4x9x16x1xf32, #tpu.memory_space<vmem>>, vector<1x1x16x1xf32>
    %277 = vector.shape_cast %276 : vector<1x1x16x1xf32> to vector<16x1xf32>
    %278 = vector.broadcast %277 : vector<16x1xf32> to vector<16x256xf32>
    %279 = arith.mulf %278, %275 : vector<16x256xf32>
    %280 = vector.broadcast %55 : vector<1x256xf32> to vector<16x256xf32>
    %281 = arith.mulf %279, %280 : vector<16x256xf32>
    %c0_178 = arith.constant 0 : index
    %c143_179 = arith.constant 143 : index
    %282 = vector.load %arg16[%c0_178, %c143_179] : memref<16x512xf32, #tpu.memory_space<vmem>>, vector<16x256xf32>
    %c0_180 = arith.constant 0 : index
    %c6_181 = arith.constant 6 : index
    %c0_182 = arith.constant 0 : index
    %c0_183 = arith.constant 0 : index
    %283 = vector.load %arg12[%c0_180, %c6_181, %c0_182, %c0_183] : memref<4x9x16x1xf32, #tpu.memory_space<vmem>>, vector<1x1x16x1xf32>
    %284 = vector.shape_cast %283 : vector<1x1x16x1xf32> to vector<16x1xf32>
    %285 = vector.broadcast %284 : vector<16x1xf32> to vector<16x256xf32>
    %286 = arith.mulf %285, %282 : vector<16x256xf32>
    %287 = vector.broadcast %53 : vector<1x256xf32> to vector<16x256xf32>
    %288 = arith.mulf %286, %287 : vector<16x256xf32>
    %c0_184 = arith.constant 0 : index
    %c144_185 = arith.constant 144 : index
    %289 = vector.load %arg16[%c0_184, %c144_185] : memref<16x512xf32, #tpu.memory_space<vmem>>, vector<16x256xf32>
    %c0_186 = arith.constant 0 : index
    %c7_187 = arith.constant 7 : index
    %c0_188 = arith.constant 0 : index
    %c0_189 = arith.constant 0 : index
    %290 = vector.load %arg12[%c0_186, %c7_187, %c0_188, %c0_189] : memref<4x9x16x1xf32, #tpu.memory_space<vmem>>, vector<1x1x16x1xf32>
    %291 = vector.shape_cast %290 : vector<1x1x16x1xf32> to vector<16x1xf32>
    %292 = vector.broadcast %291 : vector<16x1xf32> to vector<16x256xf32>
    %293 = arith.mulf %292, %289 : vector<16x256xf32>
    %c0_190 = arith.constant 0 : index
    %c145_191 = arith.constant 145 : index
    %294 = vector.load %arg16[%c0_190, %c145_191] : memref<16x512xf32, #tpu.memory_space<vmem>>, vector<16x256xf32>
    %c0_192 = arith.constant 0 : index
    %c8_193 = arith.constant 8 : index
    %c0_194 = arith.constant 0 : index
    %c0_195 = arith.constant 0 : index
    %295 = vector.load %arg12[%c0_192, %c8_193, %c0_194, %c0_195] : memref<4x9x16x1xf32, #tpu.memory_space<vmem>>, vector<1x1x16x1xf32>
    %296 = vector.shape_cast %295 : vector<1x1x16x1xf32> to vector<16x1xf32>
    %297 = vector.broadcast %296 : vector<16x1xf32> to vector<16x256xf32>
    %298 = arith.mulf %297, %294 : vector<16x256xf32>
    %299 = vector.broadcast %55 : vector<1x256xf32> to vector<16x256xf32>
    %300 = arith.mulf %298, %299 : vector<16x256xf32>
    %301 = arith.addf %250, %255 : vector<16x256xf32>
    %302 = arith.addf %262, %269 : vector<16x256xf32>
    %303 = arith.addf %274, %281 : vector<16x256xf32>
    %304 = arith.addf %288, %293 : vector<16x256xf32>
    %305 = arith.addf %301, %302 : vector<16x256xf32>
    %306 = arith.addf %303, %304 : vector<16x256xf32>
    %307 = arith.addf %305, %306 : vector<16x256xf32>
    %308 = arith.addf %307, %300 : vector<16x256xf32>
    %309 = vector.extract_strided_slice %241 {offsets = [16, 0], sizes = [16, 256], strides = [1, 1]} : vector<32x256xf32> to vector<16x256xf32>
    %c0_196 = arith.constant 0 : index
    %c128_197 = arith.constant 128 : index
    %310 = vector.load %arg16[%c0_196, %c128_197] : memref<16x512xf32, #tpu.memory_space<vmem>>, vector<16x256xf32>
    tpu.vector_store %arg16[%c0_196, %c128_197], %309 {strides = array<i32>} : memref<16x512xf32, #tpu.memory_space<vmem>>, vector<16x256xf32>,
    %c0_198 = arith.constant 0 : index
    %c111_199 = arith.constant 111 : index
    %311 = vector.load %arg16[%c0_198, %c111_199] : memref<16x512xf32, #tpu.memory_space<vmem>>, vector<16x256xf32>
    %c1_200 = arith.constant 1 : index
    %c0_201 = arith.constant 0 : index
    %c0_202 = arith.constant 0 : index
    %c0_203 = arith.constant 0 : index
    %312 = vector.load %arg12[%c1_200, %c0_201, %c0_202, %c0_203] : memref<4x9x16x1xf32, #tpu.memory_space<vmem>>, vector<1x1x16x1xf32>
    %313 = vector.shape_cast %312 : vector<1x1x16x1xf32> to vector<16x1xf32>
    %314 = vector.broadcast %313 : vector<16x1xf32> to vector<16x256xf32>
    %315 = arith.mulf %314, %311 : vector<16x256xf32>
    %316 = vector.broadcast %53 : vector<1x256xf32> to vector<16x256xf32>
    %317 = arith.mulf %315, %316 : vector<16x256xf32>
    %c0_204 = arith.constant 0 : index
    %c112_205 = arith.constant 112 : index
    %318 = vector.load %arg16[%c0_204, %c112_205] : memref<16x512xf32, #tpu.memory_space<vmem>>, vector<16x256xf32>
    %c1_206 = arith.constant 1 : index
    %c1_207 = arith.constant 1 : index
    %c0_208 = arith.constant 0 : index
    %c0_209 = arith.constant 0 : index
    %319 = vector.load %arg12[%c1_206, %c1_207, %c0_208, %c0_209] : memref<4x9x16x1xf32, #tpu.memory_space<vmem>>, vector<1x1x16x1xf32>
    %320 = vector.shape_cast %319 : vector<1x1x16x1xf32> to vector<16x1xf32>
    %321 = vector.broadcast %320 : vector<16x1xf32> to vector<16x256xf32>
    %322 = arith.mulf %321, %318 : vector<16x256xf32>
    %c0_210 = arith.constant 0 : index
    %c113_211 = arith.constant 113 : index
    %323 = vector.load %arg16[%c0_210, %c113_211] : memref<16x512xf32, #tpu.memory_space<vmem>>, vector<16x256xf32>
    %c1_212 = arith.constant 1 : index
    %c2_213 = arith.constant 2 : index
    %c0_214 = arith.constant 0 : index
    %c0_215 = arith.constant 0 : index
    %324 = vector.load %arg12[%c1_212, %c2_213, %c0_214, %c0_215] : memref<4x9x16x1xf32, #tpu.memory_space<vmem>>, vector<1x1x16x1xf32>
    %325 = vector.shape_cast %324 : vector<1x1x16x1xf32> to vector<16x1xf32>
    %326 = vector.broadcast %325 : vector<16x1xf32> to vector<16x256xf32>
    %327 = arith.mulf %326, %323 : vector<16x256xf32>
    %328 = vector.broadcast %55 : vector<1x256xf32> to vector<16x256xf32>
    %329 = arith.mulf %327, %328 : vector<16x256xf32>
    %c0_216 = arith.constant 0 : index
    %c127_217 = arith.constant 127 : index
    %330 = vector.load %arg16[%c0_216, %c127_217] : memref<16x512xf32, #tpu.memory_space<vmem>>, vector<16x256xf32>
    %c1_218 = arith.constant 1 : index
    %c3_219 = arith.constant 3 : index
    %c0_220 = arith.constant 0 : index
    %c0_221 = arith.constant 0 : index
    %331 = vector.load %arg12[%c1_218, %c3_219, %c0_220, %c0_221] : memref<4x9x16x1xf32, #tpu.memory_space<vmem>>, vector<1x1x16x1xf32>
    %332 = vector.shape_cast %331 : vector<1x1x16x1xf32> to vector<16x1xf32>
    %333 = vector.broadcast %332 : vector<16x1xf32> to vector<16x256xf32>
    %334 = arith.mulf %333, %330 : vector<16x256xf32>
    %335 = vector.broadcast %53 : vector<1x256xf32> to vector<16x256xf32>
    %336 = arith.mulf %334, %335 : vector<16x256xf32>
    %c0_222 = arith.constant 0 : index
    %c128_223 = arith.constant 128 : index
    %337 = vector.load %arg16[%c0_222, %c128_223] : memref<16x512xf32, #tpu.memory_space<vmem>>, vector<16x256xf32>
    %c1_224 = arith.constant 1 : index
    %c4_225 = arith.constant 4 : index
    %c0_226 = arith.constant 0 : index
    %c0_227 = arith.constant 0 : index
    %338 = vector.load %arg12[%c1_224, %c4_225, %c0_226, %c0_227] : memref<4x9x16x1xf32, #tpu.memory_space<vmem>>, vector<1x1x16x1xf32>
    %339 = vector.shape_cast %338 : vector<1x1x16x1xf32> to vector<16x1xf32>
    %340 = vector.broadcast %339 : vector<16x1xf32> to vector<16x256xf32>
    %341 = arith.mulf %340, %337 : vector<16x256xf32>
    %c0_228 = arith.constant 0 : index
    %c129_229 = arith.constant 129 : index
    %342 = vector.load %arg16[%c0_228, %c129_229] : memref<16x512xf32, #tpu.memory_space<vmem>>, vector<16x256xf32>
    %c1_230 = arith.constant 1 : index
    %c5_231 = arith.constant 5 : index
    %c0_232 = arith.constant 0 : index
    %c0_233 = arith.constant 0 : index
    %343 = vector.load %arg12[%c1_230, %c5_231, %c0_232, %c0_233] : memref<4x9x16x1xf32, #tpu.memory_space<vmem>>, vector<1x1x16x1xf32>
    %344 = vector.shape_cast %343 : vector<1x1x16x1xf32> to vector<16x1xf32>
    %345 = vector.broadcast %344 : vector<16x1xf32> to vector<16x256xf32>
    %346 = arith.mulf %345, %342 : vector<16x256xf32>
    %347 = vector.broadcast %55 : vector<1x256xf32> to vector<16x256xf32>
    %348 = arith.mulf %346, %347 : vector<16x256xf32>
    %c0_234 = arith.constant 0 : index
    %c143_235 = arith.constant 143 : index
    %349 = vector.load %arg16[%c0_234, %c143_235] : memref<16x512xf32, #tpu.memory_space<vmem>>, vector<16x256xf32>
    %c1_236 = arith.constant 1 : index
    %c6_237 = arith.constant 6 : index
    %c0_238 = arith.constant 0 : index
    %c0_239 = arith.constant 0 : index
    %350 = vector.load %arg12[%c1_236, %c6_237, %c0_238, %c0_239] : memref<4x9x16x1xf32, #tpu.memory_space<vmem>>, vector<1x1x16x1xf32>
    %351 = vector.shape_cast %350 : vector<1x1x16x1xf32> to vector<16x1xf32>
    %352 = vector.broadcast %351 : vector<16x1xf32> to vector<16x256xf32>
    %353 = arith.mulf %352, %349 : vector<16x256xf32>
    %354 = vector.broadcast %53 : vector<1x256xf32> to vector<16x256xf32>
    %355 = arith.mulf %353, %354 : vector<16x256xf32>
    %c0_240 = arith.constant 0 : index
    %c144_241 = arith.constant 144 : index
    %356 = vector.load %arg16[%c0_240, %c144_241] : memref<16x512xf32, #tpu.memory_space<vmem>>, vector<16x256xf32>
    %c1_242 = arith.constant 1 : index
    %c7_243 = arith.constant 7 : index
    %c0_244 = arith.constant 0 : index
    %c0_245 = arith.constant 0 : index
    %357 = vector.load %arg12[%c1_242, %c7_243, %c0_244, %c0_245] : memref<4x9x16x1xf32, #tpu.memory_space<vmem>>, vector<1x1x16x1xf32>
    %358 = vector.shape_cast %357 : vector<1x1x16x1xf32> to vector<16x1xf32>
    %359 = vector.broadcast %358 : vector<16x1xf32> to vector<16x256xf32>
    %360 = arith.mulf %359, %356 : vector<16x256xf32>
    %c0_246 = arith.constant 0 : index
    %c145_247 = arith.constant 145 : index
    %361 = vector.load %arg16[%c0_246, %c145_247] : memref<16x512xf32, #tpu.memory_space<vmem>>, vector<16x256xf32>
    %c1_248 = arith.constant 1 : index
    %c8_249 = arith.constant 8 : index
    %c0_250 = arith.constant 0 : index
    %c0_251 = arith.constant 0 : index
    %362 = vector.load %arg12[%c1_248, %c8_249, %c0_250, %c0_251] : memref<4x9x16x1xf32, #tpu.memory_space<vmem>>, vector<1x1x16x1xf32>
    %363 = vector.shape_cast %362 : vector<1x1x16x1xf32> to vector<16x1xf32>
    %364 = vector.broadcast %363 : vector<16x1xf32> to vector<16x256xf32>
    %365 = arith.mulf %364, %361 : vector<16x256xf32>
    %366 = vector.broadcast %55 : vector<1x256xf32> to vector<16x256xf32>
    %367 = arith.mulf %365, %366 : vector<16x256xf32>
    %368 = arith.addf %317, %322 : vector<16x256xf32>
    %369 = arith.addf %329, %336 : vector<16x256xf32>
    %370 = arith.addf %341, %348 : vector<16x256xf32>
    %371 = arith.addf %355, %360 : vector<16x256xf32>
    %372 = arith.addf %368, %369 : vector<16x256xf32>
    %373 = arith.addf %370, %371 : vector<16x256xf32>
    %374 = arith.addf %372, %373 : vector<16x256xf32>
    %375 = arith.addf %374, %367 : vector<16x256xf32>
    %376 = arith.addf %308, %375 : vector<16x256xf32>
    %c0_252 = arith.constant 0 : index
    %c0_253 = arith.constant 0 : index
    %c0_254 = arith.constant 0 : index
    %377 = vector.load %arg13[%c0_252, %c0_253, %c0_254] : memref<2x16x1xf32, #tpu.memory_space<vmem>>, vector<1x16x1xf32>
    %378 = vector.shape_cast %377 : vector<1x16x1xf32> to vector<16x1xf32>
    %379 = vector.broadcast %378 : vector<16x1xf32> to vector<16x256xf32>
    %380 = arith.addf %376, %379 : vector<16x256xf32>
    %c1_255 = arith.constant 1 : index
    %c0_256 = arith.constant 0 : index
    %c0_257 = arith.constant 0 : index
    %381 = vector.load %arg8[%c1_255, %c0_256, %c0_257] : memref<2x32x16xbf16, #tpu.memory_space<vmem>>, vector<1x32x16xbf16>
    %382 = vector.shape_cast %381 : vector<1x32x16xbf16> to vector<32x16xbf16>
    %383 = arith.truncf %155 : vector<16x256xf32> to vector<16x256xbf16>
    %cst_258 = arith.constant dense<0.000000e+00> : vector<32x256xf32>
    %384 = tpu.matmul %382, %383, %cst_258 {dimension_numbers = #tpu.dot_dimension_numbers<[1], [0], [0], [1], [0, 0, 1, 1], [], []>} : vector<32x16xbf16>, vector<16x256xbf16>, vector<32x256xf32> -> vector<32x256xf32>
    %c1_259 = arith.constant 1 : index
    %c0_260 = arith.constant 0 : index
    %c0_261 = arith.constant 0 : index
    %385 = vector.load %arg9[%c1_259, %c0_260, %c0_261] : memref<2x32x1xf32, #tpu.memory_space<vmem>>, vector<1x32x1xf32>
    %386 = vector.shape_cast %385 : vector<1x32x1xf32> to vector<32x1xf32>
    %387 = vector.broadcast %386 : vector<32x1xf32> to vector<32x256xf32>
    %388 = arith.addf %384, %387 : vector<32x256xf32>
    %389 = vector.extract_strided_slice %388 {offsets = [0, 0], sizes = [16, 256], strides = [1, 1]} : vector<32x256xf32> to vector<16x256xf32>
    %c0_262 = arith.constant 0 : index
    %c128_263 = arith.constant 128 : index
    %390 = vector.load %arg16[%c0_262, %c128_263] : memref<16x512xf32, #tpu.memory_space<vmem>>, vector<16x256xf32>
    tpu.vector_store %arg16[%c0_262, %c128_263], %389 {strides = array<i32>} : memref<16x512xf32, #tpu.memory_space<vmem>>, vector<16x256xf32>,
    %c0_264 = arith.constant 0 : index
    %c111_265 = arith.constant 111 : index
    %391 = vector.load %arg16[%c0_264, %c111_265] : memref<16x512xf32, #tpu.memory_space<vmem>>, vector<16x256xf32>
    %c2_266 = arith.constant 2 : index
    %c0_267 = arith.constant 0 : index
    %c0_268 = arith.constant 0 : index
    %c0_269 = arith.constant 0 : index
    %392 = vector.load %arg12[%c2_266, %c0_267, %c0_268, %c0_269] : memref<4x9x16x1xf32, #tpu.memory_space<vmem>>, vector<1x1x16x1xf32>
    %393 = vector.shape_cast %392 : vector<1x1x16x1xf32> to vector<16x1xf32>
    %394 = vector.broadcast %393 : vector<16x1xf32> to vector<16x256xf32>
    %395 = arith.mulf %394, %391 : vector<16x256xf32>
    %396 = vector.broadcast %53 : vector<1x256xf32> to vector<16x256xf32>
    %397 = arith.mulf %395, %396 : vector<16x256xf32>
    %c0_270 = arith.constant 0 : index
    %c112_271 = arith.constant 112 : index
    %398 = vector.load %arg16[%c0_270, %c112_271] : memref<16x512xf32, #tpu.memory_space<vmem>>, vector<16x256xf32>
    %c2_272 = arith.constant 2 : index
    %c1_273 = arith.constant 1 : index
    %c0_274 = arith.constant 0 : index
    %c0_275 = arith.constant 0 : index
    %399 = vector.load %arg12[%c2_272, %c1_273, %c0_274, %c0_275] : memref<4x9x16x1xf32, #tpu.memory_space<vmem>>, vector<1x1x16x1xf32>
    %400 = vector.shape_cast %399 : vector<1x1x16x1xf32> to vector<16x1xf32>
    %401 = vector.broadcast %400 : vector<16x1xf32> to vector<16x256xf32>
    %402 = arith.mulf %401, %398 : vector<16x256xf32>
    %c0_276 = arith.constant 0 : index
    %c113_277 = arith.constant 113 : index
    %403 = vector.load %arg16[%c0_276, %c113_277] : memref<16x512xf32, #tpu.memory_space<vmem>>, vector<16x256xf32>
    %c2_278 = arith.constant 2 : index
    %c2_279 = arith.constant 2 : index
    %c0_280 = arith.constant 0 : index
    %c0_281 = arith.constant 0 : index
    %404 = vector.load %arg12[%c2_278, %c2_279, %c0_280, %c0_281] : memref<4x9x16x1xf32, #tpu.memory_space<vmem>>, vector<1x1x16x1xf32>
    %405 = vector.shape_cast %404 : vector<1x1x16x1xf32> to vector<16x1xf32>
    %406 = vector.broadcast %405 : vector<16x1xf32> to vector<16x256xf32>
    %407 = arith.mulf %406, %403 : vector<16x256xf32>
    %408 = vector.broadcast %55 : vector<1x256xf32> to vector<16x256xf32>
    %409 = arith.mulf %407, %408 : vector<16x256xf32>
    %c0_282 = arith.constant 0 : index
    %c127_283 = arith.constant 127 : index
    %410 = vector.load %arg16[%c0_282, %c127_283] : memref<16x512xf32, #tpu.memory_space<vmem>>, vector<16x256xf32>
    %c2_284 = arith.constant 2 : index
    %c3_285 = arith.constant 3 : index
    %c0_286 = arith.constant 0 : index
    %c0_287 = arith.constant 0 : index
    %411 = vector.load %arg12[%c2_284, %c3_285, %c0_286, %c0_287] : memref<4x9x16x1xf32, #tpu.memory_space<vmem>>, vector<1x1x16x1xf32>
    %412 = vector.shape_cast %411 : vector<1x1x16x1xf32> to vector<16x1xf32>
    %413 = vector.broadcast %412 : vector<16x1xf32> to vector<16x256xf32>
    %414 = arith.mulf %413, %410 : vector<16x256xf32>
    %415 = vector.broadcast %53 : vector<1x256xf32> to vector<16x256xf32>
    %416 = arith.mulf %414, %415 : vector<16x256xf32>
    %c0_288 = arith.constant 0 : index
    %c128_289 = arith.constant 128 : index
    %417 = vector.load %arg16[%c0_288, %c128_289] : memref<16x512xf32, #tpu.memory_space<vmem>>, vector<16x256xf32>
    %c2_290 = arith.constant 2 : index
    %c4_291 = arith.constant 4 : index
    %c0_292 = arith.constant 0 : index
    %c0_293 = arith.constant 0 : index
    %418 = vector.load %arg12[%c2_290, %c4_291, %c0_292, %c0_293] : memref<4x9x16x1xf32, #tpu.memory_space<vmem>>, vector<1x1x16x1xf32>
    %419 = vector.shape_cast %418 : vector<1x1x16x1xf32> to vector<16x1xf32>
    %420 = vector.broadcast %419 : vector<16x1xf32> to vector<16x256xf32>
    %421 = arith.mulf %420, %417 : vector<16x256xf32>
    %c0_294 = arith.constant 0 : index
    %c129_295 = arith.constant 129 : index
    %422 = vector.load %arg16[%c0_294, %c129_295] : memref<16x512xf32, #tpu.memory_space<vmem>>, vector<16x256xf32>
    %c2_296 = arith.constant 2 : index
    %c5_297 = arith.constant 5 : index
    %c0_298 = arith.constant 0 : index
    %c0_299 = arith.constant 0 : index
    %423 = vector.load %arg12[%c2_296, %c5_297, %c0_298, %c0_299] : memref<4x9x16x1xf32, #tpu.memory_space<vmem>>, vector<1x1x16x1xf32>
    %424 = vector.shape_cast %423 : vector<1x1x16x1xf32> to vector<16x1xf32>
    %425 = vector.broadcast %424 : vector<16x1xf32> to vector<16x256xf32>
    %426 = arith.mulf %425, %422 : vector<16x256xf32>
    %427 = vector.broadcast %55 : vector<1x256xf32> to vector<16x256xf32>
    %428 = arith.mulf %426, %427 : vector<16x256xf32>
    %c0_300 = arith.constant 0 : index
    %c143_301 = arith.constant 143 : index
    %429 = vector.load %arg16[%c0_300, %c143_301] : memref<16x512xf32, #tpu.memory_space<vmem>>, vector<16x256xf32>
    %c2_302 = arith.constant 2 : index
    %c6_303 = arith.constant 6 : index
    %c0_304 = arith.constant 0 : index
    %c0_305 = arith.constant 0 : index
    %430 = vector.load %arg12[%c2_302, %c6_303, %c0_304, %c0_305] : memref<4x9x16x1xf32, #tpu.memory_space<vmem>>, vector<1x1x16x1xf32>
    %431 = vector.shape_cast %430 : vector<1x1x16x1xf32> to vector<16x1xf32>
    %432 = vector.broadcast %431 : vector<16x1xf32> to vector<16x256xf32>
    %433 = arith.mulf %432, %429 : vector<16x256xf32>
    %434 = vector.broadcast %53 : vector<1x256xf32> to vector<16x256xf32>
    %435 = arith.mulf %433, %434 : vector<16x256xf32>
    %c0_306 = arith.constant 0 : index
    %c144_307 = arith.constant 144 : index
    %436 = vector.load %arg16[%c0_306, %c144_307] : memref<16x512xf32, #tpu.memory_space<vmem>>, vector<16x256xf32>
    %c2_308 = arith.constant 2 : index
    %c7_309 = arith.constant 7 : index
    %c0_310 = arith.constant 0 : index
    %c0_311 = arith.constant 0 : index
    %437 = vector.load %arg12[%c2_308, %c7_309, %c0_310, %c0_311] : memref<4x9x16x1xf32, #tpu.memory_space<vmem>>, vector<1x1x16x1xf32>
    %438 = vector.shape_cast %437 : vector<1x1x16x1xf32> to vector<16x1xf32>
    %439 = vector.broadcast %438 : vector<16x1xf32> to vector<16x256xf32>
    %440 = arith.mulf %439, %436 : vector<16x256xf32>
    %c0_312 = arith.constant 0 : index
    %c145_313 = arith.constant 145 : index
    %441 = vector.load %arg16[%c0_312, %c145_313] : memref<16x512xf32, #tpu.memory_space<vmem>>, vector<16x256xf32>
    %c2_314 = arith.constant 2 : index
    %c8_315 = arith.constant 8 : index
    %c0_316 = arith.constant 0 : index
    %c0_317 = arith.constant 0 : index
    %442 = vector.load %arg12[%c2_314, %c8_315, %c0_316, %c0_317] : memref<4x9x16x1xf32, #tpu.memory_space<vmem>>, vector<1x1x16x1xf32>
    %443 = vector.shape_cast %442 : vector<1x1x16x1xf32> to vector<16x1xf32>
    %444 = vector.broadcast %443 : vector<16x1xf32> to vector<16x256xf32>
    %445 = arith.mulf %444, %441 : vector<16x256xf32>
    %446 = vector.broadcast %55 : vector<1x256xf32> to vector<16x256xf32>
    %447 = arith.mulf %445, %446 : vector<16x256xf32>
    %448 = arith.addf %397, %402 : vector<16x256xf32>
    %449 = arith.addf %409, %416 : vector<16x256xf32>
    %450 = arith.addf %421, %428 : vector<16x256xf32>
    %451 = arith.addf %435, %440 : vector<16x256xf32>
    %452 = arith.addf %448, %449 : vector<16x256xf32>
    %453 = arith.addf %450, %451 : vector<16x256xf32>
    %454 = arith.addf %452, %453 : vector<16x256xf32>
    %455 = arith.addf %454, %447 : vector<16x256xf32>
    %456 = vector.extract_strided_slice %388 {offsets = [16, 0], sizes = [16, 256], strides = [1, 1]} : vector<32x256xf32> to vector<16x256xf32>
    %c0_318 = arith.constant 0 : index
    %c128_319 = arith.constant 128 : index
    %457 = vector.load %arg16[%c0_318, %c128_319] : memref<16x512xf32, #tpu.memory_space<vmem>>, vector<16x256xf32>
    tpu.vector_store %arg16[%c0_318, %c128_319], %456 {strides = array<i32>} : memref<16x512xf32, #tpu.memory_space<vmem>>, vector<16x256xf32>,
    %c0_320 = arith.constant 0 : index
    %c111_321 = arith.constant 111 : index
    %458 = vector.load %arg16[%c0_320, %c111_321] : memref<16x512xf32, #tpu.memory_space<vmem>>, vector<16x256xf32>
    %c3_322 = arith.constant 3 : index
    %c0_323 = arith.constant 0 : index
    %c0_324 = arith.constant 0 : index
    %c0_325 = arith.constant 0 : index
    %459 = vector.load %arg12[%c3_322, %c0_323, %c0_324, %c0_325] : memref<4x9x16x1xf32, #tpu.memory_space<vmem>>, vector<1x1x16x1xf32>
    %460 = vector.shape_cast %459 : vector<1x1x16x1xf32> to vector<16x1xf32>
    %461 = vector.broadcast %460 : vector<16x1xf32> to vector<16x256xf32>
    %462 = arith.mulf %461, %458 : vector<16x256xf32>
    %463 = vector.broadcast %53 : vector<1x256xf32> to vector<16x256xf32>
    %464 = arith.mulf %462, %463 : vector<16x256xf32>
    %c0_326 = arith.constant 0 : index
    %c112_327 = arith.constant 112 : index
    %465 = vector.load %arg16[%c0_326, %c112_327] : memref<16x512xf32, #tpu.memory_space<vmem>>, vector<16x256xf32>
    %c3_328 = arith.constant 3 : index
    %c1_329 = arith.constant 1 : index
    %c0_330 = arith.constant 0 : index
    %c0_331 = arith.constant 0 : index
    %466 = vector.load %arg12[%c3_328, %c1_329, %c0_330, %c0_331] : memref<4x9x16x1xf32, #tpu.memory_space<vmem>>, vector<1x1x16x1xf32>
    %467 = vector.shape_cast %466 : vector<1x1x16x1xf32> to vector<16x1xf32>
    %468 = vector.broadcast %467 : vector<16x1xf32> to vector<16x256xf32>
    %469 = arith.mulf %468, %465 : vector<16x256xf32>
    %c0_332 = arith.constant 0 : index
    %c113_333 = arith.constant 113 : index
    %470 = vector.load %arg16[%c0_332, %c113_333] : memref<16x512xf32, #tpu.memory_space<vmem>>, vector<16x256xf32>
    %c3_334 = arith.constant 3 : index
    %c2_335 = arith.constant 2 : index
    %c0_336 = arith.constant 0 : index
    %c0_337 = arith.constant 0 : index
    %471 = vector.load %arg12[%c3_334, %c2_335, %c0_336, %c0_337] : memref<4x9x16x1xf32, #tpu.memory_space<vmem>>, vector<1x1x16x1xf32>
    %472 = vector.shape_cast %471 : vector<1x1x16x1xf32> to vector<16x1xf32>
    %473 = vector.broadcast %472 : vector<16x1xf32> to vector<16x256xf32>
    %474 = arith.mulf %473, %470 : vector<16x256xf32>
    %475 = vector.broadcast %55 : vector<1x256xf32> to vector<16x256xf32>
    %476 = arith.mulf %474, %475 : vector<16x256xf32>
    %c0_338 = arith.constant 0 : index
    %c127_339 = arith.constant 127 : index
    %477 = vector.load %arg16[%c0_338, %c127_339] : memref<16x512xf32, #tpu.memory_space<vmem>>, vector<16x256xf32>
    %c3_340 = arith.constant 3 : index
    %c3_341 = arith.constant 3 : index
    %c0_342 = arith.constant 0 : index
    %c0_343 = arith.constant 0 : index
    %478 = vector.load %arg12[%c3_340, %c3_341, %c0_342, %c0_343] : memref<4x9x16x1xf32, #tpu.memory_space<vmem>>, vector<1x1x16x1xf32>
    %479 = vector.shape_cast %478 : vector<1x1x16x1xf32> to vector<16x1xf32>
    %480 = vector.broadcast %479 : vector<16x1xf32> to vector<16x256xf32>
    %481 = arith.mulf %480, %477 : vector<16x256xf32>
    %482 = vector.broadcast %53 : vector<1x256xf32> to vector<16x256xf32>
    %483 = arith.mulf %481, %482 : vector<16x256xf32>
    %c0_344 = arith.constant 0 : index
    %c128_345 = arith.constant 128 : index
    %484 = vector.load %arg16[%c0_344, %c128_345] : memref<16x512xf32, #tpu.memory_space<vmem>>, vector<16x256xf32>
    %c3_346 = arith.constant 3 : index
    %c4_347 = arith.constant 4 : index
    %c0_348 = arith.constant 0 : index
    %c0_349 = arith.constant 0 : index
    %485 = vector.load %arg12[%c3_346, %c4_347, %c0_348, %c0_349] : memref<4x9x16x1xf32, #tpu.memory_space<vmem>>, vector<1x1x16x1xf32>
    %486 = vector.shape_cast %485 : vector<1x1x16x1xf32> to vector<16x1xf32>
    %487 = vector.broadcast %486 : vector<16x1xf32> to vector<16x256xf32>
    %488 = arith.mulf %487, %484 : vector<16x256xf32>
    %c0_350 = arith.constant 0 : index
    %c129_351 = arith.constant 129 : index
    %489 = vector.load %arg16[%c0_350, %c129_351] : memref<16x512xf32, #tpu.memory_space<vmem>>, vector<16x256xf32>
    %c3_352 = arith.constant 3 : index
    %c5_353 = arith.constant 5 : index
    %c0_354 = arith.constant 0 : index
    %c0_355 = arith.constant 0 : index
    %490 = vector.load %arg12[%c3_352, %c5_353, %c0_354, %c0_355] : memref<4x9x16x1xf32, #tpu.memory_space<vmem>>, vector<1x1x16x1xf32>
    %491 = vector.shape_cast %490 : vector<1x1x16x1xf32> to vector<16x1xf32>
    %492 = vector.broadcast %491 : vector<16x1xf32> to vector<16x256xf32>
    %493 = arith.mulf %492, %489 : vector<16x256xf32>
    %494 = vector.broadcast %55 : vector<1x256xf32> to vector<16x256xf32>
    %495 = arith.mulf %493, %494 : vector<16x256xf32>
    %c0_356 = arith.constant 0 : index
    %c143_357 = arith.constant 143 : index
    %496 = vector.load %arg16[%c0_356, %c143_357] : memref<16x512xf32, #tpu.memory_space<vmem>>, vector<16x256xf32>
    %c3_358 = arith.constant 3 : index
    %c6_359 = arith.constant 6 : index
    %c0_360 = arith.constant 0 : index
    %c0_361 = arith.constant 0 : index
    %497 = vector.load %arg12[%c3_358, %c6_359, %c0_360, %c0_361] : memref<4x9x16x1xf32, #tpu.memory_space<vmem>>, vector<1x1x16x1xf32>
    %498 = vector.shape_cast %497 : vector<1x1x16x1xf32> to vector<16x1xf32>
    %499 = vector.broadcast %498 : vector<16x1xf32> to vector<16x256xf32>
    %500 = arith.mulf %499, %496 : vector<16x256xf32>
    %501 = vector.broadcast %53 : vector<1x256xf32> to vector<16x256xf32>
    %502 = arith.mulf %500, %501 : vector<16x256xf32>
    %c0_362 = arith.constant 0 : index
    %c144_363 = arith.constant 144 : index
    %503 = vector.load %arg16[%c0_362, %c144_363] : memref<16x512xf32, #tpu.memory_space<vmem>>, vector<16x256xf32>
    %c3_364 = arith.constant 3 : index
    %c7_365 = arith.constant 7 : index
    %c0_366 = arith.constant 0 : index
    %c0_367 = arith.constant 0 : index
    %504 = vector.load %arg12[%c3_364, %c7_365, %c0_366, %c0_367] : memref<4x9x16x1xf32, #tpu.memory_space<vmem>>, vector<1x1x16x1xf32>
    %505 = vector.shape_cast %504 : vector<1x1x16x1xf32> to vector<16x1xf32>
    %506 = vector.broadcast %505 : vector<16x1xf32> to vector<16x256xf32>
    %507 = arith.mulf %506, %503 : vector<16x256xf32>
    %c0_368 = arith.constant 0 : index
    %c145_369 = arith.constant 145 : index
    %508 = vector.load %arg16[%c0_368, %c145_369] : memref<16x512xf32, #tpu.memory_space<vmem>>, vector<16x256xf32>
    %c3_370 = arith.constant 3 : index
    %c8_371 = arith.constant 8 : index
    %c0_372 = arith.constant 0 : index
    %c0_373 = arith.constant 0 : index
    %509 = vector.load %arg12[%c3_370, %c8_371, %c0_372, %c0_373] : memref<4x9x16x1xf32, #tpu.memory_space<vmem>>, vector<1x1x16x1xf32>
    %510 = vector.shape_cast %509 : vector<1x1x16x1xf32> to vector<16x1xf32>
    %511 = vector.broadcast %510 : vector<16x1xf32> to vector<16x256xf32>
    %512 = arith.mulf %511, %508 : vector<16x256xf32>
    %513 = vector.broadcast %55 : vector<1x256xf32> to vector<16x256xf32>
    %514 = arith.mulf %512, %513 : vector<16x256xf32>
    %515 = arith.addf %464, %469 : vector<16x256xf32>
    %516 = arith.addf %476, %483 : vector<16x256xf32>
    %517 = arith.addf %488, %495 : vector<16x256xf32>
    %518 = arith.addf %502, %507 : vector<16x256xf32>
    %519 = arith.addf %515, %516 : vector<16x256xf32>
    %520 = arith.addf %517, %518 : vector<16x256xf32>
    %521 = arith.addf %519, %520 : vector<16x256xf32>
    %522 = arith.addf %521, %514 : vector<16x256xf32>
    %523 = arith.addf %455, %522 : vector<16x256xf32>
    %c1_374 = arith.constant 1 : index
    %c0_375 = arith.constant 0 : index
    %c0_376 = arith.constant 0 : index
    %524 = vector.load %arg13[%c1_374, %c0_375, %c0_376] : memref<2x16x1xf32, #tpu.memory_space<vmem>>, vector<1x16x1xf32>
    %525 = vector.shape_cast %524 : vector<1x16x1xf32> to vector<16x1xf32>
    %526 = vector.broadcast %525 : vector<16x1xf32> to vector<16x256xf32>
    %527 = arith.addf %523, %526 : vector<16x256xf32>
    %528 = arith.truncf %233 : vector<8x256xf32> to vector<8x256xbf16>
    %529 = arith.truncf %380 : vector<16x256xf32> to vector<16x256xbf16>
    %cst_377 = arith.constant dense<0.000000e+00> : vector<8x16xf32>
    %530 = tpu.matmul %528, %529, %cst_377 {dimension_numbers = #tpu.dot_dimension_numbers<[1], [1], [0], [0], [0, 0, 1, 0], [], []>} : vector<8x256xbf16>, vector<16x256xbf16>, vector<8x16xf32> -> vector<8x16xf32>
    %cst_378 = arith.constant 0.000000e+00 : f32
    %531 = vector.broadcast %cst_378 : f32 to vector<8x16xf32>
    %532 = arith.maximumf %530, %531 : vector<8x16xf32>
    %cst_379 = arith.constant dense<0xFF800000> : vector<8xf32>
    %533 = vector.multi_reduction <maximumf>, %532, %cst_379 [1] : vector<8x16xf32> to vector<8xf32>
    %534 = vector.shape_cast %533 : vector<8xf32> to vector<8x1xf32>
    %535 = vector.broadcast %534 : vector<8x1xf32> to vector<8x16xf32>
    %536 = arith.subf %532, %535 : vector<8x16xf32>
    %537 = math.exp %536 : vector<8x16xf32>
    %cst_380 = arith.constant dense<0.000000e+00> : vector<8xf32>
    %538 = vector.multi_reduction <add>, %537, %cst_380 [1] : vector<8x16xf32> to vector<8xf32>
    %539 = vector.shape_cast %538 : vector<8xf32> to vector<8x1xf32>
    %540 = tpu.reciprocal %539 {approx = true} : vector<8x1xf32> -> vector<8x1xf32>
    %541 = vector.broadcast %540 : vector<8x1xf32> to vector<8x16xf32>
    %542 = arith.mulf %537, %541 : vector<8x16xf32>
    %543 = arith.truncf %542 : vector<8x16xf32> to vector<8x16xbf16>
    %544 = arith.truncf %527 : vector<16x256xf32> to vector<16x256xbf16>
    %cst_381 = arith.constant dense<0.000000e+00> : vector<8x256xf32>
    %545 = tpu.matmul %543, %544, %cst_381 {dimension_numbers = #tpu.dot_dimension_numbers<[1], [0], [0], [1], [0, 0, 1, 1], [], []>} : vector<8x16xbf16>, vector<16x256xbf16>, vector<8x256xf32> -> vector<8x256xf32>
    %546 = arith.addf %545, %57 : vector<8x256xf32>
    %cst_382 = arith.constant dense<0.000000e+00> : vector<8x32xf32>
    %547 = tpu.matmul %546, %15, %cst_382 {dimension_numbers = #tpu.dot_dimension_numbers<[1], [0], [0], [1], [0, 0, 1, 1], [], []>} : vector<8x256xf32>, vector<256x32xf32>, vector<8x32xf32> -> vector<8x32xf32>
    %cst_383 = arith.constant 1.250000e-01 : f32
    %548 = vector.broadcast %cst_383 : f32 to vector<8x32xf32>
    %549 = arith.mulf %547, %548 : vector<8x32xf32>
    %cst_384 = arith.constant dense<0.000000e+00> : vector<8x256xf32>
    %550 = tpu.matmul %549, %27, %cst_384 {dimension_numbers = #tpu.dot_dimension_numbers<[1], [0], [0], [1], [0, 0, 1, 1], [], []>} : vector<8x32xf32>, vector<32x256xf32>, vector<8x256xf32> -> vector<8x256xf32>
    %551 = arith.subf %546, %550 : vector<8x256xf32>
    %552 = arith.mulf %551, %551 : vector<8x256xf32>
    %cst_385 = arith.constant dense<0.000000e+00> : vector<8x32xf32>
    %553 = tpu.matmul %552, %15, %cst_385 {dimension_numbers = #tpu.dot_dimension_numbers<[1], [0], [0], [1], [0, 0, 1, 1], [], []>} : vector<8x256xf32>, vector<256x32xf32>, vector<8x32xf32> -> vector<8x32xf32>
    %cst_386 = arith.constant 1.250000e-01 : f32
    %554 = vector.broadcast %cst_386 : f32 to vector<8x32xf32>
    %555 = arith.mulf %553, %554 : vector<8x32xf32>
    %cst_387 = arith.constant 9.99999974E-6 : f32
    %556 = vector.broadcast %cst_387 : f32 to vector<8x32xf32>
    %557 = arith.addf %555, %556 : vector<8x32xf32>
    %558 = math.rsqrt %557 : vector<8x32xf32>
    %cst_388 = arith.constant dense<0.000000e+00> : vector<8x256xf32>
    %559 = tpu.matmul %558, %27, %cst_388 {dimension_numbers = #tpu.dot_dimension_numbers<[1], [0], [0], [1], [0, 0, 1, 1], [], []>} : vector<8x32xf32>, vector<32x256xf32>, vector<8x256xf32> -> vector<8x256xf32>
    %560 = arith.mulf %551, %559 : vector<8x256xf32>
    %c4_389 = arith.constant 4 : index
    %c0_390 = arith.constant 0 : index
    %c0_391 = arith.constant 0 : index
    %561 = vector.load %arg3[%c4_389, %c0_390, %c0_391] : memref<12x1x256xf32, #tpu.memory_space<vmem>>, vector<1x1x256xf32>
    %562 = vector.shape_cast %561 : vector<1x1x256xf32> to vector<1x256xf32>
    %563 = vector.broadcast %562 : vector<1x256xf32> to vector<8x256xf32>
    %564 = arith.mulf %560, %563 : vector<8x256xf32>
    %c5_392 = arith.constant 5 : index
    %c0_393 = arith.constant 0 : index
    %c0_394 = arith.constant 0 : index
    %565 = vector.load %arg3[%c5_392, %c0_393, %c0_394] : memref<12x1x256xf32, #tpu.memory_space<vmem>>, vector<1x1x256xf32>
    %566 = vector.shape_cast %565 : vector<1x1x256xf32> to vector<1x256xf32>
    %567 = vector.broadcast %566 : vector<1x256xf32> to vector<8x256xf32>
    %568 = arith.addf %564, %567 : vector<8x256xf32>
    %c0_395 = arith.constant 0 : index
    %c0_396 = arith.constant 0 : index
    %569 = vector.load %arg6[%c0_395, %c0_396] : memref<16x8xbf16, #tpu.memory_space<vmem>>, vector<16x8xbf16>
    %570 = arith.truncf %568 : vector<8x256xf32> to vector<8x256xbf16>
    %cst_397 = arith.constant dense<0.000000e+00> : vector<16x256xf32>
    %571 = tpu.matmul %569, %570, %cst_397 {dimension_numbers = #tpu.dot_dimension_numbers<[1], [0], [0], [1], [0, 0, 1, 1], [], []>} : vector<16x8xbf16>, vector<8x256xbf16>, vector<16x256xf32> -> vector<16x256xf32>
    %c0_398 = arith.constant 0 : index
    %c0_399 = arith.constant 0 : index
    %572 = vector.load %arg7[%c0_398, %c0_399] : memref<16x1xf32, #tpu.memory_space<vmem>>, vector<16x1xf32>
    %573 = vector.broadcast %572 : vector<16x1xf32> to vector<16x256xf32>
    %574 = arith.addf %571, %573 : vector<16x256xf32>
    %575 = vector.extract_strided_slice %574 {offsets = [0, 0], sizes = [8, 256], strides = [1, 1]} : vector<16x256xf32> to vector<8x256xf32>
    %c0_400 = arith.constant 0 : index
    %c128_401 = arith.constant 128 : index
    %576 = vector.load %arg16[%c0_400, %c128_401] : memref<16x512xf32, #tpu.memory_space<vmem>>, vector<8x256xf32>
    tpu.vector_store %arg16[%c0_400, %c128_401], %575 {strides = array<i32>} : memref<16x512xf32, #tpu.memory_space<vmem>>, vector<8x256xf32>,
    %c0_402 = arith.constant 0 : index
    %c111_403 = arith.constant 111 : index
    %577 = vector.load %arg16[%c0_402, %c111_403] : memref<16x512xf32, #tpu.memory_space<vmem>>, vector<8x256xf32>
    %c1_404 = arith.constant 1 : index
    %c0_405 = arith.constant 0 : index
    %c0_406 = arith.constant 0 : index
    %c0_407 = arith.constant 0 : index
    %578 = vector.load %arg10[%c1_404, %c0_405, %c0_406, %c0_407] : memref<3x9x8x1xf32, #tpu.memory_space<vmem>>, vector<1x1x8x1xf32>
    %579 = vector.shape_cast %578 : vector<1x1x8x1xf32> to vector<8x1xf32>
    %580 = vector.broadcast %579 : vector<8x1xf32> to vector<8x256xf32>
    %581 = arith.mulf %580, %577 : vector<8x256xf32>
    %582 = vector.broadcast %53 : vector<1x256xf32> to vector<8x256xf32>
    %583 = arith.mulf %581, %582 : vector<8x256xf32>
    %c0_408 = arith.constant 0 : index
    %c112_409 = arith.constant 112 : index
    %584 = vector.load %arg16[%c0_408, %c112_409] : memref<16x512xf32, #tpu.memory_space<vmem>>, vector<8x256xf32>
    %c1_410 = arith.constant 1 : index
    %c1_411 = arith.constant 1 : index
    %c0_412 = arith.constant 0 : index
    %c0_413 = arith.constant 0 : index
    %585 = vector.load %arg10[%c1_410, %c1_411, %c0_412, %c0_413] : memref<3x9x8x1xf32, #tpu.memory_space<vmem>>, vector<1x1x8x1xf32>
    %586 = vector.shape_cast %585 : vector<1x1x8x1xf32> to vector<8x1xf32>
    %587 = vector.broadcast %586 : vector<8x1xf32> to vector<8x256xf32>
    %588 = arith.mulf %587, %584 : vector<8x256xf32>
    %c0_414 = arith.constant 0 : index
    %c113_415 = arith.constant 113 : index
    %589 = vector.load %arg16[%c0_414, %c113_415] : memref<16x512xf32, #tpu.memory_space<vmem>>, vector<8x256xf32>
    %c1_416 = arith.constant 1 : index
    %c2_417 = arith.constant 2 : index
    %c0_418 = arith.constant 0 : index
    %c0_419 = arith.constant 0 : index
    %590 = vector.load %arg10[%c1_416, %c2_417, %c0_418, %c0_419] : memref<3x9x8x1xf32, #tpu.memory_space<vmem>>, vector<1x1x8x1xf32>
    %591 = vector.shape_cast %590 : vector<1x1x8x1xf32> to vector<8x1xf32>
    %592 = vector.broadcast %591 : vector<8x1xf32> to vector<8x256xf32>
    %593 = arith.mulf %592, %589 : vector<8x256xf32>
    %594 = vector.broadcast %55 : vector<1x256xf32> to vector<8x256xf32>
    %595 = arith.mulf %593, %594 : vector<8x256xf32>
    %c0_420 = arith.constant 0 : index
    %c127_421 = arith.constant 127 : index
    %596 = vector.load %arg16[%c0_420, %c127_421] : memref<16x512xf32, #tpu.memory_space<vmem>>, vector<8x256xf32>
    %c1_422 = arith.constant 1 : index
    %c3_423 = arith.constant 3 : index
    %c0_424 = arith.constant 0 : index
    %c0_425 = arith.constant 0 : index
    %597 = vector.load %arg10[%c1_422, %c3_423, %c0_424, %c0_425] : memref<3x9x8x1xf32, #tpu.memory_space<vmem>>, vector<1x1x8x1xf32>
    %598 = vector.shape_cast %597 : vector<1x1x8x1xf32> to vector<8x1xf32>
    %599 = vector.broadcast %598 : vector<8x1xf32> to vector<8x256xf32>
    %600 = arith.mulf %599, %596 : vector<8x256xf32>
    %601 = vector.broadcast %53 : vector<1x256xf32> to vector<8x256xf32>
    %602 = arith.mulf %600, %601 : vector<8x256xf32>
    %c0_426 = arith.constant 0 : index
    %c128_427 = arith.constant 128 : index
    %603 = vector.load %arg16[%c0_426, %c128_427] : memref<16x512xf32, #tpu.memory_space<vmem>>, vector<8x256xf32>
    %c1_428 = arith.constant 1 : index
    %c4_429 = arith.constant 4 : index
    %c0_430 = arith.constant 0 : index
    %c0_431 = arith.constant 0 : index
    %604 = vector.load %arg10[%c1_428, %c4_429, %c0_430, %c0_431] : memref<3x9x8x1xf32, #tpu.memory_space<vmem>>, vector<1x1x8x1xf32>
    %605 = vector.shape_cast %604 : vector<1x1x8x1xf32> to vector<8x1xf32>
    %606 = vector.broadcast %605 : vector<8x1xf32> to vector<8x256xf32>
    %607 = arith.mulf %606, %603 : vector<8x256xf32>
    %c0_432 = arith.constant 0 : index
    %c129_433 = arith.constant 129 : index
    %608 = vector.load %arg16[%c0_432, %c129_433] : memref<16x512xf32, #tpu.memory_space<vmem>>, vector<8x256xf32>
    %c1_434 = arith.constant 1 : index
    %c5_435 = arith.constant 5 : index
    %c0_436 = arith.constant 0 : index
    %c0_437 = arith.constant 0 : index
    %609 = vector.load %arg10[%c1_434, %c5_435, %c0_436, %c0_437] : memref<3x9x8x1xf32, #tpu.memory_space<vmem>>, vector<1x1x8x1xf32>
    %610 = vector.shape_cast %609 : vector<1x1x8x1xf32> to vector<8x1xf32>
    %611 = vector.broadcast %610 : vector<8x1xf32> to vector<8x256xf32>
    %612 = arith.mulf %611, %608 : vector<8x256xf32>
    %613 = vector.broadcast %55 : vector<1x256xf32> to vector<8x256xf32>
    %614 = arith.mulf %612, %613 : vector<8x256xf32>
    %c0_438 = arith.constant 0 : index
    %c143_439 = arith.constant 143 : index
    %615 = vector.load %arg16[%c0_438, %c143_439] : memref<16x512xf32, #tpu.memory_space<vmem>>, vector<8x256xf32>
    %c1_440 = arith.constant 1 : index
    %c6_441 = arith.constant 6 : index
    %c0_442 = arith.constant 0 : index
    %c0_443 = arith.constant 0 : index
    %616 = vector.load %arg10[%c1_440, %c6_441, %c0_442, %c0_443] : memref<3x9x8x1xf32, #tpu.memory_space<vmem>>, vector<1x1x8x1xf32>
    %617 = vector.shape_cast %616 : vector<1x1x8x1xf32> to vector<8x1xf32>
    %618 = vector.broadcast %617 : vector<8x1xf32> to vector<8x256xf32>
    %619 = arith.mulf %618, %615 : vector<8x256xf32>
    %620 = vector.broadcast %53 : vector<1x256xf32> to vector<8x256xf32>
    %621 = arith.mulf %619, %620 : vector<8x256xf32>
    %c0_444 = arith.constant 0 : index
    %c144_445 = arith.constant 144 : index
    %622 = vector.load %arg16[%c0_444, %c144_445] : memref<16x512xf32, #tpu.memory_space<vmem>>, vector<8x256xf32>
    %c1_446 = arith.constant 1 : index
    %c7_447 = arith.constant 7 : index
    %c0_448 = arith.constant 0 : index
    %c0_449 = arith.constant 0 : index
    %623 = vector.load %arg10[%c1_446, %c7_447, %c0_448, %c0_449] : memref<3x9x8x1xf32, #tpu.memory_space<vmem>>, vector<1x1x8x1xf32>
    %624 = vector.shape_cast %623 : vector<1x1x8x1xf32> to vector<8x1xf32>
    %625 = vector.broadcast %624 : vector<8x1xf32> to vector<8x256xf32>
    %626 = arith.mulf %625, %622 : vector<8x256xf32>
    %c0_450 = arith.constant 0 : index
    %c145_451 = arith.constant 145 : index
    %627 = vector.load %arg16[%c0_450, %c145_451] : memref<16x512xf32, #tpu.memory_space<vmem>>, vector<8x256xf32>
    %c1_452 = arith.constant 1 : index
    %c8_453 = arith.constant 8 : index
    %c0_454 = arith.constant 0 : index
    %c0_455 = arith.constant 0 : index
    %628 = vector.load %arg10[%c1_452, %c8_453, %c0_454, %c0_455] : memref<3x9x8x1xf32, #tpu.memory_space<vmem>>, vector<1x1x8x1xf32>
    %629 = vector.shape_cast %628 : vector<1x1x8x1xf32> to vector<8x1xf32>
    %630 = vector.broadcast %629 : vector<8x1xf32> to vector<8x256xf32>
    %631 = arith.mulf %630, %627 : vector<8x256xf32>
    %632 = vector.broadcast %55 : vector<1x256xf32> to vector<8x256xf32>
    %633 = arith.mulf %631, %632 : vector<8x256xf32>
    %634 = arith.addf %583, %588 : vector<8x256xf32>
    %635 = arith.addf %595, %602 : vector<8x256xf32>
    %636 = arith.addf %607, %614 : vector<8x256xf32>
    %637 = arith.addf %621, %626 : vector<8x256xf32>
    %638 = arith.addf %634, %635 : vector<8x256xf32>
    %639 = arith.addf %636, %637 : vector<8x256xf32>
    %640 = arith.addf %638, %639 : vector<8x256xf32>
    %641 = arith.addf %640, %633 : vector<8x256xf32>
    %c1_456 = arith.constant 1 : index
    %c0_457 = arith.constant 0 : index
    %c0_458 = arith.constant 0 : index
    %642 = vector.load %arg11[%c1_456, %c0_457, %c0_458] : memref<3x8x1xf32, #tpu.memory_space<vmem>>, vector<1x8x1xf32>
    %643 = vector.shape_cast %642 : vector<1x8x1xf32> to vector<8x1xf32>
    %644 = vector.broadcast %643 : vector<8x1xf32> to vector<8x256xf32>
    %645 = arith.addf %641, %644 : vector<8x256xf32>
    %646 = vector.extract_strided_slice %574 {offsets = [8, 0], sizes = [8, 256], strides = [1, 1]} : vector<16x256xf32> to vector<8x256xf32>
    %c0_459 = arith.constant 0 : index
    %c128_460 = arith.constant 128 : index
    %647 = vector.load %arg16[%c0_459, %c128_460] : memref<16x512xf32, #tpu.memory_space<vmem>>, vector<8x256xf32>
    tpu.vector_store %arg16[%c0_459, %c128_460], %646 {strides = array<i32>} : memref<16x512xf32, #tpu.memory_space<vmem>>, vector<8x256xf32>,
    %c0_461 = arith.constant 0 : index
    %c111_462 = arith.constant 111 : index
    %648 = vector.load %arg16[%c0_461, %c111_462] : memref<16x512xf32, #tpu.memory_space<vmem>>, vector<8x256xf32>
    %c2_463 = arith.constant 2 : index
    %c0_464 = arith.constant 0 : index
    %c0_465 = arith.constant 0 : index
    %c0_466 = arith.constant 0 : index
    %649 = vector.load %arg10[%c2_463, %c0_464, %c0_465, %c0_466] : memref<3x9x8x1xf32, #tpu.memory_space<vmem>>, vector<1x1x8x1xf32>
    %650 = vector.shape_cast %649 : vector<1x1x8x1xf32> to vector<8x1xf32>
    %651 = vector.broadcast %650 : vector<8x1xf32> to vector<8x256xf32>
    %652 = arith.mulf %651, %648 : vector<8x256xf32>
    %653 = vector.broadcast %53 : vector<1x256xf32> to vector<8x256xf32>
    %654 = arith.mulf %652, %653 : vector<8x256xf32>
    %c0_467 = arith.constant 0 : index
    %c112_468 = arith.constant 112 : index
    %655 = vector.load %arg16[%c0_467, %c112_468] : memref<16x512xf32, #tpu.memory_space<vmem>>, vector<8x256xf32>
    %c2_469 = arith.constant 2 : index
    %c1_470 = arith.constant 1 : index
    %c0_471 = arith.constant 0 : index
    %c0_472 = arith.constant 0 : index
    %656 = vector.load %arg10[%c2_469, %c1_470, %c0_471, %c0_472] : memref<3x9x8x1xf32, #tpu.memory_space<vmem>>, vector<1x1x8x1xf32>
    %657 = vector.shape_cast %656 : vector<1x1x8x1xf32> to vector<8x1xf32>
    %658 = vector.broadcast %657 : vector<8x1xf32> to vector<8x256xf32>
    %659 = arith.mulf %658, %655 : vector<8x256xf32>
    %c0_473 = arith.constant 0 : index
    %c113_474 = arith.constant 113 : index
    %660 = vector.load %arg16[%c0_473, %c113_474] : memref<16x512xf32, #tpu.memory_space<vmem>>, vector<8x256xf32>
    %c2_475 = arith.constant 2 : index
    %c2_476 = arith.constant 2 : index
    %c0_477 = arith.constant 0 : index
    %c0_478 = arith.constant 0 : index
    %661 = vector.load %arg10[%c2_475, %c2_476, %c0_477, %c0_478] : memref<3x9x8x1xf32, #tpu.memory_space<vmem>>, vector<1x1x8x1xf32>
    %662 = vector.shape_cast %661 : vector<1x1x8x1xf32> to vector<8x1xf32>
    %663 = vector.broadcast %662 : vector<8x1xf32> to vector<8x256xf32>
    %664 = arith.mulf %663, %660 : vector<8x256xf32>
    %665 = vector.broadcast %55 : vector<1x256xf32> to vector<8x256xf32>
    %666 = arith.mulf %664, %665 : vector<8x256xf32>
    %c0_479 = arith.constant 0 : index
    %c127_480 = arith.constant 127 : index
    %667 = vector.load %arg16[%c0_479, %c127_480] : memref<16x512xf32, #tpu.memory_space<vmem>>, vector<8x256xf32>
    %c2_481 = arith.constant 2 : index
    %c3_482 = arith.constant 3 : index
    %c0_483 = arith.constant 0 : index
    %c0_484 = arith.constant 0 : index
    %668 = vector.load %arg10[%c2_481, %c3_482, %c0_483, %c0_484] : memref<3x9x8x1xf32, #tpu.memory_space<vmem>>, vector<1x1x8x1xf32>
    %669 = vector.shape_cast %668 : vector<1x1x8x1xf32> to vector<8x1xf32>
    %670 = vector.broadcast %669 : vector<8x1xf32> to vector<8x256xf32>
    %671 = arith.mulf %670, %667 : vector<8x256xf32>
    %672 = vector.broadcast %53 : vector<1x256xf32> to vector<8x256xf32>
    %673 = arith.mulf %671, %672 : vector<8x256xf32>
    %c0_485 = arith.constant 0 : index
    %c128_486 = arith.constant 128 : index
    %674 = vector.load %arg16[%c0_485, %c128_486] : memref<16x512xf32, #tpu.memory_space<vmem>>, vector<8x256xf32>
    %c2_487 = arith.constant 2 : index
    %c4_488 = arith.constant 4 : index
    %c0_489 = arith.constant 0 : index
    %c0_490 = arith.constant 0 : index
    %675 = vector.load %arg10[%c2_487, %c4_488, %c0_489, %c0_490] : memref<3x9x8x1xf32, #tpu.memory_space<vmem>>, vector<1x1x8x1xf32>
    %676 = vector.shape_cast %675 : vector<1x1x8x1xf32> to vector<8x1xf32>
    %677 = vector.broadcast %676 : vector<8x1xf32> to vector<8x256xf32>
    %678 = arith.mulf %677, %674 : vector<8x256xf32>
    %c0_491 = arith.constant 0 : index
    %c129_492 = arith.constant 129 : index
    %679 = vector.load %arg16[%c0_491, %c129_492] : memref<16x512xf32, #tpu.memory_space<vmem>>, vector<8x256xf32>
    %c2_493 = arith.constant 2 : index
    %c5_494 = arith.constant 5 : index
    %c0_495 = arith.constant 0 : index
    %c0_496 = arith.constant 0 : index
    %680 = vector.load %arg10[%c2_493, %c5_494, %c0_495, %c0_496] : memref<3x9x8x1xf32, #tpu.memory_space<vmem>>, vector<1x1x8x1xf32>
    %681 = vector.shape_cast %680 : vector<1x1x8x1xf32> to vector<8x1xf32>
    %682 = vector.broadcast %681 : vector<8x1xf32> to vector<8x256xf32>
    %683 = arith.mulf %682, %679 : vector<8x256xf32>
    %684 = vector.broadcast %55 : vector<1x256xf32> to vector<8x256xf32>
    %685 = arith.mulf %683, %684 : vector<8x256xf32>
    %c0_497 = arith.constant 0 : index
    %c143_498 = arith.constant 143 : index
    %686 = vector.load %arg16[%c0_497, %c143_498] : memref<16x512xf32, #tpu.memory_space<vmem>>, vector<8x256xf32>
    %c2_499 = arith.constant 2 : index
    %c6_500 = arith.constant 6 : index
    %c0_501 = arith.constant 0 : index
    %c0_502 = arith.constant 0 : index
    %687 = vector.load %arg10[%c2_499, %c6_500, %c0_501, %c0_502] : memref<3x9x8x1xf32, #tpu.memory_space<vmem>>, vector<1x1x8x1xf32>
    %688 = vector.shape_cast %687 : vector<1x1x8x1xf32> to vector<8x1xf32>
    %689 = vector.broadcast %688 : vector<8x1xf32> to vector<8x256xf32>
    %690 = arith.mulf %689, %686 : vector<8x256xf32>
    %691 = vector.broadcast %53 : vector<1x256xf32> to vector<8x256xf32>
    %692 = arith.mulf %690, %691 : vector<8x256xf32>
    %c0_503 = arith.constant 0 : index
    %c144_504 = arith.constant 144 : index
    %693 = vector.load %arg16[%c0_503, %c144_504] : memref<16x512xf32, #tpu.memory_space<vmem>>, vector<8x256xf32>
    %c2_505 = arith.constant 2 : index
    %c7_506 = arith.constant 7 : index
    %c0_507 = arith.constant 0 : index
    %c0_508 = arith.constant 0 : index
    %694 = vector.load %arg10[%c2_505, %c7_506, %c0_507, %c0_508] : memref<3x9x8x1xf32, #tpu.memory_space<vmem>>, vector<1x1x8x1xf32>
    %695 = vector.shape_cast %694 : vector<1x1x8x1xf32> to vector<8x1xf32>
    %696 = vector.broadcast %695 : vector<8x1xf32> to vector<8x256xf32>
    %697 = arith.mulf %696, %693 : vector<8x256xf32>
    %c0_509 = arith.constant 0 : index
    %c145_510 = arith.constant 145 : index
    %698 = vector.load %arg16[%c0_509, %c145_510] : memref<16x512xf32, #tpu.memory_space<vmem>>, vector<8x256xf32>
    %c2_511 = arith.constant 2 : index
    %c8_512 = arith.constant 8 : index
    %c0_513 = arith.constant 0 : index
    %c0_514 = arith.constant 0 : index
    %699 = vector.load %arg10[%c2_511, %c8_512, %c0_513, %c0_514] : memref<3x9x8x1xf32, #tpu.memory_space<vmem>>, vector<1x1x8x1xf32>
    %700 = vector.shape_cast %699 : vector<1x1x8x1xf32> to vector<8x1xf32>
    %701 = vector.broadcast %700 : vector<8x1xf32> to vector<8x256xf32>
    %702 = arith.mulf %701, %698 : vector<8x256xf32>
    %703 = vector.broadcast %55 : vector<1x256xf32> to vector<8x256xf32>
    %704 = arith.mulf %702, %703 : vector<8x256xf32>
    %705 = arith.addf %654, %659 : vector<8x256xf32>
    %706 = arith.addf %666, %673 : vector<8x256xf32>
    %707 = arith.addf %678, %685 : vector<8x256xf32>
    %708 = arith.addf %692, %697 : vector<8x256xf32>
    %709 = arith.addf %705, %706 : vector<8x256xf32>
    %710 = arith.addf %707, %708 : vector<8x256xf32>
    %711 = arith.addf %709, %710 : vector<8x256xf32>
    %712 = arith.addf %711, %704 : vector<8x256xf32>
    %c2_515 = arith.constant 2 : index
    %c0_516 = arith.constant 0 : index
    %c0_517 = arith.constant 0 : index
    %713 = vector.load %arg11[%c2_515, %c0_516, %c0_517] : memref<3x8x1xf32, #tpu.memory_space<vmem>>, vector<1x8x1xf32>
    %714 = vector.shape_cast %713 : vector<1x8x1xf32> to vector<8x1xf32>
    %715 = vector.broadcast %714 : vector<8x1xf32> to vector<8x256xf32>
    %716 = arith.addf %712, %715 : vector<8x256xf32>
    %717 = arith.negf %716 : vector<8x256xf32>
    %718 = math.exp %717 : vector<8x256xf32>
    %cst_518 = arith.constant 1.000000e+00 : f32
    %719 = vector.broadcast %cst_518 : f32 to vector<8x256xf32>
    %720 = arith.addf %719, %718 : vector<8x256xf32>
    %721 = arith.divf %719, %720 : vector<8x256xf32>
    %722 = arith.mulf %645, %721 : vector<8x256xf32>
    %c1_519 = arith.constant 1 : index
    %c0_520 = arith.constant 0 : index
    %c0_521 = arith.constant 0 : index
    %723 = vector.load %arg4[%c1_519, %c0_520, %c0_521] : memref<2x8x8xbf16, #tpu.memory_space<vmem>>, vector<1x8x8xbf16>
    %724 = vector.shape_cast %723 : vector<1x8x8xbf16> to vector<8x8xbf16>
    %725 = arith.truncf %722 : vector<8x256xf32> to vector<8x256xbf16>
    %cst_522 = arith.constant dense<0.000000e+00> : vector<8x256xf32>
    %726 = tpu.matmul %724, %725, %cst_522 {dimension_numbers = #tpu.dot_dimension_numbers<[1], [0], [0], [1], [0, 0, 1, 1], [], []>} : vector<8x8xbf16>, vector<8x256xbf16>, vector<8x256xf32> -> vector<8x256xf32>
    %c1_523 = arith.constant 1 : index
    %c0_524 = arith.constant 0 : index
    %c0_525 = arith.constant 0 : index
    %727 = vector.load %arg5[%c1_523, %c0_524, %c0_525] : memref<2x8x1xf32, #tpu.memory_space<vmem>>, vector<1x8x1xf32>
    %728 = vector.shape_cast %727 : vector<1x8x1xf32> to vector<8x1xf32>
    %729 = vector.broadcast %728 : vector<8x1xf32> to vector<8x256xf32>
    %730 = arith.addf %726, %729 : vector<8x256xf32>
    %731 = arith.addf %730, %546 : vector<8x256xf32>
    %c0_526 = arith.constant 0 : index
    %c0_527 = arith.constant 0 : index
    %c0_528 = arith.constant 0 : index
    %732 = vector.load %arg15[%c0_526, %c0_527, %c0_528] : memref<1x8x256xf32, #tpu.memory_space<vmem>>, vector<1x8x256xf32>
    %733 = vector.shape_cast %732 : vector<1x8x256xf32> to vector<8x256xf32>
    %734 = vector.shape_cast %731 : vector<8x256xf32> to vector<1x8x256xf32>
    tpu.vector_store %arg15[%c0_526, %c0_527, %c0_528], %734 {strides = array<i32>} : memref<1x8x256xf32, #tpu.memory_space<vmem>>, vector<1x8x256xf32>,
    return
  }
  func.func @transform_0(%arg0: i32) -> (i32, i32, i32) {
    %c0_i32 = arith.constant 0 : i32
    %c0_i32_0 = arith.constant 0 : i32
    %c0_i32_1 = arith.constant 0 : i32
    return %arg0, %c0_i32, %c0_i32_0 : i32, i32, i32
  }
  func.func @transform_1(%arg0: i32) -> (i32, i32, i32) {
    %c0_i32 = arith.constant 0 : i32
    %c0_i32_0 = arith.constant 0 : i32
    %c0_i32_1 = arith.constant 0 : i32
    return %arg0, %c0_i32, %c0_i32_0 : i32, i32, i32
  }
  func.func @transform_2(%arg0: i32) -> (i32, i32, i32) {
    %c0_i32 = arith.constant 0 : i32
    %c0_i32_0 = arith.constant 0 : i32
    %c0_i32_1 = arith.constant 0 : i32
    %c0_i32_2 = arith.constant 0 : i32
    return %c0_i32, %c0_i32_0, %c0_i32_1 : i32, i32, i32
  }
  func.func @transform_3(%arg0: i32) -> (i32, i32, i32) {
    %c0_i32 = arith.constant 0 : i32
    %c0_i32_0 = arith.constant 0 : i32
    %c0_i32_1 = arith.constant 0 : i32
    %c0_i32_2 = arith.constant 0 : i32
    return %c0_i32, %c0_i32_0, %c0_i32_1 : i32, i32, i32
  }
  func.func @transform_4(%arg0: i32) -> (i32, i32, i32) {
    %c0_i32 = arith.constant 0 : i32
    %c0_i32_0 = arith.constant 0 : i32
    %c0_i32_1 = arith.constant 0 : i32
    %c0_i32_2 = arith.constant 0 : i32
    return %c0_i32, %c0_i32_0, %c0_i32_1 : i32, i32, i32
  }
  func.func @transform_5(%arg0: i32) -> (i32, i32) {
    %c0_i32 = arith.constant 0 : i32
    %c0_i32_0 = arith.constant 0 : i32
    %c0_i32_1 = arith.constant 0 : i32
    return %c0_i32, %c0_i32_0 : i32, i32
  }
  func.func @transform_6(%arg0: i32) -> (i32, i32) {
    %c0_i32 = arith.constant 0 : i32
    %c0_i32_0 = arith.constant 0 : i32
    %c0_i32_1 = arith.constant 0 : i32
    return %c0_i32, %c0_i32_0 : i32, i32
  }
  func.func @transform_7(%arg0: i32) -> (i32, i32, i32) {
    %c0_i32 = arith.constant 0 : i32
    %c0_i32_0 = arith.constant 0 : i32
    %c0_i32_1 = arith.constant 0 : i32
    %c0_i32_2 = arith.constant 0 : i32
    return %c0_i32, %c0_i32_0, %c0_i32_1 : i32, i32, i32
  }
  func.func @transform_8(%arg0: i32) -> (i32, i32, i32) {
    %c0_i32 = arith.constant 0 : i32
    %c0_i32_0 = arith.constant 0 : i32
    %c0_i32_1 = arith.constant 0 : i32
    %c0_i32_2 = arith.constant 0 : i32
    return %c0_i32, %c0_i32_0, %c0_i32_1 : i32, i32, i32
  }
  func.func @transform_9(%arg0: i32) -> (i32, i32, i32, i32) {
    %c0_i32 = arith.constant 0 : i32
    %c0_i32_0 = arith.constant 0 : i32
    %c0_i32_1 = arith.constant 0 : i32
    %c0_i32_2 = arith.constant 0 : i32
    %c0_i32_3 = arith.constant 0 : i32
    return %c0_i32, %c0_i32_0, %c0_i32_1, %c0_i32_2 : i32, i32, i32, i32
  }
  func.func @transform_10(%arg0: i32) -> (i32, i32, i32) {
    %c0_i32 = arith.constant 0 : i32
    %c0_i32_0 = arith.constant 0 : i32
    %c0_i32_1 = arith.constant 0 : i32
    %c0_i32_2 = arith.constant 0 : i32
    return %c0_i32, %c0_i32_0, %c0_i32_1 : i32, i32, i32
  }
  func.func @transform_11(%arg0: i32) -> (i32, i32, i32, i32) {
    %c0_i32 = arith.constant 0 : i32
    %c0_i32_0 = arith.constant 0 : i32
    %c0_i32_1 = arith.constant 0 : i32
    %c0_i32_2 = arith.constant 0 : i32
    %c0_i32_3 = arith.constant 0 : i32
    return %c0_i32, %c0_i32_0, %c0_i32_1, %c0_i32_2 : i32, i32, i32, i32
  }
  func.func @transform_12(%arg0: i32) -> (i32, i32, i32) {
    %c0_i32 = arith.constant 0 : i32
    %c0_i32_0 = arith.constant 0 : i32
    %c0_i32_1 = arith.constant 0 : i32
    %c0_i32_2 = arith.constant 0 : i32
    return %c0_i32, %c0_i32_0, %c0_i32_1 : i32, i32, i32
  }
  func.func @transform_13(%arg0: i32) -> (i32, i32, i32) {
    %c0_i32 = arith.constant 0 : i32
    %c0_i32_0 = arith.constant 0 : i32
    %c0_i32_1 = arith.constant 0 : i32
    %c0_i32_2 = arith.constant 0 : i32
    return %c0_i32, %c0_i32_0, %c0_i32_1 : i32, i32, i32
  }
  func.func @transform_14(%arg0: i32) -> (i32, i32, i32) {
    %c0_i32 = arith.constant 0 : i32
    %c0_i32_0 = arith.constant 0 : i32
    %c0_i32_1 = arith.constant 0 : i32
    return %arg0, %c0_i32, %c0_i32_0 : i32, i32, i32
  }
}

</mosaic_0001>

<bundles_post_ra>
// kernel: squeeze.22
= control target key start
LH: loop header
LB: loop body
LE: loop exit
PB: predicated region body
PF: predicated region fallthrough
CT: control target
= control target key end

     0   :  { %vm16_vm0 = vcmask 130048   ;;  %s61_s0 = inlined_call_operand.vmem [shape: f32[16,3,3], index: 0, kind: input, shape index: {}]   ;;  %s62_s1 = inlined_call_operand.vmem [shape: f32[16,9], index: 1, kind: output, shape index: {}]  }
   0x1   :  { %v29_v0 = vld [vmem:[%s61_s0 + $0x8] sm:$0xf]  ;;  %v30_v1 = vld [vmem:[%s61_s0 + $0x4] sm:$0xf]  ;;  %v13_v2 = vld [vmem:[%s61_s0] sm:$0xf] }
   0x2   :  { %8 = vst [vmem:[#allocation0 + $0x10] sm:$0xf] %v29_v0  ;;  %12 = vst [vmem:[#allocation0 + $0x8] sm:$0xf] %v30_v1 }
   0x3   :  { %14 = vst [vmem:[#allocation0] sm:$0xf] %v13_v2 }
   0x9   :  { %v19_v4 = vld [vmem:[#allocation0 + $0x8] sm:$0x7]   ;;  %v24_v5 = vld [vmem:[#allocation0 + $0x10] sm:$0x7]  }
   0xa   :  { %v15_v3 = vld [vmem:[#allocation0] sm:$0x7]   ;;  %31 = vst.msk [vmem:[%s62_s1 + $0x3] sm:$0x7] %vm16_vm0, %v19_v4   ;;  %32 = vst.msk [vmem:[%s62_s1 + $0x6] sm:$0x7] %vm16_vm0, %v24_v5  }
   0xb   :  { %17 = vst.msk [vmem:[%s62_s1] sm:$0x7] %vm16_vm0, %v15_v3  }

// kernel: tile.63
= control target key start
LH: loop header
LB: loop body
LE: loop exit
PB: predicated region body
PF: predicated region fallthrough
CT: control target
= control target key end

     0   :  { %s40_s0 = inlined_call_operand.vmem [shape: f32[8], index: 0, kind: input, shape index: {}]   ;;  %s41_s1 = inlined_call_operand.vmem [shape: f32[32,8], index: 1, kind: output, shape index: {}]  }
   0x1   :  { %v4_v0 = vld [vmem:[%s40_s0] ss:$0 sm:$0xff] }
   0x2   :  { %5 = vst [vmem:[%s41_s1] sm:$0xff] %v4_v0  ;;  %12 = vst [vmem:[%s41_s1 + $0x8] sm:$0xff] %v4_v0 }
   0x3   :  { %13 = vst [vmem:[%s41_s1 + $0x10] sm:$0xff] %v4_v0  ;;  %14 = vst [vmem:[%s41_s1 + $0x18] sm:$0xff] %v4_v0 }

// kernel: tile.108
= control target key start
LH: loop header
LB: loop body
LE: loop exit
PB: predicated region body
PF: predicated region fallthrough
CT: control target
= control target key end

     0   :  { %s7_s6 = smov 3  ;;  %s21_s9 = smov 3  ;;  %vm4_vm0 = vcmask 64512   ;;  %vm11_vm1 = vcmask 1048512   ;;  %vm18_vm2 = vcmask 982912   ;;  %vm25_vm3 = vcmask 917312   ;;  %s232_s0 = inlined_call_operand.vmem [shape: f32[32,8], index: 0, kind: input, shape index: {}]   ;;  %s233_s1 = inlined_call_operand.vmem [shape: f32[1,256], index: 1, kind: output, shape index: {}]  }
   0x1   :  { %v122_v0 = vld [vmem:[%s232_s0 + $0xf] ss:$16 sm:%s7_s6]   ;;  %s153_s10 = smov 120   ;;  %v124_v1 = vld [vmem:[%s232_s0 + $0xd] ss:$16 sm:%s21_s9]   ;;  %s14_s13 = smov 3 }
   0x2   :  { %9 = vrot.lane.b32.xlu0 %v122_v0, %s153_s10  ;;  %s154_s14 = smov 104   ;;  %v123_v2 = vld [vmem:[%s232_s0 + $0xe] ss:$16 sm:%s14_s13]   ;;  %s28_s17 = smov 3  ;;  %vm32_vm4 = vcmask 851712   ;;  %vm39_vm5 = vcmask 786112  }
   0x3   :  { %23 = vrot.lane.b32.xlu1 %v124_v1, %s154_s14  ;;  %v125_v3 = vld [vmem:[%s232_s0 + $0xc] ss:$16 sm:%s28_s17]   ;;  %s35_s20 = smov 3  ;;  %s42_s21 = smov 3  ;;  %vm46_vm6 = vcmask 720512   ;;  %vm53_vm7 = vcmask 654912  }
   0x4   :  { %s155_s22 = smov 112   ;;  %s156_s23 = smov 96   ;;  %v126_v4 = vld [vmem:[%s232_s0 + $0xb] ss:$16 sm:%s35_s20]   ;;  %v127_v5 = vld [vmem:[%s232_s0 + $0xa] ss:$16 sm:%s42_s21]  }
   0x5   :  { %s49_s28 = smov 3  ;;  %s56_s29 = smov 3  ;;  %vm60_vm8 = vcmask 589312   ;;  %vm67_vm9 = vcmask 523712   ;;  %vm74_vm10 = vcmask 458112   ;;  %vm81_vm11 = vcmask 392512  }
   0x6   :  { %16 = vrot.lane.b32.xlu0 %v123_v2, %s155_s22  ;;  %s157_s30 = smov 88   ;;  %s158_s2 = smov 80   ;;  %v128_v6 = vld [vmem:[%s232_s0 + $0x9] ss:$16 sm:%s49_s28]   ;;  %vm88_vm12 = vcmask 326912   ;;  %vm95_vm13 = vcmask 261312  }
   0x7   :  { %30 = vrot.lane.b32.xlu1 %v125_v3, %s156_s23  ;;  %v129_v7 = vld [vmem:[%s232_s0 + $0x8] ss:$16 sm:%s56_s29]   ;;  %s63_s7 = smov 3  ;;  %s70_s8 = smov 3  ;;  %vm102_vm14 = vcmask 195712   ;;  %vm109_vm15 = vcmask 130112  }
   0x8   :  { %s159_s9 = smov 72   ;;  %s160_s10 = smov 64   ;;  %v130_v8 = vld [vmem:[%s232_s0 + $0x7] ss:$16 sm:%s63_s7]   ;;  %v131_v9 = vld [vmem:[%s232_s0 + $0x6] ss:$16 sm:%s70_s8]  }
   0x9   :  { %s2_s13 = smov 3  ;;  %s77_s16 = smov 3 }
   0xa   :  { %37 = vrot.lane.b32.xlu0 %v126_v4, %s157_s30  ;;  %v3_v10 = vld [vmem:[%s232_s0] ss:$16 sm:%s2_s13]   ;;  %s84_s19 = smov 3  ;;  %s161_s20 = smov 56  }
   0xb   :  { %44 = vrot.lane.b32.xlu1 %v127_v5, %s158_s2  ;;  %5 = vst.msk [vmem:[#allocation0] ss:$8 sm:$0x3] %vm4_vm0, %v3_v10   ;;  %s162_s21 = smov 48   ;;  %v132_v11 = vld [vmem:[%s232_s0 + $0x5] ss:$16 sm:%s77_s16]  }
   0xc   :  { %v133_v12 = vld [vmem:[%s232_s0 + $0x4] ss:$16 sm:%s84_s19]   ;;  %s91_s26 = smov 3  ;;  %s98_s27 = smov 3 }
   0xd   :  { %s163_s28 = smov 40   ;;  %s164_s29 = smov 32   ;;  %v134_v13 = vld [vmem:[%s232_s0 + $0x3] ss:$16 sm:%s91_s26]   ;;  %v135_v14 = vld [vmem:[%s232_s0 + $0x2] ss:$16 sm:%s98_s27]  }
   0xe   :  { %51 = vrot.lane.b32.xlu0 %v128_v6, %s159_s9  ;;  %s105_s5 = smov 3  ;;  %s165_s6 = smov 24  }
   0xf   :  { %58 = vrot.lane.b32.xlu1 %v129_v7, %s160_s10  ;;  %s166_s7 = smov 16   ;;  %v136_v15 = vld [vmem:[%s232_s0 + $0x1] ss:$16 sm:%s105_s5]   ;;  %s167_s0 = smov 8  }
  0x12   :  { %65 = vrot.lane.b32.xlu0 %v130_v8, %s161_s20 }
  0x13   :  { %72 = vrot.lane.b32.xlu1 %v131_v9, %s162_s21 }
  0x16   :  { %79 = vrot.lane.b32.xlu0 %v132_v11, %s163_s28 }
  0x17   :  { %86 = vrot.lane.b32.xlu1 %v133_v12, %s164_s29 }
  0x1a   :  { %93 = vrot.lane.b32.xlu0 %v134_v13, %s165_s6 }
  0x1b   :  { %100 = vrot.lane.b32.xlu1 %v135_v14, %s166_s7 }
  0x1e   :  { %107 = vrot.lane.b32.xlu0 %v136_v15, %s167_s0 }
  0x74   :  { %v10_v16 = vpop.permute.xlu0 %9  }
  0x75   :  { %12 = vst.msk [vmem:[#allocation0] ss:$8 sm:$0x3] %vm11_vm1, %v10_v16   ;;  %v24_v17 = vpop.permute.xlu1 %23  }
  0x78   :  { %v17_v18 = vpop.permute.xlu0 %16  }
  0x79   :  { %19 = vst.msk [vmem:[#allocation0] ss:$8 sm:$0x3] %vm18_vm2, %v17_v18   ;;  %v31_v19 = vpop.permute.xlu1 %30  }
  0x7a   :  { %26 = vst.msk [vmem:[#allocation0] ss:$8 sm:$0x3] %vm25_vm3, %v24_v17  }
  0x7b   :  { %33 = vst.msk [vmem:[#allocation0] ss:$8 sm:$0x3] %vm32_vm4, %v31_v19  }
  0x7c   :  { %v38_v20 = vpop.permute.xlu0 %37  }
  0x7d   :  { %40 = vst.msk [vmem:[#allocation0] ss:$8 sm:$0x3] %vm39_vm5, %v38_v20   ;;  %v45_v21 = vpop.permute.xlu1 %44  }
  0x7e   :  { %47 = vst.msk [vmem:[#allocation0] ss:$8 sm:$0x3] %vm46_vm6, %v45_v21  }
  0x80   :  { %v52_v22 = vpop.permute.xlu0 %51  }
  0x81   :  { %54 = vst.msk [vmem:[#allocation0] ss:$8 sm:$0x3] %vm53_vm7, %v52_v22   ;;  %v59_v23 = vpop.permute.xlu1 %58  }
  0x82   :  { %61 = vst.msk [vmem:[#allocation0] ss:$8 sm:$0x3] %vm60_vm8, %v59_v23  }
  0x84   :  { %v66_v24 = vpop.permute.xlu0 %65  }
  0x85   :  { %68 = vst.msk [vmem:[#allocation0] ss:$8 sm:$0x3] %vm67_vm9, %v66_v24   ;;  %v73_v25 = vpop.permute.xlu1 %72  }
  0x86   :  { %75 = vst.msk [vmem:[#allocation0] ss:$8 sm:$0x3] %vm74_vm10, %v73_v25  }
  0x88   :  { %v80_v26 = vpop.permute.xlu0 %79  }
  0x89   :  { %82 = vst.msk [vmem:[#allocation0] ss:$8 sm:$0x3] %vm81_vm11, %v80_v26   ;;  %v87_v27 = vpop.permute.xlu1 %86  }
  0x8a   :  { %89 = vst.msk [vmem:[#allocation0] ss:$8 sm:$0x3] %vm88_vm12, %v87_v27  }
  0x8c   :  { %v94_v28 = vpop.permute.xlu0 %93  }
  0x8d   :  { %96 = vst.msk [vmem:[#allocation0] ss:$8 sm:$0x3] %vm95_vm13, %v94_v28   ;;  %v101_v29 = vpop.permute.xlu1 %100  }
  0x8e   :  { %103 = vst.msk [vmem:[#allocation0] ss:$8 sm:$0x3] %vm102_vm14, %v101_v29  }
  0x90   :  { %v108_v30 = vpop.permute.xlu0 %107  }
  0x91   :  { %110 = vst.msk [vmem:[#allocation0] ss:$8 sm:$0x3] %vm109_vm15, %v108_v30  }
  0x98   :  { %v114_v31 = vld [vmem:[#allocation0] sm:$0x1]  ;;  %v118_v32 = vld [vmem:[#allocation0 + $0x8] sm:$0x1] }
  0x99   :  { %116 = vst [vmem:[%s233_s1] sm:$0x1] %v114_v31  ;;  %137 = vst [vmem:[%s233_s1 + $0x1] sm:$0x1] %v118_v32 }

// kernel: tile.87
= control target key start
LH: loop header
LB: loop body
LE: loop exit
PB: predicated region body
PF: predicated region fallthrough
CT: control target
= control target key end

     0   :  { %s28_s0 = inlined_call_operand.vmem [shape: f32[16], index: 0, kind: input, shape index: {}]   ;;  %s29_s1 = inlined_call_operand.vmem [shape: f32[16,16], index: 1, kind: output, shape index: {}]  }
   0x1   :  { %v4_v0 = vld [vmem:[%s28_s0] ss:$0 sm:$0xff] }
   0x2   :  { %5 = vst [vmem:[%s29_s1] sm:$0xff] %v4_v0  ;;  %8 = vst [vmem:[%s29_s1 + $0x8] sm:$0xff] %v4_v0 }

// kernel: tile.114
= control target key start
LH: loop header
LB: loop body
LE: loop exit
PB: predicated region body
PF: predicated region fallthrough
CT: control target
= control target key end

     0   :  { %s7_s6 = smov 3  ;;  %s21_s9 = smov 3  ;;  %vm4_vm0 = vcmask 130048   ;;  %vm11_vm1 = vcmask 1048448   ;;  %vm18_vm2 = vcmask 917248   ;;  %vm25_vm3 = vcmask 786048   ;;  %s128_s0 = inlined_call_operand.vmem [shape: f32[16,16], index: 0, kind: input, shape index: {}]   ;;  %s129_s1 = inlined_call_operand.vmem [shape: f32[1,256], index: 1, kind: output, shape index: {}]  }
   0x1   :  { %v66_v0 = vld [vmem:[%s128_s0 + $0x7] ss:$8 sm:%s7_s6]   ;;  %s81_s10 = smov 112   ;;  %v68_v1 = vld [vmem:[%s128_s0 + $0x5] ss:$8 sm:%s21_s9]   ;;  %s14_s13 = smov 3 }
   0x2   :  { %9 = vrot.lane.b32.xlu0 %v66_v0, %s81_s10  ;;  %s82_s14 = smov 80   ;;  %v67_v2 = vld [vmem:[%s128_s0 + $0x6] ss:$8 sm:%s14_s13]   ;;  %s28_s17 = smov 3  ;;  %vm32_vm4 = vcmask 654848   ;;  %vm39_vm5 = vcmask 523648  }
   0x3   :  { %23 = vrot.lane.b32.xlu1 %v68_v1, %s82_s14  ;;  %v69_v3 = vld [vmem:[%s128_s0 + $0x4] ss:$8 sm:%s28_s17]   ;;  %s35_s20 = smov 3  ;;  %s42_s21 = smov 3  ;;  %vm46_vm6 = vcmask 392448   ;;  %vm53_vm7 = vcmask 261248  }
   0x4   :  { %s83_s22 = smov 96   ;;  %s84_s23 = smov 64   ;;  %v70_v4 = vld [vmem:[%s128_s0 + $0x3] ss:$8 sm:%s35_s20]   ;;  %v71_v5 = vld [vmem:[%s128_s0 + $0x2] ss:$8 sm:%s42_s21]  }
   0x5   :  { %s2_s26 = smov 3  ;;  %s49_s29 = smov 3 }
   0x6   :  { %16 = vrot.lane.b32.xlu0 %v67_v2, %s83_s22  ;;  %v3_v6 = vld [vmem:[%s128_s0] ss:$8 sm:%s2_s26]   ;;  %s85_s3 = smov 48   ;;  %s86_s4 = smov 32  }
   0x7   :  { %30 = vrot.lane.b32.xlu1 %v69_v3, %s84_s23  ;;  %5 = vst.msk [vmem:[#allocation0] ss:$8 sm:$0x3] %vm4_vm0, %v3_v6   ;;  %v72_v7 = vld [vmem:[%s128_s0 + $0x1] ss:$8 sm:%s49_s29]   ;;  %s87_s0 = smov 16  }
   0xa   :  { %37 = vrot.lane.b32.xlu0 %v70_v4, %s85_s3 }
   0xb   :  { %44 = vrot.lane.b32.xlu1 %v71_v5, %s86_s4 }
   0xe   :  { %51 = vrot.lane.b32.xlu0 %v72_v7, %s87_s0 }
  0x74   :  { %v10_v8 = vpop.permute.xlu0 %9  }
  0x75   :  { %12 = vst.msk [vmem:[#allocation0] ss:$8 sm:$0x3] %vm11_vm1, %v10_v8   ;;  %v24_v9 = vpop.permute.xlu1 %23  }
  0x78   :  { %v17_v10 = vpop.permute.xlu0 %16  }
  0x79   :  { %19 = vst.msk [vmem:[#allocation0] ss:$8 sm:$0x3] %vm18_vm2, %v17_v10   ;;  %v31_v11 = vpop.permute.xlu1 %30  }
  0x7a   :  { %26 = vst.msk [vmem:[#allocation0] ss:$8 sm:$0x3] %vm25_vm3, %v24_v9  }
  0x7b   :  { %33 = vst.msk [vmem:[#allocation0] ss:$8 sm:$0x3] %vm32_vm4, %v31_v11  }
  0x7c   :  { %v38_v12 = vpop.permute.xlu0 %37  }
  0x7d   :  { %40 = vst.msk [vmem:[#allocation0] ss:$8 sm:$0x3] %vm39_vm5, %v38_v12   ;;  %v45_v13 = vpop.permute.xlu1 %44  }
  0x7e   :  { %47 = vst.msk [vmem:[#allocation0] ss:$8 sm:$0x3] %vm46_vm6, %v45_v13  }
  0x80   :  { %v52_v14 = vpop.permute.xlu0 %51  }
  0x81   :  { %54 = vst.msk [vmem:[#allocation0] ss:$8 sm:$0x3] %vm53_vm7, %v52_v14  }
  0x88   :  { %v58_v15 = vld [vmem:[#allocation0] sm:$0x1]  ;;  %v62_v16 = vld [vmem:[#allocation0 + $0x8] sm:$0x1] }
  0x89   :  { %60 = vst [vmem:[%s129_s1] sm:$0x1] %v58_v15  ;;  %73 = vst [vmem:[%s129_s1 + $0x1] sm:$0x1] %v62_v16 }

// kernel: squeeze.19
= control target key start
LH: loop header
LB: loop body
LE: loop exit
PB: predicated region body
PF: predicated region fallthrough
CT: control target
= control target key end

     0   :  { %vm16_vm0 = vcmask 64512   ;;  %s61_s0 = inlined_call_operand.vmem [shape: f32[8,3,3], index: 0, kind: input, shape index: {}]   ;;  %s62_s1 = inlined_call_operand.vmem [shape: f32[8,9], index: 1, kind: output, shape index: {}]  }
   0x1   :  { %v29_v0 = vld [vmem:[%s61_s0 + $0x8] sm:$0xf]  ;;  %v30_v1 = vld [vmem:[%s61_s0 + $0x4] sm:$0xf]  ;;  %v13_v2 = vld [vmem:[%s61_s0] sm:$0xf] }
   0x2   :  { %8 = vst [vmem:[#allocation0 + $0x10] sm:$0xf] %v29_v0  ;;  %12 = vst [vmem:[#allocation0 + $0x8] sm:$0xf] %v30_v1 }
   0x3   :  { %14 = vst [vmem:[#allocation0] sm:$0xf] %v13_v2 }
   0x9   :  { %v19_v4 = vld [vmem:[#allocation0 + $0x8] sm:$0x7]   ;;  %v24_v5 = vld [vmem:[#allocation0 + $0x10] sm:$0x7]  }
   0xa   :  { %v15_v3 = vld [vmem:[#allocation0] sm:$0x7]   ;;  %31 = vst.msk [vmem:[%s62_s1 + $0x3] sm:$0x7] %vm16_vm0, %v19_v4   ;;  %32 = vst.msk [vmem:[%s62_s1 + $0x6] sm:$0x7] %vm16_vm0, %v24_v5  }
   0xb   :  { %17 = vst.msk [vmem:[%s62_s1] sm:$0x7] %vm16_vm0, %v15_v3  }

// kernel: craa_forward.1
= control target key start
LH: loop header
LB: loop body
LE: loop exit
PB: predicated region body
PF: predicated region fallthrough
CT: control target
= control target key end

     0   :  { %s7510_s29 = smov 0   ;;  %s11211_s0 = inlined_call_operand.vmem [shape: f32[2,8,256], index: 0, kind: input, shape index: {}]   ;;  %s11212_s1 = inlined_call_operand.vmem [shape: f32[2,16,256], index: 1, kind: input, shape index: {}]   ;;  %s11213_s2 = inlined_call_operand.vmem [shape: f32[12,1,256], index: 2, kind: input, shape index: {}]   ;;  %s11214_s3 = inlined_call_operand.vmem [shape: bf16[2,8,8], index: 3, kind: input, shape index: {}]   ;;  %s11215_s4 = inlined_call_operand.vmem [shape: f32[2,8,1], index: 4, kind: input, shape index: {}]   ;;  %s11216_s5 = inlined_call_operand.vmem [shape: bf16[16,8], index: 5, kind: input, shape index: {}]   ;;  %s11217_s6 = inlined_call_operand.vmem [shape: f32[16,1], index: 6, kind: input, shape index: {}]   ;;  %s11218_s7 = inlined_call_operand.vmem [shape: bf16[2,32,16], index: 7, kind: input, shape index: {}]   ;;  %s11219_s8 = inlined_call_operand.vmem [shape: f32[2,32,1], index: 8, kind: input, shape index: {}]   ;;  %s11220_s9 = inlined_call_operand.vmem [shape: f32[3,9,8,1], index: 9, kind: input, shape index: {}]   ;;  %s11221_s10 = inlined_call_operand.vmem [shape: f32[3,8,1], index: 10, kind: input, shape index: {}]   ;;  %s11222_s11 = inlined_call_operand.vmem [shape: f32[4,9,16,1], index: 11, kind: input, shape index: {}]   ;;  %s11223_s12 = inlined_call_operand.vmem [shape: f32[2,16,1], index: 12, kind: input, shape index: {}]   ;;  %s11224_s13 = inlined_call_operand.vmem [shape: f32[2,1,256], index: 13, kind: input, shape index: {}]   ;;  %s11225_s14 = inlined_call_operand.vmem [shape: f32[2,8,256], index: 14, kind: output, shape index: {}]  }
   0x1   :  { %11507 = sst [smem:[#allocation75_spill]] %s11211_s0 }
   0x2 LB: > { %s6051_s30 = sadd.s32 4294967295, %s7421_s29   ;;  %p6055_p0 = scmp.ge.s32.totalorder %s7421_s29, 1  ;;  %s7421_s29 = sphi %s7510_s29, %s24_s29  }
   0x3   : > { %p422_p1 = scmp.lt.s32.totalorder %s7421_s29, 3 }
   0x5   : > { %p423_p2 = pnand %p6055_p0, %p422_p1 }
   0x7   : > { %426 = sbr.rel (%p423_p2) target bundleno = 6937 (0x1b19), region = 76 }
   0xe   : > { %v495_v0 = vlaneseq  ;;  %p473_p3 = scmp.lt.s32.totalorder %s6051_s30, 1  ;;  %s11508_s0 = sld [smem:[#allocation75_spill]]  ;;  %v11509_v11 = vmov 0  ;;  %v11263_v13 = vmov 1.0|1.0   ;;  %v11512_v15 = vmov 0 }
   0xf   : > { %v11515_v18 = vmov 0  ;;  %v11518_v21 = vmov 0  ;;  %v11521_v24 = vmov 0  ;;  %v11524_v27 = vmov 0  ;;  %s7427_s24 = smov 1   ;;  %s7428_s25 = smov 15  }
  0x10   : > { %v7518_v1 = vshrl.u32 %v495_v0, 7  ;;  %v7520_v2 = vand.u32 127, %v495_v0  ;;  %s12025_s30 = smov (!%p473_p3, %s6051_s30), 1  ;;  %v11527_v30 = vmov 0  ;;  %v11530_v33 = vmov 0  ;;  %s11501_s16 = smov 113  }
  0x11   : > { %s11348_s15 = sshll.u32 %s12025_s30, 4  ;;  %v11533_v36 = vmov 0  ;;  %v11536_v39 = vmov 0  ;;  %v11540_v42 = vmov 0  ;;  %v11545_v45 = vmov 0  ;;  %s6604_s23 = sshll.u32 %s12025_s30, 5 }
  0x12   : > { %v7525_v3 = vadd.s32 128, %v7518_v1  ;;  %v7528_v4 = vadd.s32 136, %v7518_v1  ;;  %v7531_v5 = vmul.u32 8, %v7520_v2  ;;  %v7547_v7 = vadd.s32 8, %v7518_v1  ;;  %s482_s26 = scalar_lea.vmem %s11212_s1, %s6604_s23  ;;  %s11505_s23 = smov 127  }
  0x13   : > { %v7560_v9 = vadd.s32 144, %v7518_v1  ;;  %v7567_v10 = vadd.s32 152, %v7518_v1  ;;  %v7578_v12 = vadd.s32 16, %v7518_v1  ;;  %v7588_v14 = vadd.s32 24, %v7518_v1  ;;  %s11465_s22 = smov 17   ;;  %s11503_s19 = smov 114  }
  0x14   : > { %s7539_s18 = scalar_lea.vmem %s11508_s0, %s11348_s15  ;;  %vm547_vm0 = vcmp.ge.s32.totalorder %v7525_v3, %v7531_v5  ;;  %v7544_v6 = vadd.s32 8, %v7531_v5  ;;  %vm548_vm1 = vcmp.ge.s32.totalorder %v7528_v4, %v7531_v5  ;;  %vm531_vm5 = vcmp.ge.s32.totalorder %v7518_v1, %v7531_v5  ;;  %s11469_s20 = smov 111  }
  0x15   : > { %v7550_v8 = vld [vmem:[%s7539_s18 + $0x8] sm:$0xff]  ;;  %vm532_vm8 = vcmp.ge.s32.totalorder %v7547_v7, %v7531_v5  ;;  %vm549_vm12 = vcmp.ge.s32.totalorder %v7560_v9, %v7531_v5  ;;  %vm550_vm15 = vcmp.ge.s32.totalorder %v7567_v10, %v7531_v5  ;;  %v7599_v16 = vadd.s32 160, %v7518_v1  ;;  %v7885_v59 = vld [vmem:[%s7539_s18] sm:$0xff]  ;;  %s11867_s15 = smov 126   ;;  %s11891_s17 = smov 94  }
  0x16   : > { %924 = vmatprep.mubr.f32.mxu0 %v7550_v8  ;;  %vm580_vm2 = vcmp.lt.s32.totalorder %v7525_v3, %v7544_v6  ;;  %vm581_vm3 = vcmp.lt.s32.totalorder %v7528_v4, %v7544_v6  ;;  %vm564_vm6 = vcmp.lt.s32.totalorder %v7518_v1, %v7544_v6  ;;  %vm565_vm9 = vcmp.lt.s32.totalorder %v7547_v7, %v7544_v6  ;;  %s11927_s21 = smov 17   ;;  %s11982_s28 = smov 113  }
  0x17   : > { %vm612_vm4 = vmand %vm547_vm0, %vm580_vm2  ;;  %vm582_vm13 = vcmp.lt.s32.totalorder %v7560_v9, %v7544_v6  ;;  %vm583_vm0 = vcmp.lt.s32.totalorder %v7567_v10, %v7544_v6  ;;  %v7609_v17 = vadd.s32 168, %v7518_v1  ;;  %v7620_v19 = vadd.s32 32, %v7518_v1 }
  0x18   : > { %vm613_vm7 = vmand %vm548_vm1, %vm581_vm3  ;;  %vm533_vm3 = vcmp.ge.s32.totalorder %v7578_v12, %v7531_v5  ;;  %v7630_v20 = vadd.s32 40, %v7518_v1  ;;  %v7641_v22 = vadd.s32 176, %v7518_v1  ;;  %v7651_v23 = vadd.s32 184, %v7518_v1 }
  0x19   : > { %vm7573_vm10 = vmpackc.low %vm613_vm7, %vm612_vm4  ;;  %vm566_vm4 = vcmp.lt.s32.totalorder %v7578_v12, %v7544_v6  ;;  %vm567_vm7 = vcmp.lt.s32.totalorder %v7588_v14, %v7544_v6  ;;  %v7662_v25 = vadd.s32 48, %v7518_v1  ;;  %v7672_v26 = vadd.s32 56, %v7518_v1 }
  0x1a   : > { %v11510_v11 = vsel %vm7573_vm10, 4294967295, %v11509_v11  ;;  %6969 = vmatprep.subr.msk.bf16.mxu0 %vm7573_vm10, %v11263_v13  ;;  %vm596_vm11 = vmand %vm531_vm5, %vm564_vm6  ;;  %vm534_vm6 = vcmp.ge.s32.totalorder %v7588_v14, %v7531_v5  ;;  %v7683_v28 = vadd.s32 192, %v7518_v1  ;;  %v7693_v29 = vadd.s32 200, %v7518_v1 }
  0x1b   : > { %11511 = vst [vmem:[#allocation3_spill] sm:$0xff] %v11510_v11  ;;  %vm597_vm14 = vmand %vm532_vm8, %vm565_vm9  ;;  %v7704_v31 = vadd.s32 64, %v7518_v1  ;;  %v7714_v32 = vadd.s32 72, %v7518_v1  ;;  %v7725_v34 = vadd.s32 208, %v7518_v1  ;;  %v7735_v35 = vadd.s32 216, %v7518_v1 }
  0x1c   : > { %vm7594_vm1 = vmpackc.low %vm597_vm14, %vm596_vm11  ;;  %vm551_vm11 = vcmp.ge.s32.totalorder %v7599_v16, %v7531_v5  ;;  %vm552_vm14 = vcmp.ge.s32.totalorder %v7609_v17, %v7531_v5  ;;  %v7746_v37 = vadd.s32 80, %v7518_v1  ;;  %v7756_v38 = vadd.s32 88, %v7518_v1 }
  0x1d   : > { %v11513_v15 = vsel %vm7594_vm1, 4294967295, %v11512_v15  ;;  %6971 = vmatpush3.bf16.msk.msra.mxu0 %vm7594_vm1, %v11263_v13  ;;  %vm614_vm2 = vmand %vm549_vm12, %vm582_vm13  ;;  %vm584_vm12 = vcmp.lt.s32.totalorder %v7599_v16, %v7544_v6  ;;  %v7767_v40 = vadd.s32 224, %v7518_v1  ;;  %v7777_v41 = vadd.s32 232, %v7518_v1 }
  0x1e   : > { %11514 = vst [vmem:[#allocation4_spill] sm:$0xff] %v11513_v15  ;;  %vm615_vm5 = vmand %vm550_vm15, %vm583_vm0  ;;  %vm585_vm15 = vcmp.lt.s32.totalorder %v7609_v17, %v7544_v6  ;;  %v7788_v43 = vadd.s32 96, %v7518_v1  ;;  %v7798_v44 = vadd.s32 104, %v7518_v1  ;;  %v7809_v46 = vadd.s32 240, %v7518_v1 }
  0x1f   : > { %vm7615_vm8 = vmpackc.low %vm615_vm5, %vm614_vm2  ;;  %11539 = vst [vmem:[#allocation13_spill] sm:$0xff] %v7777_v41  ;;  %v7819_v47 = vadd.s32 248, %v7518_v1  ;;  %v661_v48 = vmul.u32 8, %v7518_v1  ;;  %v11550_v49 = vmov 0  ;;  %v7831_v50 = vadd.s32 112, %v7518_v1 }
  0x20   : > { %v11516_v18 = vsel %vm7615_vm8, 4294967295, %v11515_v18  ;;  %6973 = vmatprep.subr.msk.bf16.mxu0 %vm7615_vm8, %v11263_v13  ;;  %vm598_vm9 = vmand %vm533_vm3, %vm566_vm4  ;;  %vm535_vm3 = vcmp.ge.s32.totalorder %v7620_v19, %v7531_v5  ;;  %vm568_vm4 = vcmp.lt.s32.totalorder %v7620_v19, %v7544_v6  ;;  %11543 = vst [vmem:[#allocation15_spill] sm:$0xff] %v7788_v43  ;;  %v662_v51 = vmul.u32 8, %v7547_v7 }
  0x21   : > { %11517 = vst [vmem:[#allocation5_spill] sm:$0xff] %v11516_v18  ;;  %vm599_vm13 = vmand %vm534_vm6, %vm567_vm7  ;;  %vm536_vm6 = vcmp.ge.s32.totalorder %v7630_v20, %v7531_v5  ;;  %vm569_vm7 = vcmp.lt.s32.totalorder %v7630_v20, %v7544_v6  ;;  %v7842_v52 = vadd.s32 120, %v7518_v1  ;;  %v11555_v53 = vmov 0 }
  0x22   : > { %vm7636_vm0 = vmpackc.low %vm599_vm13, %vm598_vm9  ;;  %vm586_vm13 = vcmp.lt.s32.totalorder %v7641_v22, %v7544_v6  ;;  %11544 = vst [vmem:[#allocation16_spill] sm:$0xff] %v7798_v44  ;;  %v7853_v54 = vadd.s32 128, %v7520_v2  ;;  %v673_v55 = vadd.s32 8, %v661_v48  ;;  %v674_v56 = vadd.s32 8, %v662_v51 }
  0x23   : > { %v11519_v21 = vsel %vm7636_vm0, 4294967295, %v11518_v21  ;;  %6975 = vmatpush3.bf16.msk.msra.mxu0 %vm7636_vm0, %v11263_v13  ;;  %vm616_vm2 = vmand %vm551_vm11, %vm584_vm12  ;;  %vm553_vm12 = vcmp.ge.s32.totalorder %v7641_v22, %v7531_v5  ;;  %11548 = vst [vmem:[#allocation18_spill] sm:$0xff] %v7809_v46  ;;  %v11559_v57 = vmov 0  ;;  %v11562_v58 = vmov 0 }
  0x24   : > { %11520 = vst [vmem:[#allocation6_spill] sm:$0xff] %v11519_v21  ;;  %vm617_vm5 = vmand %vm552_vm14, %vm585_vm15  ;;  %vm554_vm15 = vcmp.ge.s32.totalorder %v7651_v23, %v7531_v5  ;;  %vm680_vm0 = vcmp.lt.s32.totalorder %v7853_v54, %v674_v56  ;;  %v11565_v60 = vmov 0  ;;  %v11568_v61 = vmov 0 }
  0x25   : > { %vm7657_vm9 = vmpackc.low %vm617_vm5, %vm616_vm2  ;;  %vm587_vm2 = vcmp.lt.s32.totalorder %v7651_v23, %v7544_v6  ;;  %11549 = vst [vmem:[#allocation19_spill] sm:$0xff] %v7819_v47  ;;  %v663_v62 = vmul.u32 8, %v7578_v12  ;;  %v664_v63 = vmul.u32 8, %v7588_v14 }
  0x26   : > { %v11522_v24 = vsel %vm7657_vm9, 4294967295, %v11521_v24  ;;  %6977 = vmatprep.subr.msk.bf16.mxu0 %vm7657_vm9, %v11263_v13  ;;  %vm600_vm11 = vmand %vm535_vm3, %vm568_vm4  ;;  %vm537_vm4 = vcmp.ge.s32.totalorder %v7662_v25, %v7531_v5  ;;  %11553 = vst [vmem:[#allocation21_spill] sm:$0xff] %v7831_v50 }
  0x27   : > { %11523 = vst [vmem:[#allocation7_spill] sm:$0xff] %v11522_v24  ;;  %vm601_vm14 = vmand %vm536_vm6, %vm569_vm7  ;;  %vm570_vm6 = vcmp.lt.s32.totalorder %v7662_v25, %v7544_v6  ;;  %v675_v0 = vadd.s32 8, %v663_v62 }
  0x28   : > { %vm7678_vm5 = vmpackc.low %vm601_vm14, %vm600_vm11  ;;  %vm538_vm11 = vcmp.ge.s32.totalorder %v7672_v26, %v7531_v5  ;;  %vm571_vm14 = vcmp.lt.s32.totalorder %v7672_v26, %v7544_v6  ;;  %11554 = vst [vmem:[#allocation22_spill] sm:$0xff] %v7842_v52 }
  0x29   : > { %v11525_v27 = vsel %vm7678_vm5, 4294967295, %v11524_v27  ;;  %6979 = vmatpush3.bf16.msk.msra.mxu0 %vm7678_vm5, %v11263_v13  ;;  %vm618_vm3 = vmand %vm553_vm12, %vm586_vm13  ;;  %vm555_vm13 = vcmp.ge.s32.totalorder %v7683_v28, %v7531_v5  ;;  %11558 = vst [vmem:[#allocation24_spill] sm:$0xff] %v7853_v54 }
  0x2a   : > { %11526 = vst [vmem:[#allocation8_spill] sm:$0xff] %v11525_v27  ;;  %vm619_vm7 = vmand %vm554_vm15, %vm587_vm2  ;;  %vm588_vm15 = vcmp.lt.s32.totalorder %v7683_v28, %v7544_v6 }
  0x2b   : > { %vm7699_vm9 = vmpackc.low %vm619_vm7, %vm618_vm3  ;;  %vm556_vm3 = vcmp.ge.s32.totalorder %v7693_v29, %v7531_v5  ;;  %vm589_vm7 = vcmp.lt.s32.totalorder %v7693_v29, %v7544_v6 }
  0x2c   : > { %v11528_v30 = vsel %vm7699_vm9, 4294967295, %v11527_v30  ;;  %6981 = vmatprep.subr.msk.bf16.mxu0 %vm7699_vm9, %v11263_v13  ;;  %vm602_vm12 = vmand %vm537_vm4, %vm570_vm6  ;;  %vm539_vm6 = vcmp.ge.s32.totalorder %v7704_v31, %v7531_v5 }
  0x2d   : > { %11529 = vst [vmem:[#allocation9_spill] sm:$0xff] %v11528_v30  ;;  %vm603_vm2 = vmand %vm538_vm11, %vm571_vm14  ;;  %vm572_vm11 = vcmp.lt.s32.totalorder %v7704_v31, %v7544_v6 }
  0x2e   : > { %vm7720_vm5 = vmpackc.low %vm603_vm2, %vm602_vm12  ;;  %vm540_vm12 = vcmp.ge.s32.totalorder %v7714_v32, %v7531_v5  ;;  %vm573_vm2 = vcmp.lt.s32.totalorder %v7714_v32, %v7544_v6 }
  0x2f   : > { %v11531_v33 = vsel %vm7720_vm5, 4294967295, %v11530_v33  ;;  %6983 = vmatpush3.bf16.msk.msra.mxu0 %vm7720_vm5, %v11263_v13  ;;  %vm620_vm4 = vmand %vm555_vm13, %vm588_vm15  ;;  %vm557_vm15 = vcmp.ge.s32.totalorder %v7725_v34, %v7531_v5 }
  0x30   : > { %11532 = vst [vmem:[#allocation10_spill] sm:$0xff] %v11531_v33  ;;  %vm621_vm14 = vmand %vm556_vm3, %vm589_vm7  ;;  %vm590_vm3 = vcmp.lt.s32.totalorder %v7725_v34, %v7544_v6 }
  0x31   : > { %vm7741_vm9 = vmpackc.low %vm621_vm14, %vm620_vm4  ;;  %vm558_vm4 = vcmp.ge.s32.totalorder %v7735_v35, %v7531_v5  ;;  %vm591_vm14 = vcmp.lt.s32.totalorder %v7735_v35, %v7544_v6 }
  0x32   : > { %v11534_v36 = vsel %vm7741_vm9, 4294967295, %v11533_v36  ;;  %6985 = vmatprep.subr.msk.bf16.mxu0 %vm7741_vm9, %v11263_v13  ;;  %vm604_vm13 = vmand %vm539_vm6, %vm572_vm11  ;;  %vm541_vm11 = vcmp.ge.s32.totalorder %v7746_v37, %v7531_v5 }
  0x33   : > { %11535 = vst [vmem:[#allocation11_spill] sm:$0xff] %v11534_v36  ;;  %vm605_vm7 = vmand %vm540_vm12, %vm573_vm2  ;;  %vm574_vm12 = vcmp.lt.s32.totalorder %v7746_v37, %v7544_v6 }
  0x34   : > { %vm7762_vm5 = vmpackc.low %vm605_vm7, %vm604_vm13  ;;  %vm542_vm13 = vcmp.ge.s32.totalorder %v7756_v38, %v7531_v5  ;;  %vm575_vm7 = vcmp.lt.s32.totalorder %v7756_v38, %v7544_v6 }
  0x35   : > { %v11537_v39 = vsel %vm7762_vm5, 4294967295, %v11536_v39  ;;  %6987 = vmatpush3.bf16.msk.msra.mxu0 %vm7762_vm5, %v11263_v13  ;;  %vm622_vm6 = vmand %vm557_vm15, %vm590_vm3  ;;  %vm559_vm3 = vcmp.ge.s32.totalorder %v7767_v40, %v7531_v5 }
  0x36   : > { %11538 = vst [vmem:[#allocation12_spill] sm:$0xff] %v11537_v39  ;;  %vm623_vm2 = vmand %vm558_vm4, %vm591_vm14  ;;  %vm592_vm4 = vcmp.lt.s32.totalorder %v7767_v40, %v7544_v6 }
  0x37   : > { %vm7783_vm9 = vmpackc.low %vm623_vm2, %vm622_vm6  ;;  %vm560_vm6 = vcmp.ge.s32.totalorder %v7777_v41, %v7531_v5  ;;  %vm593_vm2 = vcmp.lt.s32.totalorder %v7777_v41, %v7544_v6  ;;  %v11600_v41 = vmov 0.0  }
  0x38   : > { %v11541_v42 = vsel %vm7783_vm9, 4294967295, %v11540_v42  ;;  %6989 = vmatprep.subr.msk.bf16.mxu0 %vm7783_vm9, %v11263_v13  ;;  %vm606_vm15 = vmand %vm541_vm11, %vm574_vm12  ;;  %vm543_vm12 = vcmp.ge.s32.totalorder %v7788_v43, %v7531_v5 }
  0x39   : > { %11542 = vst [vmem:[#allocation14_spill] sm:$0xff] %v11541_v42  ;;  %vm607_vm14 = vmand %vm542_vm13, %vm575_vm7  ;;  %vm576_vm13 = vcmp.lt.s32.totalorder %v7788_v43, %v7544_v6  ;;  %v11598_v43 = vmov 1.0|1.0  }
  0x3a   : > { %vm7804_vm5 = vmpackc.low %vm607_vm14, %vm606_vm15  ;;  %vm544_vm15 = vcmp.ge.s32.totalorder %v7798_v44, %v7531_v5  ;;  %vm577_vm14 = vcmp.lt.s32.totalorder %v7798_v44, %v7544_v6 }
  0x3b   : > { %v11546_v45 = vsel %vm7804_vm5, 4294967295, %v11545_v45  ;;  %6991 = vmatpush3.bf16.msk.msra.mxu0 %vm7804_vm5, %v11263_v13  ;;  %vm624_vm11 = vmand %vm559_vm3, %vm592_vm4  ;;  %vm561_vm4 = vcmp.ge.s32.totalorder %v7809_v46, %v7531_v5 }
  0x3c   : > { %11547 = vst [vmem:[#allocation17_spill] sm:$0xff] %v11546_v45  ;;  %vm625_vm7 = vmand %vm560_vm6, %vm593_vm2  ;;  %vm594_vm6 = vcmp.lt.s32.totalorder %v7809_v46, %v7544_v6 }
  0x3d   : > { %vm7826_vm5 = vmpackc.low %vm625_vm7, %vm624_vm11  ;;  %vm562_vm11 = vcmp.ge.s32.totalorder %v7819_v47, %v7531_v5  ;;  %vm595_vm7 = vcmp.lt.s32.totalorder %v7819_v47, %v7544_v6 }
  0x3e   : > { %v11551_v49 = vsel %vm7826_vm5, 4294967295, %v11550_v49  ;;  %6993 = vmatprep.subr.msk.bf16.mxu0 %vm7826_vm5, %v11263_v13  ;;  %vm608_vm3 = vmand %vm543_vm12, %vm576_vm13  ;;  %vm545_vm13 = vcmp.ge.s32.totalorder %v7831_v50, %v7531_v5 }
  0x3f   : > { %11552 = vst [vmem:[#allocation20_spill] sm:$0xff] %v11551_v49  ;;  %vm609_vm2 = vmand %vm544_vm15, %vm577_vm14  ;;  %vm578_vm15 = vcmp.lt.s32.totalorder %v7831_v50, %v7544_v6 }
  0x40   : > { %vm7848_vm9 = vmpackc.low %vm609_vm2, %vm608_vm3  ;;  %vm546_vm3 = vcmp.ge.s32.totalorder %v7842_v52, %v7531_v5  ;;  %vm579_vm2 = vcmp.lt.s32.totalorder %v7842_v52, %v7544_v6  ;;  %v676_v5 = vadd.s32 8, %v664_v63  ;;  %v11571_v6 = vmov 0 }
  0x41   : > { %v11556_v53 = vsel %vm7848_vm9, 4294967295, %v11555_v53  ;;  %6995 = vmatpush3.bf16.msk.msra.mxu0 %vm7848_vm9, %v11263_v13  ;;  %vm626_vm12 = vmand %vm561_vm4, %vm594_vm6  ;;  %vm666_vm6 = vcmp.ge.s32.totalorder %v7853_v54, %v661_v48  ;;  %vm678_vm9 = vcmp.lt.s32.totalorder %v7853_v54, %v673_v55 }
  0x42   : > { %11557 = vst [vmem:[#allocation23_spill] sm:$0xff] %v11556_v53  ;;  %vm627_vm14 = vmand %vm562_vm11, %vm595_vm7  ;;  %vm668_vm7 = vcmp.ge.s32.totalorder %v7853_v54, %v662_v51 }
  0x43   : > { %vm7866_vm5 = vmpackc.low %vm627_vm14, %vm626_vm12 }
  0x44   : > { %v11560_v57 = vsel %vm7866_vm5, 4294967295, %v11559_v57  ;;  %6997 = vmatprep.subr.msk.bf16.mxu0 %vm7866_vm5, %v11263_v13  ;;  %vm610_vm4 = vmand %vm545_vm13, %vm578_vm15  ;;  %vm665_vm13 = vcmp.ge.s32.totalorder %v7520_v2, %v661_v48  ;;  %vm677_vm15 = vcmp.lt.s32.totalorder %v7520_v2, %v673_v55  ;;  %v11574_v48 = vmov 0 }
  0x45   : > { %11561 = vst [vmem:[#allocation25_spill] sm:$0xff] %v11560_v57  ;;  %vm611_vm11 = vmand %vm546_vm3, %vm579_vm2  ;;  %vm667_vm3 = vcmp.ge.s32.totalorder %v7520_v2, %v662_v51  ;;  %vm679_vm2 = vcmp.lt.s32.totalorder %v7520_v2, %v674_v56  ;;  %v11261_v51 = vmov 0.0  }
  0x46   : > { %vm7877_vm8 = vmpackc.low %vm611_vm11, %vm610_vm4  ;;  %vm670_vm11 = vcmp.ge.s32.totalorder %v7853_v54, %v663_v62  ;;  %999 = vmatprep.mubr.f32.mxu1 %v11261_v51 }
  0x47   : > { %v11563_v58 = vsel %vm7877_vm8, 4294967295, %v11562_v58  ;;  %6999 = vmatpush3.bf16.msk.msra.mxu0 %vm7877_vm8, %v11263_v13  ;;  %vm686_vm12 = vmand %vm666_vm6, %vm678_vm9 }
  0x48   : > { %11564 = vst [vmem:[#allocation26_spill] sm:$0xff] %v11563_v58  ;;  %vm688_vm14 = vmand %vm668_vm7, %vm680_vm0  ;;  %vm672_vm7 = vcmp.ge.s32.totalorder %v7853_v54, %v664_v63 }
  0x49   : > { %vm7891_vm4 = vmpackc.low %vm688_vm14, %vm686_vm12  ;;  %vm682_vm12 = vcmp.lt.s32.totalorder %v7853_v54, %v675_v0  ;;  %vm669_vm14 = vcmp.ge.s32.totalorder %v7520_v2, %v663_v62 }
  0x4a   : > { %v11566_v60 = vsel %vm7891_vm4, 4294967295, %v11565_v60  ;;  %925 = vmatmul.mubr.f32.vlgmr.msra.gmra.mrb[0].mxu0 %v7885_v59  ;;  %7001 = vmatprep.subr.msk.bf16.mxu1 %vm7891_vm4, %v11263_v13  ;;  %vm685_vm9 = vmand %vm665_vm13, %vm677_vm15  ;;  %vm684_vm13 = vcmp.lt.s32.totalorder %v7853_v54, %v676_v5 }
  0x4b   : > { %11567 = vst [vmem:[#allocation27_spill] sm:$0xff] %v11566_v60  ;;  %vm687_vm6 = vmand %vm667_vm3, %vm679_vm2  ;;  %7041 = vmatprep.subr.msk.bf16.mxu0 %vm7891_vm4, %v11263_v13  ;;  %vm681_vm3 = vcmp.lt.s32.totalorder %v7520_v2, %v675_v0  ;;  %1150 = vmatprep.mubr.f32.mxu0 %v11261_v51 }
  0x4c   : > { %vm7902_vm0 = vmpackc.low %vm687_vm6, %vm685_vm9  ;;  %vm671_vm9 = vcmp.ge.s32.totalorder %v7520_v2, %v664_v63  ;;  %vm683_vm6 = vcmp.lt.s32.totalorder %v7520_v2, %v676_v5 }
  0x4d   : > { %v11569_v61 = vsel %vm7902_vm0, 4294967295, %v11568_v61  ;;  %7003 = vmatpush1.bf16.msk.msra.mxu1 %vm7902_vm0, %v11263_v13  ;;  %7043 = vmatpush1.bf16.msk.msra.mxu0 %vm7902_vm0, %v11263_v13  ;;  %vm690_vm15 = vmand %vm670_vm11, %vm682_vm12 }
  0x4e   : > { %11570 = vst [vmem:[#allocation28_spill] sm:$0xff] %v11569_v61  ;;  %vm692_vm2 = vmand %vm672_vm7, %vm684_vm13  ;;  %vm11577_vm7 = vnez %v11516_v18  ;;  %vm11578_vm13 = vnez %v11519_v21 }
  0x4f   : > { %vm7922_vm0 = vmpackc.low %vm692_vm2, %vm690_vm15  ;;  %vm11579_vm15 = vnez %v11522_v24  ;;  %vm11582_vm2 = vnez %v11531_v33 }
  0x50   : > { %v11572_v6 = vsel %vm7922_vm0, 4294967295, %v11571_v6  ;;  %7005 = vmatprep.subr.msk.bf16.mxu1 %vm7922_vm0, %v11263_v13  ;;  %vm689_vm4 = vmand %vm669_vm14, %vm681_vm3  ;;  %7045 = vmatprep.subr.msk.bf16.mxu0 %vm7922_vm0, %v11263_v13  ;;  %vm11580_vm14 = vnez %v11525_v27  ;;  %vm11581_vm3 = vnez %v11528_v30 }
  0x51   : > { %11573 = vst [vmem:[#allocation29_spill] sm:$0xff] %v11572_v6  ;;  %vm691_vm11 = vmand %vm671_vm9, %vm683_vm6  ;;  %vm11583_vm9 = vnez %v11534_v36  ;;  %vm11584_vm6 = vnez %v11537_v39 }
  0x52   : > { %vm7932_vm12 = vmpackc.low %vm691_vm11, %vm689_vm4  ;;  %vm11254_vm4 = vcmask 261120   ;;  %vm11585_vm11 = vnez %v11541_v42 }
  0x53   : > { %v11575_v48 = vsel %vm7932_vm12, 4294967295, %v11574_v48  ;;  %7007 = vmatpush1.bf16.msk.msra.mxu1 %vm7932_vm12, %v11263_v13  ;;  %7047 = vmatpush1.bf16.msk.msra.mxu0 %vm7932_vm12, %v11263_v13 }
  0x54   : > { %11576 = vst [vmem:[#allocation30_spill] sm:$0xff] %v11575_v48  ;;  %7009 = vmatprep.subr.msk.bf16.mxu1 %vm7573_vm10, %v11263_v13  ;;  %7049 = vmatprep.subr.msk.bf16.mxu0 %vm7573_vm10, %v11263_v13 }
 0x11d   : > { %v6638_v55 = vpop.f32.mrb[0].mxu0 }
 0x11e   : > { %v6639_v56 = vpop.f32.mrb[1].mxu0 }
 0x11f   : > { %v6640_v62 = vadd.f32 %v6639_v56, %v6638_v55 }
 0x121   : > { %v930_v63 = vmul.f32 0.125, %v6640_v62 }
 0x123   : > { %6103 = vmatmul.mubr.msk.f32.vlgmr.msra.gmra.mrb[0].mxu1 %vm11254_vm4, %v930_v63  ;;  %vm11586_vm4 = vnez %v11546_v45 }
 0x124   : > { %7011 = vmatpush3.bf16.msk.msra.mxu1 %vm7594_vm1, %v11263_v13 }
 0x125   : > { %7013 = vmatprep.subr.msk.bf16.mxu1 %vm11577_vm7, %v11263_v13 }
 0x128   : > { %7015 = vmatpush3.bf16.msk.msra.mxu1 %vm11578_vm13, %v11263_v13 }
 0x129   : > { %7017 = vmatprep.subr.msk.bf16.mxu1 %vm11579_vm15, %v11263_v13 }
 0x12c   : > { %7019 = vmatpush3.bf16.msk.msra.mxu1 %vm11580_vm14, %v11263_v13 }
 0x12d   : > { %7021 = vmatprep.subr.msk.bf16.mxu1 %vm11581_vm3, %v11263_v13  ;;  %vm11587_vm3 = vnez %v11551_v49 }
 0x130   : > { %7023 = vmatpush3.bf16.msk.msra.mxu1 %vm11582_vm2, %v11263_v13  ;;  %vm11588_vm2 = vnez %v11556_v53 }
 0x131   : > { %7025 = vmatprep.subr.msk.bf16.mxu1 %vm11583_vm9, %v11263_v13 }
 0x134   : > { %7027 = vmatpush3.bf16.msk.msra.mxu1 %vm11584_vm6, %v11263_v13 }
 0x135   : > { %7029 = vmatprep.subr.msk.bf16.mxu1 %vm11585_vm11, %v11263_v13  ;;  %vm11589_vm11 = vnez %v11566_v60 }
 0x138   : > { %7031 = vmatpush3.bf16.msk.msra.mxu1 %vm11586_vm4, %v11263_v13 }
 0x139   : > { %7033 = vmatprep.subr.msk.bf16.mxu1 %vm11587_vm3, %v11263_v13 }
 0x13c   : > { %7035 = vmatpush3.bf16.msk.msra.mxu1 %vm11588_vm2, %v11263_v13 }
 0x13d   : > { %7037 = vmatprep.subr.msk.bf16.mxu1 %vm7866_vm5, %v11263_v13  ;;  %vm11590_vm5 = vnez %v11569_v61 }
 0x140   : > { %7039 = vmatpush3.bf16.msk.msra.mxu1 %vm7877_vm8, %v11263_v13 }
 0x141   : > { %7081 = vmatprep.subr.msk.bf16.mxu1 %vm11589_vm11, %v11263_v13 }
 0x1f6   : > { %v1001_v0 = vpop.f32.mrb[0].mxu1 }
 0x1f7   : > { %v1006_v5 = vsub.f32 %v7885_v59, %v1001_v0  ;;  %v1003_v55 = vpop.f32.mrb[1].mxu1 }
 0x1f8   : > { %v1007_v56 = vsub.f32 %v7550_v8, %v1003_v55 }
 0x1f9   : > { %v1008_v63 = vmul.f32 %v1006_v5, %v1006_v5 }
 0x1fa   : > { %v1009_v62 = vmul.f32 %v1007_v56, %v1007_v56 }
 0x1fc   : > { %1074 = vmatprep.mubr.f32.mxu1 %v1009_v62 }
 0x1fd   : > { %1075 = vmatmul.mubr.f32.vlgmr.msra.gmra.mrb[2].mxu1 %v1008_v63 }
 0x1fe   : > { %7083 = vmatpush1.bf16.msk.msra.mxu1 %vm11590_vm5, %v11263_v13  ;;  %1326 = vmatprep.mubr.f32.mxu1 %v11261_v51  ;;  %vm11591_vm5 = vcmask 261120  }
 0x1ff   : > { %7085 = vmatprep.subr.msk.bf16.mxu1 %vm7922_vm0, %v11263_v13 }
 0x202   : > { %7087 = vmatpush1.bf16.msk.msra.mxu1 %vm7932_vm12, %v11263_v13 }
 0x203   : > { %7089 = vmatprep.subr.msk.bf16.mxu1 %vm7573_vm10, %v11263_v13  ;;  %vm11593_vm10 = vnez %v11531_v33 }
 0x2d0   : > { %v6673_v8 = vpop.f32.mrb[2].mxu1 }
 0x2d1   : > { %v6674_v59 = vpop.f32.mrb[3].mxu1 }
 0x2d2   : > { %v6675_v0 = vadd.f32 %v6674_v59, %v6673_v8  ;;  %v8064_v8 = vsub.s32 0, %v7518_v1  ;;  %v1159_v59 = vld [vmem:[%s11213_s2] sm:$0x3] }
 0x2d4   : > { %v1080_v55 = vmul.f32 0.125, %v6675_v0  ;;  %11596 = vst [vmem:[#allocation31_spill] sm:$0xff] %v8064_v8  ;;  %v8070_v0 = vsub.s32 1, %v7518_v1 }
 0x2d6   : > { %v1081_v62 = vadd.f32 1e-05, %v1080_v55  ;;  %11597 = vst [vmem:[#allocation32_spill] sm:$0xff] %v8070_v0  ;;  %v1164_v55 = vrot.slane %v1159_v59, %v8064_v8  ;;  %v1168_v51 = vrot.slane %v1159_v59, %v8070_v0  ;;  %v8145_v59 = vmul.u32 16, %v7520_v2 }
 0x2d8   : > { %7379 = vrsqrt.f32 %v1081_v62  ;;  %v6145_v62 = vld [vmem:[%s11213_s2 + $0x2] sm:$0x3] }
 0x2d9   : > { %v1183_v54 = vrot.slane %v6145_v62, %v8070_v0  ;;  %v1179_v50 = vrot.slane %v6145_v62, %v8064_v8 }
 0x2e2   : > { %v7380_v63 = vpop.eup %7379 }
 0x2e3   : > { %6144 = vmatmul.mubr.msk.f32.vlgmr.msra.gmra.mrb[2].mxu0 %vm11591_vm5, %v7380_v63  ;;  %vm11592_vm5 = vnez %v11528_v30 }
 0x2e4   : > { %7051 = vmatpush3.bf16.msk.msra.mxu0 %vm7594_vm1, %v11263_v13 }
 0x2e5   : > { %7053 = vmatprep.subr.msk.bf16.mxu0 %vm11577_vm7, %v11263_v13 }
 0x2e8   : > { %7055 = vmatpush3.bf16.msk.msra.mxu0 %vm11578_vm13, %v11263_v13 }
 0x2e9   : > { %7057 = vmatprep.subr.msk.bf16.mxu0 %vm11579_vm15, %v11263_v13  ;;  %vm11594_vm15 = vnez %v11541_v42 }
 0x2ec   : > { %7059 = vmatpush3.bf16.msk.msra.mxu0 %vm11580_vm14, %v11263_v13 }
 0x2ed   : > { %7061 = vmatprep.subr.msk.bf16.mxu0 %vm11592_vm5, %v11263_v13 }
 0x2f0   : > { %7063 = vmatpush3.bf16.msk.msra.mxu0 %vm11593_vm10, %v11263_v13 }
 0x2f1   : > { %7065 = vmatprep.subr.msk.bf16.mxu0 %vm11583_vm9, %v11263_v13  ;;  %vm11595_vm9 = vnez %v11560_v57 }
 0x2f4   : > { %7067 = vmatpush3.bf16.msk.msra.mxu0 %vm11584_vm6, %v11263_v13 }
 0x2f5   : > { %7069 = vmatprep.subr.msk.bf16.mxu0 %vm11594_vm15, %v11263_v13 }
 0x2f8   : > { %7071 = vmatpush3.bf16.msk.msra.mxu0 %vm11586_vm4, %v11263_v13 }
 0x2f9   : > { %7073 = vmatprep.subr.msk.bf16.mxu0 %vm11587_vm3, %v11263_v13 }
 0x2fc   : > { %7075 = vmatpush3.bf16.msk.msra.mxu0 %vm11588_vm2, %v11263_v13 }
 0x2fd   : > { %7077 = vmatprep.subr.msk.bf16.mxu0 %vm11595_vm9, %v11263_v13 }
 0x300   : > { %7079 = vmatpush3.bf16.msk.msra.mxu0 %vm7877_vm8, %v11263_v13  ;;  %vm11601_vm8 = vcmask 261120  }
 0x301   : > { %7121 = vmatprep.subr.msk.bf16.mxu0 %vm11589_vm11, %v11263_v13  ;;  %vm11599_vm11 = vnez %v11569_v61 }
 0x3b6   : > { %v1152_v63 = vpop.f32.mrb[2].mxu0 }
 0x3b7   : > { %v1157_v13 = vmul.f32 %v1152_v63, %v1006_v5  ;;  %v1154_v60 = vpop.f32.mrb[3].mxu0 }
 0x3b8   : > { %v1158_v11 = vmul.f32 %v1154_v60, %v1007_v56 }
 0x3b9   : > { %v1171_v52 = vmul.f32 %v1164_v55, %v1157_v13 }
 0x3ba   : > { %v1172_v47 = vmul.f32 %v1168_v51, %v1158_v11 }
 0x3bb   : > { %v1186_v44 = vadd.f32 %v1179_v50, %v1171_v52 }
 0x3bc   : > { %v1187_v46 = vadd.f32 %v1183_v54, %v1172_v47 }
 0x3be   : > { %1252 = vmatprep.mubr.f32.mxu0 %v1187_v46 }
 0x3bf   : > { %1253 = vmatmul.mubr.f32.vlgmr.msra.gmra.mrb[4].mxu0 %v1186_v44 }
 0x3c0   : > { %7123 = vmatpush1.bf16.msk.msra.mxu0 %vm11599_vm11, %v11598_v43  ;;  %1477 = vmatprep.mubr.f32.mxu0 %v11600_v41  ;;  %vm718_vm11 = vcmp.ge.s32.totalorder %v7525_v3, %v8145_v59 }
 0x3c1   : > { %7125 = vmatprep.subr.msk.bf16.mxu0 %vm7922_vm0, %v11598_v43  ;;  %vm11604_vm0 = vnez %v11563_v58 }
 0x3c4   : > { %7127 = vmatpush1.bf16.msk.msra.mxu0 %vm7932_vm12, %v11598_v43  ;;  %vm11602_vm12 = vnez %v11522_v24 }
 0x492   : > { %v6708_v13 = vpop.f32.mrb[4].mxu0 }
 0x493   : > { %v6709_v11 = vpop.f32.mrb[5].mxu0 }
 0x494   : > { %v6710_v47 = vadd.f32 %v6709_v11, %v6708_v13  ;;  %v8349_v11 = vld [vmem:[%s482_s26 + $0x8] sm:$0xff] }
 0x496   : > { %v1258_v50 = vmul.f32 0.125, %v6710_v47 }
 0x498   : > { %6186 = vmatmul.mubr.msk.f32.vlgmr.msra.gmra.mrb[4].mxu1 %vm11601_vm8, %v1258_v50  ;;  %vm11603_vm8 = vnez %v11534_v36  ;;  %v8398_v50 = vld [vmem:[%s482_s26] sm:$0xff] }
 0x499   : > { %7091 = vmatpush3.bf16.msk.msra.mxu1 %vm7594_vm1, %v11598_v43 }
 0x49a   : > { %7093 = vmatprep.subr.msk.bf16.mxu1 %vm11577_vm7, %v11598_v43 }
 0x49d   : > { %7095 = vmatpush3.bf16.msk.msra.mxu1 %vm11578_vm13, %v11598_v43 }
 0x49e   : > { %7097 = vmatprep.subr.msk.bf16.mxu1 %vm11602_vm12, %v11598_v43 }
 0x4a1   : > { %7099 = vmatpush3.bf16.msk.msra.mxu1 %vm11580_vm14, %v11598_v43 }
 0x4a2   : > { %7101 = vmatprep.subr.msk.bf16.mxu1 %vm11592_vm5, %v11598_v43 }
 0x4a5   : > { %7103 = vmatpush3.bf16.msk.msra.mxu1 %vm11593_vm10, %v11598_v43 }
 0x4a6   : > { %7105 = vmatprep.subr.msk.bf16.mxu1 %vm11603_vm8, %v11598_v43  ;;  %vm703_vm8 = vcmp.ge.s32.totalorder %v7547_v7, %v8145_v59 }
 0x4a9   : > { %7107 = vmatpush3.bf16.msk.msra.mxu1 %vm11584_vm6, %v11598_v43  ;;  %vm702_vm6 = vcmp.ge.s32.totalorder %v7518_v1, %v8145_v59 }
 0x4aa   : > { %7109 = vmatprep.subr.msk.bf16.mxu1 %vm11594_vm15, %v11598_v43 }
 0x4ad   : > { %7111 = vmatpush3.bf16.msk.msra.mxu1 %vm11586_vm4, %v11598_v43 }
 0x4ae   : > { %7113 = vmatprep.subr.msk.bf16.mxu1 %vm11587_vm3, %v11598_v43 }
 0x4b1   : > { %7115 = vmatpush3.bf16.msk.msra.mxu1 %vm11588_vm2, %v11598_v43 }
 0x4b2   : > { %7117 = vmatprep.subr.msk.bf16.mxu1 %vm11595_vm9, %v11598_v43 }
 0x4b5   : > { %7119 = vmatpush3.bf16.msk.msra.mxu1 %vm11604_vm0, %v11598_v43  ;;  %vm719_vm0 = vcmp.ge.s32.totalorder %v7528_v4, %v8145_v59 }
 0x56b   : > { %v1328_v52 = vpop.f32.mrb[4].mxu1 }
 0x56c   : > { %v8135_v54 = vsub.f32 %v1186_v44, %v1328_v52  ;;  %v1330_v60 = vpop.f32.mrb[5].mxu1  ;;  %v8150_v44 = vadd.s32 16, %v8145_v59  ;;  %v8400_v52 = vld [vmem:[%s482_s26 + $0x18] sm:$0xff] }
 0x56d   : > { %v8137_v51 = vsub.f32 %v1187_v46, %v1330_v60  ;;  %v11605_v46 = vmov 0  ;;  %v8404_v60 = vld [vmem:[%s482_s26 + $0x10] sm:$0xff]  ;;  %s11467_s26 = smov 94  }
 0x56e   : > { %v1335_v56 = vmul.f32 %v8135_v54, %v8135_v54  ;;  %vm751_vm9 = vcmp.lt.s32.totalorder %v7525_v3, %v8150_v44  ;;  %vm752_vm2 = vcmp.lt.s32.totalorder %v7528_v4, %v8150_v44  ;;  %vm735_vm10 = vcmp.lt.s32.totalorder %v7518_v1, %v8150_v44  ;;  %v2684_v3 = vld [vmem:[%s11219_s8 + $0x8] sm:$0xff]  ;;  %v2294_v4 = vld [vmem:[%s11215_s4] sm:$0xff] }
 0x56f   : > { %v1336_v5 = vmul.f32 %v8137_v51, %v8137_v51  ;;  %vm783_vm3 = vmand %vm718_vm11, %vm751_vm9  ;;  %vm720_vm9 = vcmp.ge.s32.totalorder %v7560_v9, %v8145_v59  ;;  %vm721_vm11 = vcmp.ge.s32.totalorder %v7567_v10, %v8145_v59  ;;  %vm753_vm5 = vcmp.lt.s32.totalorder %v7560_v9, %v8150_v44 }
 0x570   : > { %vm784_vm4 = vmand %vm719_vm0, %vm752_vm2  ;;  %vm736_vm0 = vcmp.lt.s32.totalorder %v7547_v7, %v8150_v44  ;;  %vm754_vm14 = vcmp.lt.s32.totalorder %v7567_v10, %v8150_v44  ;;  %v11611_v9 = vmov 0  ;;  %v11613_v10 = vmov 0 }
 0x571   : > { %1401 = vmatprep.mubr.f32.mxu1 %v1336_v5  ;;  %vm8158_vm15 = vmpackc.low %vm784_vm4, %vm783_vm3  ;;  %v831_v5 = vmul.u32 16, %v7518_v1  ;;  %v11656_v1 = vmov 0 }
 0x572   : > { %1402 = vmatmul.mubr.f32.vlgmr.msra.gmra.mrb[6].mxu1 %v1335_v56  ;;  %v11606_v46 = vsel %vm8158_vm15, 4294967295, %v11605_v46  ;;  %7129 = vmatprep.subr.msk.bf16.mxu0 %vm8158_vm15, %v11598_v43  ;;  %vm767_vm4 = vmand %vm702_vm6, %vm735_vm10  ;;  %vm704_vm10 = vcmp.ge.s32.totalorder %v7578_v12, %v8145_v59  ;;  %vm737_vm6 = vcmp.lt.s32.totalorder %v7578_v12, %v8150_v44  ;;  %v11615_v12 = vmov 0 }
 0x573   : > { %1664 = vmatprep.mubr.f32.mxu1 %v11600_v41  ;;  %vm768_vm3 = vmand %vm703_vm8, %vm736_vm0  ;;  %vm705_vm0 = vcmp.ge.s32.totalorder %v7588_v14, %v8145_v59  ;;  %v832_v56 = vmul.u32 16, %v7547_v7  ;;  %v11658_v7 = vmov 0 }
 0x574   : > { %vm8173_vm2 = vmpackc.low %vm768_vm3, %vm767_vm4  ;;  %vm738_vm4 = vcmp.lt.s32.totalorder %v7588_v14, %v8150_v44  ;;  %v11617_v14 = vmov 0 }
 0x575   : > { %vm785_vm12 = vmand %vm720_vm9, %vm753_vm5  ;;  %vm722_vm5 = vcmp.ge.s32.totalorder %v7599_v16, %v8145_v59  ;;  %vm755_vm9 = vcmp.lt.s32.totalorder %v7599_v16, %v8150_v44  ;;  %v11619_v16 = vmov 0 }
 0x576   : > { %vm786_vm8 = vmand %vm721_vm11, %vm754_vm14  ;;  %vm723_vm14 = vcmp.ge.s32.totalorder %v7609_v17, %v8145_v59  ;;  %vm756_vm11 = vcmp.lt.s32.totalorder %v7609_v17, %v8150_v44  ;;  %v11621_v17 = vmov 0 }
 0x577   : > { %vm8193_vm3 = vmpackc.low %vm786_vm8, %vm785_vm12 }
 0x578   : > { %vm769_vm13 = vmand %vm704_vm10, %vm737_vm6  ;;  %vm706_vm10 = vcmp.ge.s32.totalorder %v7620_v19, %v8145_v59  ;;  %vm739_vm6 = vcmp.lt.s32.totalorder %v7620_v19, %v8150_v44  ;;  %v11623_v19 = vmov 0 }
 0x579   : > { %vm770_vm7 = vmand %vm705_vm0, %vm738_vm4  ;;  %vm707_vm0 = vcmp.ge.s32.totalorder %v7630_v20, %v8145_v59  ;;  %vm740_vm4 = vcmp.lt.s32.totalorder %v7630_v20, %v8150_v44  ;;  %v11625_v20 = vmov 0 }
 0x57a   : > { %vm8205_vm1 = vmpackc.low %vm770_vm7, %vm769_vm13  ;;  %vm724_vm13 = vcmp.ge.s32.totalorder %v7641_v22, %v8145_v59 }
 0x57b   : > { %v11612_v9 = vsel %vm8205_vm1, 4294967295, %v11611_v9  ;;  %vm787_vm12 = vmand %vm722_vm5, %vm755_vm9  ;;  %vm757_vm5 = vcmp.lt.s32.totalorder %v7641_v22, %v8150_v44  ;;  %v11627_v22 = vld [vmem:[#allocation13_spill] sm:$0xff] }
 0x57c   : > { %vm788_vm8 = vmand %vm723_vm14, %vm756_vm11  ;;  %vm725_vm14 = vcmp.ge.s32.totalorder %v7651_v23, %v8145_v59  ;;  %vm758_vm11 = vcmp.lt.s32.totalorder %v7651_v23, %v8150_v44  ;;  %v11628_v23 = vmov 0 }
 0x57d   : > { %vm8217_vm15 = vmpackc.low %vm788_vm8, %vm787_vm12 }
 0x57e   : > { %v11614_v10 = vsel %vm8217_vm15, 4294967295, %v11613_v10  ;;  %vm771_vm7 = vmand %vm706_vm10, %vm739_vm6  ;;  %vm708_vm10 = vcmp.ge.s32.totalorder %v7662_v25, %v8145_v59  ;;  %vm741_vm6 = vcmp.lt.s32.totalorder %v7662_v25, %v8150_v44  ;;  %v11630_v25 = vld [vmem:[#allocation15_spill] sm:$0xff] }
 0x57f   : > { %vm772_vm9 = vmand %vm707_vm0, %vm740_vm4  ;;  %vm709_vm0 = vcmp.ge.s32.totalorder %v7672_v26, %v8145_v59  ;;  %vm742_vm4 = vcmp.lt.s32.totalorder %v7672_v26, %v8150_v44  ;;  %v11631_v26 = vld [vmem:[#allocation16_spill] sm:$0xff] }
 0x580   : > { %vm8229_vm1 = vmpackc.low %vm772_vm9, %vm771_vm7 }
 0x581   : > { %v11616_v12 = vsel %vm8229_vm1, 4294967295, %v11615_v12  ;;  %vm789_vm12 = vmand %vm724_vm13, %vm757_vm5  ;;  %vm726_vm13 = vcmp.ge.s32.totalorder %v7683_v28, %v8145_v59  ;;  %vm759_vm5 = vcmp.lt.s32.totalorder %v7683_v28, %v8150_v44  ;;  %v11632_v28 = vmov 0 }
 0x582   : > { %vm790_vm8 = vmand %vm725_vm14, %vm758_vm11  ;;  %vm727_vm14 = vcmp.ge.s32.totalorder %v7693_v29, %v8145_v59  ;;  %vm760_vm11 = vcmp.lt.s32.totalorder %v7693_v29, %v8150_v44  ;;  %v11634_v29 = vld [vmem:[#allocation18_spill] sm:$0xff] }
 0x583   : > { %vm8241_vm15 = vmpackc.low %vm790_vm8, %vm789_vm12 }
 0x584   : > { %v11618_v14 = vsel %vm8241_vm15, 4294967295, %v11617_v14  ;;  %vm773_vm7 = vmand %vm708_vm10, %vm741_vm6  ;;  %vm710_vm10 = vcmp.ge.s32.totalorder %v7704_v31, %v8145_v59  ;;  %vm743_vm6 = vcmp.lt.s32.totalorder %v7704_v31, %v8150_v44  ;;  %v11635_v31 = vld [vmem:[#allocation19_spill] sm:$0xff] }
 0x585   : > { %vm774_vm9 = vmand %vm709_vm0, %vm742_vm4  ;;  %vm711_vm0 = vcmp.ge.s32.totalorder %v7714_v32, %v8145_v59  ;;  %vm744_vm4 = vcmp.lt.s32.totalorder %v7714_v32, %v8150_v44  ;;  %v11636_v32 = vmov 0 }
 0x586   : > { %vm8253_vm1 = vmpackc.low %vm774_vm9, %vm773_vm7 }
 0x587   : > { %v11620_v16 = vsel %vm8253_vm1, 4294967295, %v11619_v16  ;;  %vm791_vm12 = vmand %vm726_vm13, %vm759_vm5  ;;  %vm728_vm13 = vcmp.ge.s32.totalorder %v7725_v34, %v8145_v59  ;;  %vm761_vm5 = vcmp.lt.s32.totalorder %v7725_v34, %v8150_v44  ;;  %v11638_v34 = vld [vmem:[#allocation21_spill] sm:$0xff] }
 0x588   : > { %vm792_vm8 = vmand %vm727_vm14, %vm760_vm11  ;;  %vm729_vm14 = vcmp.ge.s32.totalorder %v7735_v35, %v8145_v59  ;;  %vm762_vm11 = vcmp.lt.s32.totalorder %v7735_v35, %v8150_v44  ;;  %v11639_v35 = vld [vmem:[#allocation22_spill] sm:$0xff] }
 0x589   : > { %vm8265_vm15 = vmpackc.low %vm792_vm8, %vm791_vm12 }
 0x58a   : > { %v11622_v17 = vsel %vm8265_vm15, 4294967295, %v11621_v17  ;;  %vm775_vm7 = vmand %vm710_vm10, %vm743_vm6  ;;  %vm712_vm10 = vcmp.ge.s32.totalorder %v7746_v37, %v8145_v59  ;;  %vm745_vm6 = vcmp.lt.s32.totalorder %v7746_v37, %v8150_v44  ;;  %v11640_v37 = vmov 0 }
 0x58b   : > { %vm776_vm9 = vmand %vm711_vm0, %vm744_vm4  ;;  %vm713_vm0 = vcmp.ge.s32.totalorder %v7756_v38, %v8145_v59  ;;  %vm746_vm4 = vcmp.lt.s32.totalorder %v7756_v38, %v8150_v44  ;;  %v11642_v38 = vmov 0 }
 0x58c   : > { %vm8277_vm1 = vmpackc.low %vm776_vm9, %vm775_vm7 }
 0x58d   : > { %v11624_v19 = vsel %vm8277_vm1, 4294967295, %v11623_v19  ;;  %vm793_vm12 = vmand %vm728_vm13, %vm761_vm5  ;;  %vm730_vm13 = vcmp.ge.s32.totalorder %v7767_v40, %v8145_v59  ;;  %vm763_vm5 = vcmp.lt.s32.totalorder %v7767_v40, %v8150_v44 }
 0x58e   : > { %vm794_vm8 = vmand %vm729_vm14, %vm762_vm11  ;;  %vm731_vm14 = vcmp.ge.s32.totalorder %v11627_v22, %v8145_v59  ;;  %vm764_vm11 = vcmp.lt.s32.totalorder %v11627_v22, %v8150_v44  ;;  %v11655_v22 = vld [vmem:[#allocation24_spill] sm:$0xff] }
 0x58f   : > { %vm8289_vm15 = vmpackc.low %vm794_vm8, %vm793_vm12 }
 0x590   : > { %v11626_v20 = vsel %vm8289_vm15, 4294967295, %v11625_v20  ;;  %vm777_vm7 = vmand %vm712_vm10, %vm745_vm6  ;;  %vm714_vm10 = vcmp.ge.s32.totalorder %v11630_v25, %v8145_v59  ;;  %vm747_vm6 = vcmp.lt.s32.totalorder %v11630_v25, %v8150_v44  ;;  %v8452_v25 = vld [vmem:[%s11213_s2 + $0x6] sm:$0x3] }
 0x591   : > { %vm778_vm9 = vmand %vm713_vm0, %vm746_vm4  ;;  %vm715_vm0 = vcmp.ge.s32.totalorder %v11631_v26, %v8145_v59  ;;  %vm748_vm4 = vcmp.lt.s32.totalorder %v11631_v26, %v8150_v44 }
 0x592   : > { %vm8301_vm1 = vmpackc.low %vm778_vm9, %vm777_vm7 }
 0x593   : > { %v11629_v23 = vsel %vm8301_vm1, 4294967295, %v11628_v23  ;;  %vm795_vm12 = vmand %vm730_vm13, %vm763_vm5  ;;  %vm732_vm13 = vcmp.ge.s32.totalorder %v11634_v29, %v8145_v59  ;;  %vm765_vm5 = vcmp.lt.s32.totalorder %v11634_v29, %v8150_v44 }
 0x594   : > { %vm796_vm8 = vmand %vm731_vm14, %vm764_vm11  ;;  %vm733_vm14 = vcmp.ge.s32.totalorder %v11635_v31, %v8145_v59  ;;  %vm766_vm11 = vcmp.lt.s32.totalorder %v11635_v31, %v8150_v44 }
 0x595   : > { %vm8313_vm15 = vmpackc.low %vm796_vm8, %vm795_vm12 }
 0x596   : > { %v11633_v28 = vsel %vm8313_vm15, 4294967295, %v11632_v28  ;;  %vm779_vm7 = vmand %vm714_vm10, %vm747_vm6  ;;  %vm716_vm10 = vcmp.ge.s32.totalorder %v11638_v34, %v8145_v59  ;;  %vm749_vm6 = vcmp.lt.s32.totalorder %v11638_v34, %v8150_v44  ;;  %v1507_v34 = vrot.slane %v8452_v25, %v8064_v8 }
 0x597   : > { %vm780_vm9 = vmand %vm715_vm0, %vm748_vm4  ;;  %vm717_vm0 = vcmp.ge.s32.totalorder %v11639_v35, %v8145_v59  ;;  %vm750_vm4 = vcmp.lt.s32.totalorder %v11639_v35, %v8150_v44  ;;  %v837_v59 = vadd.s32 16, %v831_v5  ;;  %v838_v44 = vadd.s32 16, %v832_v56 }
 0x598   : > { %vm8325_vm1 = vmpackc.low %vm780_vm9, %vm779_vm7  ;;  %vm11644_vm9 = vcmask 261120  }
 0x599   : > { %v11637_v32 = vsel %vm8325_vm1, 4294967295, %v11636_v32  ;;  %vm797_vm12 = vmand %vm732_vm13, %vm765_vm5 }
 0x59a   : > { %vm798_vm8 = vmand %vm733_vm14, %vm766_vm11  ;;  %vm11645_vm14 = vnez %v11612_v9  ;;  %vm11646_vm11 = vnez %v11614_v10  ;;  %v11330_v9 = vmov 0   ;;  %v2685_v10 = vld [vmem:[%s11219_s8 + $0x10] sm:$0xff] }
 0x59b   : > { %vm8337_vm15 = vmpackc.low %vm798_vm8, %vm797_vm12  ;;  %vm11647_vm12 = vnez %v11616_v12  ;;  %vm11650_vm8 = vnez %v11622_v17  ;;  %7373 = vset.pattern.permute.xlu1 %v11330_v9  ;;  %7372 = vset.pattern.permute.xlu0 %v11330_v9 }
 0x59c   : > { %v11641_v37 = vsel %vm8337_vm15, 4294967295, %v11640_v37  ;;  %vm781_vm7 = vmand %vm716_vm10, %vm749_vm6  ;;  %vm11648_vm10 = vnez %v11618_v14  ;;  %vm11649_vm6 = vnez %v11620_v16  ;;  %2694 = vperm.xlu1 %7373, %v2684_v3   ;;  %2297 = vperm.xlu0 %7372, %v2294_v4  }
 0x59d   : > { %vm782_vm13 = vmand %vm717_vm0, %vm750_vm4  ;;  %vm11651_vm0 = vnez %v11624_v19  ;;  %vm11652_vm4 = vnez %v11626_v20 }
 0x59e   : > { %vm8341_vm5 = vmpackc.low %vm782_vm13, %vm781_vm7  ;;  %vm11653_vm7 = vnez %v11629_v23  ;;  %vm11654_vm13 = vnez %v11633_v28 }
 0x59f   : > { %v11643_v38 = vsel %vm8341_vm5, 4294967295, %v11642_v38 }
 0x5a0   : > { %2699 = vperm.xlu1 %7373, %v2685_v10  }
 0x645   : > { %v6743_v40 = vpop.f32.mrb[6].mxu1 }
 0x646   : > { %v6744_v55 = vpop.f32.mrb[7].mxu1 }
 0x647   : > { %v6745_v62 = vadd.f32 %v6744_v55, %v6743_v40 }
 0x649   : > { %v1407_v63 = vmul.f32 0.125, %v6745_v62 }
 0x64b   : > { %v1408_v13 = vadd.f32 1e-05, %v1407_v63 }
 0x64d   : > { %7381 = vrsqrt.f32 %v1408_v13 }
 0x657   : > { %v7382_v47 = vpop.eup %7381 }
 0x658   : > { %6227 = vmatmul.mubr.msk.f32.vlgmr.msra.gmra.mrb[6].mxu0 %vm11644_vm9, %v7382_v47  ;;  %vm834_vm9 = vcmp.ge.s32.totalorder %v11655_v22, %v831_v5 }
 0x659   : > { %7131 = vmatpush3.bf16.msk.msra.mxu0 %vm8173_vm2, %v11598_v43  ;;  %1580 = vmatprep.mubr.f32.mxu0 %v8349_v11 }
 0x65a   : > { %7133 = vmatprep.subr.msk.bf16.mxu0 %vm8193_vm3, %v11598_v43 }
 0x65d   : > { %7135 = vmatpush3.bf16.msk.msra.mxu0 %vm11645_vm14, %v11598_v43 }
 0x65e   : > { %7137 = vmatprep.subr.msk.bf16.mxu0 %vm11646_vm11, %v11598_v43 }
 0x661   : > { %7139 = vmatpush3.bf16.msk.msra.mxu0 %vm11647_vm12, %v11598_v43 }
 0x662   : > { %7141 = vmatprep.subr.msk.bf16.mxu0 %vm11648_vm10, %v11598_v43 }
 0x665   : > { %7143 = vmatpush3.bf16.msk.msra.mxu0 %vm11649_vm6, %v11598_v43  ;;  %vm841_vm6 = vcmp.lt.s32.totalorder %v7520_v2, %v838_v44 }
 0x666   : > { %7145 = vmatprep.subr.msk.bf16.mxu0 %vm11650_vm8, %v11598_v43  ;;  %vm835_vm8 = vcmp.ge.s32.totalorder %v7520_v2, %v832_v56 }
 0x669   : > { %7147 = vmatpush3.bf16.msk.msra.mxu0 %vm11651_vm0, %v11598_v43 }
 0x66a   : > { %7149 = vmatprep.subr.msk.bf16.mxu0 %vm11652_vm4, %v11598_v43  ;;  %vm839_vm4 = vcmp.lt.s32.totalorder %v7520_v2, %v837_v59 }
 0x66d   : > { %7151 = vmatpush3.bf16.msk.msra.mxu0 %vm11653_vm7, %v11598_v43  ;;  %vm833_vm7 = vcmp.ge.s32.totalorder %v7520_v2, %v831_v5  ;;  %v8447_v2 = vld [vmem:[%s11213_s2 + $0x4] sm:$0x3] }
 0x66e   : > { %7153 = vmatprep.subr.msk.bf16.mxu0 %vm11654_vm13, %v11598_v43  ;;  %vm843_vm12 = vmand %vm833_vm7, %vm839_vm4  ;;  %v1492_v26 = vrot.slane %v8447_v2, %v8064_v8  ;;  %vm11665_vm4 = vnez %v11624_v19  ;;  %vm11666_vm7 = vnez %v11626_v20  ;;  %v6415_v19 = vld [vmem:[%s11222_s11 + $0x78] sm:$0xff] }
 0x671   : > { %7155 = vmatpush3.bf16.msk.msra.mxu0 %vm8325_vm1, %v11598_v43  ;;  %vm842_vm1 = vcmp.lt.s32.totalorder %v11655_v22, %v838_v44 }
 0x672   : > { %7157 = vmatprep.subr.msk.bf16.mxu0 %vm8337_vm15, %v11598_v43  ;;  %vm840_vm15 = vcmp.lt.s32.totalorder %v11655_v22, %v837_v59 }
 0x673   : > { %vm844_vm13 = vmand %vm834_vm9, %vm840_vm15 }
 0x674   : > { %vm845_vm15 = vmand %vm835_vm8, %vm841_vm6  ;;  %vm11662_vm6 = vnez %v11618_v14  ;;  %vm11663_vm8 = vnez %v11620_v16  ;;  %v6414_v14 = vld [vmem:[%s11222_s11 + $0x70] sm:$0xff]  ;;  %v2686_v16 = vld [vmem:[%s11219_s8 + $0x18] sm:$0xff] }
 0x675   : > { %7159 = vmatpush3.bf16.msk.msra.mxu0 %vm8341_vm5, %v11598_v43  ;;  %vm836_vm5 = vcmp.ge.s32.totalorder %v11655_v22, %v832_v56  ;;  %vm8428_vm9 = vmpackc.low %vm845_vm15, %vm843_vm12  ;;  %vm11661_vm12 = vnez %v11616_v12  ;;  %vm11668_vm15 = vnez %v11633_v28  ;;  %v2683_v12 = vld [vmem:[%s11219_s8] sm:$0xff]  ;;  %2957 = vperm.xlu1 %7373, %v6414_v14   ;;  %v6407_v28 = vld [vmem:[%s11222_s11 + $0x38] sm:$0xff] }
 0x676   : > { %vm846_vm0 = vmand %vm836_vm5, %vm842_vm1  ;;  %v11659_v7 = vsel %vm8428_vm9, 4294967295, %v11658_v7  ;;  %vm11660_vm1 = vnez %v11606_v46  ;;  %vm11323_vm5 = vcmask 130048   ;;  %v6307_v46 = vld [vmem:[%s11213_s2 + $0xe] sm:$0x3]  ;;  %2689 = vperm.xlu0 %7372, %v2683_v12  }
 0x677   : > { %vm8418_vm10 = vmpackc.low %vm846_vm0, %vm844_vm13  ;;  %vm11664_vm0 = vnez %v11622_v17  ;;  %vm11667_vm13 = vnez %v11629_v23  ;;  %v6432_v17 = vld [vmem:[%s11222_s11 + $0x100] sm:$0xff]  ;;  %v6433_v23 = vld [vmem:[%s11222_s11 + $0x108] sm:$0xff] }
 0x678   : > { %1581 = vmatmul.mubr.f32.vlgmr.msra.gmra.mrb[8].mxu0 %v8398_v50  ;;  %v11657_v1 = vsel %vm8418_vm10, 4294967295, %v11656_v1  ;;  %7161 = vmatprep.subr.msk.bf16.mxu1 %vm8418_vm10, %v11598_v43 }
 0x679   : > { %1585 = vmatprep.mubr.f32.mxu0 %v8400_v52  ;;  %7197 = vmatprep.subr.msk.bf16.mxu0 %vm8418_vm10, %v11598_v43 }
 0x67a   : > { %7163 = vmatpush1.bf16.msk.msra.mxu1 %vm8428_vm9, %v11598_v43  ;;  %7199 = vmatpush1.bf16.msk.msra.mxu0 %vm8428_vm9, %v11598_v43  ;;  %vm11670_vm9 = vnez %v11641_v37 }
 0x67b   : > { %7165 = vmatprep.subr.msk.bf16.mxu1 %vm11660_vm1, %v11598_v43  ;;  %7233 = vmatprep.subr.msk.bf16.mxu0 %vm8418_vm10, %v11598_v43  ;;  %vm11671_vm10 = vnez %v11643_v38 }
 0x67c   : > { %1586 = vmatmul.mubr.f32.gmra.mrb[10].mxu0 %v8404_v60  ;;  %2704 = vperm.xlu0 %7372, %v2686_v16  }
 0x67d   : > { %1836 = vmatprep.mubr.f32.mxu0 %v11600_v41  ;;  %3434 = vperm.xlu1 %7373, %v6432_v17  }
 0x680   : > { %2962 = vperm.xlu0 %7372, %v6415_v19   ;;  %v8803_v19 = vpop.permute.xlu1 %2694 }
 0x684   : > { %3439 = vperm.xlu0 %7372, %v6433_v23   ;;  %v6422_v23 = vld [vmem:[%s11222_s11 + $0xb0] sm:$0xff] }
 0x72b   : > { %v1479_v29 = vpop.f32.mrb[6].mxu0 }
 0x72c   : > { %v1484_v31 = vmul.f32 %v1479_v29, %v8135_v54  ;;  %v8459_v35 = vpop.f32.mrb[7].mxu0 }
 0x72e   : > { %v1499_v40 = vmul.f32 %v1492_v26, %v1484_v31 }
 0x730   : > { %v8461_v55 = vadd.f32 %v1507_v34, %v1499_v40 }
 0x74b   : > { %v6778_v62 = vpop.f32.mrb[8].mxu0 }
 0x74c   : > { %v6779_v63 = vpop.f32.mrb[9].mxu0 }
 0x74d   : > { %v6780_v13 = vadd.f32 %v6779_v63, %v6778_v62 }
 0x74f   : > { %v1591_v47 = vmul.f32 0.0625, %v6780_v13  ;;  %v6781_v5 = vpop.f32.mrb[10].mxu0 }
 0x750   : > { %v6782_v56 = vpop.f32.mrb[11].mxu0 }
 0x751   : > { %v6783_v59 = vadd.f32 %v6782_v56, %v6781_v5  ;;  %6266 = vmatmul.mubr.msk.f32.vlgmr.msra.gmra.mrb[8].mxu1 %vm11323_vm5, %v1591_v47 }
 0x752   : > { %1670 = vmatprep.mubr.f32.mxu1 %v11600_v41  ;;  %7167 = vmatpush3.bf16.msk.msra.mxu1 %vm8173_vm2, %v11598_v43 }
 0x753   : > { %v1592_v54 = vmul.f32 0.0625, %v6783_v59  ;;  %7169 = vmatprep.subr.msk.bf16.mxu1 %vm8193_vm3, %v11598_v43 }
 0x755   : > { %6267 = vmatmul.mubr.msk.f32.gmra.mrb[10].mxu1 %vm11323_vm5, %v1592_v54  ;;  %vm11669_vm5 = vnez %v11637_v32  ;;  %v6406_v32 = vld [vmem:[%s11222_s11 + $0x30] sm:$0xff] }
 0x756   : > { %7171 = vmatpush3.bf16.msk.msra.mxu1 %vm11645_vm14, %v11598_v43  ;;  %2859 = vperm.xlu0 %7372, %v6406_v32   ;;  %v8813_v32 = vpop.permute.xlu0 %2297 }
 0x757   : > { %7173 = vmatprep.subr.msk.bf16.mxu1 %vm11646_vm11, %v11598_v43 }
 0x75a   : > { %7175 = vmatpush3.bf16.msk.msra.mxu1 %vm11661_vm12, %v11598_v43 }
 0x75b   : > { %7177 = vmatprep.subr.msk.bf16.mxu1 %vm11662_vm6, %v11598_v43 }
 0x75e   : > { %7179 = vmatpush3.bf16.msk.msra.mxu1 %vm11663_vm8, %v11598_v43 }
 0x75f   : > { %7181 = vmatprep.subr.msk.bf16.mxu1 %vm11664_vm0, %v11598_v43 }
 0x762   : > { %7183 = vmatpush3.bf16.msk.msra.mxu1 %vm11665_vm4, %v11598_v43 }
 0x763   : > { %7185 = vmatprep.subr.msk.bf16.mxu1 %vm11666_vm7, %v11598_v43 }
 0x766   : > { %7187 = vmatpush3.bf16.msk.msra.mxu1 %vm11667_vm13, %v11598_v43 }
 0x767   : > { %7189 = vmatprep.subr.msk.bf16.mxu1 %vm11668_vm15, %v11598_v43 }
 0x76a   : > { %7191 = vmatpush3.bf16.msk.msra.mxu1 %vm11669_vm5, %v11598_v43 }
 0x76b   : > { %7193 = vmatprep.subr.msk.bf16.mxu1 %vm11670_vm9, %v11598_v43 }
 0x76e   : > { %7195 = vmatpush3.bf16.msk.msra.mxu1 %vm11671_vm10, %v11598_v43 }
 0x76f   : > { %7201 = vmatprep.subr.msk.bf16.mxu1 %vm11660_vm1, %v11598_v43 }
 0x824   : > { %v1666_v44 = vpop.f32.mrb[8].mxu1 }
 0x825   : > { %v1677_v22 = vsub.f32 %v8398_v50, %v1666_v44  ;;  %v1668_v26 = vpop.f32.mrb[9].mxu1 }
 0x826   : > { %v1678_v29 = vsub.f32 %v8349_v11, %v1668_v26 }
 0x827   : > { %v1681_v40 = vmul.f32 %v1677_v22, %v1677_v22 }
 0x828   : > { %v1682_v31 = vmul.f32 %v1678_v29, %v1678_v29  ;;  %v1672_v34 = vpop.f32.mrb[10].mxu1 }
 0x829   : > { %v8517_v62 = vsub.f32 %v8404_v60, %v1672_v34  ;;  %v1674_v63 = vpop.f32.mrb[11].mxu1 }
 0x82a   : > { %v8520_v13 = vsub.f32 %v8400_v52, %v1674_v63  ;;  %1749 = vmatprep.mubr.f32.mxu1 %v1682_v31  ;;  %v1485_v63 = vmul.f32 %v8459_v35, %v8137_v51  ;;  %v1880_v51 = vrot.slane %v6307_v46, %v8070_v0 }
 0x82b   : > { %1750 = vmatmul.mubr.f32.vlgmr.msra.gmra.mrb[12].mxu1 %v1681_v40  ;;  %v1683_v11 = vmul.f32 %v8517_v62, %v8517_v62  ;;  %v6306_v40 = vld [vmem:[%s11213_s2 + $0xc] sm:$0x3] }
 0x82c   : > { %v1684_v47 = vmul.f32 %v8520_v13, %v8520_v13  ;;  %7203 = vmatpush3.bf16.msk.msra.mxu1 %vm8173_vm2, %v11598_v43 }
 0x82d   : > { %7205 = vmatprep.subr.msk.bf16.mxu1 %vm8193_vm3, %v11598_v43 }
 0x82e   : > { %1754 = vmatprep.mubr.f32.mxu1 %v1684_v47  ;;  %v1496_v47 = vrot.slane %v8447_v2, %v8070_v0  ;;  %v1876_v2 = vrot.slane %v6307_v46, %v8064_v8 }
 0x82f   : > { %1755 = vmatmul.mubr.f32.gmra.mrb[14].mxu1 %v1683_v11  ;;  %v1859_v11 = vrot.slane %v6306_v40, %v8064_v8 }
 0x830   : > { %7207 = vmatpush3.bf16.msk.msra.mxu1 %vm11645_vm14, %v11598_v43 }
 0x831   : > { %7209 = vmatprep.subr.msk.bf16.mxu1 %vm11646_vm11, %v11598_v43 }
 0x834   : > { %7211 = vmatpush3.bf16.msk.msra.mxu1 %vm11661_vm12, %v11598_v43 }
 0x835   : > { %7213 = vmatprep.subr.msk.bf16.mxu1 %vm11662_vm6, %v11598_v43 }
 0x838   : > { %7215 = vmatpush3.bf16.msk.msra.mxu1 %vm11663_vm8, %v11598_v43 }
 0x839   : > { %7217 = vmatprep.subr.msk.bf16.mxu1 %vm11664_vm0, %v11598_v43 }
 0x83c   : > { %7219 = vmatpush3.bf16.msk.msra.mxu1 %vm11665_vm4, %v11598_v43 }
 0x83d   : > { %7221 = vmatprep.subr.msk.bf16.mxu1 %vm11666_vm7, %v11598_v43  ;;  %vm11672_vm7 = vnez %v11657_v1 }
 0x840   : > { %7223 = vmatpush3.bf16.msk.msra.mxu1 %vm11667_vm13, %v11598_v43 }
 0x841   : > { %7225 = vmatprep.subr.msk.bf16.mxu1 %vm11668_vm15, %v11598_v43 }
 0x844   : > { %7227 = vmatpush3.bf16.msk.msra.mxu1 %vm11669_vm5, %v11598_v43 }
 0x845   : > { %7229 = vmatprep.subr.msk.bf16.mxu1 %vm11670_vm9, %v11598_v43  ;;  %vm11673_vm9 = vcmask 130048  }
 0x848   : > { %7231 = vmatpush3.bf16.msk.msra.mxu1 %vm11671_vm10, %v11598_v43  ;;  %vm11675_vm10 = vmmov %vm11673_vm9 }
 0x849   : > { %7269 = vmatprep.subr.msk.bf16.mxu1 %vm11672_vm7, %v11598_v43  ;;  %vm11674_vm7 = vnez %v11659_v7 }
 0x8fe   : > { %v6816_v50 = vpop.f32.mrb[12].mxu1 }
 0x8ff   : > { %v6817_v52 = vpop.f32.mrb[13].mxu1 }
 0x900   : > { %v6818_v60 = vadd.f32 %v6817_v52, %v6816_v50  ;;  %v1863_v52 = vrot.slane %v6306_v40, %v8070_v0 }
 0x902   : > { %v1760_v5 = vmul.f32 0.0625, %v6818_v60  ;;  %v6819_v56 = vpop.f32.mrb[14].mxu1  ;;  %v1500_v60 = vmul.f32 %v1496_v47, %v1485_v63 }
 0x903   : > { %v6820_v59 = vpop.f32.mrb[15].mxu1 }
 0x904   : > { %v1762_v54 = vadd.f32 1e-05, %v1760_v5  ;;  %v6821_v44 = vadd.f32 %v6820_v59, %v6819_v56  ;;  %v1511_v5 = vrot.slane %v8452_v25, %v8070_v0 }
 0x906   : > { %7383 = vrsqrt.f32 %v1762_v54  ;;  %v1761_v26 = vmul.f32 0.0625, %v6821_v44 }
 0x908   : > { %v1763_v31 = vadd.f32 1e-05, %v1761_v26 }
 0x90a   : > { %7385 = vrsqrt.f32 %v1763_v31  ;;  %v1515_v31 = vadd.f32 %v1511_v5, %v1500_v60 }
 0x910   : > { %v7384_v34 = vpop.eup %7383 }
 0x911   : > { %6304 = vmatmul.mubr.msk.f32.vlgmr.msra.gmra.mrb[12].mxu0 %vm11673_vm9, %v7384_v34 }
 0x912   : > { %1842 = vmatprep.mubr.f32.mxu0 %v11600_v41  ;;  %7235 = vmatpush1.bf16.msk.msra.mxu0 %vm11674_vm7, %v11598_v43 }
 0x913   : > { %7237 = vmatprep.subr.msk.bf16.mxu0 %vm11660_vm1, %v11598_v43  ;;  %vm11676_vm1 = vmmov %vm11673_vm9 }
 0x914   : > { %v7386_v1 = vpop.eup %7385 }
 0x915   : > { %6305 = vmatmul.mubr.msk.f32.gmra.mrb[14].mxu0 %vm11675_vm10, %v7386_v1  ;;  %vm11474_vm10 = vcmask 1043456  }
 0x916   : > { %2034 = vmatprep.mubr.f32.mxu0 %v11600_v41 }
 0x9e4   : > { %v1838_v50 = vpop.f32.mrb[12].mxu0 }
 0x9e5   : > { %v1849_v56 = vmul.f32 %v1838_v50, %v1677_v22  ;;  %v1840_v59 = vpop.f32.mrb[13].mxu0 }
 0x9e6   : > { %v1850_v54 = vmul.f32 %v1840_v59, %v1678_v29  ;;  %v2293_v29 = vpack.c.bf16 %v1515_v31, %v1515_v31  ;;  %v6413_v59 = vld [vmem:[%s11222_s11 + $0x68] sm:$0xff]  ;;  %v6430_v31 = vld [vmem:[%s11222_s11 + $0xf0] sm:$0xff] }
 0x9e7   : > { %v1866_v35 = vmul.f32 %v1859_v11, %v1849_v56 }
 0x9e8   : > { %v1867_v44 = vmul.f32 %v1863_v52, %v1850_v54  ;;  %v1844_v26 = vpop.f32.mrb[14].mxu0  ;;  %v6412_v54 = vld [vmem:[%s11222_s11 + $0x60] sm:$0xff] }
 0x9e9   : > { %v1851_v34 = vmul.f32 %v1844_v26, %v8517_v62  ;;  %v1846_v1 = vpop.f32.mrb[15].mxu0  ;;  %v8604_v47 = vadd.f32 %v1876_v2, %v1866_v35  ;;  %v6424_v35 = vld [vmem:[%s11222_s11 + $0xc0] sm:$0xff]  ;;  %v6431_v26 = vld [vmem:[%s11222_s11 + $0xf8] sm:$0xff] }
 0x9ea   : > { %v1852_v40 = vmul.f32 %v1846_v1, %v8520_v13  ;;  %v8602_v63 = vadd.f32 %v1880_v51, %v1867_v44  ;;  %v6428_v44 = vld [vmem:[%s11222_s11 + $0xe0] sm:$0xff] }
 0x9eb   : > { %v1868_v25 = vmul.f32 %v1859_v11, %v1851_v34  ;;  %v851_v34 = vld [vmem:[%s11224_s13] sm:$0x3] }
 0x9ec   : > { %v1869_v22 = vmul.f32 %v1863_v52, %v1852_v40  ;;  %1951 = vmatprep.mubr.f32.mxu1 %v8602_v63  ;;  %v8739_v1 = vrot.slane %v851_v34, %v8064_v8  ;;  %v8742_v40 = vrot.slane %v851_v34, %v8070_v0 }
 0x9ed   : > { %1952 = vmatmul.mubr.f32.vlgmr.msra.gmra.mrb[16].mxu1 %v8604_v47  ;;  %v8614_v13 = vadd.f32 %v1876_v2, %v1868_v25  ;;  %v6429_v2 = vld [vmem:[%s11222_s11 + $0xe8] sm:$0xff]  ;;  %v6062_v25 = vld [vmem:[%s11224_s13 + $0x2] sm:$0x3] }
 0x9ee   : > { %7271 = vmatpush1.bf16.msk.msra.mxu1 %vm11674_vm7, %v11598_v43  ;;  %v8611_v62 = vadd.f32 %v1880_v51, %v1869_v22  ;;  %v6425_v51 = vld [vmem:[%s11222_s11 + $0xc8] sm:$0xff]  ;;  %v8752_v22 = vrot.slane %v6062_v25, %v8064_v8  ;;  %vm2498_vm7 = vcmask 121856  }
 0x9ef   : > { %6388 = vmatprep.subr.msk.bf16.mxu1 %vm11474_vm10, %v2293_v29  ;;  %v8755_v29 = vrot.slane %v6062_v25, %v8070_v0 }
 0x9f0   : > { %1956 = vmatprep.mubr.f32.mxu1 %v8611_v62 }
 0x9f1   : > { %1957 = vmatmul.mubr.f32.gmra.mrb[18].mxu1 %v8614_v13 }
 0x9f2   : > { %2206 = vmatprep.mubr.f32.mxu1 %v11600_v41 }
 0xac0   : > { %v6854_v11 = vpop.f32.mrb[16].mxu1 }
 0xac1   : > { %v6855_v46 = vpop.f32.mrb[17].mxu1 }
 0xac2   : > { %v6856_v50 = vadd.f32 %v6855_v46, %v6854_v11  ;;  %v6392_v11 = vld [vmem:[%s11220_s9 + $0x18] sm:$0xff]  ;;  %v6394_v46 = vld [vmem:[%s11220_s9 + $0x28] sm:$0xff] }
 0xac4   : > { %v1962_v52 = vmul.f32 0.0625, %v6856_v50  ;;  %v6857_v60 = vpop.f32.mrb[18].mxu1  ;;  %v6405_v50 = vld [vmem:[%s11222_s11 + $0x28] sm:$0xff] }
 0xac5   : > { %v6858_v7 = vpop.f32.mrb[19].mxu1 }
 0xac6   : > { %v6859_v5 = vadd.f32 %v6858_v7, %v6857_v60  ;;  %6344 = vmatmul.mubr.msk.f32.vlgmr.msra.gmra.mrb[16].mxu0 %vm11673_vm9, %v1962_v52  ;;  %v6395_v52 = vld [vmem:[%s11220_s9 + $0x30] sm:$0xff]  ;;  %v6423_v60 = vld [vmem:[%s11222_s11 + $0xb8] sm:$0xff]  ;;  %vm11480_vm9 = vcmask 932864  }
 0xac7   : > { %2040 = vmatprep.mubr.f32.mxu0 %v11600_v41  ;;  %7239 = vmatpush3.bf16.msk.msra.mxu0 %vm8173_vm2, %v11598_v43  ;;  %vm11677_vm2 = vnez %v11626_v20  ;;  %v6396_v20 = vld [vmem:[%s11220_s9 + $0x38] sm:$0xff] }
 0xac8   : > { %v1963_v56 = vmul.f32 0.0625, %v6859_v5  ;;  %7241 = vmatprep.subr.msk.bf16.mxu0 %vm8193_vm3, %v11598_v43  ;;  %vm11678_vm3 = vnez %v11641_v37  ;;  %2510 = vperm.xlu1 %7373, %v6396_v20   ;;  %v6411_v37 = vld [vmem:[%s11222_s11 + $0x58] sm:$0xff]  ;;  %v6409_v20 = vld [vmem:[%s11222_s11 + $0x48] sm:$0xff] }
 0xaca   : > { %6345 = vmatmul.mubr.msk.f32.gmra.mrb[18].mxu0 %vm11676_vm1, %v1963_v56 }
 0xacb   : > { %7243 = vmatpush3.bf16.msk.msra.mxu0 %vm11645_vm14, %v11598_v43  ;;  %vm11679_vm14 = vnez %v11643_v38  ;;  %v6410_v38 = vld [vmem:[%s11222_s11 + $0x50] sm:$0xff] }
 0xacc   : > { %7245 = vmatprep.subr.msk.bf16.mxu0 %vm11646_vm11, %v11598_v43  ;;  %2864 = vperm.xlu1 %7373, %v6407_v28   ;;  %v8811_v28 = vpop.permute.xlu1 %2699  ;;  %vm11475_vm11 = vcmask 138240  }
 0xacd   : > { %2907 = vperm.xlu0 %7372, %v6410_v38   ;;  %v6402_v38 = vld [vmem:[%s11222_s11 + $0x10] sm:$0xff]  ;;  %494 = vst.msk [vmem:[#allocation2 + $0x38] sm:$0xff] %vm11475_vm11, %v11600_v41  ;;  %493 = vst.msk [vmem:[#allocation2 + $0x18] sm:$0xff] %vm11475_vm11, %v11600_v41 }
 0xacf   : > { %7247 = vmatpush3.bf16.msk.msra.mxu0 %vm11661_vm12, %v11598_v43  ;;  %vm11707_vm12 = vmmov %vm11676_vm1 }
 0xad0   : > { %7249 = vmatprep.subr.msk.bf16.mxu0 %vm11662_vm6, %v11598_v43  ;;  %2912 = vperm.xlu1 %7373, %v6411_v37   ;;  %v6421_v37 = vld [vmem:[%s11222_s11 + $0xa8] sm:$0xff]  ;;  %vm11710_vm6 = vmmov %vm11676_vm1 }
 0xad1   : > { %2932 = vperm.xlu0 %7372, %v6412_v54   ;;  %v8823_v54 = vpop.permute.xlu0 %2689 }
 0xad3   : > { %7251 = vmatpush3.bf16.msk.msra.mxu0 %vm11663_vm8, %v11598_v43  ;;  %vm11473_vm8 = vcmask 64512  }
 0xad4   : > { %7253 = vmatprep.subr.msk.bf16.mxu0 %vm11664_vm0, %v11598_v43  ;;  %2937 = vperm.xlu1 %7373, %v6413_v59   ;;  %v8821_v59 = vpop.permute.xlu1 %2957  ;;  %vm11481_vm0 = vcmask 1039360  }
 0xad5   : > { %3336 = vperm.xlu0 %7372, %v6424_v35   ;;  %v6408_v35 = vld [vmem:[%s11222_s11 + $0x40] sm:$0xff] }
 0xad7   : > { %7255 = vmatpush3.bf16.msk.msra.mxu0 %vm11665_vm4, %v11598_v43  ;;  %vm2476_vm4 = vcmask 7168  }
 0xad8   : > { %7257 = vmatprep.subr.msk.bf16.mxu0 %vm11677_vm2, %v11598_v43  ;;  %3341 = vperm.xlu1 %7373, %v6425_v51   ;;  %v6427_v51 = vld [vmem:[%s11222_s11 + $0xd8] sm:$0xff]  ;;  %vm11777_vm2 = vmmov %vm11710_vm6 }
 0xad9   : > { %3384 = vperm.xlu0 %7372, %v6428_v44   ;;  %v8833_v44 = vpop.permute.xlu0 %2704 }
 0xadb   : > { %7259 = vmatpush3.bf16.msk.msra.mxu0 %vm11667_vm13, %v11598_v43  ;;  %vm11724_vm13 = vmmov %vm11676_vm1 }
 0xadc   : > { %7261 = vmatprep.subr.msk.bf16.mxu0 %vm11668_vm15, %v11598_v43  ;;  %3389 = vperm.xlu1 %7373, %v6429_v2   ;;  %v8831_v2 = vpop.permute.xlu1 %3434  ;;  %vm11725_vm15 = vmmov %vm11676_vm1  ;;  %vm11479_vm1 = vcmask 924672  }
 0xadd   : > { %3409 = vperm.xlu0 %7372, %v6430_v31   ;;  %v6420_v31 = vld [vmem:[%s11222_s11 + $0xa0] sm:$0xff]  ;;  %v8843_v25 = vpop.permute.xlu0 %2962 }
 0xadf   : > { %7263 = vmatpush3.bf16.msk.msra.mxu0 %vm11669_vm5, %v11598_v43  ;;  %vm489_vm5 = vcmask 1048440  }
 0xae0   : > { %7265 = vmatprep.subr.msk.bf16.mxu0 %vm11678_vm3, %v11598_v43  ;;  %3414 = vperm.xlu1 %7373, %v6431_v26   ;;  %v6417_v26 = vld [vmem:[%s11222_s11 + $0x88] sm:$0xff]  ;;  %491 = vst.msk [vmem:[#allocation2 + $0x20] sm:$0xff] %vm489_vm5, %v11600_v41  ;;  %490 = vst.msk [vmem:[#allocation2] sm:$0xff] %vm489_vm5, %v11600_v41  ;;  %vm11478_vm5 = vcmask 1031168  }
 0xae1   : > { %2438 = vrot.lane.b32.xlu0 %v8739_v1, %s11505_s23  ;;  %vm11779_vm3 = vmmov %vm11777_vm2 }
 0xae3   : > { %7267 = vmatpush3.bf16.msk.msra.mxu0 %vm11679_vm14, %v11598_v43  ;;  %vm11477_vm14 = vcmask 908288  }
 0xae4   : > { %2440 = vrot.lane.b32.xlu1 %v8742_v40, %s11505_s23 }
 0xae5   : > { %2472 = vrot.lane.b32.xlu0 %v8752_v22, %s7427_s24 }
 0xae7   : > { %v8946_v6 = vld [vmem:[#allocation2 + $0x20] sm:$0xff] }
 0xae8   : > { %2474 = vrot.lane.b32.xlu1 %v8755_v29, %s7427_s24  ;;  %11691 = vst [vmem:[#allocation36_spill] sm:$0xff] %v8946_v6  ;;  %s11881_s24 = smov 111  }
 0xae9   : > { %2494 = vrot.lane.b32.xlu0 %v8739_v1, %s7428_s25 }
 0xaec   : > { %2496 = vrot.lane.b32.xlu1 %v8742_v40, %s7428_s25  ;;  %s11471_s25 = smov 126  }
 0xaed   : > { %2432 = vperm.xlu0 %7372, %v6392_v11   ;;  %v6435_v11 = vld [vmem:[%s11222_s11 + $0x118] sm:$0xff] }
 0xaf0   : > { %2466 = vperm.xlu1 %7373, %v6394_v46   ;;  %v6426_v46 = vld [vmem:[%s11222_s11 + $0xd0] sm:$0xff] }
 0xaf1   : > { %2488 = vperm.xlu0 %7372, %v6395_v52   ;;  %v8853_v52 = vpop.permute.xlu0 %3439 }
 0xaf4   : > { %2839 = vperm.xlu1 %7373, %v6405_v50  }
 0xaf8   : > { %3316 = vperm.xlu1 %7373, %v6423_v60   ;;  %v6416_v60 = vld [vmem:[%s11222_s11 + $0x80] sm:$0xff] }
 0xb47   : > { %v8841_v34 = vpop.permute.xlu1 %2510 }
 0xb4b   : > { %v8851_v50 = vpop.permute.xlu1 %2864 }
 0xb4c   : > { %v2870_v57 = vmul.f32 %v8851_v50, %v8946_v6 }
 0xb99   : > { %v2036_v7 = vpop.f32.mrb[16].mxu0 }
 0xb9a   : > { %v8777_v5 = vsub.f32 %v8604_v47, %v2036_v7  ;;  %v2038_v56 = vpop.f32.mrb[17].mxu0  ;;  %v8860_v7 = vpop.permute.xlu1 %2912 }
 0xb9b   : > { %v8780_v3 = vsub.f32 %v8602_v63, %v2038_v56  ;;  %v8862_v56 = vpop.permute.xlu0 %2859 }
 0xb9c   : > { %v2051_v12 = vmul.f32 %v8777_v5, %v8777_v5 }
 0xb9d   : > { %v2052_v4 = vmul.f32 %v8780_v3, %v8780_v3  ;;  %v2042_v10 = vpop.f32.mrb[18].mxu0 }
 0xb9e   : > { %v8787_v14 = vsub.f32 %v8614_v13, %v2042_v10  ;;  %v2044_v16 = vpop.f32.mrb[19].mxu0  ;;  %v6403_v13 = vld [vmem:[%s11222_s11 + $0x18] sm:$0xff]  ;;  %v6434_v10 = vld [vmem:[%s11222_s11 + $0x110] sm:$0xff] }
 0xb9f   : > { %v8790_v17 = vsub.f32 %v8611_v62, %v2044_v16  ;;  %2119 = vmatprep.mubr.f32.mxu0 %v2052_v4  ;;  %v6404_v62 = vld [vmem:[%s11222_s11 + $0x20] sm:$0xff]  ;;  %2820 = vperm.xlu1 %7373, %v6403_v13   ;;  %v6390_v4 = vld [vmem:[%s11220_s9 + $0x8] sm:$0xff]  ;;  %v8876_v16 = vpop.permute.xlu0 %2907 }
 0xba0   : > { %2120 = vmatmul.mubr.f32.vlgmr.msra.gmra.mrb[20].mxu0 %v2051_v12  ;;  %v2053_v47 = vmul.f32 %v8787_v14, %v8787_v14  ;;  %2834 = vperm.xlu0 %7372, %v6404_v62   ;;  %v8870_v12 = vpop.permute.xlu1 %2937  ;;  %v6397_v13 = vld [vmem:[%s11220_s9 + $0x40] sm:$0xff]  ;;  %v6391_v62 = vld [vmem:[%s11220_s9 + $0x10] sm:$0xff] }
 0xba1   : > { %v2054_v63 = vmul.f32 %v8790_v17, %v8790_v17  ;;  %11680 = vst [vmem:[#allocation13_spill] sm:$0xff] %v8870_v12 }
 0xba3   : > { %2124 = vmatprep.mubr.f32.mxu0 %v2054_v63  ;;  %2889 = vperm.xlu1 %7373, %v6409_v20   ;;  %v8894_v20 = vld [vmem:[#allocation2 + $0x18] sm:$0xff] }
 0xba4   : > { %2125 = vmatmul.mubr.f32.gmra.mrb[22].mxu0 %v2053_v47  ;;  %3311 = vperm.xlu0 %7372, %v6422_v23   ;;  %v8884_v63 = vpop.permute.xlu1 %3341  ;;  %v8886_v47 = vpop.permute.xlu0 %2932  ;;  %11683 = vst [vmem:[#allocation18_spill] sm:$0xff] %v8894_v20 }
 0xba5   : > { %2755 = vmatprep.mubr.bf16.mxu0 %v11330_v9  ;;  %11681 = vst [vmem:[#allocation15_spill] sm:$0xff] %v8884_v63  ;;  %11682 = vst [vmem:[#allocation16_spill] sm:$0xff] %v8886_v47 }
 0xba7   : > { %3297 = vperm.xlu1 %7373, %v6421_v37  }
 0xba8   : > { %2815 = vperm.xlu0 %7372, %v6402_v38   ;;  %v8896_v23 = vpop.permute.xlu1 %3389  ;;  %v8901_v37 = vpop.permute.xlu0 %3336  ;;  %v2967_v38 = vmul.f32 %v8821_v59, %v8894_v20 }
 0xba9   : > { %11684 = vst [vmem:[#allocation19_spill] sm:$0xff] %v8896_v23 }
 0xbab   : > { %3366 = vperm.xlu1 %7373, %v6427_v51   ;;  %v8905_v51 = vld [vmem:[#allocation2 + $0x38] sm:$0xff] }
 0xbac   : > { %2884 = vperm.xlu0 %7372, %v6408_v35   ;;  %v8908_v35 = vpop.permute.xlu1 %3414  ;;  %v3397_v48 = vmul.f32 %v8896_v23, %v8905_v51 }
 0xbad   : > { %11685 = vst [vmem:[#allocation21_spill] sm:$0xff] %v8908_v35 }
 0xbaf   : > { %2981 = vperm.xlu1 %7373, %v6417_v26   ;;  %v3444_v26 = vmul.f32 %v8831_v2, %v8894_v20 }
 0xbb0   : > { %3292 = vperm.xlu0 %7372, %v6420_v31   ;;  %v8912_v31 = vpop.permute.xlu0 %3384 }
 0xbb3   : > { %3458 = vperm.xlu1 %7373, %v6435_v11   ;;  %v2970_v11 = vmul.f32 %v8843_v25, %v8905_v51 }
 0xbb4   : > { %3361 = vperm.xlu0 %7372, %v6426_v46   ;;  %v8919_v46 = vpop.permute.xlu1 %2440 }
 0xbb5   : > { %11686 = vst [vmem:[#allocation22_spill] sm:$0xff] %v8919_v46 }
 0xbb7   : > { %2418 = vrot.lane.b32.xlu1 %v8755_v29, %s11501_s16 }
 0xbb8   : > { %2976 = vperm.xlu0 %7372, %v6416_v60   ;;  %v2515_v60 = vmul.f32 %v8894_v20, %v8841_v34 }
 0xbbb   : > { %2391 = vperm.xlu1 %7373, %v6390_v4   ;;  %v2917_v4 = vmul.f32 %v8876_v16, %v8894_v20 }
 0xbbc   : > { %3453 = vperm.xlu0 %7372, %v6434_v10   ;;  %v8925_v10 = vpop.permute.xlu0 %3409 }
 0xbbd   : > { %11687 = vst [vmem:[#allocation24_spill] sm:$0xff] %v8925_v10 }
 0xbbf   : > { %2526 = vrot.lane.b32.xlu1 %v8752_v22, %s11465_s22 }
 0xbc0   : > { %2416 = vrot.lane.b32.xlu0 %v8752_v22, %s11501_s16  ;;  %v6393_v22 = vld [vmem:[%s11220_s9 + $0x20] sm:$0xff]  ;;  %v8940_v9 = vpop.permute.xlu0 %2438 }
 0xbc1   : > { %11690 = vst [vmem:[#allocation35_spill] sm:$0xff] %v8940_v9  ;;  %v2876_v49 = vmul.f32 %v2870_v57, %v8940_v9 }
 0xbc3   : > { %2520 = vperm.xlu1 %7373, %v6397_v13   ;;  %v2920_v13 = vmul.f32 %v8860_v7, %v8905_v51 }
 0xbc4   : > { %2401 = vperm.xlu0 %7372, %v6391_v62   ;;  %v3394_v62 = vmul.f32 %v8912_v31, %v8894_v20  ;;  %v8952_v58 = vpop.permute.xlu0 %2472 }
 0xbc5   : > { %11692 = vst [vmem:[#allocation37_spill] sm:$0xff] %v8952_v58 }
 0xbc7   : > { %3104 = vrot.lane.b32.xlu1 %v2967_v38, %s11505_s23  ;;  %v8937_v38 = vld [vmem:[#allocation2] sm:$0xff] }
 0xbc8   : > { %2454 = vperm.xlu0 %7372, %v6393_v22   ;;  %v8935_v22 = vpop.permute.xlu1 %2474  ;;  %11689 = vst [vmem:[#allocation34_spill] sm:$0xff] %v8937_v38  ;;  %v8964_v53 = vpop.permute.xlu0 %2494 }
 0xbc9   : > { %11688 = vst [vmem:[#allocation33_spill] sm:$0xff] %v8935_v22  ;;  %v3400_v61 = vmul.f32 %v3394_v62, %v8935_v22  ;;  %11694 = vst [vmem:[#allocation39_spill] sm:$0xff] %v8964_v53  ;;  %v3347_v62 = vmul.f32 %v8884_v63, %v8946_v6 }
 0xbcb   : > { %3581 = vrot.lane.b32.xlu1 %v3444_v26, %s11505_s23  ;;  %v2923_v26 = vmul.f32 %v2917_v4, %v8935_v22 }
 0xbcc   : > { %2528 = vrot.lane.b32.xlu0 %v8755_v29, %s11465_s22  ;;  %v3447_v29 = vmul.f32 %v8853_v52, %v8905_v51  ;;  %v8954_v4 = vpop.permute.xlu1 %2496  ;;  %v8974_v45 = vpop.permute.xlu0 %2432 }
 0xbcd   : > { %11693 = vst [vmem:[#allocation38_spill] sm:$0xff] %v8954_v4 }
 0xbcf   : > { %2594 = vrot.lane.b32.xlu1 %v2515_v60, %s11505_s23  ;;  %v2867_v60 = vmul.f32 %v8862_v56, %v8937_v38 }
 0xbd0   : > { %3110 = vrot.lane.b32.xlu0 %v2970_v11, %s11505_s23  ;;  %v2926_v11 = vmul.f32 %v2920_v13, %v8935_v22  ;;  %v3403_v13 = vmul.f32 %v3397_v48, %v8935_v22 }
 0xbd3   : > { %3074 = vrot.lane.b32.xlu1 %v2923_v26, %s11505_s23  ;;  %v2873_v26 = vmul.f32 %v2867_v60, %v8940_v9 }
 0xbd4   : > { %3587 = vrot.lane.b32.xlu0 %v3447_v29, %s11505_s23  ;;  %v3344_v29 = vmul.f32 %v8901_v37, %v8937_v38 }
 0xbd6   : > { %v3350_v48 = vmul.f32 %v3344_v29, %v8940_v9 }
 0xbd7   : > { %3551 = vrot.lane.b32.xlu1 %v3400_v61, %s11505_s23  ;;  %v2435_v61 = vmul.f32 %v8937_v38, %v8974_v45 }
 0xbd8   : > { %3080 = vrot.lane.b32.xlu0 %v2926_v11, %s11505_s23  ;;  %v8972_v11 = vpop.permute.xlu1 %2466 }
 0xbd9   : > { %v2471_v60 = vmul.f32 %v8894_v20, %v8972_v11  ;;  %v2447_v57 = vmul.f32 %v8940_v9, %v2435_v61  ;;  %v2357_v61 = vld [vmem:[%s11220_s9] sm:$0xff] }
 0xbdb   : > { %3036 = vrot.lane.b32.xlu1 %v2873_v26, %s11503_s19  ;;  %v2483_v29 = vmul.f32 %v8935_v22, %v2471_v60  ;;  %v2786_v26 = vld [vmem:[%s11222_s11] sm:$0xff] }
 0xbdc   : > { %3557 = vrot.lane.b32.xlu0 %v3403_v13, %s11505_s23  ;;  %v3353_v13 = vmul.f32 %v3347_v62, %v8940_v9  ;;  %v6418_v62 = vld [vmem:[%s11222_s11 + $0x90] sm:$0xff]  ;;  %v9007_v60 = vpop.permute.xlu1 %2839 }
 0xbdd   : > { %11695 = vst [vmem:[#allocation40_spill] sm:$0xff] %v9007_v60 }
 0xbdf   : > { %3513 = vrot.lane.b32.xlu1 %v3350_v48, %s11503_s19  ;;  %v6419_v48 = vld [vmem:[%s11222_s11 + $0x98] sm:$0xff] }
 0xbe0   : > { %3042 = vrot.lane.b32.xlu0 %v2876_v49, %s11503_s19  ;;  %v2787_v49 = vld [vmem:[%s11222_s11 + $0x8] sm:$0xff] }
 0xbe3   : > { %2557 = vrot.lane.b32.xlu1 %v2447_v57, %s11503_s19  ;;  %v9011_v57 = vpop.permute.xlu0 %2488 }
 0xbe4   : > { %3519 = vrot.lane.b32.xlu0 %v3353_v13, %s11503_s19  ;;  %v9009_v13 = vpop.permute.xlu1 %3316 }
 0xbe5   : > { %11696 = vst [vmem:[#allocation41_spill] sm:$0xff] %v9009_v13 }
 0xbe7   : > { %2790 = vperm.xlu1 %7373, %v2786_v26  }
 0xbe8   : > { %2579 = vrot.lane.b32.xlu0 %v2483_v29, %s11505_s23 }
 0xbeb   : > { %3267 = vperm.xlu1 %7373, %v6418_v62  }
 0xbec   : > { %2795 = vperm.xlu0 %7372, %v2787_v49  }
 0xbef   : > { %2375 = vrot.lane.b32.xlu1 %v8739_v1, %s11469_s20 }
 0xbf0   : > { %3272 = vperm.xlu0 %7372, %v6419_v48  }
 0xbf3   : > { %2360 = vperm.xlu1 %7373, %v2357_v61  }
 0xbf4   : > { %2377 = vrot.lane.b32.xlu0 %v8742_v40, %s11469_s20 }
 0xc1e   : > { %v9013_v29 = vpop.permute.xlu1 %2820 }
 0xc1f   : > { %v9015_v26 = vpop.permute.xlu0 %2834 }
 0xc20   : > { %11697 = vst [vmem:[#allocation42_spill] sm:$0xff] %v9015_v26 }
 0xc22   : > { %v9017_v49 = vpop.permute.xlu1 %2889 }
 0xc23   : > { %11698 = vst [vmem:[#allocation43_spill] sm:$0xff] %v9017_v49  ;;  %v9019_v1 = vpop.permute.xlu0 %3311 }
 0xc24   : > { %11699 = vst [vmem:[#allocation44_spill] sm:$0xff] %v9019_v1 }
 0xc26   : > { %v9021_v62 = vpop.permute.xlu1 %3297 }
 0xc27   : > { %v9023_v48 = vpop.permute.xlu0 %2815 }
 0xc2a   : > { %v9025_v39 = vpop.permute.xlu1 %3366 }
 0xc2b   : > { %11700 = vst [vmem:[#allocation45_spill] sm:$0xff] %v9025_v39  ;;  %v9027_v36 = vpop.permute.xlu0 %2884 }
 0xc2c   : > { %11701 = vst [vmem:[#allocation46_spill] sm:$0xff] %v9027_v36 }
 0xc2e   : > { %v9029_v18 = vpop.permute.xlu1 %2981 }
 0xc2f   : > { %11702 = vst [vmem:[#allocation47_spill] sm:$0xff] %v9029_v18  ;;  %v9031_v15 = vpop.permute.xlu0 %3292  ;;  %v2493_v18 = vmul.f32 %v8894_v20, %v9011_v57 }
 0xc32   : > { %v9033_v13 = vpop.permute.xlu1 %3458 }
 0xc33   : > { %11703 = vst [vmem:[#allocation48_spill] sm:$0xff] %v9033_v13  ;;  %v9035_v1 = vpop.permute.xlu0 %3361 }
 0xc34   : > { %11704 = vst [vmem:[#allocation49_spill] sm:$0xff] %v9035_v1 }
 0xc73   : > { %v6892_v40 = vpop.f32.mrb[20].mxu0 }
 0xc74   : > { %v6893_v61 = vpop.f32.mrb[21].mxu0 }
 0xc75   : > { %v6894_v42 = vadd.f32 %v6893_v61, %v6892_v40  ;;  %v2292_v40 = vpack.c.bf16 %v8461_v55, %v8461_v55  ;;  %v9041_v61 = vpop.permute.xlu0 %2976 }
 0xc76   : > { %11706 = vst [vmem:[#allocation51_spill] sm:$0xff] %v9041_v61 }
 0xc77   : > { %v2130_v33 = vmul.f32 0.0625, %v6894_v42  ;;  %v6895_v30 = vpop.f32.mrb[22].mxu0  ;;  %v9039_v42 = vpop.permute.xlu1 %2418 }
 0xc78   : > { %v6896_v27 = vpop.f32.mrb[23].mxu0  ;;  %11705 = vst [vmem:[#allocation50_spill] sm:$0xff] %v9039_v42 }
 0xc79   : > { %v2132_v24 = vadd.f32 1e-05, %v2130_v33  ;;  %v6897_v21 = vadd.f32 %v6896_v27, %v6895_v30  ;;  %v2306_v30 = vsel %vm11474_vm10, %v2292_v40, 0  ;;  %v2291_v40 = vld [vmem:[%s11214_s3] sm:$0xf] }
 0xc7b   : > { %7387 = vrsqrt.f32 %v2132_v24  ;;  %v2131_v43 = vmul.f32 0.0625, %v6897_v21  ;;  %v9045_v24 = vpop.permute.xlu1 %2391  ;;  %v9047_v21 = vpop.permute.xlu0 %3453 }
 0xc7c   : > { %11708 = vst [vmem:[#allocation52_spill] sm:$0xff] %v9045_v24  ;;  %11709 = vst [vmem:[#allocation53_spill] sm:$0xff] %v9047_v21  ;;  %v2945_v24 = vmul.f32 %v8870_v12, %v8905_v51 }
 0xc7d   : > { %v2133_v49 = vadd.f32 1e-05, %v2131_v43 }
 0xc7e   : > { %v2951_v21 = vmul.f32 %v2945_v24, %v8954_v4 }
 0xc7f   : > { %7389 = vrsqrt.f32 %v2133_v49  ;;  %v9051_v43 = vpop.permute.xlu1 %2526  ;;  %v9053_v55 = vpop.permute.xlu0 %2416  ;;  %v11713_v49 = vmov 0  }
 0xc80   : > { %11711 = vst [vmem:[#allocation54_spill] sm:$0xff] %v9051_v43  ;;  %11712 = vst [vmem:[#allocation55_spill] sm:$0xff] %v9053_v55 }
 0xc85   : > { %v7388_v27 = vpop.eup %7387 }
 0xc86   : > { %6382 = vmatmul.mubr.msk.f32.vlgmr.msra.gmra.mrb[20].mxu1 %vm11707_vm12, %v7388_v27  ;;  %v2942_v27 = vmul.f32 %v8886_v47, %v8894_v20  ;;  %vm11476_vm12 = vcmask 769024  }
 0xc87   : > { %2312 = vmatpush1.bf16.msra.mxu1 %v2306_v30  ;;  %2212 = vmatprep.mubr.f32.mxu1 %v11600_v41  ;;  %v9062_v30 = vpop.permute.xlu1 %2520  ;;  %v9064_v41 = vpop.permute.xlu0 %2401 }
 0xc88   : > { %11714 = vst [vmem:[#allocation56_spill] sm:$0xff] %v9062_v30  ;;  %11715 = vst [vmem:[#allocation57_spill] sm:$0xff] %v9064_v41  ;;  %v2948_v39 = vmul.f32 %v2942_v27, %v8954_v4  ;;  %v3422_v27 = vmul.f32 %v8908_v35, %v8905_v51 }
 0xc89   : > { %v7390_v33 = vpop.eup %7389 }
 0xc8a   : > { %6383 = vmatmul.mubr.msk.f32.gmra.mrb[22].mxu1 %vm11710_vm6, %v7390_v33  ;;  %v3419_v33 = vmul.f32 %v8925_v10, %v8894_v20 }
 0xc8b   : > { %2343 = vmatprep.mubr.bf16.mxu1 %v11713_v49  ;;  %v9070_v1 = vpop.permute.xlu0 %2454  ;;  %v9072_v36 = vpop.permute.xlu1 %3104 }
 0xc8c   : > { %11716 = vst [vmem:[#allocation58_spill] sm:$0xff] %v9070_v1  ;;  %11717 = vst [vmem:[#allocation59_spill] sm:$0xff] %v9072_v36  ;;  %v3425_v30 = vmul.f32 %v3419_v33, %v8954_v4 }
 0xc8e   : > { %6389 = vmatmul.mubr.msk.bf16.vlgmr.msra.gmra.mrb[24].mxu1 %vm11473_vm8, %v2291_v40  ;;  %v3124_v40 = vadd.f32 %v9072_v36, %v2948_v39 }
 0xc8f   : > { %3833 = vmatprep.mubr.bf16.mxu1 %v11713_v49  ;;  %v9079_v41 = vpop.permute.xlu0 %2528  ;;  %v9081_v13 = vpop.permute.xlu1 %3581 }
 0xc90   : > { %3172 = vrot.lane.b32.xlu1 %v3124_v40, %s11501_s16  ;;  %11718 = vst [vmem:[#allocation60_spill] sm:$0xff] %v9079_v41  ;;  %11719 = vst [vmem:[#allocation61_spill] sm:$0xff] %v9081_v13  ;;  %v3601_v1 = vadd.f32 %v9081_v13, %v3425_v30  ;;  %v3428_v40 = vmul.f32 %v3422_v27, %v8954_v4  ;;  %v2505_v41 = vmul.f32 %v8954_v4, %v2493_v18  ;;  %v6386_v18 = vld [vmem:[%s11213_s2 + $0x14] sm:$0x3] }
 0xc91   : > { %v2267_v61 = vrot.slane %v6386_v18, %v8070_v0 }
 0xc93   : > { %v9090_v39 = vpop.permute.xlu0 %3110  ;;  %v9099_v24 = vpop.permute.xlu1 %2594 }
 0xc94   : > { %3649 = vrot.lane.b32.xlu1 %v3601_v1, %s11501_s16  ;;  %11720 = vst [vmem:[#allocation62_spill] sm:$0xff] %v9090_v39  ;;  %v3127_v33 = vadd.f32 %v9090_v39, %v2951_v21  ;;  %v2603_v43 = vadd.f32 %v9099_v24, %v2505_v41  ;;  %v6384_v1 = vld [vmem:[%s11213_s2 + $0x10] sm:$0x3]  ;;  %v6385_v41 = vld [vmem:[%s11213_s2 + $0x12] sm:$0x3] }
 0xc95   : > { %v2229_v27 = vrot.slane %v6384_v1, %v8064_v8  ;;  %v2246_v13 = vrot.slane %v6385_v41, %v8064_v8  ;;  %v2250_v39 = vrot.slane %v6385_v41, %v8070_v0 }
 0xc96   : > { %3178 = vrot.lane.b32.xlu0 %v3127_v33, %s11501_s16  ;;  %v2263_v33 = vrot.slane %v6386_v18, %v8064_v8 }
 0xc97   : > { %v9096_v51 = vpop.permute.xlu0 %3587 }
 0xc98   : > { %11721 = vst [vmem:[#allocation63_spill] sm:$0xff] %v9096_v51  ;;  %v3604_v30 = vadd.f32 %v9096_v51, %v3428_v40  ;;  %v2233_v51 = vrot.slane %v6384_v1, %v8070_v0 }
 0xc9a   : > { %3655 = vrot.lane.b32.xlu0 %v3604_v30, %s11501_s16 }
 0xc9e   : > { %2629 = vrot.lane.b32.xlu0 %v2603_v43, %s11501_s16  ;;  %v6387_v43 = vld [vmem:[%s11213_s2 + $0x16] sm:$0x3] }
 0xc9f   : > { %v2284_v1 = vrot.slane %v6387_v43, %v8070_v0 }
 0xd59   : > { %v2208_v21 = vpop.f32.mrb[20].mxu1 }
 0xd5a   : > { %v2219_v40 = vmul.f32 %v2208_v21, %v8777_v5  ;;  %v2210_v30 = vpop.f32.mrb[21].mxu1  ;;  %v2280_v5 = vrot.slane %v6387_v43, %v8064_v8 }
 0xd5b   : > { %v2220_v20 = vmul.f32 %v2210_v30, %v8780_v3 }
 0xd5c   : > { %v2236_v35 = vmul.f32 %v2229_v27, %v2219_v40  ;;  %v2270_v10 = vmul.f32 %v2263_v33, %v2219_v40 }
 0xd5d   : > { %v2214_v21 = vpop.f32.mrb[22].mxu1  ;;  %v2237_v60 = vmul.f32 %v2233_v51, %v2220_v20  ;;  %v2271_v55 = vmul.f32 %v2267_v61, %v2220_v20 }
 0xd5e   : > { %v2221_v42 = vmul.f32 %v2214_v21, %v8787_v14  ;;  %v2216_v12 = vpop.f32.mrb[23].mxu1  ;;  %v2253_v36 = vadd.f32 %v2246_v13, %v2236_v35  ;;  %v2287_v26 = vadd.f32 %v2280_v5, %v2270_v10 }
 0xd5f   : > { %v2222_v3 = vmul.f32 %v2216_v12, %v8790_v17  ;;  %v2254_v8 = vadd.f32 %v2250_v39, %v2237_v60  ;;  %v2288_v21 = vadd.f32 %v2284_v1, %v2271_v55 }
 0xd60   : > { %v2238_v30 = vmul.f32 %v2229_v27, %v2221_v42  ;;  %v2272_v18 = vmul.f32 %v2263_v33, %v2221_v42 }
 0xd61   : > { %v2239_v47 = vmul.f32 %v2233_v51, %v2222_v3  ;;  %v2273_v40 = vmul.f32 %v2267_v61, %v2222_v3  ;;  %v2345_v23 = vpop.f32.mrb[24].mxu1  ;;  %v7375_v61 = vld [vmem:[%s11218_s7 + $0x8] sm:$0xff]  }
 0xd62   : > { %v2255_v63 = vadd.f32 %v2246_v13, %v2238_v30  ;;  %v2289_v6 = vadd.f32 %v2280_v5, %v2272_v18  ;;  %v9129_v41 = vadd.f32 %v2345_v23, %v8813_v32  ;;  %v2347_v14 = vpop.f32.mrb[25].mxu1 }
 0xd63   : > { %v2256_v20 = vadd.f32 %v2250_v39, %v2239_v47  ;;  %v2290_v38 = vadd.f32 %v2284_v1, %v2273_v40  ;;  %v9132_v43 = vadd.f32 %v2347_v14, %v8813_v32  ;;  %v2349_v17 = vpop.f32.mrb[26].mxu1  ;;  %v9150_v32 = vsel %vm11481_vm0, %v8940_v9, %v8919_v46  ;;  %v9174_v39 = vpop.permute.xlu1 %3074 }
 0xd64   : > { %v2681_v12 = vpack.c.bf16 %v2255_v63, %v2253_v36  ;;  %v3758_v35 = vpack.c.bf16 %v2289_v6, %v2287_v26  ;;  %v2513_v10 = vmul.f32 %v8841_v34, %v9129_v41  ;;  %v2350_v60 = vpop.f32.mrb[27].mxu1  ;;  %v7374_v36 = vld [vmem:[%s11218_s7] sm:$0xff]   ;;  %11722 = vst [vmem:[#allocation64_spill] sm:$0xff] %v9150_v32  ;;  %v9157_v63 = vsel %vm2476_vm4, %v8952_v58, %v8935_v22 }
 0xd65   : > { %v2682_v13 = vpack.c.bf16 %v2256_v20, %v2254_v8  ;;  %v3759_v42 = vpack.c.bf16 %v2290_v38, %v2288_v21  ;;  %v2514_v23 = vmul.f32 %v8841_v34, %v9132_v43  ;;  %v2437_v47 = vmul.f32 %v8974_v45, %v9132_v43  ;;  %11723 = vst [vmem:[#allocation65_spill] sm:$0xff] %v9157_v63 }
 0xd66   : > { %2590 = vrot.lane.b32.xlu1 %v2513_v10, %s11505_s23  ;;  %v2436_v8 = vmul.f32 %v8974_v45, %v9129_v41  ;;  %v2470_v34 = vmul.f32 %v8972_v11, %v9132_v43  ;;  %v2469_v38 = vmul.f32 %v8972_v11, %v9129_v41  ;;  %v9176_v11 = vpop.permute.xlu0 %3080 }
 0xd67   : > { %2723 = vmatprep.subr.bf16.mxu0 %v2682_v13  ;;  %3801 = vmatprep.subr.bf16.mxu1 %v3759_v42  ;;  %v2449_v6 = vmul.f32 %v8919_v46, %v2437_v47  ;;  %v9178_v51 = vpop.permute.xlu1 %3551  ;;  %v2492_v47 = vmul.f32 %v9011_v57, %v9132_v43 }
 0xd68   : > { %2724 = vmatpush1.bf16.msra.mxu0 %v2681_v12  ;;  %3802 = vmatpush1.bf16.msra.mxu1 %v3758_v35  ;;  %v2448_v45 = vmul.f32 %v9150_v32, %v2436_v8  ;;  %v2482_v26 = vmul.f32 %v9157_v63, %v2470_v34  ;;  %v2481_v55 = vmul.f32 %v8952_v58, %v2469_v38 }
 0xd69   : > { %2592 = vrot.lane.b32.xlu0 %v2514_v23, %s11505_s23 }
 0xd6a   : > { %2561 = vrot.lane.b32.xlu1 %v2449_v6, %s11503_s19  ;;  %v9180_v27 = vpop.permute.xlu0 %3557  ;;  %v9224_v6 = vsel %vm2498_vm7, %v8964_v53, %v8954_v4 }
 0xd6b   : > { %6400 = vmatmul.mubr.msk.bf16.vlgmr.msra.gmra.mrb[24].mxu0 %vm11724_vm13, %v7374_v36  ;;  %v9182_v33 = vpop.permute.xlu1 %3036  ;;  %v2491_v36 = vmul.f32 %v9011_v57, %v9129_v41  ;;  %11734 = vst [vmem:[#allocation74_spill] sm:$0xff] %v9224_v6 }
 0xd6c   : > { %2765 = vmatprep.mubr.bf16.mxu0 %v11713_v49 }
 0xd6d   : > { %2559 = vrot.lane.b32.xlu0 %v2448_v45, %s11503_s19  ;;  %v2504_v45 = vmul.f32 %v9224_v6, %v2492_v47  ;;  %v2503_v38 = vmul.f32 %v8964_v53, %v2491_v36 }
 0xd6e   : > { %2577 = vrot.lane.b32.xlu1 %v2482_v26, %s11505_s23  ;;  %v9184_v5 = vpop.permute.xlu0 %3042 }
 0xd6f   : > { %v9186_v1 = vpop.permute.xlu1 %3513 }
 0xd71   : > { %2575 = vrot.lane.b32.xlu0 %v2481_v55, %s11505_s23 }
 0xd72   : > { %v9188_v3 = vpop.permute.xlu0 %3519 }
 0xd73   : > { %6401 = vmatmul.mubr.msk.bf16.gmra.mrb[28].mxu0 %vm11725_vm15, %v7375_v61  ;;  %v9190_v30 = vpop.permute.xlu1 %2557 }
 0xd76   : > { %v9192_v18 = vpop.permute.xlu0 %2579 }
 0xd77   : > { %v9194_v40 = vpop.permute.xlu1 %2790 }
 0xd78   : > { %11726 = vst [vmem:[#allocation66_spill] sm:$0xff] %v9194_v40 }
 0xd7a   : > { %v9196_v14 = vpop.permute.xlu0 %2795 }
 0xd7b   : > { %11727 = vst [vmem:[#allocation67_spill] sm:$0xff] %v9196_v14  ;;  %v9198_v21 = vpop.permute.xlu1 %3267 }
 0xd7c   : > { %11728 = vst [vmem:[#allocation68_spill] sm:$0xff] %v9198_v21 }
 0xd7e   : > { %v9200_v20 = vpop.permute.xlu0 %3272 }
 0xd7f   : > { %11729 = vst [vmem:[#allocation69_spill] sm:$0xff] %v9200_v20  ;;  %v9202_v17 = vpop.permute.xlu1 %2375 }
 0xd80   : > { %11730 = vst [vmem:[#allocation70_spill] sm:$0xff] %v9202_v17 }
 0xd82   : > { %v9204_v12 = vpop.permute.xlu0 %2377 }
 0xd83   : > { %11731 = vst [vmem:[#allocation71_spill] sm:$0xff] %v9204_v12  ;;  %v9206_v35 = vpop.permute.xlu1 %2360  ;;  %v11775_v12 = vld [vmem:[#allocation63_spill] sm:$0xff] }
 0xd84   : > { %11732 = vst [vmem:[#allocation72_spill] sm:$0xff] %v9206_v35 }
 0xd86   : > { %v9208_v10 = vpop.permute.xlu0 %3178 }
 0xd87   : > { %v9210_v60 = vpop.permute.xlu1 %3172 }
 0xd8a   : > { %v9212_v13 = vpop.permute.xlu0 %3655 }
 0xd8b   : > { %v9214_v42 = vpop.permute.xlu1 %3649 }
 0xd8e   : > { %v9216_v23 = vpop.permute.xlu0 %2629 }
 0xd8f   : > { %11733 = vst [vmem:[#allocation73_spill] sm:$0xff] %v9216_v23 }
 0xdd8   : > { %v2591_v8 = vpop.permute.xlu1 %2590 }
 0xddb   : > { %v2593_v34 = vpop.permute.xlu0 %2592 }
 0xddc   : > { %v2596_v26 = vsel %vm11481_vm0, %v2591_v8, %v2593_v34  ;;  %v2597_v61 = vsel %vm11481_vm0, %v2593_v34, %v9099_v24 }
 0xddd   : > { %v2602_v55 = vadd.f32 %v2597_v61, %v2504_v45  ;;  %v2601_v0 = vadd.f32 %v2596_v26, %v2503_v38 }
 0xddf   : > { %2627 = vrot.lane.b32.xlu1 %v2602_v55, %s11501_s16  ;;  %2625 = vrot.lane.b32.xlu0 %v2601_v0, %s11501_s16 }
 0xe3e   : > { %v2757_v57 = vpop.f32.mrb[24].mxu0 }
 0xe3f   : > { %v9234_v4 = vadd.f32 %v2757_v57, %v8823_v54  ;;  %v2759_v9 = vpop.f32.mrb[25].mxu0 }
 0xe40   : > { %v2761_v22 = vpop.f32.mrb[26].mxu0  ;;  %v9237_v47 = vadd.f32 %v2759_v9, %v8823_v54 }
 0xe41   : > { %v2763_v36 = vpop.f32.mrb[27].mxu0  ;;  %v2965_v8 = vmul.f32 %v8821_v59, %v9234_v4  ;;  %v2824_v24 = vmul.f32 %v9023_v48, %v9234_v4  ;;  %v9246_v0 = vadd.f32 %v2761_v22, %v8803_v19  ;;  %v2868_v54 = vmul.f32 %v8862_v56, %v9234_v4 }
 0xe42   : > { %v2825_v34 = vmul.f32 %v9023_v48, %v9237_v47  ;;  %v2966_v9 = vmul.f32 %v8821_v59, %v9237_v47  ;;  %v2915_v57 = vmul.f32 %v8876_v16, %v9234_v4  ;;  %v9264_v59 = vadd.f32 %v2763_v36, %v8803_v19 }
 0xe43   : > { %3100 = vrot.lane.b32.xlu1 %v2965_v8, %s11505_s23  ;;  %3004 = vrot.lane.b32.xlu0 %v2824_v24, %s11505_s23  ;;  %v2874_v22 = vmul.f32 %v2868_v54, %v9150_v32  ;;  %v2968_v55 = vmul.f32 %v8843_v25, %v9246_v0  ;;  %v2827_v24 = vmul.f32 %v9013_v29, %v9246_v0 }
 0xe44   : > { %v2921_v8 = vmul.f32 %v2915_v57, %v8952_v58  ;;  %v2871_v19 = vmul.f32 %v8851_v50, %v9246_v0  ;;  %v2916_v36 = vmul.f32 %v8876_v16, %v9237_v47 }
 0xe46   : > { %v2767_v45 = vpop.f32.mrb[28].mxu0 }
 0xe47   : > { %v2769_v38 = vpop.f32.mrb[29].mxu0  ;;  %3006 = vrot.lane.b32.xlu1 %v2825_v34, %s11505_s23  ;;  %3102 = vrot.lane.b32.xlu0 %v2966_v9, %s11505_s23  ;;  %v2869_v34 = vmul.f32 %v8862_v56, %v9237_v47  ;;  %v2969_v9 = vmul.f32 %v8843_v25, %v9264_v59  ;;  %v2877_v56 = vmul.f32 %v2871_v19, %v9150_v32 }
 0xe48   : > { %v2771_v26 = vpop.f32.mrb[30].mxu0  ;;  %v2918_v25 = vmul.f32 %v8860_v7, %v9246_v0  ;;  %v9291_v16 = vadd.f32 %v2767_v45, %v8811_v28 }
 0xe49   : > { %v2773_v61 = vpop.f32.mrb[31].mxu0  ;;  %v2875_v54 = vmul.f32 %v2869_v34, %v8919_v46 }
 0xe4a   : > { %v3442_v34 = vmul.f32 %v8831_v2, %v9291_v16  ;;  %v9320_v19 = vadd.f32 %v2773_v61, %v8833_v44 }
 0xe4b   : > { %3038 = vrot.lane.b32.xlu1 %v2874_v22, %s11503_s19  ;;  %3106 = vrot.lane.b32.xlu0 %v2968_v55, %s11505_s23  ;;  %v2922_v22 = vmul.f32 %v2916_v36, %v9157_v63  ;;  %v2919_v55 = vmul.f32 %v8860_v7, %v9264_v59  ;;  %v9300_v7 = vadd.f32 %v2769_v38, %v8811_v28 }
 0xe4c   : > { %v3392_v38 = vmul.f32 %v8912_v31, %v9291_v16 }
 0xe4d   : > { %v2925_v57 = vmul.f32 %v2919_v55, %v9157_v63  ;;  %v3443_v28 = vmul.f32 %v8831_v2, %v9300_v7  ;;  %v3446_v2 = vmul.f32 %v8853_v52, %v9320_v19  ;;  %v3302_v55 = vmul.f32 %v9031_v15, %v9300_v7 }
 0xe4e   : > { %v3398_v36 = vmul.f32 %v3392_v38, %v8952_v58  ;;  %v11738_v38 = vld [vmem:[#allocation19_spill] sm:$0xff] }
 0xe4f   : > { %3070 = vrot.lane.b32.xlu1 %v2921_v8, %s11505_s23  ;;  %3010 = vrot.lane.b32.xlu0 %v2827_v24, %s11505_s23  ;;  %v2924_v8 = vmul.f32 %v2918_v25, %v8952_v58  ;;  %v2872_v24 = vmul.f32 %v8851_v50, %v9264_v59  ;;  %v9310_v50 = vadd.f32 %v2771_v26, %v8833_v44  ;;  %v11736_v25 = vld [vmem:[#allocation36_spill] sm:$0xff] }
 0xe50   : > { %v2828_v44 = vmul.f32 %v9013_v29, %v9264_v59 }
 0xe51   : > { %v2878_v45 = vmul.f32 %v2872_v24, %v8919_v46  ;;  %v3445_v26 = vmul.f32 %v8853_v52, %v9310_v50  ;;  %v3304_v61 = vmul.f32 %v9021_v62, %v9310_v50  ;;  %v3303_v24 = vmul.f32 %v9021_v62, %v11736_v25 }
 0xe53   : > { %3108 = vrot.lane.b32.xlu1 %v2969_v9, %s11505_s23  ;;  %3040 = vrot.lane.b32.xlu0 %v2875_v54, %s11503_s19  ;;  %v3345_v9 = vmul.f32 %v8901_v37, %v9291_v16 }
 0xe55   : > { %v3351_v54 = vmul.f32 %v3345_v9, %v9150_v32  ;;  %v3305_v9 = vmul.f32 %v9021_v62, %v9320_v19 }
 0xe57   : > { %3044 = vrot.lane.b32.xlu1 %v2877_v56, %s11503_s19  ;;  %3072 = vrot.lane.b32.xlu0 %v2922_v22, %s11505_s23  ;;  %v3301_v56 = vmul.f32 %v9031_v15, %v9291_v16  ;;  %v11735_v22 = vld [vmem:[#allocation34_spill] sm:$0xff] }
 0xe58   : > { %v2823_v52 = vmul.f32 %v9023_v48, %v11735_v22  ;;  %v3735_v48 = vld [vmem:[%s11223_s12] sm:$0xff] }
 0xe5b   : > { %3078 = vrot.lane.b32.xlu1 %v2925_v57, %s11505_s23  ;;  %3076 = vrot.lane.b32.xlu0 %v2924_v8, %s11505_s23  ;;  %v2826_v57 = vmul.f32 %v9013_v29, %v11736_v25  ;;  %v3300_v8 = vmul.f32 %v9031_v15, %v11735_v22  ;;  %v3736_v15 = vld [vmem:[%s11223_s12 + $0x8] sm:$0xff] }
 0xe5f   : > { %3577 = vrot.lane.b32.xlu1 %v3442_v34, %s11505_s23  ;;  %3046 = vrot.lane.b32.xlu0 %v2878_v45, %s11503_s19  ;;  %v3346_v34 = vmul.f32 %v8901_v37, %v9300_v7  ;;  %v3393_v45 = vmul.f32 %v8912_v31, %v9300_v7 }
 0xe61   : > { %v3352_v29 = vmul.f32 %v3346_v34, %v8919_v46  ;;  %v3399_v37 = vmul.f32 %v3393_v45, %v9157_v63 }
 0xe63   : > { %3515 = vrot.lane.b32.xlu1 %v3351_v54, %s11503_s19  ;;  %3579 = vrot.lane.b32.xlu0 %v3443_v28, %s11505_s23  ;;  %v11737_v54 = vld [vmem:[#allocation15_spill] sm:$0xff] }
 0xe64   : > { %v3348_v28 = vmul.f32 %v11737_v54, %v9310_v50  ;;  %v3349_v62 = vmul.f32 %v11737_v54, %v9320_v19 }
 0xe66   : > { %v3354_v31 = vmul.f32 %v3348_v28, %v9150_v32 }
 0xe67   : > { %3547 = vrot.lane.b32.xlu1 %v3398_v36, %s11505_s23  ;;  %3583 = vrot.lane.b32.xlu0 %v3445_v26, %s11505_s23  ;;  %v3395_v36 = vmul.f32 %v11738_v38, %v9310_v50 }
 0xe69   : > { %v3401_v26 = vmul.f32 %v3395_v36, %v8952_v58 }
 0xe6b   : > { %3585 = vrot.lane.b32.xlu1 %v3446_v2, %s11505_s23  ;;  %3481 = vrot.lane.b32.xlu0 %v3301_v56, %s11505_s23  ;;  %v3396_v2 = vmul.f32 %v11738_v38, %v9320_v19 }
 0xe6d   : > { %v3402_v56 = vmul.f32 %v3396_v2, %v9157_v63 }
 0xe6f   : > { %3012 = vrot.lane.b32.xlu1 %v2828_v44, %s11505_s23  ;;  %3487 = vrot.lane.b32.xlu0 %v3304_v61, %s11505_s23  ;;  %v3355_v44 = vmul.f32 %v3349_v62, %v8919_v46  ;;  %v9387_v61 = vpop.permute.xlu1 %2561 }
 0xe73   : > { %3483 = vrot.lane.b32.xlu1 %v3302_v55, %s11505_s23  ;;  %3002 = vrot.lane.b32.xlu0 %v2823_v52, %s11505_s23  ;;  %v9389_v52 = vpop.permute.xlu0 %2559  ;;  %v9391_v55 = vpop.permute.xlu1 %2577 }
 0xe77   : > { %3008 = vrot.lane.b32.xlu1 %v2826_v57, %s11505_s23  ;;  %3479 = vrot.lane.b32.xlu0 %v3300_v8, %s11505_s23  ;;  %v9393_v57 = vpop.permute.xlu0 %2575  ;;  %v9395_v8 = vpop.permute.xlu1 %2627 }
 0xe7b   : > { %3485 = vrot.lane.b32.xlu1 %v3303_v24, %s11505_s23  ;;  %3739 = vperm.xlu0 %7372, %v3735_v48   ;;  %v9397_v48 = vpop.permute.xlu0 %2625 }
 0xe7f   : > { %3744 = vperm.xlu1 %7373, %v3736_v15   ;;  %3517 = vrot.lane.b32.xlu0 %v3352_v29, %s11503_s19  ;;  %v11740_v15 = vld [vmem:[#allocation16_spill] sm:$0xff] }
 0xe80   : > { %v2940_v29 = vmul.f32 %v11740_v15, %v9234_v4  ;;  %v2941_v45 = vmul.f32 %v11740_v15, %v9237_v47 }
 0xe82   : > { %v2946_v28 = vmul.f32 %v2940_v29, %v8964_v53  ;;  %v2947_v38 = vmul.f32 %v2941_v45, %v9224_v6 }
 0xe83   : > { %3489 = vrot.lane.b32.xlu1 %v3305_v9, %s11505_s23  ;;  %3549 = vrot.lane.b32.xlu0 %v3399_v37, %s11505_s23  ;;  %v11741_v9 = vld [vmem:[#allocation42_spill] sm:$0xff] }
 0xe84   : > { %v2842_v37 = vmul.f32 %v11741_v9, %v11735_v22 }
 0xe87   : > { %3521 = vrot.lane.b32.xlu1 %v3354_v31, %s11503_s19  ;;  %3553 = vrot.lane.b32.xlu0 %v3401_v26, %s11505_s23  ;;  %v11743_v26 = vld [vmem:[#allocation59_spill] sm:$0xff] }
 0xe8b   : > { %3555 = vrot.lane.b32.xlu1 %v3402_v56, %s11505_s23  ;;  %3523 = vrot.lane.b32.xlu0 %v3355_v44, %s11503_s19  ;;  %v11744_v44 = vld [vmem:[#allocation55_spill] sm:$0xff] }
 0xe8c   : > { %v2848_v15 = vmul.f32 %v2842_v37, %v11744_v44  ;;  %v11746_v37 = vld [vmem:[#allocation13_spill] sm:$0xff] }
 0xeb5   : > { %v3101_v24 = vpop.permute.xlu1 %3100  ;;  %v9399_v34 = vpop.permute.xlu0 %3004 }
 0xeb6   : > { %11739 = vst [vmem:[#allocation34_spill] sm:$0xff] %v9399_v34 }
 0xeb9   : > { %v9407_v54 = vpop.permute.xlu1 %3006  ;;  %v3103_v36 = vpop.permute.xlu0 %3102 }
 0xeba   : > { %11742 = vst [vmem:[#allocation36_spill] sm:$0xff] %v9407_v54  ;;  %v3112_v31 = vsel %vm11481_vm0, %v3101_v24, %v3103_v36  ;;  %v3113_v2 = vsel %vm11481_vm0, %v3103_v36, %v11743_v26  ;;  %v2844_v24 = vmul.f32 %v11741_v9, %v9237_v47  ;;  %v2944_v36 = vmul.f32 %v11746_v37, %v9264_v59 }
 0xebb   : > { %v3122_v62 = vadd.f32 %v3112_v31, %v2946_v28  ;;  %v3123_v56 = vadd.f32 %v3113_v2, %v2947_v38  ;;  %v2943_v38 = vmul.f32 %v11746_v37, %v9246_v0  ;;  %v11747_v31 = vld [vmem:[#allocation50_spill] sm:$0xff] }
 0xebc   : > { %v2850_v26 = vmul.f32 %v2844_v24, %v11747_v31  ;;  %v9440_v37 = vsel %vm11479_vm1, %v11744_v44, %v11747_v31  ;;  %v2950_v24 = vmul.f32 %v2944_v36, %v9224_v6 }
 0xebd   : > { %v3039_v58 = vpop.permute.xlu1 %3038  ;;  %3170 = vrot.lane.b32.xlu0 %v3123_v56, %s11501_s16  ;;  %3168 = vrot.lane.b32.xlu1 %v3122_v62, %s11501_s16  ;;  %v3107_v63 = vpop.permute.xlu0 %3106  ;;  %v2843_v62 = vmul.f32 %v11741_v9, %v9234_v4  ;;  %11749 = vst [vmem:[#allocation19_spill] sm:$0xff] %v9440_v37 }
 0xebe   : > { %v3048_v29 = vsel %vm11480_vm9, %v9182_v33, %v3039_v58  ;;  %v2949_v33 = vmul.f32 %v2943_v38, %v8964_v53 }
 0xebf   : > { %v3058_v45 = vadd.f32 %v3048_v29, %v2848_v15  ;;  %v2849_v9 = vmul.f32 %v2843_v62, %v9440_v37 }
 0xec1   : > { %v9421_v46 = vpop.permute.xlu1 %3070  ;;  %3134 = vrot.lane.b32.xlu0 %v3058_v45, %s11471_s25  ;;  %v9424_v28 = vpop.permute.xlu0 %3010  ;;  %v11748_v45 = vld [vmem:[#allocation62_spill] sm:$0xff] }
 0xec2   : > { %11745 = vst [vmem:[#allocation15_spill] sm:$0xff] %v9424_v28 }
 0xec5   : > { %v3109_v2 = vpop.permute.xlu1 %3108  ;;  %v3041_v56 = vpop.permute.xlu0 %3040 }
 0xec6   : > { %v3114_v15 = vsel %vm11481_vm0, %v3107_v63, %v3109_v2  ;;  %v3060_v29 = vadd.f32 %v3041_v56, %v2850_v26  ;;  %v3115_v32 = vsel %vm11481_vm0, %v3109_v2, %v11748_v45  ;;  %v3049_v38 = vsel %vm11480_vm9, %v3039_v58, %v3041_v56  ;;  %v11750_v2 = vld [vmem:[#allocation40_spill] sm:$0xff] }
 0xec7   : > { %v3125_v28 = vadd.f32 %v3114_v15, %v2949_v33  ;;  %v3126_v26 = vadd.f32 %v3115_v32, %v2950_v24  ;;  %v3059_v33 = vadd.f32 %v3049_v38, %v2849_v9  ;;  %v2847_v15 = vmul.f32 %v11750_v2, %v9264_v59  ;;  %v11751_v24 = vld [vmem:[#allocation24_spill] sm:$0xff] }
 0xec8   : > { %3138 = vrot.lane.b32.xlu1 %v3060_v29, %s11471_s25  ;;  %v2846_v36 = vmul.f32 %v11750_v2, %v9246_v0  ;;  %v3418_v38 = vmul.f32 %v11751_v24, %v9300_v7 }
 0xec9   : > { %v3045_v35 = vpop.permute.xlu1 %3044  ;;  %3174 = vrot.lane.b32.xlu0 %v3125_v28, %s11501_s16  ;;  %v9447_v63 = vpop.permute.xlu0 %3072  ;;  %v2845_v28 = vmul.f32 %v11750_v2, %v11736_v25  ;;  %v2853_v32 = vmul.f32 %v2847_v15, %v11747_v31  ;;  %v3417_v25 = vmul.f32 %v11751_v24, %v9291_v16  ;;  %v11752_v2 = vld [vmem:[#allocation44_spill] sm:$0xff] }
 0xeca   : > { %v2852_v56 = vmul.f32 %v2846_v36, %v9440_v37  ;;  %v3319_v15 = vmul.f32 %v11752_v2, %v11735_v22 }
 0xecb   : > { %v2851_v14 = vmul.f32 %v2845_v28, %v11744_v44 }
 0xecc   : > { %3176 = vrot.lane.b32.xlu1 %v3126_v26, %s11501_s16 }
 0xecd   : > { %v9452_v45 = vpop.permute.xlu1 %3078  ;;  %3136 = vrot.lane.b32.xlu0 %v3059_v33, %s11471_s25  ;;  %v9455_v58 = vpop.permute.xlu0 %3076  ;;  %v3050_v33 = vsel %vm11480_vm9, %v9184_v5, %v3045_v35  ;;  %v11753_v5 = vld [vmem:[#allocation61_spill] sm:$0xff] }
 0xece   : > { %v3061_v34 = vadd.f32 %v3050_v33, %v2851_v14  ;;  %v11754_v14 = vld [vmem:[#allocation21_spill] sm:$0xff] }
 0xed1   : > { %v3578_v62 = vpop.permute.xlu1 %3577  ;;  %v3047_v29 = vpop.permute.xlu0 %3046 }
 0xed2   : > { %v3051_v9 = vsel %vm11480_vm9, %v3045_v35, %v3047_v29  ;;  %v3063_v26 = vadd.f32 %v3047_v29, %v2853_v32  ;;  %v3424_v32 = vmul.f32 %v3418_v38, %v9224_v6  ;;  %v3420_v38 = vmul.f32 %v11754_v14, %v9310_v50 }
 0xed3   : > { %v3062_v20 = vadd.f32 %v3051_v9, %v2852_v56  ;;  %v3423_v9 = vmul.f32 %v3417_v25, %v8964_v53 }
 0xed4   : > { %3144 = vrot.lane.b32.xlu1 %v3063_v26, %s11471_s25 }
 0xed5   : > { %v9474_v36 = vpop.permute.xlu1 %3515  ;;  %3142 = vrot.lane.b32.xlu0 %v3062_v20, %s11471_s25  ;;  %v3580_v29 = vpop.permute.xlu0 %3579  ;;  %v3325_v20 = vmul.f32 %v3319_v15, %v11744_v44  ;;  %v11755_v15 = vld [vmem:[#allocation51_spill] sm:$0xff] }
 0xed6   : > { %v3590_v35 = vsel %vm11481_vm0, %v3580_v29, %v11753_v5  ;;  %v3589_v28 = vsel %vm11481_vm0, %v3578_v62, %v3580_v29  ;;  %v3525_v24 = vsel %vm11480_vm9, %v9186_v1, %v9474_v36  ;;  %v3426_v1 = vmul.f32 %v3420_v38, %v8964_v53 }
 0xed7   : > { %v3600_v56 = vadd.f32 %v3590_v35, %v3424_v32  ;;  %v3599_v33 = vadd.f32 %v3589_v28, %v3423_v9  ;;  %v3535_v62 = vadd.f32 %v3525_v24, %v3325_v20  ;;  %v2984_v5 = vmul.f32 %v11755_v15, %v9234_v4  ;;  %v11756_v35 = vld [vmem:[#allocation18_spill] sm:$0xff]  ;;  %v11759_v20 = vld [vmem:[#allocation60_spill] sm:$0xff] }
 0xed8   : > { %3140 = vrot.lane.b32.xlu1 %v3061_v34, %s11471_s25  ;;  %v2986_v28 = vmul.f32 %v11755_v15, %v11756_v35 }
 0xed9   : > { %v9487_v26 = vpop.permute.xlu1 %3547  ;;  %3647 = vrot.lane.b32.xlu0 %v3600_v56, %s11501_s16  ;;  %v3584_v32 = vpop.permute.xlu0 %3583  ;;  %v11757_v56 = vld [vmem:[#allocation54_spill] sm:$0xff] }
 0xeda   : > { %v2990_v24 = vmul.f32 %v2984_v5, %v11757_v56  ;;  %v2992_v38 = vmul.f32 %v2986_v28, %v11759_v20  ;;  %v11764_v5 = vld [vmem:[#allocation53_spill] sm:$0xff] }
 0xedb   : > { %v3463_v53 = vmul.f32 %v11764_v5, %v11756_v35  ;;  %v3321_v35 = vmul.f32 %v11752_v2, %v9300_v7 }
 0xedc   : > { %3645 = vrot.lane.b32.xlu1 %v3599_v33, %s11501_s16  ;;  %v11760_v33 = vld [vmem:[#allocation47_spill] sm:$0xff] }
 0xedd   : > { %v3586_v29 = vpop.permute.xlu1 %3585  ;;  %3611 = vrot.lane.b32.xlu0 %v3535_v62, %s11471_s25  ;;  %v9502_v9 = vpop.permute.xlu0 %3481  ;;  %v2988_v62 = vmul.f32 %v11760_v33, %v9264_v59 }
 0xede   : > { %v3591_v34 = vsel %vm11481_vm0, %v3584_v32, %v3586_v29  ;;  %11758 = vst [vmem:[#allocation16_spill] sm:$0xff] %v9502_v9  ;;  %v3592_v21 = vsel %vm11481_vm0, %v3586_v29, %v11775_v12 }
 0xedf   : > { %v3602_v25 = vadd.f32 %v3591_v34, %v3426_v1  ;;  %v9516_v34 = vsel %vm11475_vm11, %v11757_v56, %v11759_v20 }
 0xee0   : > { %11763 = vst [vmem:[#allocation13_spill] sm:$0xff] %v9516_v34 }
 0xee1   : > { %3651 = vrot.lane.b32.xlu0 %v3602_v25, %s11501_s16  ;;  %v9508_v32 = vpop.permute.xlu1 %3012  ;;  %v9511_v1 = vpop.permute.xlu0 %3487  ;;  %v2994_v25 = vmul.f32 %v2988_v62, %v9516_v34  ;;  %v11767_v62 = vld [vmem:[#allocation48_spill] sm:$0xff] }
 0xee2   : > { %11761 = vst [vmem:[#allocation42_spill] sm:$0xff] %v9508_v32  ;;  %11762 = vst [vmem:[#allocation59_spill] sm:$0xff] %v9511_v1  ;;  %v3469_v32 = vmul.f32 %v3463_v53, %v11759_v20  ;;  %v3465_v9 = vmul.f32 %v11767_v62, %v9320_v19  ;;  %v11772_v53 = vld [vmem:[#allocation52_spill] sm:$0xff] }
 0xee5   : > { %3224 = vrot.lane.b32.xlu0 %v2990_v24, %s11467_s26  ;;  %v3461_v24 = vmul.f32 %v11764_v5, %v9291_v16  ;;  %v9522_v28 = vpop.permute.xlu1 %3483  ;;  %v9527_v1 = vpop.permute.xlu0 %3002 }
 0xee6   : > { %11765 = vst [vmem:[#allocation62_spill] sm:$0xff] %v9522_v28  ;;  %11766 = vst [vmem:[#allocation40_spill] sm:$0xff] %v9527_v1  ;;  %v3471_v28 = vmul.f32 %v3465_v9, %v9516_v34  ;;  %v2395_v1 = vmul.f32 %v11772_v53, %v9129_v41  ;;  %v3327_v9 = vmul.f32 %v3321_v35, %v11747_v31 }
 0xee9   : > { %3228 = vrot.lane.b32.xlu0 %v2992_v38, %s11467_s26  ;;  %v3467_v38 = vmul.f32 %v3461_v24, %v11757_v56  ;;  %v9533_v17 = vpop.permute.xlu1 %3008 }
 0xeea   : > { %11768 = vst [vmem:[#allocation24_spill] sm:$0xff] %v9533_v17  ;;  %v11773_v17 = vld [vmem:[#allocation57_spill] sm:$0xff] }
 0xeeb   : > { %v2406_v54 = vmul.f32 %v11773_v17, %v9132_v43 }
 0xeed   : > { %3232 = vrot.lane.b32.xlu0 %v2994_v25, %s11467_s26  ;;  %v9536_v25 = vpop.permute.xlu0 %3479  ;;  %v9542_v24 = vpop.permute.xlu1 %3485  ;;  %v2427_v40 = vmul.f32 %v11747_v31, %v2406_v54 }
 0xeee   : > { %11769 = vst [vmem:[#allocation44_spill] sm:$0xff] %v9536_v25  ;;  %11770 = vst [vmem:[#allocation61_spill] sm:$0xff] %v9542_v24  ;;  %v2394_v24 = vmul.f32 %v11735_v22, %v11772_v53 }
 0xeef   : > { %v2571_v35 = vadd.f32 %v9387_v61, %v2427_v40 }
 0xef1   : > { %3701 = vrot.lane.b32.xlu0 %v3467_v38, %s11467_s26 }
 0xef5   : > { %3705 = vrot.lane.b32.xlu0 %v3469_v32, %s11467_s26  ;;  %v3421_v32 = vmul.f32 %v11754_v14, %v9320_v19  ;;  %v3320_v14 = vmul.f32 %v11752_v2, %v9291_v16 }
 0xef7   : > { %v3427_v23 = vmul.f32 %v3421_v32, %v9224_v6  ;;  %v3326_v29 = vmul.f32 %v3320_v14, %v9440_v37  ;;  %v7409_v32 = vld [vmem:[#allocation2 + $0x38] sm:$0xff] }
 0xef8   : > { %v2989_v14 = vmul.f32 %v7409_v32, %v11760_v33 }
 0xef9   : > { %3709 = vrot.lane.b32.xlu0 %v3471_v28, %s11467_s26  ;;  %v3603_v22 = vadd.f32 %v3592_v21, %v3427_v23 }
 0xefa   : > { %v9544_v38 = vpop.permute.xlu0 %3739 }
 0xefb   : > { %11771 = vst [vmem:[#allocation21_spill] sm:$0xff] %v9544_v38 }
 0xefd   : > { %2542 = vrot.lane.b32.xlu0 %v2395_v1, %s11505_s23 }
 0xefe   : > { %v9554_v28 = vpop.permute.xlu1 %3744  ;;  %v3518_v25 = vpop.permute.xlu0 %3517 }
 0xeff   : > { %11774 = vst [vmem:[#allocation51_spill] sm:$0xff] %v9554_v28  ;;  %v3537_v38 = vadd.f32 %v3518_v25, %v3327_v9  ;;  %v2985_v9 = vmul.f32 %v11755_v15, %v9237_v47  ;;  %v3526_v12 = vsel %vm11480_vm9, %v9474_v36, %v3518_v25  ;;  %v2987_v15 = vmul.f32 %v11760_v33, %v9246_v0 }
 0xf00   : > { %v3536_v21 = vadd.f32 %v3526_v12, %v3326_v29  ;;  %v3462_v29 = vmul.f32 %v11764_v5, %v9300_v7  ;;  %v3464_v33 = vmul.f32 %v11767_v62, %v9310_v50  ;;  %v2405_v5 = vmul.f32 %v11773_v17, %v9129_v41 }
 0xf01   : > { %3615 = vrot.lane.b32.xlu1 %v3537_v38, %s11471_s25  ;;  %2540 = vrot.lane.b32.xlu0 %v2394_v24, %s11505_s23  ;;  %v11776_v24 = vld [vmem:[#allocation41_spill] sm:$0xff]  ;;  %v2991_v23 = vmul.f32 %v2985_v9, %v9516_v34  ;;  %v2995_v9 = vmul.f32 %v2989_v14, %v11759_v20  ;;  %v2565_v14 = vsel %vm11480_vm9, %v9389_v52, %v9387_v61 }
 0xf02   : > { %v9566_v1 = vpop.permute.xlu0 %3549  ;;  %v9573_v54 = vpop.permute.xlu1 %3489  ;;  %v3323_v40 = vmul.f32 %v11776_v24, %v9310_v50 }
 0xf04   : > { %v3329_v25 = vmul.f32 %v3323_v40, %v9440_v37  ;;  %v3468_v40 = vmul.f32 %v3462_v29, %v9516_v34 }
 0xf05   : > { %3653 = vrot.lane.b32.xlu1 %v3603_v22, %s11501_s16  ;;  %2611 = vrot.lane.b32.xlu0 %v2571_v35, %s11471_s25  ;;  %v2993_v22 = vmul.f32 %v2987_v15, %v11757_v56 }
 0xf06   : > { %v9578_v2 = vpop.permute.xlu0 %3553  ;;  %v3522_v36 = vpop.permute.xlu1 %3521 }
 0xf09   : > { %3226 = vrot.lane.b32.xlu1 %v2991_v23, %s11467_s26  ;;  %3613 = vrot.lane.b32.xlu0 %v3536_v21, %s11471_s25  ;;  %v3466_v21 = vmul.f32 %v7409_v32, %v11767_v62  ;;  %v3470_v23 = vmul.f32 %v3464_v33, %v11757_v56  ;;  %v2426_v62 = vmul.f32 %v9440_v37, %v2405_v5 }
 0xf0a   : > { %v3524_v38 = vpop.permute.xlu0 %3523  ;;  %v9630_v29 = vpop.permute.xlu1 %3555  ;;  %v3082_v33 = vsel %vm11481_vm0, %v9421_v46, %v9447_v63 }
 0xf0b   : > { %v3528_v35 = vsel %vm11480_vm9, %v3522_v36, %v3524_v38  ;;  %v3472_v15 = vmul.f32 %v3466_v21, %v11759_v20  ;;  %v2570_v32 = vadd.f32 %v2565_v14, %v2426_v62  ;;  %v3527_v21 = vsel %vm11480_vm9, %v9188_v3, %v3522_v36 }
 0xf0c   : > { %v3539_v12 = vadd.f32 %v3528_v35, %v3329_v25  ;;  %v2396_v25 = vmul.f32 %v11772_v53, %v9132_v43  ;;  %v3324_v35 = vmul.f32 %v11776_v24, %v9320_v19  ;;  %v7376_v53 = vld [vmem:[%s11218_s7 + $0x10] sm:$0xff]  }
 0xf0d   : > { %3230 = vrot.lane.b32.xlu1 %v2993_v22, %s11467_s26  ;;  %v2668_v22 = vld [vmem:[%s11221_s10] sm:$0xff]  ;;  %6446 = vmatmul.mubr.msk.bf16.vlgmr.msra.gmra.mrb[28].mxu1 %vm11777_vm2, %v7376_v53  ;;  %v3085_v53 = vsel %vm11481_vm0, %v9452_v45, %v9176_v11 }
 0xf0e   : > { %3619 = vrot.lane.b32.xlu0 %v3539_v12, %s11471_s25  ;;  %v9624_v12 = vld [vmem:[#allocation2 + $0x20] sm:$0xff]  ;;  %3843 = vmatprep.mubr.bf16.mxu1 %v11713_v49 }
 0xf0f   : > { %v3322_v61 = vmul.f32 %v9624_v12, %v11776_v24 }
 0xf11   : > { %3234 = vrot.lane.b32.xlu1 %v2995_v9, %s11467_s26  ;;  %v3330_v9 = vmul.f32 %v3324_v35, %v11747_v31 }
 0xf15   : > { %3703 = vrot.lane.b32.xlu1 %v3468_v40, %s11467_s26  ;;  %v3540_v40 = vadd.f32 %v3524_v38, %v3330_v9  ;;  %v3083_v38 = vsel %vm11481_vm0, %v9447_v63, %v9174_v39  ;;  %v7377_v39 = vld [vmem:[%s11218_s7 + $0x18] sm:$0xff]   ;;  %v11780_v9 = vld [vmem:[#allocation43_spill] sm:$0xff] }
 0xf16   : > { %6447 = vmatmul.mubr.msk.bf16.gmra.mrb[32].mxu1 %vm11779_vm3, %v7377_v39 }
 0xf17   : > { %4970 = vmatprep.mubr.bf16.mxu1 %v11713_v49 }
 0xf19   : > { %3707 = vrot.lane.b32.xlu1 %v3470_v23, %s11467_s26  ;;  %v11778_v23 = vld [vmem:[#allocation46_spill] sm:$0xff] }
 0xf1a   : > { %v2892_v24 = vmul.f32 %v11778_v23, %v9234_v4  ;;  %v2893_v5 = vmul.f32 %v11778_v23, %v9237_v47 }
 0xf1d   : > { %3711 = vrot.lane.b32.xlu1 %v3472_v15, %s11467_s26  ;;  %v3328_v15 = vmul.f32 %v3322_v61, %v11744_v44  ;;  %v3084_v61 = vsel %vm11481_vm0, %v9455_v58, %v9452_v45 }
 0xf1f   : > { %v3538_v14 = vadd.f32 %v3527_v21, %v3328_v15 }
 0xf21   : > { %2544 = vrot.lane.b32.xlu1 %v2396_v25, %s11505_s23  ;;  %v3090_v25 = vadd.f32 %v3082_v33, %v2892_v24  ;;  %v2894_v33 = vmul.f32 %v11780_v9, %v9246_v0 }
 0xf23   : > { %v3092_v24 = vadd.f32 %v3084_v61, %v2894_v33 }
 0xf25   : > { %2609 = vrot.lane.b32.xlu1 %v2570_v32, %s11471_s25  ;;  %v3091_v32 = vadd.f32 %v3083_v38, %v2893_v5 }
 0xf29   : > { %2671 = vperm.xlu1 %7373, %v2668_v22  }
 0xf2d   : > { %3621 = vrot.lane.b32.xlu1 %v3540_v40, %s11471_s25  ;;  %v2895_v40 = vmul.f32 %v11780_v9, %v9264_v59 }
 0xf2f   : > { %v3169_v46 = vpop.permute.xlu1 %3168  ;;  %v3171_v62 = vpop.permute.xlu0 %3170  ;;  %v3093_v23 = vadd.f32 %v3085_v53, %v2895_v40 }
 0xf30   : > { %v3180_v3 = vsel %vm11479_vm1, %v3169_v46, %v3171_v62  ;;  %v3181_v36 = vsel %vm11479_vm1, %v3171_v62, %v9210_v60  ;;  %v3560_v46 = vsel %vm11481_vm0, %v9566_v1, %v9178_v51  ;;  %v11781_v62 = vld [vmem:[#allocation49_spill] sm:$0xff] }
 0xf31   : > { %v3188_v35 = vadd.f32 %v3180_v3, %v3090_v25  ;;  %3617 = vrot.lane.b32.xlu1 %v3538_v14, %s11471_s25  ;;  %v3189_v63 = vadd.f32 %v3181_v36, %v3091_v32  ;;  %v3370_v3 = vmul.f32 %v11781_v62, %v9300_v7  ;;  %v3559_v36 = vsel %vm11481_vm0, %v9487_v26, %v9566_v1 }
 0xf32   : > { %v3369_v39 = vmul.f32 %v11781_v62, %v9291_v16  ;;  %v3561_v1 = vsel %vm11481_vm0, %v9578_v2, %v9630_v29  ;;  %v2581_v2 = vsel %vm11481_vm0, %v9393_v57, %v9391_v55  ;;  %v11783_v62 = vld [vmem:[#allocation58_spill] sm:$0xff] }
 0xf33   : > { %3196 = vrot.lane.b32.xlu0 %v3188_v35, %s11469_s20  ;;  %v9658_v22 = vpop.permute.xlu0 %3134  ;;  %v3568_v32 = vadd.f32 %v3560_v46, %v3370_v3  ;;  %v2457_v3 = vmul.f32 %v11783_v62, %v9129_v41 }
 0xf34   : > { %v3567_v61 = vadd.f32 %v3559_v36, %v3369_v39 }
 0xf35   : > { %3198 = vrot.lane.b32.xlu1 %v3189_v63, %s11469_s20  ;;  %v2585_v39 = vadd.f32 %v2581_v2, %v2457_v3 }
 0xf3a   : > { %v9660_v60 = vpop.permute.xlu1 %3138 }
 0xf3b   : > { %v3175_v21 = vpop.permute.xlu0 %3174 }
 0xf3e   : > { %v3177_v15 = vpop.permute.xlu1 %3176 }
 0xf3f   : > { %v3182_v38 = vsel %vm11479_vm1, %v3175_v21, %v3177_v15  ;;  %v3183_v5 = vsel %vm11479_vm1, %v3177_v15, %v9208_v10  ;;  %v9677_v45 = vpop.permute.xlu0 %3136  ;;  %v11782_v21 = vld [vmem:[#allocation45_spill] sm:$0xff] }
 0xf40   : > { %v3190_v11 = vadd.f32 %v3182_v38, %v3092_v24  ;;  %v3191_v25 = vadd.f32 %v3183_v5, %v3093_v23  ;;  %v3371_v23 = vmul.f32 %v11782_v21, %v9310_v50  ;;  %v3372_v24 = vmul.f32 %v11782_v21, %v9320_v19  ;;  %v9714_v38 = vld [vmem:[#allocation2] sm:$0xff] }
 0xf41   : > { %v2404_v5 = vmul.f32 %v9714_v38, %v11773_v17  ;;  %v2564_v17 = vsel %vm11480_vm9, %v9190_v30, %v9389_v52  ;;  %v2458_v52 = vmul.f32 %v11783_v62, %v9132_v43  ;;  %v3147_v31 = vsel %vm11478_vm5, %v9677_v45, %v9660_v60 }
 0xf42   : > { %3202 = vrot.lane.b32.xlu1 %v3191_v25, %s11469_s20  ;;  %3200 = vrot.lane.b32.xlu0 %v3190_v11, %s11469_s20  ;;  %v3569_v11 = vadd.f32 %v3561_v1, %v3371_v23 }
 0xf43   : > { %v2425_v57 = vmul.f32 %v11744_v44, %v2404_v5  ;;  %v11798_v44 = vld [vmem:[#allocation16_spill] sm:$0xff] }
 0xf45   : > { %v2569_v30 = vadd.f32 %v2564_v17, %v2425_v57 }
 0xf46   : > { %v9679_v58 = vpop.permute.xlu1 %3144 }
 0xf47   : > { %v9681_v14 = vpop.permute.xlu0 %3142 }
 0xf4a   : > { %v9688_v10 = vpop.permute.xlu1 %3140 }
 0xf4b   : > { %v3648_v35 = vpop.permute.xlu0 %3647 }
 0xf4c   : > { %v3658_v63 = vsel %vm11479_vm1, %v3648_v35, %v9214_v42  ;;  %v3562_v42 = vsel %vm11481_vm0, %v9630_v29, %v9180_v27 }
 0xf4d   : > { %v3666_v53 = vadd.f32 %v3658_v63, %v3568_v32  ;;  %v3570_v25 = vadd.f32 %v3562_v42, %v3372_v24 }
 0xf4e   : > { %v3646_v51 = vpop.permute.xlu1 %3645 }
 0xf4f   : > { %v3657_v9 = vsel %vm11479_vm1, %v3646_v51, %v3648_v35  ;;  %3675 = vrot.lane.b32.xlu1 %v3666_v53, %s11469_s20  ;;  %v9700_v33 = vpop.permute.xlu0 %3611  ;;  %v2631_v35 = vsel %vm11479_vm1, %v9397_v48, %v9395_v8 }
 0xf50   : > { %v3665_v40 = vadd.f32 %v3657_v9, %v3567_v61  ;;  %v2635_v48 = vadd.f32 %v2631_v35, %v2585_v39  ;;  %v11784_v61 = vld [vmem:[#allocation56_spill] sm:$0xff]  ;;  %v11785_v9 = vld [vmem:[#allocation73_spill] sm:$0xff] }
 0xf51   : > { %v2523_v51 = vmul.f32 %v11784_v61, %v9129_v41  ;;  %v2524_v24 = vmul.f32 %v11784_v61, %v9132_v43 }
 0xf52   : > { %3673 = vrot.lane.b32.xlu0 %v3665_v40, %s11469_s20  ;;  %v2632_v40 = vsel %vm11479_vm1, %v9395_v8, %v11785_v9  ;;  %v11792_v9 = vld [vmem:[#allocation68_spill] sm:$0xff] }
 0xf53   : > { %v3652_v15 = vpop.permute.xlu0 %3651  ;;  %v2534_v23 = vmul.f32 %v11757_v56, %v2523_v51  ;;  %v2535_v5 = vmul.f32 %v9516_v34, %v2524_v24  ;;  %v11794_v24 = vld [vmem:[#allocation36_spill] sm:$0xff] }
 0xf57   : > { %v9740_v53 = vpop.permute.xlu0 %3224 }
 0xf73   : > { %v9702_v26 = vpop.permute.xlu1 %3615 }
 0xf77   : > { %v3654_v46 = vpop.permute.xlu1 %3653 }
 0xf78   : > { %v3659_v27 = vsel %vm11479_vm1, %v3652_v15, %v3654_v46  ;;  %v3660_v29 = vsel %vm11479_vm1, %v3654_v46, %v9212_v13  ;;  %v2582_v13 = vsel %vm11481_vm0, %v9391_v55, %v9192_v18  ;;  %v7412_v55 = vld [vmem:[#allocation2 + $0x18] sm:$0xff]  ;;  %v3229_v15 = vpop.permute.xlu0 %3228 }
 0xf79   : > { %v3667_v36 = vadd.f32 %v3659_v27, %v3569_v11  ;;  %v3668_v32 = vadd.f32 %v3660_v29, %v3570_v25  ;;  %v2586_v1 = vadd.f32 %v2582_v13, %v2458_v52  ;;  %v2525_v42 = vmul.f32 %v7412_v55, %v11784_v61  ;;  %v11793_v55 = vld [vmem:[#allocation71_spill] sm:$0xff] }
 0xf7b   : > { %v9733_v63 = vpop.permute.xlu1 %3226  ;;  %3679 = vrot.lane.b32.xlu1 %v3668_v32, %s11469_s20  ;;  %3677 = vrot.lane.b32.xlu0 %v3667_v36, %s11469_s20  ;;  %v2636_v21 = vadd.f32 %v2632_v40, %v2586_v1  ;;  %v2536_v8 = vmul.f32 %v11759_v20, %v2525_v42  ;;  %v3277_v40 = vmul.f32 %v11792_v9, %v9300_v7  ;;  %v11795_v7 = vld [vmem:[#allocation70_spill] sm:$0xff] }
 0xf7c   : > { %v9765_v25 = vpop.permute.xlu0 %3232  ;;  %v9811_v49 = vsel %vm11477_vm14, %v11795_v7, %v11793_v55  ;;  %v11797_v20 = vld [vmem:[#allocation62_spill] sm:$0xff] }
 0xf7d   : > { %v3492_v37 = vsel %vm11481_vm0, %v11798_v44, %v11797_v20 }
 0xf7f   : > { %2639 = vrot.lane.b32.xlu1 %v2635_v48, %s11469_s20  ;;  %2607 = vrot.lane.b32.xlu0 %v2569_v30, %s11471_s25  ;;  %v9751_v18 = vpop.permute.xlu1 %3230  ;;  %v11791_v48 = vld [vmem:[#allocation66_spill] sm:$0xff]  ;;  %s11970_s25 = smov 127  }
 0xf80   : > { %v9767_v2 = vpop.permute.xlu0 %3701  ;;  %v2800_v61 = vmul.f32 %v11791_v48, %v9237_v47 }
 0xf82   : > { %v2806_v42 = vmul.f32 %v2800_v61, %v11793_v55  ;;  %v11796_v61 = vld [vmem:[#allocation34_spill] sm:$0xff] }
 0xf83   : > { %2653 = vrot.lane.b32.xlu1 %v2534_v23, %s11467_s26  ;;  %2641 = vrot.lane.b32.xlu0 %v2636_v21, %s11469_s20  ;;  %v9761_v11 = vpop.permute.xlu1 %3234  ;;  %v2799_v21 = vmul.f32 %v11791_v48, %v9234_v4  ;;  %v3276_v23 = vmul.f32 %v11792_v9, %v9291_v16  ;;  %v3015_v34 = vsel %vm11481_vm0, %v11796_v61, %v11794_v24 }
 0xf84   : > { %v3706_v29 = vpop.permute.xlu0 %3705 }
 0xf85   : > { %v2805_v16 = vmul.f32 %v2799_v21, %v9811_v49  ;;  %v3282_v56 = vmul.f32 %v3276_v23, %v9811_v49 }
 0xf87   : > { %2657 = vrot.lane.b32.xlu1 %v2536_v8, %s11467_s26  ;;  %2655 = vrot.lane.b32.xlu0 %v2535_v5, %s11467_s26  ;;  %v3704_v46 = vpop.permute.xlu1 %3703  ;;  %v3026_v8 = vadd.f32 %v11794_v24, %v2806_v42  ;;  %v3283_v5 = vmul.f32 %v3277_v40, %v11793_v55  ;;  %v3025_v6 = vadd.f32 %v3015_v34, %v2805_v16 }
 0xf88   : > { %v9773_v3 = vpop.permute.xlu0 %3709  ;;  %v3237_v34 = vsel %vm11476_vm12, %v9733_v63, %v3229_v15  ;;  %v11799_v15 = vld [vmem:[#allocation67_spill] sm:$0xff] }
 0xf89   : > { %v3503_v42 = vadd.f32 %v11797_v20, %v3283_v5  ;;  %v3158_v40 = vadd.f32 %v9660_v60, %v3026_v8  ;;  %v3502_v20 = vadd.f32 %v3492_v37, %v3282_v56  ;;  %v3157_v28 = vadd.f32 %v3147_v31, %v3025_v6 }
 0xf8a   : > { %v3714_v60 = vsel %vm11476_vm12, %v3704_v46, %v3706_v29  ;;  %v3236_v6 = vsel %vm11476_vm12, %v9740_v53, %v9733_v63  ;;  %v3713_v31 = vsel %vm11476_vm12, %v9767_v2, %v3704_v46  ;;  %v2801_v29 = vmul.f32 %v9624_v12, %v11799_v15 }
 0xf8b   : > { %v9769_v27 = vpop.permute.xlu1 %3707  ;;  %v3635_v24 = vadd.f32 %v9702_v26, %v3503_v42  ;;  %v2802_v63 = vmul.f32 %v11799_v15, %v9246_v0  ;;  %v2803_v46 = vmul.f32 %v11799_v15, %v9264_v59 }
 0xf8c   : > { %11786 = vst [vmem:[#allocation18_spill] sm:$0xff] %v9769_v27  ;;  %v9777_v32 = vpop.permute.xlu0 %2542 }
 0xf8d   : > { %v2808_v59 = vmul.f32 %v2802_v63, %v9811_v49 }
 0xf8f   : > { %v9771_v62 = vpop.permute.xlu1 %3711 }
 0xf90   : > { %v9781_v35 = vpop.permute.xlu0 %2540 }
 0xf93   : > { %v9775_v36 = vpop.permute.xlu1 %2544 }
 0xf94   : > { %11787 = vst [vmem:[#allocation47_spill] sm:$0xff] %v9775_v36  ;;  %v9785_v39 = vpop.permute.xlu0 %2611 }
 0xf95   : > { %11790 = vst [vmem:[#allocation52_spill] sm:$0xff] %v9785_v39 }
 0xf97   : > { %v9779_v17 = vpop.permute.xlu1 %2609 }
 0xf98   : > { %11788 = vst [vmem:[#allocation53_spill] sm:$0xff] %v9779_v17  ;;  %v9791_v52 = vpop.permute.xlu0 %3613 }
 0xf99   : > { %v3624_v8 = vsel %vm11478_vm5, %v9791_v52, %v9702_v26 }
 0xf9a   : > { %v3634_v16 = vadd.f32 %v3624_v8, %v3502_v20  ;;  %v11801_v8 = vld [vmem:[#allocation72_spill] sm:$0xff] }
 0xf9c   : > { %v9797_v1 = vpop.permute.xlu0 %3619 }
 0xfa5   : > { %v9806_v47 = vpop.permute.xlu0 %3196 }
 0xfa8   : > { %v9783_v57 = vpop.permute.xlu1 %2671 }
 0xfa9   : > { %11789 = vst [vmem:[#allocation48_spill] sm:$0xff] %v9783_v57 }
 0xfac   : > { %v9787_v13 = vpop.permute.xlu1 %3621 }
 0xfb0   : > { %v9789_v30 = vpop.permute.xlu1 %3617 }
 0xfb4   : > { %v3199_v51 = vpop.permute.xlu1 %3198  ;;  %v9829_v21 = vpop.permute.xlu0 %3200 }
 0xfb5   : > { %v3214_v57 = vadd.f32 %v3199_v51, %v3158_v40  ;;  %v3204_v23 = vsel %vm11477_vm14, %v9806_v47, %v3199_v51 }
 0xfb6   : > { %v3213_v42 = vadd.f32 %v3204_v23, %v3157_v28  ;;  %v2363_v23 = vmul.f32 %v9714_v38, %v11801_v8 }
 0xfb7   : > { %v3248_v40 = vadd.f32 %v3237_v34, %v3214_v57  ;;  %v11800_v57 = vld [vmem:[#allocation69_spill] sm:$0xff]  ;;  %v11802_v34 = vld [vmem:[#allocation42_spill] sm:$0xff] }
 0xfb8   : > { %v9816_v4 = vpop.permute.xlu1 %3202  ;;  %v3247_v37 = vadd.f32 %v3236_v6, %v3213_v42  ;;  %v3280_v0 = vmul.f32 %v11800_v57, %v9320_v19 }
 0xfc1   : > { %v3676_v5 = vpop.permute.xlu1 %3675 }
 0xfc2   : > { %v3691_v39 = vadd.f32 %v3676_v5, %v3635_v24  ;;  %v3275_v24 = vmul.f32 %v9714_v38, %v11792_v9  ;;  %v2807_v9 = vmul.f32 %v2801_v29, %v11795_v7  ;;  %v11807_v29 = vld [vmem:[#allocation59_spill] sm:$0xff] }
 0xfc4   : > { %v3725_v17 = vadd.f32 %v3714_v60, %v3691_v39  ;;  %v9839_v36 = vpop.permute.xlu0 %3673  ;;  %v3278_v39 = vmul.f32 %v9624_v12, %v11800_v57  ;;  %v2365_v12 = vmul.f32 %v11801_v8, %v9132_v43  ;;  %v3281_v43 = vmul.f32 %v3275_v24, %v11795_v7 }
 0xfc5   : > { %v3681_v26 = vsel %vm11477_vm14, %v9839_v36, %v3676_v5  ;;  %v3279_v5 = vmul.f32 %v11800_v57, %v9310_v50  ;;  %v11808_v57 = vld [vmem:[#allocation61_spill] sm:$0xff] }
 0xfc6   : > { %v9843_v27 = vadd.f32 %v3725_v17, %v3248_v40  ;;  %v3690_v51 = vadd.f32 %v3681_v26, %v3634_v16  ;;  %v2798_v17 = vmul.f32 %v9714_v38, %v11791_v48  ;;  %v2364_v48 = vmul.f32 %v11801_v8, %v9129_v41  ;;  %v11803_v38 = vld [vmem:[#allocation15_spill] sm:$0xff]  ;;  %v11804_v41 = vld [vmem:[#allocation40_spill] sm:$0xff] }
 0xfc7   : > { %v3284_v20 = vmul.f32 %v3278_v39, %v11795_v7  ;;  %v3017_v60 = vsel %vm11481_vm0, %v11803_v38, %v11802_v34  ;;  %v2809_v16 = vmul.f32 %v2803_v46, %v11793_v55  ;;  %v3014_v42 = vsel %vm11481_vm0, %v11804_v41, %v11796_v61  ;;  %v11805_v40 = vld [vmem:[#allocation24_spill] sm:$0xff] }
 0xfc8   : > { %v3724_v56 = vadd.f32 %v3713_v31, %v3690_v51  ;;  %v2804_v50 = vmul.f32 %v2798_v17, %v11795_v7  ;;  %v3016_v19 = vsel %vm11481_vm0, %v11805_v40, %v11803_v38  ;;  %v11806_v26 = vld [vmem:[#allocation44_spill] sm:$0xff]  ;;  %v3285_v6 = vmul.f32 %v3279_v5, %v9811_v49 }
 0xfc9   : > { %v3491_v51 = vsel %vm11481_vm0, %v11806_v26, %v11798_v44  ;;  %v2384_v31 = vmul.f32 %v11795_v7, %v2363_v23  ;;  %v3028_v15 = vadd.f32 %v3017_v60, %v2808_v59  ;;  %v3029_v61 = vadd.f32 %v11802_v34, %v2809_v16  ;;  %v11809_v26 = vld [vmem:[#allocation18_spill] sm:$0xff] }
 0xfca   : > { %v9850_v28 = vadd.f32 %v3724_v56, %v3247_v37  ;;  %v2386_v37 = vmul.f32 %v11793_v55, %v2365_v12  ;;  %v9896_v56 = vmul.f32 %v9811_v49, %v2364_v48  ;;  %v3493_v39 = vsel %vm11481_vm0, %v11808_v57, %v11807_v29 }
 0xfcb   : > { %v3286_v17 = vmul.f32 %v3280_v0, %v11793_v55  ;;  %v3024_v24 = vadd.f32 %v3014_v42, %v2804_v50  ;;  %v3027_v44 = vadd.f32 %v3016_v19, %v2807_v9  ;;  %v3501_v63 = vadd.f32 %v3491_v51, %v3281_v43 }
 0xfcc   : > { %v3494_v46 = vsel %vm11481_vm0, %v11807_v29, %v9573_v54  ;;  %v3146_v8 = vsel %vm11478_vm5, %v9658_v22, %v9677_v45  ;;  %v3149_v23 = vsel %vm11478_vm5, %v9681_v14, %v9679_v58  ;;  %v3148_v5 = vsel %vm11478_vm5, %v9688_v10, %v9681_v14 }
 0xfcd   : > { %v3623_v12 = vsel %vm11478_vm5, %v9700_v33, %v9791_v52  ;;  %v3504_v48 = vadd.f32 %v3493_v39, %v3284_v20  ;;  %v3506_v9 = vadd.f32 %v9573_v54, %v3286_v17  ;;  %v2546_v0 = vsel %vm11481_vm0, %v9781_v35, %v9777_v32 }
 0xfce   : > { %v3625_v22 = vsel %vm11478_vm5, %v9789_v30, %v9797_v1  ;;  %v3505_v45 = vadd.f32 %v3494_v46, %v3285_v6  ;;  %v3161_v59 = vadd.f32 %v9679_v58, %v3029_v61  ;;  %v3626_v14 = vsel %vm11478_vm5, %v9797_v1, %v9787_v13 }
 0xfcf   : > { %v3205_v10 = vsel %vm11477_vm14, %v9829_v21, %v9816_v4  ;;  %v3156_v54 = vadd.f32 %v3146_v8, %v3024_v24  ;;  %v3160_v33 = vadd.f32 %v3149_v23, %v3028_v15  ;;  %v3159_v52 = vadd.f32 %v3148_v5, %v3027_v44  ;;  %v11812_v23 = vld [vmem:[#allocation52_spill] sm:$0xff]  ;;  %v11813_v5 = vld [vmem:[#allocation21_spill] sm:$0xff] }
 0xfd0   : > { %v3633_v20 = vadd.f32 %v3623_v12, %v3501_v63  ;;  %v2551_v35 = vadd.f32 %v2546_v0, %v2384_v31  ;;  %v3638_v34 = vadd.f32 %v9787_v13, %v3506_v9  ;;  %v3636_v38 = vadd.f32 %v3625_v22, %v3504_v48  ;;  %v11814_v48 = vld [vmem:[#allocation51_spill] sm:$0xff] }
 0xfd1   : > { %v3217_v30 = vadd.f32 %v9816_v4, %v3161_v59  ;;  %v3637_v60 = vadd.f32 %v3626_v14, %v3505_v45  ;;  %v3215_v58 = vadd.f32 %v9829_v21, %v3159_v52  ;;  %v3216_v50 = vadd.f32 %v3205_v10, %v3160_v33 }
 0xfd2   : > { %v3689_v1 = vadd.f32 %v9839_v36, %v3633_v20  ;;  %v3238_v41 = vsel %vm11476_vm12, %v9751_v18, %v9765_v25  ;;  %v3239_v13 = vsel %vm11476_vm12, %v9765_v25, %v9761_v11  ;;  %v3716_v4 = vsel %vm11476_vm12, %v9773_v3, %v9771_v62  ;;  %v11810_v62 = vld [vmem:[#allocation47_spill] sm:$0xff] }
 0xfd3   : > { %v3212_v36 = vadd.f32 %v9806_v47, %v3156_v54  ;;  %v3715_v51 = vsel %vm11476_vm12, %v11809_v26, %v9773_v3  ;;  %v3251_v6 = vadd.f32 %v3239_v13, %v3217_v30  ;;  %v3249_v61 = vadd.f32 %v9751_v18, %v3215_v58  ;;  %v11811_v3 = vld [vmem:[#allocation53_spill] sm:$0xff] }
 0xfd4   : > { %v3250_v29 = vadd.f32 %v3238_v41, %v3216_v50  ;;  %v3723_v11 = vadd.f32 %v9767_v2, %v3689_v1  ;;  %v2547_v47 = vsel %vm11481_vm0, %v9777_v32, %v11810_v62  ;;  %v2553_v17 = vadd.f32 %v11810_v62, %v2386_v37  ;;  %v6463_v62 = vld [vmem:[%s11222_s11 + $0x198] sm:$0xff] }
 0xfd5   : > { %v3246_v63 = vadd.f32 %v9740_v53, %v3212_v36  ;;  %v2615_v2 = vsel %vm11478_vm5, %v11811_v3, %v11812_v23  ;;  %v3749_v12 = vadd.f32 %v11813_v5, %v9843_v27  ;;  %v2552_v37 = vadd.f32 %v2547_v47, %v9896_v56  ;;  %v6440_v36 = vld [vmem:[%s11219_s8 + $0x20] sm:$0xff]  ;;  %v6454_v47 = vld [vmem:[%s11222_s11 + $0x150] sm:$0xff] }
 0xfd6   : > { %v3748_v53 = vadd.f32 %v11813_v5, %v9850_v28  ;;  %v2621_v59 = vadd.f32 %v11812_v23, %v2553_v17  ;;  %v6481_v17 = vld [vmem:[%s11222_s11 + $0x228] sm:$0xff] }
 0xfd7   : > { %v3729_v9 = vadd.f32 %v3723_v11, %v3246_v63  ;;  %v2620_v54 = vadd.f32 %v2615_v2, %v2552_v37  ;;  %v6462_v11 = vld [vmem:[%s11222_s11 + $0x190] sm:$0xff]  ;;  %v6459_v63 = vld [vmem:[%s11222_s11 + $0x178] sm:$0xff]  ;;  %v6473_v23 = vld [vmem:[%s11222_s11 + $0x1e8] sm:$0xff] }
 0xfd8   : > { %v6478_v2 = vld [vmem:[%s11222_s11 + $0x210] sm:$0xff] }
 0xfed   : > { %v3680_v43 = vpop.permute.xlu1 %3679  ;;  %v3678_v16 = vpop.permute.xlu0 %3677 }
 0xfee   : > { %v3694_v42 = vadd.f32 %v3680_v43, %v3638_v34  ;;  %v3682_v40 = vsel %vm11477_vm14, %v3678_v16, %v3680_v43  ;;  %v3692_v19 = vadd.f32 %v3678_v16, %v3636_v38  ;;  %v3747_v34 = vadd.f32 %v11813_v5, %v3729_v9  ;;  %v11815_v43 = vld [vmem:[#allocation48_spill] sm:$0xff] }
 0xfef   : > { %v3693_v21 = vadd.f32 %v3682_v40, %v3637_v60  ;;  %v6477_v5 = vld [vmem:[%s11222_s11 + $0x208] sm:$0xff] }
 0xff0   : > { %v3728_v31 = vadd.f32 %v3716_v4, %v3694_v42  ;;  %v3726_v15 = vadd.f32 %v11809_v26, %v3692_v19  ;;  %v9981_v42 = vpop.f32.mrb[28].mxu1 }
 0xff1   : > { %v3727_v25 = vadd.f32 %v3715_v51, %v3693_v21  ;;  %v2640_v57 = vpop.permute.xlu1 %2639  ;;  %v2608_v39 = vpop.permute.xlu0 %2607  ;;  %v6442_v51 = vld [vmem:[%s11219_s8 + $0x30] sm:$0xff] }
 0xff2   : > { %v3734_v24 = vadd.f32 %v3728_v31, %v3251_v6  ;;  %v2614_v44 = vsel %vm11478_vm5, %v2608_v39, %v11811_v3  ;;  %v3732_v46 = vadd.f32 %v3726_v15, %v3249_v61  ;;  %v9983_v40 = vpop.f32.mrb[29].mxu1  ;;  %v6441_v6 = vld [vmem:[%s11219_s8 + $0x28] sm:$0xff]  ;;  %v6480_v39 = vld [vmem:[%s11222_s11 + $0x220] sm:$0xff]  ;;  %v6455_v3 = vld [vmem:[%s11222_s11 + $0x158] sm:$0xff] }
 0xff3   : > { %v3733_v18 = vadd.f32 %v3727_v25, %v3250_v29  ;;  %v2619_v8 = vadd.f32 %v2614_v44, %v2551_v35  ;;  %v9992_v26 = vpop.f32.mrb[30].mxu1  ;;  %v6443_v25 = vld [vmem:[%s11219_s8 + $0x38] sm:$0xff]  ;;  %v6460_v44 = vld [vmem:[%s11222_s11 + $0x180] sm:$0xff] }
 0xff4   : > { %v3752_v32 = vadd.f32 %v11814_v48, %v3734_v24  ;;  %v3750_v52 = vadd.f32 %v11814_v48, %v3732_v46  ;;  %v10000_v31 = vpop.f32.mrb[31].mxu1  ;;  %v6458_v24 = vld [vmem:[%s11222_s11 + $0x170] sm:$0xff]  ;;  %v6472_v46 = vld [vmem:[%s11222_s11 + $0x1e0] sm:$0xff] }
 0xff5   : > { %v2654_v0 = vpop.permute.xlu1 %2653  ;;  %v2642_v22 = vpop.permute.xlu0 %2641  ;;  %v3751_v45 = vadd.f32 %v11814_v48, %v3733_v18  ;;  %v2647_v33 = vadd.f32 %v2640_v57, %v2619_v8  ;;  %v6461_v18 = vld [vmem:[%s11222_s11 + $0x188] sm:$0xff]  ;;  %v6476_v8 = vld [vmem:[%s11222_s11 + $0x200] sm:$0xff] }
 0xff6   : > { %v2643_v14 = vsel %vm11477_vm14, %v2640_v57, %v2642_v22  ;;  %v4838_v10 = vpack.c.bf16 %v3752_v32, %v3749_v12  ;;  %v2649_v20 = vadd.f32 %v2642_v22, %v2621_v59  ;;  %v4836_v1 = vpack.c.bf16 %v3750_v52, %v3747_v34  ;;  %v10002_v15 = vpop.f32.mrb[32].mxu1  ;;  %v6479_v12 = vld [vmem:[%s11222_s11 + $0x218] sm:$0xff] }
 0xff7   : > { %v4837_v27 = vpack.c.bf16 %v3751_v45, %v3748_v53  ;;  %v2648_v56 = vadd.f32 %v2643_v14, %v2620_v54  ;;  %v2665_v60 = vadd.f32 %v2654_v0, %v2647_v33  ;;  %v10004_v61 = vpop.f32.mrb[33].mxu1  ;;  %v11816_v22 = vmov 1.0|1.0   ;;  %v11817_v53 = vld [vmem:[#allocation3_spill] sm:$0xff]  ;;  %v11819_v33 = vld [vmem:[#allocation4_spill] sm:$0xff]  ;;  %v11823_v52 = vld [vmem:[#allocation6_spill] sm:$0xff] }
 0xff8   : > { %4860 = vrot.lane.b32.xlu1 %v4838_v10, %s11465_s22  ;;  %v10006_v29 = vpop.f32.mrb[34].mxu1  ;;  %vm11818_vm6 = vnez %v11817_v53  ;;  %vm11820_vm4 = vnez %v11819_v33  ;;  %vm11824_vm15 = vnez %v11823_v52  ;;  %v11831_v34 = vld [vmem:[#allocation10_spill] sm:$0xff] }
 0xff9   : > { %v2658_v35 = vpop.permute.xlu1 %2657  ;;  %4858 = vrot.lane.b32.xlu0 %v4837_v27, %s11465_s22  ;;  %v2656_v28 = vpop.permute.xlu0 %2655  ;;  %v2674_v19 = vadd.f32 %v11815_v43, %v2665_v60  ;;  %v11821_v27 = vld [vmem:[#allocation5_spill] sm:$0xff]  ;;  %vm11832_vm8 = vnez %v11831_v34 }
 0xffa   : > { %v2660_v38 = vsel %vm11476_vm12, %v2654_v0, %v2656_v28  ;;  %v2661_v30 = vsel %vm11476_vm12, %v2656_v28, %v2658_v35  ;;  %v10014_v57 = vpop.f32.mrb[35].mxu1  ;;  %vm11822_vm13 = vnez %v11821_v27  ;;  %v11829_v35 = vld [vmem:[#allocation9_spill] sm:$0xff] }
 0xffb   : > { %v2666_v58 = vadd.f32 %v2660_v38, %v2648_v56  ;;  %v2667_v50 = vadd.f32 %v2661_v30, %v2649_v20  ;;  %v4833_v21 = vpack.c.bf16 %v2674_v19, %v2674_v19  ;;  %v11825_v56 = vld [vmem:[#allocation7_spill] sm:$0xff]  ;;  %v11827_v20 = vld [vmem:[#allocation8_spill] sm:$0xff]  ;;  %vm11830_vm3 = vnez %v11829_v35 }
 0xffc   : > { %vm11826_vm7 = vnez %v11825_v56  ;;  %vm11828_vm2 = vnez %v11827_v20  ;;  %v11833_v38 = vld [vmem:[#allocation11_spill] sm:$0xff] }
 0xffd   : > { %v2675_v16 = vadd.f32 %v11815_v43, %v2666_v58  ;;  %v2676_v41 = vadd.f32 %v11815_v43, %v2667_v50  ;;  %4856 = vrot.lane.b32.xlu0 %v4836_v1, %s11465_s22  ;;  %vm11834_vm10 = vnez %v11833_v38  ;;  %v11835_v58 = vld [vmem:[#allocation12_spill] sm:$0xff]  ;;  %v11837_v43 = vld [vmem:[#allocation14_spill] sm:$0xff] }
 0xffe   : > { %vm11838_vm12 = vnez %v11837_v43 }
 0xfff   : > { %v4834_v13 = vpack.c.bf16 %v2675_v16, %v2675_v16  ;;  %v4835_v4 = vpack.c.bf16 %v2676_v41, %v2676_v41 }
0x1001   : > { %4846 = vrot.lane.b32.xlu0 %v4835_v4, %s11465_s22  ;;  %4844 = vrot.lane.b32.xlu1 %v4834_v13, %s11465_s22 }
0x1005   : > { %3767 = vperm.xlu0 %7372, %v6440_v36   ;;  %4842 = vrot.lane.b32.xlu1 %v4833_v21, %s11465_s22  ;;  %v10109_v36 = vld [vmem:[#allocation2 + $0x18] sm:$0xff]  ;;  %s12023_s22 = sshll.u32 %s12025_s30, 4 }
0x1009   : > { %3777 = vperm.xlu0 %7372, %v6442_v51   ;;  %3772 = vperm.xlu1 %7373, %v6441_v6   ;;  %v11841_v6 = vld [vmem:[#allocation20_spill] sm:$0xff] }
0x100a   : > { %vm11842_vm5 = vnez %v11841_v6 }
0x100d   : > { %4036 = vperm.xlu0 %7372, %v6462_v11   ;;  %3782 = vperm.xlu1 %7373, %v6443_v25   ;;  %v10127_v25 = vld [vmem:[#allocation2 + $0x38] sm:$0xff] }
0x1011   : > { %4513 = vperm.xlu0 %7372, %v6480_v39   ;;  %4041 = vperm.xlu1 %7373, %v6463_v62   ;;  %v11845_v39 = vld [vmem:[#allocation25_spill] sm:$0xff] }
0x1012   : > { %vm11846_vm9 = vnez %v11845_v39 }
0x1015   : > { %3938 = vperm.xlu0 %7372, %v6454_v47   ;;  %4518 = vperm.xlu1 %7373, %v6481_v17  }
0x1019   : > { %3986 = vperm.xlu0 %7372, %v6458_v24   ;;  %3943 = vperm.xlu1 %7373, %v6455_v3   ;;  %v11847_v24 = vld [vmem:[#allocation26_spill] sm:$0xff] }
0x101a   : > { %vm11848_vm0 = vnez %v11847_v24 }
0x101d   : > { %4011 = vperm.xlu0 %7372, %v6460_v44   ;;  %3991 = vperm.xlu1 %7373, %v6459_v63   ;;  %v11849_v44 = vld [vmem:[#allocation27_spill] sm:$0xff] }
0x1021   : > { %4415 = vperm.xlu0 %7372, %v6472_v46   ;;  %4016 = vperm.xlu1 %7373, %v6461_v18  }
0x1025   : > { %4463 = vperm.xlu0 %7372, %v6476_v8   ;;  %4420 = vperm.xlu1 %7373, %v6473_v23  }
0x1029   : > { %4488 = vperm.xlu0 %7372, %v6478_v2   ;;  %4468 = vperm.xlu1 %7373, %v6477_v5   ;;  %v6452_v2 = vld [vmem:[%s11222_s11 + $0x140] sm:$0xff]  ;;  %v6453_v5 = vld [vmem:[%s11222_s11 + $0x148] sm:$0xff] }
0x102d   : > { %4493 = vperm.xlu1 %7373, %v6479_v12   ;;  %v6470_v12 = vld [vmem:[%s11222_s11 + $0x1d0] sm:$0xff] }
0x106a   : > { %v4861_v48 = vpop.permute.xlu1 %4860 }
0x106b   : > { %v4859_v32 = vpop.permute.xlu0 %4858 }
0x106c   : > { %v4863_v37 = vsel %vm11475_vm11, %v4859_v32, %v4861_v48  ;;  %v6471_v48 = vld [vmem:[%s11222_s11 + $0x1d8] sm:$0xff] }
0x106d   : > { %4866 = vmatprep.subr.bf16.mxu0 %v4863_v37  ;;  %v6451_v37 = vld [vmem:[%s11222_s11 + $0x138] sm:$0xff] }
0x106f   : > { %v4857_v9 = vpop.permute.xlu0 %4856 }
0x1070   : > { %v4862_v0 = vsel %vm11475_vm11, %v4857_v9, %v4859_v32  ;;  %v6450_v32 = vld [vmem:[%s11222_s11 + $0x130] sm:$0xff]  ;;  %v6456_v9 = vld [vmem:[%s11222_s11 + $0x160] sm:$0xff] }
0x1071   : > { %4867 = vmatpush1.bf16.xpose.msra.mxu0 %v4862_v0  ;;  %v6457_v0 = vld [vmem:[%s11222_s11 + $0x168] sm:$0xff] }
0x1072   : > { %7273 = vmatprep.subr.msk.bf16.mxu0 %vm11818_vm6, %v11816_v22 }
0x1073   : > { %v4847_v45 = vpop.permute.xlu0 %4846  ;;  %v4845_v59 = vpop.permute.xlu1 %4844 }
0x1074   : > { %v4850_v14 = vsel %vm11475_vm11, %v4845_v59, %v4847_v45  ;;  %v6468_v45 = vld [vmem:[%s11222_s11 + $0x1c0] sm:$0xff] }
0x1075   : > { %4898 = vmatprep.mubr.bf16.mxu0 %v4850_v14  ;;  %v6474_v14 = vld [vmem:[%s11222_s11 + $0x1f0] sm:$0xff] }
0x1077   : > { %v4843_v10 = vpop.permute.xlu1 %4842 }
0x1078   : > { %v4849_v54 = vsel %vm11475_vm11, %v4843_v10, %v4845_v59  ;;  %vm11836_vm11 = vnez %v11835_v58  ;;  %v6469_v59 = vld [vmem:[%s11222_s11 + $0x1c8] sm:$0xff]  ;;  %v6475_v10 = vld [vmem:[%s11222_s11 + $0x1f8] sm:$0xff] }
0x1079   : > { %4899 = vmatmul.mubr.bf16.vlgmr.msra.gmra.mrb[32].mxu0 %v4849_v54  ;;  %v6464_v54 = vld [vmem:[%s11222_s11 + $0x1a0] sm:$0xff] }
0x107a   : > { %7275 = vmatpush3.bf16.msk.msra.mxu0 %vm11820_vm4, %v11816_v22 }
0x107b   : > { %7277 = vmatprep.subr.msk.bf16.mxu0 %vm11822_vm13, %v11816_v22 }
0x107e   : > { %7279 = vmatpush3.bf16.msk.msra.mxu0 %vm11824_vm15, %v11816_v22 }
0x107f   : > { %7281 = vmatprep.subr.msk.bf16.mxu0 %vm11826_vm7, %v11816_v22 }
0x1082   : > { %7283 = vmatpush3.bf16.msk.msra.mxu0 %vm11828_vm2, %v11816_v22 }
0x1083   : > { %7285 = vmatprep.subr.msk.bf16.mxu0 %vm11830_vm3, %v11816_v22 }
0x1084   : > { %v3768_v28 = vpop.permute.xlu0 %3767 }
0x1085   : > { %v10096_v50 = vadd.f32 %v9981_v42, %v3768_v28  ;;  %v10099_v1 = vadd.f32 %v9983_v40, %v3768_v28  ;;  %v11839_v40 = vld [vmem:[#allocation17_spill] sm:$0xff]  ;;  %v6465_v28 = vld [vmem:[%s11222_s11 + $0x1a8] sm:$0xff] }
0x1086   : > { %7287 = vmatpush3.bf16.msk.msra.mxu0 %vm11832_vm8, %v11816_v22  ;;  %vm11840_vm14 = vnez %v11839_v40 }
0x1087   : > { %7289 = vmatprep.subr.msk.bf16.mxu0 %vm11834_vm10, %v11816_v22 }
0x1088   : > { %v3778_v30 = vpop.permute.xlu0 %3777  ;;  %v3773_v60 = vpop.permute.xlu1 %3772 }
0x1089   : > { %v10118_v21 = vadd.f32 %v9992_v26, %v3773_v60  ;;  %v10133_v26 = vadd.f32 %v10000_v31, %v3773_v60  ;;  %v10146_v31 = vadd.f32 %v10002_v15, %v3778_v30  ;;  %v10149_v3 = vadd.f32 %v10004_v61, %v3778_v30  ;;  %v6482_v60 = vld [vmem:[%s11222_s11 + $0x230] sm:$0xff] }
0x108a   : > { %7291 = vmatpush3.bf16.msk.msra.mxu0 %vm11836_vm11, %v11816_v22 }
0x108b   : > { %7293 = vmatprep.subr.msk.bf16.mxu0 %vm11838_vm12, %v11816_v22 }
0x108c   : > { %v4037_v16 = vpop.permute.xlu0 %4036  ;;  %v3783_v41 = vpop.permute.xlu1 %3782 }
0x108d   : > { %v4044_v19 = vmul.f32 %v4037_v16, %v10096_v50  ;;  %v4045_v13 = vmul.f32 %v4037_v16, %v10099_v1  ;;  %v10107_v4 = vadd.f32 %v10006_v29, %v3783_v41  ;;  %v10112_v42 = vadd.f32 %v10014_v57, %v3783_v41  ;;  %v11843_v57 = vld [vmem:[#allocation23_spill] sm:$0xff] }
0x108e   : > { %7295 = vmatpush3.bf16.msk.msra.mxu0 %vm11840_vm14, %v11816_v22  ;;  %v4046_v29 = vmul.f32 %v4037_v16, %v10109_v36  ;;  %vm11844_vm1 = vnez %v11843_v57  ;;  %v6483_v16 = vld [vmem:[%s11222_s11 + $0x238] sm:$0xff]  ;;  %vm11879_vm14 = vcmask 924672  }
0x108f   : > { %4179 = vrot.lane.b32.xlu0 %v4044_v19, %s11505_s23  ;;  %4181 = vrot.lane.b32.xlu1 %v4045_v13, %s11505_s23 }
0x1090   : > { %v4042_v51 = vpop.permute.xlu1 %4041  ;;  %7297 = vmatprep.subr.msk.bf16.mxu0 %vm11842_vm5, %v11816_v22  ;;  %v4514_v17 = vpop.permute.xlu0 %4513 }
0x1091   : > { %v4047_v11 = vmul.f32 %v4042_v51, %v10118_v21  ;;  %v4048_v62 = vmul.f32 %v4042_v51, %v10133_v26  ;;  %v4049_v47 = vmul.f32 %v4042_v51, %v10127_v25  ;;  %v4521_v63 = vmul.f32 %v4514_v17, %v10146_v31 }
0x1092   : > { %7299 = vmatpush3.bf16.msk.msra.mxu0 %vm11844_vm1, %v11816_v22  ;;  %v4522_v46 = vmul.f32 %v4514_v17, %v10149_v3  ;;  %v4523_v15 = vmul.f32 %v4514_v17, %v10109_v36 }
0x1093   : > { %4183 = vrot.lane.b32.xlu0 %v4046_v29, %s11505_s23  ;;  %4185 = vrot.lane.b32.xlu1 %v4047_v11, %s11505_s23  ;;  %v11851_v11 = vld [vmem:[#allocation64_spill] sm:$0xff] }
0x1094   : > { %7301 = vmatprep.subr.msk.bf16.mxu0 %vm11846_vm9, %v11816_v22  ;;  %vm11850_vm9 = vnez %v11849_v44  ;;  %v4519_v18 = vpop.permute.xlu1 %4518  ;;  %v10210_v30 = vpop.permute.xlu0 %3938 }
0x1095   : > { %v4524_v61 = vmul.f32 %v4519_v18, %v10107_v4  ;;  %v4525_v8 = vmul.f32 %v4519_v18, %v10112_v42  ;;  %v4526_v23 = vmul.f32 %v4519_v18, %v10127_v25  ;;  %v3947_v41 = vmul.f32 %v10210_v30, %v10096_v50 }
0x1096   : > { %7303 = vmatpush3.bf16.msk.msra.mxu0 %vm11848_vm0, %v11816_v22  ;;  %v3948_v19 = vmul.f32 %v10210_v30, %v10099_v1  ;;  %vm11858_vm0 = vcmask 1039360  }
0x1097   : > { %4187 = vrot.lane.b32.xlu0 %v4048_v62, %s11505_s23  ;;  %4189 = vrot.lane.b32.xlu1 %v4049_v47, %s11505_s23  ;;  %v3953_v62 = vmul.f32 %v3947_v41, %v11851_v11  ;;  %v11852_v47 = vld [vmem:[#allocation22_spill] sm:$0xff]  ;;  %vm11861_vm1 = vmmov %vm11858_vm0 }
0x1098   : > { %7345 = vmatprep.subr.msk.bf16.mxu0 %vm11850_vm9, %v11816_v22  ;;  %v10222_v13 = vpop.permute.xlu1 %3943  ;;  %v3954_v17 = vmul.f32 %v3948_v19, %v11852_v47  ;;  %vm11863_vm5 = vmmov %vm11858_vm0 }
0x1099   : > { %v3950_v51 = vmul.f32 %v10222_v13, %v10118_v21  ;;  %v3951_v29 = vmul.f32 %v10222_v13, %v10133_v26 }
0x109b   : > { %4656 = vrot.lane.b32.xlu0 %v4521_v63, %s11505_s23  ;;  %4658 = vrot.lane.b32.xlu1 %v4522_v46, %s11505_s23  ;;  %v3987_v63 = vpop.permute.xlu0 %3986 }
0x109c   : > { %v3994_v46 = vmul.f32 %v3987_v63, %v10096_v50  ;;  %v3995_v18 = vmul.f32 %v3987_v63, %v10099_v1 }
0x109f   : > { %4660 = vrot.lane.b32.xlu0 %v4523_v15, %s11505_s23  ;;  %4662 = vrot.lane.b32.xlu1 %v4524_v61, %s11505_s23  ;;  %v3957_v15 = vmul.f32 %v3951_v29, %v11852_v47  ;;  %v3956_v61 = vmul.f32 %v3950_v51, %v11851_v11 }
0x10a3   : > { %4664 = vrot.lane.b32.xlu0 %v4525_v8, %s11505_s23  ;;  %4666 = vrot.lane.b32.xlu1 %v4526_v23, %s11505_s23  ;;  %v3992_v8 = vpop.permute.xlu1 %3991  ;;  %v10238_v23 = vpop.permute.xlu0 %4011 }
0x10a7   : > { %3913 = vperm.xlu0 %7372, %v6452_v2   ;;  %3918 = vperm.xlu1 %7373, %v6453_v5   ;;  %v3996_v2 = vmul.f32 %v3987_v63, %v10109_v36  ;;  %v3997_v5 = vmul.f32 %v3992_v8, %v10118_v21 }
0x10ab   : > { %4390 = vperm.xlu0 %7372, %v6470_v12   ;;  %4395 = vperm.xlu1 %7373, %v6471_v48   ;;  %v11853_v12 = vld [vmem:[#allocation65_spill] sm:$0xff] }
0x10ac   : > { %v4001_v48 = vmul.f32 %v3995_v18, %v11853_v12 }
0x10af   : > { %3894 = vperm.xlu0 %7372, %v6450_v32   ;;  %3899 = vperm.xlu1 %7373, %v6451_v37   ;;  %v11854_v32 = vld [vmem:[#allocation37_spill] sm:$0xff] }
0x10b0   : > { %v4000_v37 = vmul.f32 %v3994_v46, %v11854_v32 }
0x10b3   : > { %3963 = vperm.xlu0 %7372, %v6456_v9   ;;  %3968 = vperm.xlu1 %7373, %v6457_v0   ;;  %v10246_v9 = vpop.permute.xlu1 %4016  ;;  %v3998_v0 = vmul.f32 %v3992_v8, %v10133_v26 }
0x10b7   : > { %4371 = vperm.xlu0 %7372, %v6468_v45   ;;  %4376 = vperm.xlu1 %7373, %v6469_v59   ;;  %v3999_v45 = vmul.f32 %v3992_v8, %v10127_v25  ;;  %v11855_v59 = vld [vmem:[#allocation33_spill] sm:$0xff]  ;;  %v4421_v19 = vpop.permute.xlu1 %4420 }
0x10b8   : > { %v4427_v51 = vmul.f32 %v4421_v19, %v10107_v4  ;;  %v4428_v29 = vmul.f32 %v4421_v19, %v10112_v42 }
0x10b9   : > { %v4005_v41 = vmul.f32 %v3999_v45, %v11855_v59 }
0x10bb   : > { %4440 = vperm.xlu0 %7372, %v6474_v14   ;;  %4445 = vperm.xlu1 %7373, %v6475_v10   ;;  %v4002_v14 = vmul.f32 %v3996_v2, %v11855_v59  ;;  %v4003_v10 = vmul.f32 %v3997_v5, %v11854_v32  ;;  %v4469_v8 = vpop.permute.xlu1 %4468 }
0x10bc   : > { %v4474_v5 = vmul.f32 %v4469_v8, %v10107_v4  ;;  %v4476_v45 = vmul.f32 %v4469_v8, %v10127_v25 }
0x10bf   : > { %4055 = vperm.xlu0 %7372, %v6464_v54   ;;  %4060 = vperm.xlu1 %7373, %v6465_v28   ;;  %v4416_v54 = vpop.permute.xlu0 %4415 }
0x10c0   : > { %v4424_v28 = vmul.f32 %v4416_v54, %v10146_v31 }
0x10c3   : > { %4532 = vperm.xlu0 %7372, %v6482_v60   ;;  %4537 = vperm.xlu1 %7373, %v6483_v16   ;;  %v4425_v60 = vmul.f32 %v4416_v54, %v10149_v3  ;;  %v4004_v16 = vmul.f32 %v3998_v0, %v11853_v12  ;;  %v4464_v63 = vpop.permute.xlu0 %4463  ;;  %v4475_v0 = vmul.f32 %v4469_v8, %v10112_v42 }
0x10c4   : > { %v4471_v46 = vmul.f32 %v4464_v63, %v10146_v31  ;;  %v4472_v18 = vmul.f32 %v4464_v63, %v10149_v3  ;;  %v4473_v2 = vmul.f32 %v4464_v63, %v10109_v36  ;;  %v11856_v63 = vld [vmem:[#allocation35_spill] sm:$0xff]  ;;  %v4020_v8 = vmul.f32 %v10238_v23, %v10099_v1 }
0x10c7   : > { %4117 = vrot.lane.b32.xlu0 %v3953_v62, %s11503_s19  ;;  %4119 = vrot.lane.b32.xlu1 %v3954_v17, %s11503_s19  ;;  %v4430_v62 = vmul.f32 %v4424_v28, %v11851_v11  ;;  %v4431_v17 = vmul.f32 %v4425_v60, %v11852_v47  ;;  %v10282_v28 = vld [vmem:[#allocation2] sm:$0xff] }
0x10c8   : > { %v10284_v60 = vld [vmem:[#allocation2 + $0x20] sm:$0xff] }
0x10cb   : > { %4125 = vrot.lane.b32.xlu1 %v3957_v15, %s11503_s19  ;;  %4123 = vrot.lane.b32.xlu0 %v3956_v61, %s11503_s19  ;;  %v4434_v15 = vmul.f32 %v4428_v29, %v11852_v47  ;;  %v4433_v61 = vmul.f32 %v4427_v51, %v11851_v11  ;;  %v4481_v51 = vmul.f32 %v4475_v0, %v11853_v12 }
0x10cc   : > { %v4482_v29 = vmul.f32 %v4476_v45, %v11855_v59 }
0x10cf   : > { %4151 = vrot.lane.b32.xlu1 %v4001_v48, %s11505_s23  ;;  %4149 = vrot.lane.b32.xlu0 %v4000_v37, %s11505_s23  ;;  %v4478_v48 = vmul.f32 %v4472_v18, %v11853_v12  ;;  %v4477_v37 = vmul.f32 %v4471_v46, %v11854_v32 }
0x10d3   : > { %4153 = vrot.lane.b32.xlu0 %v4002_v14, %s11505_s23  ;;  %4155 = vrot.lane.b32.xlu1 %v4003_v10, %s11505_s23  ;;  %v4479_v14 = vmul.f32 %v4473_v2, %v11855_v59  ;;  %v4480_v10 = vmul.f32 %v4474_v5, %v11854_v32  ;;  %v11857_v5 = vld [vmem:[#allocation39_spill] sm:$0xff] }
0x10d7   : > { %4157 = vrot.lane.b32.xlu0 %v4004_v16, %s11505_s23  ;;  %4159 = vrot.lane.b32.xlu1 %v4005_v41, %s11505_s23  ;;  %v3946_v16 = vmul.f32 %v10210_v30, %v10282_v28  ;;  %v3949_v41 = vmul.f32 %v10222_v13, %v10284_v60 }
0x10d9   : > { %v3952_v46 = vmul.f32 %v3946_v16, %v11856_v63  ;;  %v3955_v18 = vmul.f32 %v3949_v41, %v11856_v63  ;;  %v4022_v16 = vmul.f32 %v10246_v9, %v10118_v21  ;;  %v4023_v41 = vmul.f32 %v10246_v9, %v10133_v26 }
0x10db   : > { %4594 = vrot.lane.b32.xlu0 %v4430_v62, %s11503_s19  ;;  %4596 = vrot.lane.b32.xlu1 %v4431_v17, %s11503_s19  ;;  %v4423_v62 = vmul.f32 %v4416_v54, %v10282_v28  ;;  %v4426_v17 = vmul.f32 %v4421_v19, %v10284_v60  ;;  %v4019_v54 = vmul.f32 %v10238_v23, %v10096_v50  ;;  %v4489_v19 = vpop.permute.xlu0 %4488 }
0x10dd   : > { %v4429_v30 = vmul.f32 %v4423_v62, %v11856_v63  ;;  %v4432_v13 = vmul.f32 %v4426_v17, %v11856_v63 }
0x10df   : > { %4602 = vrot.lane.b32.xlu1 %v4434_v15, %s11503_s19  ;;  %4600 = vrot.lane.b32.xlu0 %v4433_v61, %s11503_s19  ;;  %v4494_v15 = vpop.permute.xlu1 %4493  ;;  %v4021_v61 = vmul.f32 %v10238_v23, %v10109_v36 }
0x10e3   : > { %4628 = vrot.lane.b32.xlu1 %v4478_v48, %s11505_s23  ;;  %4626 = vrot.lane.b32.xlu0 %v4477_v37, %s11505_s23  ;;  %v4025_v48 = vmul.f32 %v4019_v54, %v11857_v5 }
0x10e7   : > { %4630 = vrot.lane.b32.xlu0 %v4479_v14, %s11505_s23  ;;  %4632 = vrot.lane.b32.xlu1 %v4480_v10, %s11505_s23  ;;  %v11859_v14 = vld [vmem:[#allocation38_spill] sm:$0xff] }
0x10e8   : > { %v4027_v10 = vmul.f32 %v4021_v61, %v11859_v14  ;;  %v4028_v61 = vmul.f32 %v4022_v16, %v11857_v5 }
0x10eb   : > { %4634 = vrot.lane.b32.xlu0 %v4481_v51, %s11505_s23  ;;  %4636 = vrot.lane.b32.xlu1 %v4482_v29, %s11505_s23  ;;  %v11860_v51 = vld [vmem:[#allocation74_spill] sm:$0xff] }
0x10ec   : > { %v4026_v29 = vmul.f32 %v4020_v8, %v11860_v51  ;;  %v4029_v8 = vmul.f32 %v4023_v41, %v11860_v51 }
0x10ef   : > { %4115 = vrot.lane.b32.xlu0 %v3952_v46, %s11503_s19  ;;  %4121 = vrot.lane.b32.xlu1 %v3955_v18, %s11503_s19 }
0x10f3   : > { %4592 = vrot.lane.b32.xlu0 %v4429_v30, %s11503_s19  ;;  %4598 = vrot.lane.b32.xlu1 %v4432_v13, %s11503_s19  ;;  %v4024_v30 = vmul.f32 %v10246_v9, %v10127_v25  ;;  %v4496_v13 = vmul.f32 %v4489_v19, %v10146_v31  ;;  %v4498_v9 = vmul.f32 %v4489_v19, %v10109_v36 }
0x10f5   : > { %v4502_v41 = vmul.f32 %v4496_v13, %v11857_v5 }
0x1101   : > { %v4180_v2 = vpop.permute.xlu0 %4179  ;;  %v4182_v37 = vpop.permute.xlu1 %4181 }
0x1102   : > { %v4191_v0 = vsel %vm11858_vm0, %v4180_v2, %v4182_v37 }
0x1103   : > { %v4201_v45 = vadd.f32 %v4191_v0, %v4025_v48 }
0x1105   : > { %v4184_v62 = vpop.permute.xlu0 %4183  ;;  %4247 = vrot.lane.b32.xlu0 %v4201_v45, %s11501_s16  ;;  %v4186_v23 = vpop.permute.xlu1 %4185 }
0x1106   : > { %v4192_v17 = vsel %vm11861_vm1, %v4182_v37, %v4184_v62  ;;  %v4203_v46 = vadd.f32 %v4184_v62, %v4027_v10  ;;  %vm11862_vm1 = vmmov %vm11858_vm0  ;;  %v4497_v10 = vmul.f32 %v4489_v19, %v10149_v3  ;;  %v4500_v19 = vmul.f32 %v4494_v15, %v10112_v42 }
0x1107   : > { %v4202_v18 = vadd.f32 %v4192_v17, %v4026_v29  ;;  %v4030_v29 = vmul.f32 %v4024_v30, %v11859_v14 }
0x1108   : > { %v4503_v30 = vmul.f32 %v4497_v10, %v11860_v51 }
0x1109   : > { %v4188_v54 = vpop.permute.xlu0 %4187  ;;  %4249 = vrot.lane.b32.xlu1 %v4202_v18, %s11501_s16  ;;  %4251 = vrot.lane.b32.xlu0 %v4203_v46, %s11501_s16  ;;  %v4190_v2 = vpop.permute.xlu1 %4189  ;;  %v4504_v18 = vmul.f32 %v4498_v9, %v11859_v14  ;;  %v4506_v9 = vmul.f32 %v4500_v19, %v11860_v51  ;;  %v6466_v19 = vld [vmem:[%s11222_s11 + $0x1b0] sm:$0xff] }
0x110a   : > { %v4193_v48 = vsel %vm11858_vm0, %v4186_v23, %v4188_v54  ;;  %v4194_v37 = vsel %vm11862_vm1, %v4188_v54, %v4190_v2  ;;  %v4206_v17 = vadd.f32 %v4190_v2, %v4030_v29  ;;  %v4499_v54 = vmul.f32 %v4494_v15, %v10107_v4  ;;  %vm11865_vm1 = vmmov %vm11858_vm0 }
0x110b   : > { %v4204_v0 = vadd.f32 %v4193_v48, %v4028_v61  ;;  %v4205_v45 = vadd.f32 %v4194_v37, %v4029_v8  ;;  %v4501_v2 = vmul.f32 %v4494_v15, %v10127_v25 }
0x110d   : > { %v4657_v16 = vpop.permute.xlu0 %4656  ;;  %4253 = vrot.lane.b32.xlu1 %v4204_v0, %s11501_s16  ;;  %4255 = vrot.lane.b32.xlu0 %v4205_v45, %s11501_s16  ;;  %v4659_v62 = vpop.permute.xlu1 %4658  ;;  %v4505_v45 = vmul.f32 %v4499_v54, %v11857_v5 }
0x110e   : > { %v4668_v23 = vsel %vm11863_vm5, %v4657_v16, %v4659_v62  ;;  %vm11864_vm5 = vmmov %vm11858_vm0 }
0x110f   : > { %v4678_v46 = vadd.f32 %v4668_v23, %v4502_v41  ;;  %v4507_v23 = vmul.f32 %v4501_v2, %v11859_v14 }
0x1111   : > { %v4661_v61 = vpop.permute.xlu0 %4660  ;;  %4257 = vrot.lane.b32.xlu1 %v4206_v17, %s11501_s16  ;;  %4724 = vrot.lane.b32.xlu0 %v4678_v46, %s11501_s16  ;;  %v4663_v8 = vpop.permute.xlu1 %4662  ;;  %v6448_v17 = vld [vmem:[%s11222_s11 + $0x120] sm:$0xff]  ;;  %v6449_v46 = vld [vmem:[%s11222_s11 + $0x128] sm:$0xff] }
0x1112   : > { %v4669_v13 = vsel %vm11858_vm0, %v4659_v62, %v4661_v61  ;;  %v4680_v48 = vadd.f32 %v4661_v61, %v4504_v18  ;;  %vm11868_vm0 = vcmask 932864  }
0x1113   : > { %v4679_v37 = vadd.f32 %v4669_v13, %v4503_v30 }
0x1115   : > { %v4665_v0 = vpop.permute.xlu0 %4664  ;;  %4726 = vrot.lane.b32.xlu1 %v4679_v37, %s11501_s16  ;;  %4728 = vrot.lane.b32.xlu0 %v4680_v48, %s11501_s16  ;;  %v4667_v10 = vpop.permute.xlu1 %4666 }
0x1116   : > { %v4670_v29 = vsel %vm11864_vm5, %v4663_v8, %v4665_v0  ;;  %v4671_v16 = vsel %vm11865_vm1, %v4665_v0, %v4667_v10  ;;  %v4683_v15 = vadd.f32 %v4667_v10, %v4507_v23  ;;  %v6467_v8 = vld [vmem:[%s11222_s11 + $0x1b8] sm:$0xff]  ;;  %vm11870_vm5 = vmmov %vm11868_vm0 }
0x1117   : > { %v4681_v41 = vadd.f32 %v4670_v29, %v4505_v45  ;;  %v4682_v62 = vadd.f32 %v4671_v16, %v4506_v9  ;;  %vm11871_vm1 = vmmov %vm11868_vm0 }
0x1119   : > { %4730 = vrot.lane.b32.xlu1 %v4681_v41, %s11501_s16  ;;  %4732 = vrot.lane.b32.xlu0 %v4682_v62, %s11501_s16 }
0x111d   : > { %4734 = vrot.lane.b32.xlu1 %v4683_v15, %s11501_s16 }
0x1121   : > { %3869 = vperm.xlu1 %7373, %v6448_v17  }
0x1125   : > { %3874 = vperm.xlu1 %7373, %v6449_v46  }
0x1126   : > { %v10362_v18 = vpop.permute.xlu0 %3913  ;;  %v10364_v54 = vpop.permute.xlu1 %3918 }
0x1127   : > { %v3922_v63 = vmul.f32 %v10362_v18, %v10096_v50 }
0x1129   : > { %4346 = vperm.xlu1 %7373, %v6466_v19  }
0x112a   : > { %v10369_v30 = vpop.permute.xlu0 %4390  ;;  %v10371_v61 = vpop.permute.xlu1 %4395 }
0x112d   : > { %4351 = vperm.xlu1 %7373, %v6467_v8   ;;  %v3923_v8 = vmul.f32 %v10362_v18, %v10099_v1 }
0x112e   : > { %v3895_v13 = vpop.permute.xlu0 %3894  ;;  %v3900_v48 = vpop.permute.xlu1 %3899 }
0x112f   : > { %v3903_v37 = vmul.f32 %v3895_v13, %v10096_v50  ;;  %v3904_v45 = vmul.f32 %v3895_v13, %v10099_v1  ;;  %v3906_v29 = vmul.f32 %v3900_v48, %v10118_v21  ;;  %v3907_v23 = vmul.f32 %v3900_v48, %v10133_v26 }
0x1130   : > { %v3902_v12 = vmul.f32 %v3895_v13, %v10282_v28 }
0x1131   : > { %4083 = vrot.lane.b32.xlu1 %v3903_v37, %s11505_s23 }
0x1132   : > { %v10378_v2 = vpop.permute.xlu0 %3963  ;;  %v10380_v0 = vpop.permute.xlu1 %3968 }
0x1135   : > { %4085 = vrot.lane.b32.xlu1 %v3904_v45, %s11505_s23 }
0x1136   : > { %v4372_v9 = vpop.permute.xlu0 %4371  ;;  %v4377_v10 = vpop.permute.xlu1 %4376 }
0x1137   : > { %v4380_v16 = vmul.f32 %v4372_v9, %v10146_v31  ;;  %v4382_v15 = vmul.f32 %v4377_v10, %v10284_v60  ;;  %v4381_v19 = vmul.f32 %v4372_v9, %v10149_v3  ;;  %v4384_v5 = vmul.f32 %v4377_v10, %v10112_v42 }
0x1139   : > { %4560 = vrot.lane.b32.xlu0 %v4380_v16, %s11505_s23  ;;  %4089 = vrot.lane.b32.xlu1 %v3906_v29, %s11505_s23  ;;  %v4383_v29 = vmul.f32 %v4377_v10, %v10107_v4  ;;  %v3926_v16 = vmul.f32 %v10364_v54, %v10133_v26 }
0x113a   : > { %v10388_v41 = vpop.permute.xlu0 %4440  ;;  %v10390_v62 = vpop.permute.xlu1 %4445 }
0x113d   : > { %4091 = vrot.lane.b32.xlu1 %v3907_v23, %s11505_s23  ;;  %4564 = vrot.lane.b32.xlu0 %v4382_v15, %s11505_s23  ;;  %v11866_v23 = vld [vmem:[#allocation50_spill] sm:$0xff] }
0x113e   : > { %v10396_v17 = vpop.permute.xlu0 %4055  ;;  %v10398_v46 = vpop.permute.xlu1 %4060  ;;  %v3929_v15 = vmul.f32 %v3923_v8, %v11866_v23 }
0x1141   : > { %4562 = vrot.lane.b32.xlu1 %v4381_v19, %s11505_s23  ;;  %v3932_v19 = vmul.f32 %v3926_v16, %v11866_v23 }
0x1142   : > { %v10404_v37 = vpop.permute.xlu0 %4532  ;;  %v10406_v45 = vpop.permute.xlu1 %4537 }
0x1145   : > { %4566 = vrot.lane.b32.xlu1 %v4383_v29, %s11505_s23 }
0x1146   : > { %v10413_v51 = vpop.permute.xlu0 %4117  ;;  %v4120_v14 = vpop.permute.xlu1 %4119 }
0x1147   : > { %v4139_v32 = vadd.f32 %v4120_v14, %v3929_v15 }
0x1149   : > { %4568 = vrot.lane.b32.xlu1 %v4384_v5, %s11505_s23  ;;  %4217 = vrot.lane.b32.xlu0 %v4139_v32, %s11867_s15  ;;  %v3905_v32 = vmul.f32 %v3900_v48, %v10284_v60  ;;  %v3925_v48 = vmul.f32 %v10364_v54, %v10118_v21 }
0x114a   : > { %v10419_v11 = vpop.permute.xlu0 %4123  ;;  %v4126_v59 = vpop.permute.xlu1 %4125 }
0x114b   : > { %v4142_v29 = vadd.f32 %v4126_v59, %v3932_v19  ;;  %v4379_v19 = vmul.f32 %v4372_v9, %v10282_v28  ;;  %v4130_v9 = vsel %vm11870_vm5, %v10419_v11, %v4126_v59  ;;  %v4402_v59 = vmul.f32 %v10371_v61, %v10107_v4  ;;  %vm11873_vm5 = vmmov %vm11868_vm0 }
0x114c   : > { %v10422_v47 = vpop.f32.mrb[32].mxu0 }
0x114d   : > { %v4902_v8 = vpop.f32.mrb[33].mxu0  ;;  %4081 = vrot.lane.b32.xlu1 %v3902_v12, %s11505_s23  ;;  %4223 = vrot.lane.b32.xlu0 %v4142_v29, %s11867_s15  ;;  %v4128_v29 = vsel %vm11868_vm0, %v10413_v51, %v4120_v14  ;;  %v4399_v14 = vmul.f32 %v10369_v30, %v10146_v31 }
0x114e   : > { %v4903_v10 = vpop.f32.mrb[34].mxu0  ;;  %v10426_v15 = vpop.permute.xlu0 %4149  ;;  %v11869_v8 = vld [vmem:[#allocation19_spill] sm:$0xff] }
0x114f   : > { %v4904_v5 = vpop.f32.mrb[35].mxu0  ;;  %v10429_v16 = vpop.permute.xlu1 %4151  ;;  %v3928_v10 = vmul.f32 %v3922_v63, %v11869_v8  ;;  %v3931_v57 = vmul.f32 %v3925_v48, %v11869_v8  ;;  %v4403_v63 = vmul.f32 %v10371_v61, %v10112_v42  ;;  %v4405_v58 = vmul.f32 %v4399_v14, %v11869_v8 }
0x1150   : > { %v4400_v5 = vmul.f32 %v10369_v30, %v10149_v3 }
0x1151   : > { %4087 = vrot.lane.b32.xlu1 %v3905_v32, %s11505_s23  ;;  %v4138_v24 = vadd.f32 %v4128_v29, %v3928_v10  ;;  %v4141_v40 = vadd.f32 %v4130_v9, %v3931_v57  ;;  %v4409_v48 = vmul.f32 %v4403_v63, %v11866_v23  ;;  %v4408_v9 = vmul.f32 %v4402_v59, %v11869_v8  ;;  %v11872_v59 = vld [vmem:[#allocation55_spill] sm:$0xff] }
0x1152   : > { %v10434_v13 = vpop.permute.xlu0 %4153  ;;  %v4406_v6 = vmul.f32 %v4400_v5, %v11866_v23 }
0x1153   : > { %v10437_v12 = vpop.permute.xlu1 %4155 }
0x1155   : > { %4558 = vrot.lane.b32.xlu1 %v4379_v19, %s11505_s23  ;;  %s11972_s23 = smov 114  }
0x1156   : > { %v10447_v32 = vpop.permute.xlu0 %4157 }
0x1157   : > { %v10449_v39 = vpop.permute.xlu1 %4159 }
0x1159   : > { %4215 = vrot.lane.b32.xlu1 %v4138_v24, %s11867_s15 }
0x115a   : > { %v4595_v19 = vpop.permute.xlu0 %4594 }
0x115b   : > { %v4597_v29 = vpop.permute.xlu1 %4596 }
0x115c   : > { %v4605_v10 = vsel %vm11871_vm1, %v4595_v19, %v4597_v29  ;;  %v4616_v43 = vadd.f32 %v4597_v29, %v4406_v6  ;;  %vm11874_vm1 = vmmov %vm11868_vm0 }
0x115d   : > { %4221 = vrot.lane.b32.xlu1 %v4141_v40, %s11867_s15  ;;  %v4615_v38 = vadd.f32 %v4605_v10, %v4405_v58  ;;  %v3921_v58 = vmul.f32 %v10362_v18, %v10282_v28 }
0x115e   : > { %4694 = vrot.lane.b32.xlu0 %v4616_v43, %s11867_s15  ;;  %v4601_v24 = vpop.permute.xlu0 %4600 }
0x115f   : > { %v4603_v34 = vpop.permute.xlu1 %4602 }
0x1160   : > { %v4607_v57 = vsel %vm11868_vm0, %v4601_v24, %v4603_v34  ;;  %v4619_v5 = vadd.f32 %v4603_v34, %v4409_v48  ;;  %v3924_v34 = vmul.f32 %v10364_v54, %v10284_v60  ;;  %v3927_v48 = vmul.f32 %v3921_v58, %v11872_v59 }
0x1161   : > { %4692 = vrot.lane.b32.xlu1 %v4615_v38, %s11867_s15  ;;  %v4618_v14 = vadd.f32 %v4607_v57, %v4408_v9  ;;  %v4398_v38 = vmul.f32 %v10369_v30, %v10282_v28 }
0x1162   : > { %4700 = vrot.lane.b32.xlu0 %v4619_v5, %s11867_s15  ;;  %v4627_v6 = vpop.permute.xlu0 %4626  ;;  %v4401_v5 = vmul.f32 %v10371_v61, %v10284_v60  ;;  %v3930_v18 = vmul.f32 %v3924_v34, %v11872_v59 }
0x1163   : > { %v4629_v29 = vpop.permute.xlu1 %4628  ;;  %v4404_v35 = vmul.f32 %v4398_v38, %v11872_v59 }
0x1164   : > { %v4407_v61 = vmul.f32 %v4401_v5, %v11872_v59 }
0x1165   : > { %4698 = vrot.lane.b32.xlu1 %v4618_v14, %s11867_s15 }
0x1166   : > { %v4631_v43 = vpop.permute.xlu0 %4630 }
0x1167   : > { %v10472_v40 = vpop.permute.xlu1 %4632 }
0x116a   : > { %v10476_v63 = vpop.permute.xlu0 %4634 }
0x116b   : > { %v10480_v10 = vpop.permute.xlu1 %4636 }
0x116e   : > { %v4116_v57 = vpop.permute.xlu0 %4115 }
0x116f   : > { %v4127_v9 = vsel %vm11873_vm5, %v4116_v57, %v10413_v51  ;;  %v4122_v14 = vpop.permute.xlu1 %4121  ;;  %vm11875_vm5 = vmmov %vm11868_vm0 }
0x1170   : > { %v4137_v8 = vadd.f32 %v4127_v9, %v3927_v48  ;;  %v4129_v54 = vsel %vm11874_vm1, %v4122_v14, %v10419_v11  ;;  %vm11876_vm1 = vcmask 1039360  }
0x1171   : > { %v4140_v23 = vadd.f32 %v4129_v54, %v3930_v18 }
0x1172   : > { %v4593_v30 = vpop.permute.xlu0 %4592  ;;  %4213 = vrot.lane.b32.xlu1 %v4137_v8, %s11867_s15  ;;  %v4161_v8 = vsel %vm11876_vm1, %v10426_v15, %v10429_v16 }
0x1173   : > { %v4604_v58 = vsel %vm11868_vm0, %v4593_v30, %v4595_v19  ;;  %4219 = vrot.lane.b32.xlu0 %v4140_v23, %s11867_s15  ;;  %v4599_v51 = vpop.permute.xlu1 %4598  ;;  %vm11877_vm0 = vmmov %vm11876_vm1  ;;  %v3971_v19 = vmul.f32 %v10378_v2, %v10096_v50 }
0x1174   : > { %v4614_v57 = vadd.f32 %v4604_v58, %v4404_v35  ;;  %v4606_v34 = vsel %vm11875_vm5, %v4599_v51, %v4601_v24  ;;  %v4162_v23 = vsel %vm11877_vm0, %v10429_v16, %v10434_v13  ;;  %v3972_v35 = vmul.f32 %v10378_v2, %v10099_v1  ;;  %vm11878_vm5 = vmmov %vm11877_vm0 }
0x1175   : > { %v4617_v48 = vadd.f32 %v4606_v34, %v4407_v61  ;;  %v4169_v24 = vadd.f32 %v4161_v8, %v3971_v19  ;;  %v4163_v18 = vsel %vm11878_vm5, %v10437_v12, %v10447_v32  ;;  %vm11880_vm1 = vmmov %vm11879_vm14  ;;  %v3973_v16 = vmul.f32 %v10380_v0, %v10118_v21 }
0x1176   : > { %4690 = vrot.lane.b32.xlu1 %v4614_v57, %s11867_s15  ;;  %v4170_v38 = vadd.f32 %v4162_v23, %v3972_v35  ;;  %v4164_v12 = vsel %vm11877_vm0, %v10447_v32, %v10449_v39  ;;  %vm11882_vm5 = vmmov %vm11880_vm1  ;;  %v3974_v51 = vmul.f32 %v10380_v0, %v10133_v26  ;;  %v4448_v39 = vmul.f32 %v10388_v41, %v10146_v31 }
0x1177   : > { %4696 = vrot.lane.b32.xlu0 %v4617_v48, %s11867_s15  ;;  %v4248_v11 = vpop.permute.xlu0 %4247  ;;  %v4171_v30 = vadd.f32 %v4163_v18, %v3973_v16  ;;  %vm11885_vm12 = vmmov %vm11882_vm5  ;;  %v4449_v32 = vmul.f32 %v10388_v41, %v10149_v3 }
0x1178   : > { %v4172_v34 = vadd.f32 %v4164_v12, %v3974_v51  ;;  %v4063_v51 = vmul.f32 %v10396_v17, %v10096_v50 }
0x117b   : > { %v4252_v5 = vpop.permute.xlu0 %4251  ;;  %v4250_v9 = vpop.permute.xlu1 %4249 }
0x117c   : > { %v4259_v15 = vsel %vm11879_vm14, %v4248_v11, %v4250_v9  ;;  %v4260_v14 = vsel %vm11880_vm1, %v4250_v9, %v4252_v5  ;;  %vm11883_vm14 = vmmov %vm11877_vm0  ;;  %v4450_v9 = vmul.f32 %v10390_v62, %v10107_v4 }
0x117d   : > { %v4267_v13 = vadd.f32 %v4259_v15, %v4169_v24  ;;  %v4268_v54 = vadd.f32 %v4260_v14, %v4170_v38  ;;  %v4638_v8 = vsel %vm11883_vm14, %v4627_v6, %v4629_v29  ;;  %vm11884_vm1 = vmmov %vm11877_vm0  ;;  %v4640_v6 = vsel %vm11877_vm0, %v10472_v40, %v10476_v63 }
0x117e   : > { %v4639_v23 = vsel %vm11884_vm1, %v4629_v29, %v4631_v43  ;;  %v4646_v0 = vadd.f32 %v4638_v8, %v4448_v39  ;;  %v4648_v15 = vadd.f32 %v4640_v6, %v4450_v9  ;;  %vm11887_vm14 = vmmov %vm11877_vm0  ;;  %v11892_v8 = vld [vmem:[#allocation60_spill] sm:$0xff] }
0x117f   : > { %v4256_v58 = vpop.permute.xlu0 %4255  ;;  %4277 = vrot.lane.b32.xlu0 %v4268_v54, %s11881_s24  ;;  %4275 = vrot.lane.b32.xlu1 %v4267_v13, %s11881_s24  ;;  %v4254_v2 = vpop.permute.xlu1 %4253  ;;  %v4647_v24 = vadd.f32 %v4639_v23, %v4449_v32  ;;  %v4641_v40 = vsel %vm11887_vm14, %v10476_v63, %v10480_v10  ;;  %vm11888_vm1 = vmmov %vm11882_vm5  ;;  %v4451_v54 = vmul.f32 %v10390_v62, %v10112_v42  ;;  %v6485_v62 = vld [vmem:[%s11223_s12 + $0x18] sm:$0xff] }
0x1180   : > { %v4261_v61 = vsel %vm11882_vm5, %v4254_v2, %v4256_v58  ;;  %vm11889_vm0 = vmmov %vm11888_vm1  ;;  %v4064_v10 = vmul.f32 %v10396_v17, %v10099_v1  ;;  %v4540_v32 = vmul.f32 %v10404_v37, %v10146_v31 }
0x1181   : > { %v4269_v57 = vadd.f32 %v4261_v61, %v4171_v30  ;;  %v6484_v61 = vld [vmem:[%s11223_s12 + $0x10] sm:$0xff] }
0x1183   : > { %v4725_v48 = vpop.permute.xlu0 %4724  ;;  %4279 = vrot.lane.b32.xlu1 %v4269_v57, %s11881_s24  ;;  %v4258_v11 = vpop.permute.xlu1 %4257  ;;  %v4065_v57 = vmul.f32 %v10396_v17, %v10109_v36 }
0x1184   : > { %v4262_v19 = vsel %vm11885_vm12, %v4256_v58, %v4258_v11  ;;  %vm11886_vm12 = vmmov %vm11882_vm5  ;;  %v4649_v58 = vadd.f32 %v4641_v40, %v4451_v54  ;;  %v4067_v11 = vmul.f32 %v10398_v46, %v10133_v26  ;;  %v4068_v40 = vmul.f32 %v10398_v46, %v10127_v25 }
0x1185   : > { %v4270_v35 = vadd.f32 %v4262_v19, %v4172_v34  ;;  %v11890_v34 = vld [vmem:[#allocation54_spill] sm:$0xff]  ;;  %v4071_v23 = vmul.f32 %v4065_v57, %v11892_v8  ;;  %v11893_v19 = vld [vmem:[#allocation13_spill] sm:$0xff] }
0x1186   : > { %v4070_v39 = vmul.f32 %v4064_v10, %v11893_v19  ;;  %v4073_v17 = vmul.f32 %v4067_v11, %v11893_v19 }
0x1187   : > { %v4729_v38 = vpop.permute.xlu0 %4728  ;;  %4281 = vrot.lane.b32.xlu0 %v4270_v35, %s11881_s24  ;;  %v4727_v5 = vpop.permute.xlu1 %4726  ;;  %v4542_v35 = vmul.f32 %v10404_v37, %v10109_v36  ;;  %v11493_v36 = vmax.f32 %v10422_v47, 0.0 }
0x1188   : > { %v4736_v29 = vsel %vm11882_vm5, %v4725_v48, %v4727_v5  ;;  %v4737_v43 = vsel %vm11886_vm12, %v4727_v5, %v4729_v38  ;;  %v4069_v48 = vmul.f32 %v4063_v51, %v11890_v34  ;;  %vm11894_vm5 = vcmask 130048   ;;  %vm11897_vm12 = vmmov %vm11887_vm14 }
0x1189   : > { %v4744_v18 = vadd.f32 %v4736_v29, %v4646_v0  ;;  %v4745_v41 = vadd.f32 %v4737_v43, %v4647_v24  ;;  %v4546_v0 = vmul.f32 %v4540_v32, %v11890_v34  ;;  %v4544_v24 = vmul.f32 %v10406_v45, %v10112_v42  ;;  %vm11898_vm14 = vmmov %vm11897_vm12 }
0x118a   : > { %v4548_v38 = vmul.f32 %v4542_v35, %v11892_v8 }
0x118b   : > { %v4733_v14 = vpop.permute.xlu0 %4732  ;;  %4754 = vrot.lane.b32.xlu0 %v4745_v41, %s11881_s24  ;;  %4752 = vrot.lane.b32.xlu1 %v4744_v18, %s11881_s24  ;;  %v4731_v16 = vpop.permute.xlu1 %4730  ;;  %v4550_v6 = vmul.f32 %v4544_v24, %v11893_v19  ;;  %v4907_v18 = vsel %vm11894_vm5, %v11493_v36, -inf }
0x118c   : > { %v4738_v13 = vsel %vm11888_vm1, %v4731_v16, %v4733_v14  ;;  %vm11899_vm1 = vmmov %vm11897_vm12 }
0x118d   : > { %v4746_v30 = vadd.f32 %v4738_v13, %v4648_v15 }
0x118f   : > { %4756 = vrot.lane.b32.xlu1 %v4746_v30, %s11881_s24  ;;  %v4735_v2 = vpop.permute.xlu1 %4734  ;;  %v4541_v30 = vmul.f32 %v10404_v37, %v10149_v3 }
0x1190   : > { %v4739_v12 = vsel %vm11889_vm0, %v4733_v14, %v4735_v2  ;;  %v4066_v14 = vmul.f32 %v10398_v46, %v10118_v21  ;;  %v4543_v2 = vmul.f32 %v10406_v45, %v10107_v4  ;;  %v4545_v46 = vmul.f32 %v10406_v45, %v10127_v25  ;;  %vm11900_vm0 = vmmov %vm11899_vm1 }
0x1191   : > { %v4747_v63 = vadd.f32 %v4739_v12, %v4649_v58  ;;  %v4074_v58 = vmul.f32 %v4068_v40, %v11892_v8  ;;  %v4547_v12 = vmul.f32 %v4541_v30, %v11893_v19  ;;  %vm11902_vm5 = vmmov %vm11900_vm0 }
0x1192   : > { %v4072_v13 = vmul.f32 %v4066_v14, %v11890_v34  ;;  %v4549_v51 = vmul.f32 %v4543_v2, %v11890_v34 }
0x1193   : > { %4819 = vperm.xlu1 %7373, %v6484_v61   ;;  %4758 = vrot.lane.b32.xlu0 %v4747_v63, %s11881_s24  ;;  %v4551_v63 = vmul.f32 %v4545_v46, %v11892_v8 }
0x1197   : > { %4303 = vrot.lane.b32.xlu1 %v4069_v48, %s11891_s17  ;;  %4824 = vperm.xlu0 %7372, %v6485_v62  }
0x119b   : > { %4307 = vrot.lane.b32.xlu1 %v4071_v23, %s11891_s17  ;;  %4305 = vrot.lane.b32.xlu0 %v4070_v39, %s11891_s17 }
0x119f   : > { %4311 = vrot.lane.b32.xlu1 %v4073_v17, %s11891_s17 }
0x11a0   : > { %v10583_v5 = vpop.permute.xlu1 %3869 }
0x11a1   : > { %v3877_v59 = vmul.f32 %v10583_v5, %v10282_v28  ;;  %v3878_v34 = vmul.f32 %v10583_v5, %v10096_v50  ;;  %v3879_v20 = vmul.f32 %v10583_v5, %v10099_v1 }
0x11a3   : > { %4780 = vrot.lane.b32.xlu1 %v4546_v0, %s11891_s17 }
0x11a4   : > { %v3875_v29 = vpop.permute.xlu1 %3874 }
0x11a5   : > { %v3882_v56 = vmul.f32 %v3875_v29, %v10133_v26  ;;  %v3880_v52 = vmul.f32 %v3875_v29, %v10284_v60  ;;  %v3881_v27 = vmul.f32 %v3875_v29, %v10118_v21  ;;  %v3884_v21 = vmul.f32 %v3878_v34, %v9811_v49 }
0x11a6   : > { %v3883_v29 = vmul.f32 %v3877_v59, %v11795_v7 }
0x11a7   : > { %4784 = vrot.lane.b32.xlu1 %v4548_v38, %s11891_s17 }
0x11a8   : > { %v10588_v43 = vpop.permute.xlu1 %4346 }
0x11a9   : > { %v4355_v33 = vmul.f32 %v10588_v43, %v10146_v31  ;;  %v4354_v53 = vmul.f32 %v10588_v43, %v10282_v28  ;;  %v4356_v44 = vmul.f32 %v10588_v43, %v10149_v3  ;;  %v3885_v31 = vmul.f32 %v3879_v20, %v11793_v55 }
0x11aa   : > { %v3888_v28 = vmul.f32 %v3882_v56, %v11793_v55 }
0x11ab   : > { %4788 = vrot.lane.b32.xlu1 %v4550_v6, %s11891_s17  ;;  %v10640_v45 = vpop.permute.xlu0 %4560  ;;  %v4362_v59 = vmul.f32 %v4356_v44, %v11793_v55  ;;  %v4360_v34 = vmul.f32 %v4354_v53, %v11795_v7  ;;  %v11901_v44 = vmax.f32 %v10422_v47, 0.0 }
0x11ac   : > { %v10591_v9 = vpop.permute.xlu1 %4351 }
0x11ad   : > { %v4357_v50 = vmul.f32 %v10591_v9, %v10284_v60  ;;  %v4358_v1 = vmul.f32 %v10591_v9, %v10107_v4  ;;  %v4359_v26 = vmul.f32 %v10591_v9, %v10112_v42  ;;  %v3887_v60 = vmul.f32 %v3881_v27, %v9811_v49 }
0x11ae   : > { %v4361_v4 = vmul.f32 %v4355_v33, %v9811_v49  ;;  %v3886_v42 = vmul.f32 %v3880_v52, %v11795_v7 }
0x11af   : > { %v4565_v39 = vpop.permute.xlu0 %4564  ;;  %v4363_v27 = vmul.f32 %v4357_v50, %v11795_v7  ;;  %v4364_v33 = vmul.f32 %v4358_v1, %v9811_v49  ;;  %v4365_v52 = vmul.f32 %v4359_v26, %v11793_v55 }
0x11b0   : > { %v10596_v41 = vpop.permute.xlu1 %4083 }
0x11b4   : > { %v10598_v15 = vpop.permute.xlu1 %4085 }
0x11b5   : > { %v4094_v3 = vsel %vm11897_vm12, %v10596_v41, %v10598_v15  ;;  %v4105_v9 = vadd.f32 %v10598_v15, %v3885_v31  ;;  %vm11903_vm12 = vmmov %vm11900_vm0 }
0x11b8   : > { %v10602_v16 = vpop.permute.xlu1 %4089 }
0x11ba   : > { %4908 = vmax.xlane.f32.xlu0 %v4907_v18 }
0x11bb   : > { %v10644_v32 = vpop.permute.xlu0 %4217 }
0x11bc   : > { %v10608_v54 = vpop.permute.xlu1 %4091  ;;  %v4237_v15 = vadd.f32 %v10644_v32, %v4105_v9 }
0x11bd   : > { %v4096_v20 = vsel %vm11898_vm14, %v10602_v16, %v10608_v54  ;;  %v4108_v56 = vadd.f32 %v10608_v54, %v3888_v28  ;;  %vm11904_vm14 = vmmov %vm11900_vm0 }
0x11be   : > { %v4107_v31 = vadd.f32 %v4096_v20, %v3887_v60 }
0x11bf   : > { %v10648_v35 = vpop.permute.xlu0 %4223 }
0x11c0   : > { %v10617_v61 = vpop.permute.xlu1 %4562  ;;  %v10746_v26 = vadd.f32 %v10648_v35, %v4108_v56 }
0x11c4   : > { %v10624_v37 = vpop.permute.xlu1 %4566 }
0x11c5   : > { %v4572_v54 = vsel %vm11900_vm0, %v4565_v39, %v10624_v37 }
0x11c6   : > { %v4583_v28 = vadd.f32 %v4572_v54, %v4363_v27 }
0x11c8   : > { %v10628_v62 = vpop.permute.xlu1 %4568 }
0x11c9   : > { %v4573_v50 = vsel %vm11902_vm5, %v10624_v37, %v10628_v62 }
0x11cc   : > { %v10630_v10 = vpop.permute.xlu1 %4081 }
0x11cd   : > { %v4093_v1 = vsel %vm11903_vm12, %v10630_v10, %v10596_v41  ;;  %v4584_v10 = vadd.f32 %v4573_v50, %v4364_v33 }
0x11ce   : > { %v4103_v20 = vadd.f32 %v4093_v1, %v3883_v29 }
0x11d0   : > { %4309 = vrot.lane.b32.xlu0 %v4072_v13, %s11891_s17  ;;  %v10632_v57 = vpop.permute.xlu1 %4087  ;;  %v10652_v24 = vpop.permute.xlu0 %4694 }
0x11d4   : > { %4313 = vrot.lane.b32.xlu0 %v4074_v58, %s11891_s17  ;;  %v10634_v48 = vpop.permute.xlu1 %4558  ;;  %v10656_v6 = vpop.permute.xlu0 %4700 }
0x11d8   : > { %4782 = vrot.lane.b32.xlu0 %v4547_v12, %s11891_s17  ;;  %v10636_v11 = vpop.permute.xlu1 %4215 }
0x11dc   : > { %4786 = vrot.lane.b32.xlu0 %v4549_v51, %s11891_s17  ;;  %v10638_v25 = vpop.permute.xlu1 %4221 }
0x11e0   : > { %4790 = vrot.lane.b32.xlu0 %v4551_v63, %s11891_s17  ;;  %v10642_v23 = vpop.permute.xlu1 %4692 }
0x11e4   : > { %v10646_v17 = vpop.permute.xlu1 %4698 }
0x11e5   : > { %v10660_v14 = vpop.permute.xlu0 %4219 }
0x11e8   : > { %v10650_v0 = vpop.permute.xlu1 %4213 }
0x11e9   : > { %v10664_v13 = vpop.permute.xlu0 %4696 }
0x11ec   : > { %v10654_v38 = vpop.permute.xlu1 %4690 }
0x11f1   : > { %v10658_v18 = vpop.permute.xlu1 %4275  ;;  %v10668_v58 = vpop.permute.xlu0 %4277 }
0x11f5   : > { %v10662_v40 = vpop.permute.xlu1 %4279 }
0x11f9   : > { %v10670_v2 = vpop.permute.xlu0 %4281 }
0x11fd   : > { %v10666_v30 = vpop.permute.xlu1 %4752  ;;  %v10676_v51 = vpop.permute.xlu0 %4754 }
0x1201   : > { %v10672_v12 = vpop.permute.xlu1 %4756 }
0x1205   : > { %v10678_v63 = vpop.permute.xlu0 %4758 }
0x1212   : > { %v10674_v46 = vpop.permute.xlu1 %4819 }
0x1213   : > { %11895 = vst [vmem:[#allocation57_spill] sm:$0xff] %v10674_v46  ;;  %v4571_v46 = vsel %vm11899_vm1, %v10640_v45, %v10617_v61  ;;  %vm11905_vm1 = vmmov %vm11900_vm0  ;;  %vm11906_vm0 = vcmask 1031168  }
0x1214   : > { %v4581_v39 = vadd.f32 %v4571_v46, %v4361_v4  ;;  %v4095_v37 = vsel %vm11905_vm1, %v10632_v57, %v10602_v16  ;;  %vm11907_vm5 = vmmov %vm11906_vm0  ;;  %v4225_v46 = vsel %vm11906_vm0, %v10650_v0, %v10636_v11 }
0x1215   : > { %vm11908_vm12 = vmmov %vm11906_vm0  ;;  %v4235_v0 = vadd.f32 %v4225_v46, %v4103_v20 }
0x1216   : > { %v10680_v36 = vpop.permute.xlu1 %4303  ;;  %v10682_v8 = vpop.permute.xlu0 %4824  ;;  %vm11910_vm1 = vmmov %vm11906_vm0 }
0x1217   : > { %11896 = vst [vmem:[#allocation63_spill] sm:$0xff] %v10682_v8  ;;  %v4104_v8 = vadd.f32 %v4094_v3, %v3884_v21  ;;  %v4582_v21 = vadd.f32 %v10617_v61, %v4362_v59  ;;  %v4585_v3 = vadd.f32 %v10628_v62, %v4365_v52  ;;  %v4702_v61 = vsel %vm11906_vm0, %v10654_v38, %v10642_v23 }
0x1218   : > { %v4228_v62 = vsel %vm11908_vm12, %v10638_v25, %v10648_v35  ;;  %v4705_v38 = vsel %vm11910_vm1, %v10646_v17, %v10656_v6  ;;  %vm11912_vm12 = vmmov %vm11906_vm0  ;;  %v4291_v27 = vadd.f32 %v10658_v18, %v4235_v0 }
0x1219   : > { %v4714_v57 = vadd.f32 %v10652_v24, %v4582_v21 }
0x121a   : > { %v10684_v19 = vpop.permute.xlu1 %4307  ;;  %v10707_v5 = vpop.permute.xlu0 %4305  ;;  %v4325_v50 = vadd.f32 %v10680_v36, %v4291_v27  ;;  %v11925_v46 = vld [vmem:[#allocation57_spill] sm:$0xff]  ;;  %v6589_v27 = vld [vmem:[%s11220_s9 + $0xb8] sm:$0xff] }
0x121e   : > { %v10719_v43 = vpop.permute.xlu1 %4311 }
0x1222   : > { %v4781_v60 = vpop.permute.xlu1 %4780 }
0x1247   : > { %v4909_v22 = vpop.xlane.xlu0 %4908 }
0x1248   : > { %v4910_v53 = vsub.f32 %v11901_v44, %v4909_v22  ;;  %v4570_v22 = vsel %vm11904_vm14, %v10634_v48, %v10640_v45  ;;  %v4226_v48 = vsel %vm11907_vm5, %v10636_v11, %v10644_v32  ;;  %vm11909_vm14 = vmmov %vm11906_vm0  ;;  %v4106_v45 = vadd.f32 %v4095_v37, %v3886_v42 }
0x1249   : > { %v4580_v56 = vadd.f32 %v4570_v22, %v4360_v34  ;;  %v4703_v16 = vsel %vm11909_vm14, %v10642_v23, %v10652_v24  ;;  %v4717_v32 = vadd.f32 %v10656_v6, %v4585_v3  ;;  %vm11911_vm5 = vmmov %vm11906_vm0  ;;  %v4704_v23 = vsel %vm11912_vm12, %v10664_v13, %v10646_v17 }
0x124a   : > { %v4911_v47 = vmul.f32 1.442695, %v4910_v53  ;;  %v4227_v35 = vsel %vm11911_vm5, %v10660_v14, %v10638_v25  ;;  %v4236_v4 = vadd.f32 %v4226_v48, %v4104_v8  ;;  %v4239_v42 = vadd.f32 %v4228_v62, %v4107_v31  ;;  %v4785_v14 = vpop.permute.xlu1 %4784 }
0x124b   : > { %v4310_v41 = vpop.permute.xlu0 %4309  ;;  %v4712_v24 = vadd.f32 %v4702_v61, %v4580_v56  ;;  %v4713_v59 = vadd.f32 %v4703_v16, %v4581_v39  ;;  %vm11913_vm14 = vcmask 908288   ;;  %v4716_v11 = vadd.f32 %v4705_v38, %v4584_v10 }
0x124c   : > { %7391 = vpow2.f32 %v4911_v47  ;;  %v4760_v34 = vsel %vm11913_vm14, %v10666_v30, %v10676_v51  ;;  %vm11914_vm1 = vmmov %vm11913_vm14  ;;  %v4238_v9 = vadd.f32 %v4227_v35, %v4106_v45  ;;  %v4715_v17 = vadd.f32 %v4704_v23, %v4583_v28 }
0x124d   : > { %v4283_v6 = vsel %vm11914_vm1, %v10658_v18, %v10668_v58  ;;  %v4768_v25 = vadd.f32 %v10666_v30, %v4712_v24  ;;  %v4293_v13 = vadd.f32 %v10668_v58, %v4237_v15  ;;  %vm11915_vm0 = vmmov %vm11914_vm1  ;;  %v4769_v33 = vadd.f32 %v4760_v34, %v4713_v59  ;;  %v11926_v24 = vld [vmem:[#allocation63_spill] sm:$0xff] }
0x124e   : > { %v4284_v8 = vsel %vm11915_vm0, %v10662_v40, %v10670_v2  ;;  %vm11916_vm5 = vmmov %vm11915_vm0  ;;  %v4292_v53 = vadd.f32 %v4283_v6, %v4236_v4  ;;  %v4294_v30 = vadd.f32 %v10662_v40, %v4238_v9  ;;  %vm11917_vm12 = vcmask 769024   ;;  %v6590_v6 = vld [vmem:[%s11220_s9 + $0xc0] sm:$0xff]  ;;  %v5312_v9 = vld [vmem:[%s11217_s6 + $0x8] sm:$0xff] }
0x124f   : > { %v4314_v29 = vpop.permute.xlu0 %4313  ;;  %v4761_v52 = vsel %vm11916_vm5, %v10672_v12, %v10678_v63  ;;  %v4802_v54 = vadd.f32 %v4781_v60, %v4768_v25  ;;  %v4315_v58 = vsel %vm11917_vm12, %v10680_v36, %v10707_v5  ;;  %vm11918_vm14 = vmmov %vm11917_vm12  ;;  %v4295_v31 = vadd.f32 %v4284_v8, %v4239_v42  ;;  %v4789_v36 = vpop.permute.xlu1 %4788  ;;  %v6580_v25 = vld [vmem:[%s11220_s9 + $0x78] sm:$0xff]  ;;  %v6587_v8 = vld [vmem:[%s11220_s9 + $0xa8] sm:$0xff] }
0x1250   : > { %vm11919_vm1 = vmmov %vm11917_vm12  ;;  %v4770_v22 = vadd.f32 %v10676_v51, %v4714_v57  ;;  %v4771_v47 = vadd.f32 %v10672_v12, %v4715_v17  ;;  %v4772_v40 = vadd.f32 %v4761_v52, %v4716_v11  ;;  %v4326_v28 = vadd.f32 %v4315_v58, %v4292_v53  ;;  %v6591_v17 = vld [vmem:[%s11220_s9 + $0xc8] sm:$0xff] }
0x1251   : > { %v4317_v18 = vsel %vm11919_vm1, %v4310_v41, %v10719_v43  ;;  %vm11920_vm0 = vmmov %vm11919_vm1  ;;  %v4808_v37 = vadd.f32 %v4802_v54, %v4325_v50  ;;  %vm11922_vm12 = vcmask 130048   ;;  %v4328_v20 = vadd.f32 %v4310_v41, %v4294_v30 }
0x1252   : > { %vm11921_vm5 = vmmov %vm11920_vm0  ;;  %v4329_v61 = vadd.f32 %v4317_v18, %v4295_v31  ;;  %v4773_v57 = vadd.f32 %v10678_v63, %v4717_v32  ;;  %v11930_v30 = vmov 1.0|1.0  }
0x1253   : > { %v4783_v44 = vpop.permute.xlu0 %4782  ;;  %v4316_v3 = vsel %vm11921_vm5, %v10707_v5, %v10684_v19  ;;  %vm11924_vm1 = vmmov %vm11920_vm0  ;;  %v4296_v19 = vadd.f32 %v10670_v2, %v10746_v26  ;;  %v4827_v35 = vadd.f32 %v11925_v46, %v4808_v37  ;;  %vm11928_vm5 = vcmask 138240  }
0x1254   : > { %v4792_v15 = vsel %vm11918_vm14, %v4781_v60, %v4783_v44  ;;  %v4793_v39 = vsel %vm11920_vm0, %v4783_v44, %v4785_v14  ;;  %vm11923_vm14 = vmmov %vm11920_vm0  ;;  %v4318_v12 = vsel %vm11924_vm1, %v10719_v43, %v4314_v29  ;;  %v4327_v45 = vadd.f32 %v4316_v3, %v4293_v13  ;;  %v5311_v14 = vld [vmem:[%s11217_s6] sm:$0xff]  ;;  %v7413_v3 = vld [vmem:[%s7539_s18 + $0x8] sm:$0xff] }
0x1255   : > { %v4803_v1 = vadd.f32 %v4792_v15, %v4769_v33  ;;  %v4804_v48 = vadd.f32 %v4793_v39, %v4770_v22  ;;  %v4330_v23 = vadd.f32 %v4318_v12, %v4296_v19  ;;  %v6581_v13 = vld [vmem:[%s11220_s9 + $0x80] sm:$0xff]  ;;  %v11935_v22 = vmov 0.0  }
0x1256   : > { %v10805_v21 = vpop.eup %7391  ;;  %v10973_v19 = vld [vmem:[#allocation2] sm:$0xff] }
0x1257   : > { %v4787_v60 = vpop.permute.xlu0 %4786  ;;  %v4913_v10 = vsel %vm11922_vm12, %v10805_v21, 0.0  ;;  %v4809_v62 = vadd.f32 %v4803_v1, %v4326_v28  ;;  %v4810_v43 = vadd.f32 %v4804_v48, %v4327_v45  ;;  %vm11929_vm12 = vmmov %vm11928_vm5  ;;  %v11933_v1 = vld [vmem:[#allocation28_spill] sm:$0xff]  ;;  %v6588_v45 = vld [vmem:[%s11220_s9 + $0xb0] sm:$0xff] }
0x1258   : > { %v4794_v51 = vsel %vm11923_vm14, %v4787_v60, %v4789_v36  ;;  %v4805_v56 = vadd.f32 %v4787_v60, %v4771_v47  ;;  %4914 = vadd.xlane.f32.xlu1 %v4913_v10  ;;  %vm11932_vm14 = vcmask 130048   ;;  %vm11934_vm1 = vnez %v11933_v1  ;;  %v11936_v47 = vld [vmem:[#allocation29_spill] sm:$0xff]  ;;  %v7414_v60 = vld [vmem:[%s7539_s18] sm:$0xff] }
0x1259   : > { %v4806_v16 = vadd.f32 %v4794_v51, %v4772_v40  ;;  %v4828_v29 = vadd.f32 %v11925_v46, %v4809_v62  ;;  %v4829_v63 = vadd.f32 %v11925_v46, %v4810_v43  ;;  %v11938_v40 = vld [vmem:[#allocation30_spill] sm:$0xff] }
0x125a   : > { %v4811_v5 = vadd.f32 %v4805_v56, %v4328_v20  ;;  %v11951_v46 = vld [vmem:[#allocation14_spill] sm:$0xff] }
0x125b   : > { %v4812_v38 = vadd.f32 %v4806_v16, %v4329_v61  ;;  %v4791_v41 = vpop.permute.xlu0 %4790  ;;  %v6586_v16 = vld [vmem:[%s11220_s9 + $0xa0] sm:$0xff] }
0x125c   : > { %v4830_v4 = vadd.f32 %v11926_v24, %v4811_v5  ;;  %v4795_v42 = vsel %vm11920_vm0, %v4789_v36, %v4791_v41  ;;  %vm11937_vm0 = vnez %v11936_v47 }
0x125d   : > { %v4831_v59 = vadd.f32 %v11926_v24, %v4812_v38  ;;  %v4807_v34 = vadd.f32 %v4795_v42, %v4773_v57  ;;  %v11961_v42 = vld [vmem:[#allocation26_spill] sm:$0xff] }
0x125e   : > { %v4919_v2 = vpack.c.bf16 %v4830_v4, %v4827_v35  ;;  %v11953_v35 = vld [vmem:[#allocation17_spill] sm:$0xff]  ;;  %v10980_v38 = vld [vmem:[#allocation2 + $0x18] sm:$0xff] }
0x125f   : > { %v4813_v26 = vadd.f32 %v4807_v34, %v4330_v23  ;;  %v4920_v11 = vpack.c.bf16 %v4831_v59, %v4828_v29  ;;  %v11955_v23 = vld [vmem:[#allocation20_spill] sm:$0xff]  ;;  %v11959_v4 = vld [vmem:[#allocation25_spill] sm:$0xff] }
0x1261   : > { %v4832_v32 = vadd.f32 %v11926_v24, %v4813_v26  ;;  %4927 = vrot.lane.b32.xlu0 %v4920_v11, %s11927_s21  ;;  %v11957_v24 = vld [vmem:[#allocation23_spill] sm:$0xff]  ;;  %v11963_v11 = vmov 0  }
0x1263   : > { %v4921_v0 = vpack.c.bf16 %v4832_v32, %v4829_v63 }
0x1265   : > { %4929 = vrot.lane.b32.xlu0 %v4921_v0, %s11927_s21 }
0x1269   : > { %5716 = vperm.xlu1 %7373, %v6590_v6   ;;  %4925 = vrot.lane.b32.xlu0 %v4919_v2, %s11927_s21 }
0x126d   : > { %5463 = vperm.xlu1 %7373, %v6580_v25   ;;  %5315 = vperm.xlu0 %7372, %v5311_v14  }
0x1271   : > { %5320 = vperm.xlu0 %7372, %v5312_v9   ;;  %v6569_v9 = vld [vmem:[%s11213_s2 + $0x8] sm:$0x3] }
0x1275   : > { %5729 = vperm.xlu0 %7372, %v6591_v17   ;;  %v6570_v17 = vld [vmem:[%s11213_s2 + $0xa] sm:$0x3] }
0x1279   : > { %5476 = vperm.xlu0 %7372, %v6581_v13   ;;  %v11965_v13 = vld [vmem:[#allocation31_spill] sm:$0xff] }
0x127d   : > { %5678 = vperm.xlu0 %7372, %v6587_v8   ;;  %v5283_v8 = vrot.slane %v6569_v9, %v11965_v13 }
0x1281   : > { %5703 = vperm.xlu0 %7372, %v6589_v27  }
0x12d3   : > { %v4928_v33 = vpop.permute.xlu0 %4927 }
0x12d7   : > { %v4930_v52 = vpop.permute.xlu0 %4929 }
0x12d8   : > { %v4932_v54 = vsel %vm11928_vm5, %v4928_v33, %v4930_v52  ;;  %vm11969_vm5 = vcmask 64512  }
0x12d9   : > { %4938 = vmatprep.subr.bf16.mxu1 %v4932_v54 }
0x12db   : > { %v4926_v44 = vpop.permute.xlu0 %4925 }
0x12dc   : > { %v4931_v53 = vsel %vm11929_vm12, %v4926_v44, %v4928_v33  ;;  %v11966_v33 = vld [vmem:[#allocation32_spill] sm:$0xff]  ;;  %v5298_v44 = vrot.slane %v6570_v17, %v11965_v13  ;;  %vm11979_vm12 = vcmask 1039360  }
0x12dd   : > { %4939 = vmatpush1.bf16.msra.mxu1 %v4931_v53  ;;  %v5287_v52 = vrot.slane %v6569_v9, %v11966_v33  ;;  %v5302_v58 = vrot.slane %v6570_v17, %v11966_v33  ;;  %v11976_v13 = vld [vmem:[#allocation64_spill] sm:$0xff]  ;;  %v11977_v33 = vld [vmem:[#allocation37_spill] sm:$0xff] }
0x12de   : > { %7305 = vmatprep.subr.msk.bf16.mxu1 %vm11850_vm9, %v11930_v30  ;;  %vm11939_vm9 = vnez %v11938_v40  ;;  %v7378_v40 = vld [vmem:[%s11216_s5] sm:$0xff]  }
0x12e5   : > { %v4915_v15 = vpop.xlane.xlu1 %4914 }
0x12e6   : > { %7393 = vrcp.f32 %v4915_v15 }
0x12ec   : > { %v5316_v39 = vpop.permute.xlu0 %5315 }
0x12f0   : > { %v7394_v31 = vpop.eup %7393 }
0x12f1   : > { %v4917_v50 = vmul.f32 %v7394_v31, %v10805_v21 }
0x12f3   : > { %v4918_v18 = vpack.c.bf16 %v4917_v50, %v4917_v50 }
0x12f5   : > { %6486 = vmatmul.mubr.msk.bf16.vlgmr.msra.gmra.mrb[36].mxu1 %vm11932_vm14, %v4918_v18  ;;  %vm11983_vm14 = vmmov %vm11979_vm12 }
0x12f6   : > { %7307 = vmatpush1.bf16.msk.msra.mxu1 %vm11934_vm1, %v11930_v30  ;;  %5117 = vmatprep.mubr.f32.mxu1 %v11935_v22 }
0x12f7   : > { %7309 = vmatprep.subr.msk.bf16.mxu1 %vm11937_vm0, %v11930_v30 }
0x12fa   : > { %7311 = vmatpush1.bf16.msk.msra.mxu1 %vm11939_vm9, %v11930_v30 }
0x12fb   : > { %7313 = vmatprep.subr.msk.bf16.mxu1 %vm11818_vm6, %v11930_v30  ;;  %vm11941_vm6 = vcmask 261120  }
0x13c8   : > { %v4972_v21 = vpop.f32.mrb[36].mxu1 }
0x13c9   : > { %v4974_v28 = vpop.f32.mrb[37].mxu1  ;;  %v10879_v10 = vadd.f32 %v7414_v60, %v4972_v21  ;;  %v5321_v21 = vpop.permute.xlu0 %5320 }
0x13ca   : > { %v10876_v37 = vadd.f32 %v7413_v3, %v4974_v28  ;;  %v4976_v36 = vpop.f32.mrb[38].mxu1 }
0x13cb   : > { %v4977_v20 = vpop.f32.mrb[39].mxu1 }
0x13cc   : > { %5043 = vmatprep.mubr.f32.mxu0 %v10876_v37 }
0x13cd   : > { %5044 = vmatmul.mubr.f32.vlgmr.msra.gmra.mrb[36].mxu0 %v10879_v10  ;;  %v5730_v28 = vpop.permute.xlu0 %5729 }
0x13ce   : > { %7347 = vmatpush1.bf16.msk.msra.mxu0 %vm11934_vm1, %v11930_v30  ;;  %5268 = vmatprep.mubr.f32.mxu0 %v11935_v22  ;;  %vm11984_vm1 = vmmov %vm11979_vm12 }
0x13cf   : > { %7349 = vmatprep.subr.msk.bf16.mxu0 %vm11937_vm0, %v11930_v30  ;;  %vm11985_vm0 = vmmov %vm11984_vm1 }
0x13d2   : > { %7351 = vmatpush1.bf16.msk.msra.mxu0 %vm11939_vm9, %v11930_v30  ;;  %vm11986_vm9 = vmmov %vm11985_vm0 }
0x14a0   : > { %v6930_v61 = vpop.f32.mrb[36].mxu0 }
0x14a1   : > { %v6931_v51 = vpop.f32.mrb[37].mxu0 }
0x14a2   : > { %v6932_v56 = vadd.f32 %v6931_v51, %v6930_v61  ;;  %v5477_v61 = vpop.permute.xlu0 %5476 }
0x14a4   : > { %v5049_v12 = vmul.f32 0.125, %v6932_v56 }
0x14a6   : > { %6527 = vmatmul.mubr.msk.f32.vlgmr.msra.gmra.mrb[40].mxu1 %vm11941_vm6, %v5049_v12  ;;  %v5679_v5 = vpop.permute.xlu0 %5678 }
0x14a7   : > { %7315 = vmatpush3.bf16.msk.msra.mxu1 %vm11820_vm4, %v11930_v30  ;;  %vm11952_vm4 = vnez %v11951_v46  ;;  %v5681_v41 = vmul.f32 %v5679_v5, %v10973_v19  ;;  %v5734_v46 = vmul.f32 %v5730_v28, %v10980_v38 }
0x14a8   : > { %7317 = vmatprep.subr.msk.bf16.mxu1 %vm11822_vm13, %v11930_v30  ;;  %vm11954_vm13 = vnez %v11953_v35  ;;  %v11971_v35 = vld [vmem:[#allocation35_spill] sm:$0xff] }
0x14ab   : > { %7319 = vmatpush3.bf16.msk.msra.mxu1 %vm11824_vm15, %v11930_v30  ;;  %vm11956_vm15 = vnez %v11955_v23  ;;  %v5684_v23 = vmul.f32 %v5681_v41, %v11971_v35 }
0x14ac   : > { %7321 = vmatprep.subr.msk.bf16.mxu1 %vm11826_vm7, %v11930_v30  ;;  %vm11964_vm7 = vmmov %vm11941_vm6  ;;  %vm11989_vm6 = vcmask 932864  }
0x14af   : > { %7323 = vmatpush3.bf16.msk.msra.mxu1 %vm11828_vm2, %v11930_v30  ;;  %vm11967_vm2 = vcmask 1043456  }
0x14b0   : > { %7325 = vmatprep.subr.msk.bf16.mxu1 %vm11830_vm3, %v11930_v30  ;;  %vm11968_vm3 = vmmov %vm11967_vm2 }
0x14b3   : > { %7327 = vmatpush3.bf16.msk.msra.mxu1 %vm11832_vm8, %v11930_v30  ;;  %vm11958_vm8 = vnez %v11957_v24 }
0x14b4   : > { %7329 = vmatprep.subr.msk.bf16.mxu1 %vm11834_vm10, %v11930_v30  ;;  %vm11960_vm10 = vnez %v11959_v4  ;;  %v6577_v4 = vld [vmem:[%s11220_s9 + $0x60] sm:$0xff] }
0x14b7   : > { %7331 = vmatpush3.bf16.msk.msra.mxu1 %vm11836_vm11, %v11930_v30  ;;  %vm11962_vm11 = vnez %v11961_v42  ;;  %v5704_v42 = vpop.permute.xlu0 %5703 }
0x14b8   : > { %7333 = vmatprep.subr.msk.bf16.mxu1 %vm11952_vm4, %v11930_v30  ;;  %vm11992_vm4 = vmmov %vm11989_vm6 }
0x14bb   : > { %7335 = vmatpush3.bf16.msk.msra.mxu1 %vm11954_vm13, %v11930_v30  ;;  %vm11994_vm13 = vmmov %vm11985_vm0 }
0x14bc   : > { %7337 = vmatprep.subr.msk.bf16.mxu1 %vm11956_vm15, %v11930_v30  ;;  %vm11995_vm15 = vcmask 924672  }
0x14bf   : > { %7339 = vmatpush3.bf16.msk.msra.mxu1 %vm11958_vm8, %v11930_v30  ;;  %vm11996_vm8 = vmmov %vm11995_vm15 }
0x14c0   : > { %7341 = vmatprep.subr.msk.bf16.mxu1 %vm11960_vm10, %v11930_v30  ;;  %vm11998_vm10 = vmmov %vm11992_vm4 }
0x14c3   : > { %7343 = vmatpush3.bf16.msk.msra.mxu1 %vm11962_vm11, %v11930_v30  ;;  %vm11999_vm11 = vmmov %vm11992_vm4 }
0x1579   : > { %v5119_v43 = vpop.f32.mrb[40].mxu1 }
0x157a   : > { %v5124_v29 = vsub.f32 %v10879_v10, %v5119_v43  ;;  %v5121_v59 = vpop.f32.mrb[41].mxu1  ;;  %v11973_v43 = vld [vmem:[#allocation22_spill] sm:$0xff] }
0x157b   : > { %v5125_v34 = vsub.f32 %v10876_v37, %v5121_v59 }
0x157c   : > { %v5126_v26 = vmul.f32 %v5124_v29, %v5124_v29 }
0x157d   : > { %v5127_v2 = vmul.f32 %v5125_v34, %v5125_v34 }
0x157f   : > { %5192 = vmatprep.mubr.f32.mxu1 %v5127_v2 }
0x1580   : > { %5193 = vmatmul.mubr.f32.vlgmr.msra.gmra.mrb[42].mxu1 %v5126_v26  ;;  %v11974_v26 = vld [vmem:[#allocation65_spill] sm:$0xff] }
0x1581   : > { %5971 = vmatprep.mubr.bf16.mxu1 %v11963_v11 }
0x1653   : > { %v6965_v63 = vpop.f32.mrb[42].mxu1 }
0x1654   : > { %v6966_v32 = vpop.f32.mrb[43].mxu1 }
0x1655   : > { %v6967_v0 = vadd.f32 %v6966_v32, %v6965_v63  ;;  %v5481_v32 = vmul.f32 %v10980_v38, %v5477_v61 }
0x1657   : > { %v5198_v6 = vmul.f32 0.125, %v6967_v0  ;;  %v6585_v0 = vld [vmem:[%s11220_s9 + $0x98] sm:$0xff] }
0x1659   : > { %v5199_v25 = vadd.f32 1e-05, %v5198_v6  ;;  %v6592_v6 = vld [vmem:[%s11220_s9 + $0xd0] sm:$0xff] }
0x165b   : > { %7395 = vrsqrt.f32 %v5199_v25  ;;  %v5708_v25 = vmul.f32 %v5704_v42, %v10980_v38 }
0x1665   : > { %v7396_v14 = vpop.eup %7395 }
0x1666   : > { %6568 = vmatmul.mubr.msk.f32.vlgmr.msra.gmra.mrb[38].mxu0 %vm11964_vm7, %v7396_v14  ;;  %v11975_v14 = vld [vmem:[#allocation33_spill] sm:$0xff]  ;;  %vm12000_vm7 = vmmov %vm11985_vm0 }
0x1667   : > { %5369 = vmatprep.mubr.bf16.mxu0 %v11963_v11  ;;  %v5711_v9 = vmul.f32 %v5708_v25, %v11975_v14 }
0x1739   : > { %v5270_v27 = vpop.f32.mrb[38].mxu0 }
0x173a   : > { %v5275_v54 = vmul.f32 %v5270_v27, %v5124_v29  ;;  %v5272_v53 = vpop.f32.mrb[39].mxu0 }
0x173b   : > { %v5276_v30 = vmul.f32 %v5272_v53, %v5125_v34  ;;  %v6579_v34 = vld [vmem:[%s11220_s9 + $0x70] sm:$0xff] }
0x173c   : > { %v5290_v15 = vmul.f32 %v5283_v8, %v5275_v54  ;;  %v5717_v54 = vpop.permute.xlu1 %5716 }
0x173d   : > { %v5291_v31 = vmul.f32 %v5287_v52, %v5276_v30  ;;  %v5721_v30 = vmul.f32 %v5717_v54, %v10980_v38 }
0x173e   : > { %v5305_v50 = vadd.f32 %v5298_v44, %v5290_v15  ;;  %v11978_v15 = vld [vmem:[#allocation39_spill] sm:$0xff] }
0x173f   : > { %v5306_v18 = vadd.f32 %v5302_v58, %v5291_v31 }
0x1740   : > { %v5309_v1 = vpack.c.bf16 %v5305_v50, %v5305_v50 }
0x1741   : > { %v5310_v22 = vpack.c.bf16 %v5306_v18, %v5306_v18 }
0x1742   : > { %v5332_v47 = vsel %vm11967_vm2, %v5309_v1, 0  ;;  %vm12001_vm2 = vmmov %vm11985_vm0 }
0x1743   : > { %6572 = vmatprep.subr.msk.bf16.mxu0 %vm11968_vm3, %v5310_v22  ;;  %v11980_v22 = vld [vmem:[#allocation38_spill] sm:$0xff]  ;;  %vm12002_vm3 = vmmov %vm11996_vm8 }
0x1744   : > { %5338 = vmatpush1.bf16.msra.mxu0 %v5332_v47  ;;  %v5724_v47 = vmul.f32 %v5721_v30, %v11980_v22 }
0x1747   : > { %6573 = vmatmul.mubr.msk.bf16.vlgmr.msra.gmra.mrb[40].mxu0 %vm11969_vm5, %v7378_v40  ;;  %vm12003_vm5 = vmmov %vm12002_vm3 }
0x181a   : > { %v5371_v3 = vpop.f32.mrb[40].mxu0 }
0x181b   : > { %v5373_v36 = vpop.f32.mrb[41].mxu0  ;;  %v10996_v2 = vadd.f32 %v5371_v3, %v5316_v39 }
0x181c   : > { %v10960_v60 = vadd.f32 %v5373_v36, %v5316_v39  ;;  %v5375_v20 = vpop.f32.mrb[42].mxu0  ;;  %v11981_v39 = vld [vmem:[#allocation74_spill] sm:$0xff] }
0x181d   : > { %v10962_v51 = vadd.f32 %v5375_v20, %v5321_v21  ;;  %v5377_v56 = vpop.f32.mrb[43].mxu0  ;;  %v5479_v63 = vmul.f32 %v5477_v61, %v10996_v2  ;;  %v6576_v20 = vld [vmem:[%s11220_s9 + $0x58] sm:$0xff] }
0x181e   : > { %v10964_v12 = vadd.f32 %v5377_v56, %v5321_v21  ;;  %v5480_v48 = vmul.f32 %v5477_v61, %v10960_v60  ;;  %v6575_v61 = vld [vmem:[%s11220_s9 + $0x50] sm:$0xff]  ;;  %v5464_v56 = vpop.permute.xlu1 %5463 }
0x181f   : > { %v5732_v62 = vmul.f32 %v5730_v28, %v10962_v51  ;;  %v5682_v17 = vmul.f32 %v5679_v5, %v10962_v51  ;;  %v5706_v27 = vmul.f32 %v5704_v42, %v10962_v51  ;;  %v5719_v53 = vmul.f32 %v5717_v54, %v10962_v51 }
0x1820   : > { %5549 = vrot.lane.b32.xlu1 %v5480_v48, %s11970_s25  ;;  %v5733_v57 = vmul.f32 %v5730_v28, %v10964_v12  ;;  %v5683_v24 = vmul.f32 %v5679_v5, %v10964_v12  ;;  %v5707_v59 = vmul.f32 %v5704_v42, %v10964_v12  ;;  %v5720_v50 = vmul.f32 %v5717_v54, %v10964_v12  ;;  %v6578_v48 = vld [vmem:[%s11220_s9 + $0x68] sm:$0xff] }
0x1821   : > { %5800 = vrot.lane.b32.xlu0 %v5732_v62, %s11970_s25  ;;  %v5685_v8 = vmul.f32 %v5682_v17, %v11976_v13  ;;  %v5709_v52 = vmul.f32 %v5706_v27, %v11977_v33  ;;  %v5722_v31 = vmul.f32 %v5719_v53, %v11978_v15  ;;  %v6582_v62 = vld [vmem:[%s11220_s9 + $0x88] sm:$0xff]  ;;  %v6584_v53 = vld [vmem:[%s11220_s9 + $0x90] sm:$0xff] }
0x1822   : > { %v5686_v29 = vmul.f32 %v5683_v24, %v11973_v43  ;;  %v5710_v11 = vmul.f32 %v5707_v59, %v11974_v26  ;;  %v5723_v21 = vmul.f32 %v5720_v50, %v11981_v39 }
0x1824   : > { %5665 = vperm.xlu1 %7373, %v6586_v16  }
0x1825   : > { %5802 = vrot.lane.b32.xlu0 %v5733_v57, %s11970_s25 }
0x1828   : > { %5691 = vperm.xlu1 %7373, %v6588_v45  }
0x1829   : > { %5804 = vrot.lane.b32.xlu0 %v5734_v46, %s11970_s25 }
0x182c   : > { %5768 = vrot.lane.b32.xlu1 %v5684_v23, %s11972_s23 }
0x182d   : > { %5425 = vperm.xlu0 %7372, %v6577_v4  }
0x1830   : > { %5772 = vrot.lane.b32.xlu1 %v5686_v29, %s11972_s23 }
0x1831   : > { %5450 = vperm.xlu0 %7372, %v6579_v34  }
0x1834   : > { %5787 = vrot.lane.b32.xlu1 %v5710_v11, %s11970_s25 }
0x1835   : > { %5547 = vrot.lane.b32.xlu0 %v5479_v63, %s11970_s25 }
0x1839   : > { %5551 = vrot.lane.b32.xlu0 %v5481_v32, %s11970_s25  ;;  %v5467_v32 = vmul.f32 %v5464_v56, %v10960_v60 }
0x183d   : > { %5655 = vperm.xlu0 %7372, %v6585_v0   ;;  %v5466_v0 = vmul.f32 %v5464_v56, %v10996_v2 }
0x183f   : > { %v5469_v27 = vmul.f32 %v5466_v0, %v11978_v15 }
0x1841   : > { %5739 = vperm.xlu0 %7372, %v6592_v6  }
0x1845   : > { %5789 = vrot.lane.b32.xlu0 %v5711_v9, %s11970_s25 }
0x1849   : > { %5770 = vrot.lane.b32.xlu0 %v5685_v8, %s11972_s23  ;;  %v5468_v8 = vmul.f32 %v10980_v38, %v5464_v56 }
0x184d   : > { %5785 = vrot.lane.b32.xlu0 %v5709_v52, %s11970_s25 }
0x1892   : > { %v5550_v16 = vpop.permute.xlu1 %5549 }
0x1893   : > { %v5801_v44 = vpop.permute.xlu0 %5800 }
0x1897   : > { %v5803_v58 = vpop.permute.xlu0 %5802 }
0x1898   : > { %v5806_v18 = vsel %vm11979_vm12, %v5801_v44, %v5803_v58  ;;  %vm12004_vm12 = vmmov %vm11985_vm0 }
0x1899   : > { %v5811_v1 = vadd.f32 %v5806_v18, %v5722_v31 }
0x189b   : > { %v5805_v40 = vpop.permute.xlu0 %5804  ;;  %5834 = vrot.lane.b32.xlu1 %v5811_v1, %s11982_s28 }
0x189c   : > { %v5807_v28 = vsel %vm11983_vm14, %v5803_v58, %v5805_v40  ;;  %v5813_v3 = vadd.f32 %v5805_v40, %v5724_v47  ;;  %vm12005_vm14 = vcmask 1031168  }
0x189d   : > { %v5812_v36 = vadd.f32 %v5807_v28, %v5723_v21  ;;  %v11987_v28 = vld [vmem:[#allocation54_spill] sm:$0xff] }
0x189f   : > { %5836 = vrot.lane.b32.xlu0 %v5812_v36, %s11982_s28  ;;  %5838 = vrot.lane.b32.xlu1 %v5813_v3, %s11982_s28 }
0x18a3   : > { %5412 = vperm.xlu0 %7372, %v6576_v20   ;;  %5402 = vperm.xlu1 %7373, %v6575_v61   ;;  %v11043_v5 = vpop.permute.xlu1 %5665  ;;  %v11988_v20 = vld [vmem:[#allocation55_spill] sm:$0xff] }
0x18a4   : > { %v5668_v18 = vmul.f32 %v11043_v5, %v10973_v19  ;;  %v5670_v56 = vmul.f32 %v11043_v5, %v10964_v12 }
0x18a6   : > { %v5671_v61 = vmul.f32 %v5668_v18, %v11988_v20 }
0x18a7   : > { %5438 = vperm.xlu0 %7372, %v6578_v48   ;;  %5486 = vperm.xlu1 %7373, %v6582_v62   ;;  %v11053_v29 = vpop.permute.xlu1 %5691 }
0x18a8   : > { %v5695_v1 = vmul.f32 %v11053_v29, %v10964_v12 }
0x18ac   : > { %v5426_v57 = vpop.permute.xlu0 %5425 }
0x18ad   : > { %v5428_v45 = vmul.f32 %v10973_v19, %v5426_v57  ;;  %v5429_v41 = vmul.f32 %v5426_v57, %v10996_v2  ;;  %v5430_v46 = vmul.f32 %v5426_v57, %v10960_v60 }
0x18af   : > { %v5431_v23 = vmul.f32 %v5428_v45, %v11971_v35  ;;  %v5432_v24 = vmul.f32 %v5429_v41, %v11976_v13  ;;  %v5433_v59 = vmul.f32 %v5430_v46, %v11973_v43  ;;  %v5769_v43 = vpop.permute.xlu1 %5768  ;;  %v5470_v13 = vmul.f32 %v5467_v32, %v11981_v39  ;;  %v11990_v41 = vld [vmem:[#allocation50_spill] sm:$0xff] }
0x18b0   : > { %v5451_v4 = vpop.permute.xlu0 %5450  ;;  %v5669_v45 = vmul.f32 %v11043_v5, %v10962_v51  ;;  %v5673_v46 = vmul.f32 %v5670_v56, %v11990_v41  ;;  %v5694_v32 = vmul.f32 %v11053_v29, %v10962_v51  ;;  %v11997_v29 = vld [vmem:[#allocation60_spill] sm:$0xff] }
0x18b1   : > { %v5453_v42 = vmul.f32 %v5451_v4, %v10996_v2  ;;  %5515 = vrot.lane.b32.xlu0 %v5431_v23, %s11972_s23  ;;  %5517 = vrot.lane.b32.xlu1 %v5432_v24, %s11972_s23  ;;  %v5454_v34 = vmul.f32 %v5451_v4, %v10960_v60  ;;  %v5455_v11 = vmul.f32 %v10980_v38, %v5451_v4  ;;  %v11991_v24 = vld [vmem:[#allocation13_spill] sm:$0xff] }
0x18b3   : > { %v5456_v63 = vmul.f32 %v5453_v42, %v11977_v33  ;;  %v5457_v6 = vmul.f32 %v5454_v34, %v11974_v26  ;;  %v5458_v25 = vmul.f32 %v5455_v11, %v11975_v14  ;;  %v5471_v14 = vmul.f32 %v5468_v8, %v11980_v22  ;;  %v5773_v44 = vpop.permute.xlu1 %5772 }
0x18b4   : > { %v5548_v35 = vpop.permute.xlu0 %5547  ;;  %v5781_v23 = vadd.f32 %v5773_v44, %v5673_v46 }
0x18b5   : > { %5519 = vrot.lane.b32.xlu0 %v5433_v59, %s11972_s23  ;;  %5532 = vrot.lane.b32.xlu1 %v5456_v63, %s11970_s25  ;;  %v5553_v9 = vsel %vm11984_vm1, %v5548_v35, %v5550_v16  ;;  %v11993_v59 = vld [vmem:[#allocation19_spill] sm:$0xff]  ;;  %vm12006_vm1 = vmmov %vm11985_vm0  ;;  %s487_s23 = scalar_lea.vmem %s11225_s14, %s12023_s22 }
0x18b6   : > { %v5558_v26 = vadd.f32 %v5553_v9, %v5469_v27  ;;  %v5672_v34 = vmul.f32 %v5669_v45, %v11993_v59  ;;  %v6574_v27 = vld [vmem:[%s11220_s9 + $0x48] sm:$0xff] }
0x18b7   : > { %v5788_v22 = vpop.permute.xlu1 %5787 }
0x18b8   : > { %v5552_v17 = vpop.permute.xlu0 %5551 }
0x18b9   : > { %v5554_v33 = vsel %vm11985_vm0, %v5550_v16, %v5552_v17  ;;  %5534 = vrot.lane.b32.xlu0 %v5457_v6, %s11970_s25  ;;  %5536 = vrot.lane.b32.xlu1 %v5458_v25, %s11970_s25  ;;  %v5560_v30 = vadd.f32 %v5552_v17, %v5471_v14  ;;  %v6593_v16 = vld [vmem:[%s11221_s10 + $0x10] sm:$0xff]  ;;  %vm12007_vm0 = vmmov %vm12005_vm14 }
0x18ba   : > { %v5559_v52 = vadd.f32 %v5554_v33, %v5470_v13 }
0x18bc   : > { %v5656_v54 = vpop.permute.xlu0 %5655 }
0x18bd   : > { %5583 = vrot.lane.b32.xlu1 %v5559_v52, %s11982_s28  ;;  %5581 = vrot.lane.b32.xlu0 %v5558_v26, %s11982_s28  ;;  %v5658_v15 = vmul.f32 %v5656_v54, %v10973_v19  ;;  %v5659_v31 = vmul.f32 %v5656_v54, %v10962_v51  ;;  %v5660_v21 = vmul.f32 %v5656_v54, %v10964_v12 }
0x18c0   : > { %v5740_v58 = vpop.permute.xlu0 %5739 }
0x18c1   : > { %5642 = vperm.xlu1 %7373, %v6584_v53   ;;  %5585 = vrot.lane.b32.xlu0 %v5560_v30, %s11982_s28  ;;  %v5742_v50 = vmul.f32 %v5740_v58, %v10962_v51  ;;  %v5743_v57 = vmul.f32 %v5740_v58, %v10964_v12  ;;  %v5744_v17 = vmul.f32 %v5740_v58, %v10980_v38 }
0x18c3   : > { %v5745_v3 = vmul.f32 %v5742_v50, %v11987_v28  ;;  %v5746_v4 = vmul.f32 %v5743_v57, %v11991_v24  ;;  %v5747_v33 = vmul.f32 %v5744_v17, %v11997_v29 }
0x18c4   : > { %v5790_v47 = vpop.permute.xlu0 %5789 }
0x18c5   : > { %v5792_v40 = vsel %vm11986_vm9, %v5788_v22, %v5790_v47  ;;  %5753 = vrot.lane.b32.xlu1 %v5659_v31, %s11970_s25  ;;  %5751 = vrot.lane.b32.xlu0 %v5658_v15, %s11970_s25  ;;  %vm12008_vm9 = vcmask 908288  }
0x18c6   : > { %v5796_v39 = vadd.f32 %v5792_v40, %v5695_v1 }
0x18c8   : > { %v5771_v36 = vpop.permute.xlu0 %5770 }
0x18c9   : > { %v5774_v48 = vsel %vm11989_vm6, %v5769_v43, %v5771_v36  ;;  %5862 = vrot.lane.b32.xlu1 %v5745_v3, %s11891_s17  ;;  %5755 = vrot.lane.b32.xlu0 %v5660_v21, %s11970_s25  ;;  %v5775_v42 = vsel %vm11992_vm4, %v5771_v36, %v5773_v44  ;;  %vm12009_vm6 = vcmask 769024  }
0x18ca   : > { %v5779_v62 = vadd.f32 %v5774_v48, %v5671_v61  ;;  %v5780_v11 = vadd.f32 %v5775_v42, %v5672_v34  ;;  %vm12010_vm4 = vmmov %vm12009_vm6 }
0x18cc   : > { %v5786_v5 = vpop.permute.xlu0 %5785 }
0x18cd   : > { %5880 = vperm.xlu0 %7372, %v6593_v16   ;;  %5817 = vrot.lane.b32.xlu1 %v5779_v62, %s11867_s15  ;;  %v5791_v35 = vsel %vm11994_vm13, %v5786_v5, %v5788_v22  ;;  %v6583_v16 = vld [vmem:[%s11221_s10 + $0x8] sm:$0xff]  ;;  %vm12011_vm13 = vmmov %vm12006_vm1 }
0x18ce   : > { %v5795_v0 = vadd.f32 %v5791_v35, %v5694_v32 }
0x18d1   : > { %5864 = vrot.lane.b32.xlu0 %v5746_v4, %s11891_s17  ;;  %5821 = vrot.lane.b32.xlu1 %v5781_v23, %s11867_s15 }
0x18d5   : > { %5819 = vrot.lane.b32.xlu0 %v5780_v11, %s11867_s15 }
0x190d   : > { %v5835_v63 = vpop.permute.xlu1 %5834 }
0x1911   : > { %v5837_v6 = vpop.permute.xlu0 %5836  ;;  %v5839_v25 = vpop.permute.xlu1 %5838 }
0x1912   : > { %v5840_v43 = vsel %vm11995_vm15, %v5835_v63, %v5837_v6  ;;  %v5841_v9 = vsel %vm11996_vm8, %v5837_v6, %v5839_v25  ;;  %vm12012_vm15 = vmmov %vm12007_vm0 }
0x1913   : > { %v5844_v13 = vadd.f32 %v5840_v43, %v5795_v0  ;;  %v5845_v8 = vadd.f32 %v5841_v9, %v5796_v39  ;;  %vm12013_vm8 = vmmov %vm12006_vm1 }
0x1915   : > { %5848 = vrot.lane.b32.xlu1 %v5844_v13, %s11881_s24  ;;  %5850 = vrot.lane.b32.xlu0 %v5845_v8, %s11881_s24 }
0x1919   : > { %5866 = vrot.lane.b32.xlu1 %v5747_v33, %s11891_s17  ;;  %5389 = vperm.xlu0 %7372, %v6574_v27  }
0x1922   : > { %v5413_v52 = vpop.permute.xlu0 %5412  ;;  %v5403_v26 = vpop.permute.xlu1 %5402 }
0x1923   : > { %v5405_v54 = vmul.f32 %v10973_v19, %v5403_v26  ;;  %v5406_v14 = vmul.f32 %v5403_v26, %v10996_v2  ;;  %v5415_v44 = vmul.f32 %v10973_v19, %v5413_v52  ;;  %v5407_v58 = vmul.f32 %v5403_v26, %v10960_v60 }
0x1924   : > { %v5417_v15 = vmul.f32 %v5413_v52, %v10960_v60  ;;  %v5416_v31 = vmul.f32 %v5413_v52, %v10996_v2 }
0x1925   : > { %5498 = vrot.lane.b32.xlu1 %v5405_v54, %s11970_s25  ;;  %5500 = vrot.lane.b32.xlu0 %v5406_v14, %s11970_s25  ;;  %v5418_v18 = vmul.f32 %v5415_v44, %v11988_v20 }
0x1926   : > { %v5439_v53 = vpop.permute.xlu0 %5438  ;;  %v5487_v30 = vpop.permute.xlu1 %5486  ;;  %v5420_v40 = vmul.f32 %v5417_v15, %v11990_v41  ;;  %v5419_v39 = vmul.f32 %v5416_v31, %v11993_v59 }
0x1927   : > { %v5441_v57 = vmul.f32 %v5439_v53, %v10996_v2  ;;  %v5442_v42 = vmul.f32 %v5439_v53, %v10960_v60  ;;  %v5489_v59 = vmul.f32 %v5487_v30, %v10996_v2  ;;  %v5490_v35 = vmul.f32 %v5487_v30, %v10960_v60 }
0x1928   : > { %v5491_v32 = vmul.f32 %v10980_v38, %v5487_v30 }
0x1929   : > { %5502 = vrot.lane.b32.xlu1 %v5407_v58, %s11970_s25  ;;  %v5492_v0 = vmul.f32 %v5489_v59, %v11987_v28  ;;  %v5493_v25 = vmul.f32 %v5490_v35, %v11991_v24 }
0x192a   : > { %v5516_v50 = vpop.permute.xlu0 %5515  ;;  %v5518_v1 = vpop.permute.xlu1 %5517  ;;  %v5494_v43 = vmul.f32 %v5491_v32, %v11997_v29 }
0x192b   : > { %v5521_v22 = vsel %vm11998_vm10, %v5516_v50, %v5518_v1  ;;  %vm12014_vm10 = vmmov %vm12007_vm0 }
0x192c   : > { %v5526_v47 = vadd.f32 %v5521_v22, %v5418_v18 }
0x192e   : > { %v5520_v21 = vpop.permute.xlu0 %5519  ;;  %5564 = vrot.lane.b32.xlu0 %v5526_v47, %s11867_s15  ;;  %v5533_v3 = vpop.permute.xlu1 %5532 }
0x192f   : > { %v5522_v36 = vsel %vm11999_vm11, %v5518_v1, %v5520_v21  ;;  %v5528_v61 = vadd.f32 %v5520_v21, %v5420_v40  ;;  %vm12015_vm11 = vmmov %vm12008_vm9 }
0x1930   : > { %v5527_v56 = vadd.f32 %v5522_v36, %v5419_v39 }
0x1932   : > { %v5535_v48 = vpop.permute.xlu0 %5534  ;;  %5566 = vrot.lane.b32.xlu1 %v5527_v56, %s11867_s15  ;;  %5568 = vrot.lane.b32.xlu0 %v5528_v61, %s11867_s15  ;;  %v5537_v20 = vpop.permute.xlu1 %5536 }
0x1933   : > { %v5538_v62 = vsel %vm12000_vm7, %v5533_v3, %v5535_v48  ;;  %v5539_v23 = vsel %vm12001_vm2, %v5535_v48, %v5537_v20  ;;  %vm12016_vm7 = vmmov %vm12010_vm4 }
0x1934   : > { %v5542_v45 = vadd.f32 %v5538_v62, %v5441_v57  ;;  %v5543_v11 = vadd.f32 %v5539_v23, %v5442_v42  ;;  %vm12017_vm2 = vmmov %vm12010_vm4 }
0x1936   : > { %v5582_v41 = vpop.permute.xlu0 %5581  ;;  %5627 = vperm.xlu1 %7373, %v6583_v16   ;;  %v5584_v46 = vpop.permute.xlu1 %5583 }
0x1937   : > { %v5587_v4 = vsel %vm12002_vm3, %v5582_v41, %v5584_v46  ;;  %vm12018_vm3 = vcmask 138240  }
0x1938   : > { %v5591_v34 = vadd.f32 %v5587_v4, %v5542_v45 }
0x193a   : > { %v5586_v5 = vpop.permute.xlu0 %5585  ;;  %5595 = vrot.lane.b32.xlu0 %v5591_v34, %s11881_s24 }
0x193b   : > { %v5588_v63 = vsel %vm12003_vm5, %v5584_v46, %v5586_v5  ;;  %vm12019_vm5 = vmmov %vm12018_vm3 }
0x193c   : > { %v5592_v6 = vadd.f32 %v5588_v63, %v5543_v11 }
0x193e   : > { %5597 = vrot.lane.b32.xlu1 %v5592_v6, %s11881_s24  ;;  %5609 = vrot.lane.b32.xlu0 %v5492_v0, %s11891_s17  ;;  %v5752_v17 = vpop.permute.xlu0 %5751 }
0x1940   : > { %v5643_v9 = vpop.permute.xlu1 %5642 }
0x1941   : > { %v5645_v52 = vmul.f32 %v5643_v9, %v10973_v19  ;;  %v5646_v30 = vmul.f32 %v5643_v9, %v10962_v51  ;;  %v5647_v31 = vmul.f32 %v5643_v9, %v10964_v12 }
0x1942   : > { %5611 = vrot.lane.b32.xlu1 %v5493_v25, %s11891_s17  ;;  %5613 = vrot.lane.b32.xlu0 %v5494_v43, %s11891_s17  ;;  %v5756_v8 = vpop.permute.xlu0 %5755 }
0x1943   : > { %v5648_v26 = vmul.f32 %v5645_v52, %v11795_v7  ;;  %v5649_v50 = vmul.f32 %v5646_v30, %v9811_v49  ;;  %v5650_v47 = vmul.f32 %v5647_v31, %v11793_v55 }
0x1944   : > { %v5754_v13 = vpop.permute.xlu1 %5753 }
0x1945   : > { %v5757_v24 = vsel %vm12004_vm12, %v5752_v17, %v5754_v13  ;;  %v5758_v18 = vsel %vm12006_vm1, %v5754_v13, %v5756_v8  ;;  %v5764_v51 = vadd.f32 %v5756_v8, %v5650_v47  ;;  %vm12020_vm12 = vcmask 1043456  }
0x1946   : > { %v5762_v44 = vadd.f32 %v5757_v24, %v5648_v26  ;;  %v5763_v39 = vadd.f32 %v5758_v18, %v5649_v50  ;;  %vm12022_vm1 = vcmask 64512  }
0x1948   : > { %v5863_v27 = vpop.permute.xlu1 %5862 }
0x194c   : > { %v5881_v38 = vpop.permute.xlu0 %5880  ;;  %v5818_v33 = vpop.permute.xlu1 %5817 }
0x1950   : > { %v5865_v28 = vpop.permute.xlu0 %5864  ;;  %v5822_v29 = vpop.permute.xlu1 %5821 }
0x1951   : > { %v5830_v48 = vadd.f32 %v5822_v29, %v5764_v51  ;;  %v5868_v16 = vsel %vm12010_vm4, %v5863_v27, %v5865_v28 }
0x1954   : > { %v5820_v54 = vpop.permute.xlu0 %5819 }
0x1955   : > { %v5823_v14 = vsel %vm12005_vm14, %v5818_v33, %v5820_v54  ;;  %v5824_v40 = vsel %vm12007_vm0, %v5820_v54, %v5822_v29  ;;  %vm12021_vm14 = vmmov %vm12020_vm12 }
0x1956   : > { %v5828_v58 = vadd.f32 %v5823_v14, %v5762_v44  ;;  %v5829_v3 = vadd.f32 %v5824_v40, %v5763_v39 }
0x1987   : > { %v5849_v53 = vpop.permute.xlu1 %5848  ;;  %v5851_v1 = vpop.permute.xlu0 %5850 }
0x1988   : > { %v5856_v15 = vadd.f32 %v5849_v53, %v5828_v58  ;;  %v5852_v21 = vsel %vm12008_vm9, %v5849_v53, %v5851_v1  ;;  %v5858_v57 = vadd.f32 %v5851_v1, %v5830_v48 }
0x1989   : > { %v5857_v56 = vadd.f32 %v5852_v21, %v5829_v3 }
0x198a   : > { %v5873_v22 = vadd.f32 %v5863_v27, %v5856_v15 }
0x198b   : > { %v5867_v61 = vpop.permute.xlu1 %5866  ;;  %v5874_v45 = vadd.f32 %v5868_v16, %v5857_v56 }
0x198c   : > { %v5883_v36 = vadd.f32 %v5881_v38, %v5873_v22  ;;  %v5869_v20 = vsel %vm12009_vm6, %v5865_v28, %v5867_v61 }
0x198d   : > { %v5875_v41 = vadd.f32 %v5869_v20, %v5858_v57  ;;  %v5884_v23 = vadd.f32 %v5881_v38, %v5874_v45  ;;  %v6598_v57 = vld [vmem:[%s11215_s4 + $0x8] sm:$0xff] }
0x198e   : > { %v6594_v12 = vmul.f32 -1.442695, %v5883_v36 }
0x198f   : > { %v5885_v4 = vadd.f32 %v5881_v38, %v5875_v41  ;;  %v6595_v59 = vmul.f32 -1.442695, %v5884_v23 }
0x1990   : > { %7397 = vpow2.f32 %v6594_v12 }
0x1991   : > { %v6596_v11 = vmul.f32 -1.442695, %v5885_v4  ;;  %7399 = vpow2.f32 %v6595_v59  ;;  %v6597_v59 = vld [vmem:[%s11214_s3 + $0x4] sm:$0xf] }
0x1993   : > { %7401 = vpow2.f32 %v6596_v11 }
0x1997   : > { %v5499_v42 = vpop.permute.xlu1 %5498 }
0x1998   : > { %v5390_v62 = vpop.permute.xlu0 %5389 }
0x1999   : > { %v5392_v63 = vmul.f32 %v10973_v19, %v5390_v62  ;;  %v5393_v28 = vmul.f32 %v5390_v62, %v10996_v2  ;;  %v5394_v19 = vmul.f32 %v5390_v62, %v10960_v60 }
0x199a   : > { %v7398_v5 = vpop.eup %7397 }
0x199b   : > { %v5503_v35 = vpop.permute.xlu1 %5502  ;;  %v5895_v0 = vadd.f32 1.0, %v7398_v5  ;;  %v5395_v6 = vmul.f32 %v5392_v63, %v11795_v7  ;;  %v7400_v8 = vpop.eup %7399  ;;  %v5397_v24 = vmul.f32 %v5394_v19, %v11793_v55  ;;  %v5396_v29 = vmul.f32 %v5393_v28, %v9811_v49 }
0x199c   : > { %v5501_v46 = vpop.permute.xlu0 %5500  ;;  %v5896_v26 = vadd.f32 1.0, %v7400_v8 }
0x199d   : > { %v5504_v43 = vsel %vm12011_vm13, %v5499_v42, %v5501_v46  ;;  %7403 = vrcp.f32 %v5895_v0  ;;  %v7402_v27 = vpop.eup %7401  ;;  %v5505_v44 = vsel %vm12013_vm8, %v5501_v46, %v5503_v35  ;;  %v5511_v60 = vadd.f32 %v5503_v35, %v5397_v24 }
0x199e   : > { %v5509_v13 = vadd.f32 %v5504_v43, %v5395_v6  ;;  %v5897_v54 = vadd.f32 1.0, %v7402_v27  ;;  %7405 = vrcp.f32 %v5896_v26  ;;  %v5510_v15 = vadd.f32 %v5505_v44, %v5396_v29 }
0x19a0   : > { %v5565_v34 = vpop.permute.xlu0 %5564  ;;  %7407 = vrcp.f32 %v5897_v54 }
0x19a4   : > { %v5569_v32 = vpop.permute.xlu0 %5568  ;;  %v5567_v25 = vpop.permute.xlu1 %5566 }
0x19a5   : > { %v5570_v17 = vsel %vm12012_vm15, %v5565_v34, %v5567_v25  ;;  %v5571_v2 = vsel %vm12014_vm10, %v5567_v25, %v5569_v32  ;;  %v5577_v1 = vadd.f32 %v5569_v32, %v5511_v60 }
0x19a6   : > { %v5575_v38 = vadd.f32 %v5570_v17, %v5509_v13  ;;  %v5576_v55 = vadd.f32 %v5571_v2, %v5510_v15 }
0x19a7   : > { %v7404_v30 = vpop.eup %7403 }
0x19a8   : > { %v7406_v51 = vpop.eup %7405 }
0x19aa   : > { %v7408_v48 = vpop.eup %7407 }
0x19ac   : > { %v5596_v9 = vpop.permute.xlu0 %5595 }
0x19ad   : > { %v5603_v52 = vadd.f32 %v5596_v9, %v5575_v38 }
0x19b0   : > { %v5610_v33 = vpop.permute.xlu0 %5609 }
0x19b1   : > { %v5620_v7 = vadd.f32 %v5610_v33, %v5603_v52 }
0x19b4   : > { %v5614_v49 = vpop.permute.xlu0 %5613 }
0x19b5   : > { %v5628_v14 = vpop.permute.xlu1 %5627 }
0x19b6   : > { %v5630_v53 = vadd.f32 %v5628_v14, %v5620_v7 }
0x19b8   : > { %v5904_v58 = vmul.f32 %v7404_v30, %v5630_v53 }
0x19b9   : > { %v5598_v31 = vpop.permute.xlu1 %5597 }
0x19ba   : > { %v5909_v50 = vpack.c.bf16 %v5904_v58, %v5904_v58  ;;  %v5599_v18 = vsel %vm12015_vm11, %v5596_v9, %v5598_v31  ;;  %v5605_v47 = vadd.f32 %v5598_v31, %v5577_v1 }
0x19bb   : > { %v5604_v22 = vadd.f32 %v5599_v18, %v5576_v55 }
0x19bc   : > { %5922 = vrot.lane.b32.xlu1 %v5909_v50, %s11927_s21 }
0x19bd   : > { %v5612_v40 = vpop.permute.xlu1 %5611 }
0x19be   : > { %v5615_v39 = vsel %vm12016_vm7, %v5610_v33, %v5612_v40  ;;  %v5616_v21 = vsel %vm12017_vm2, %v5612_v40, %v5614_v49 }
0x19bf   : > { %v5621_v3 = vadd.f32 %v5615_v39, %v5604_v22  ;;  %v5622_v36 = vadd.f32 %v5616_v21, %v5605_v47 }
0x19c1   : > { %v5631_v61 = vadd.f32 %v5628_v14, %v5621_v3  ;;  %v5632_v56 = vadd.f32 %v5628_v14, %v5622_v36 }
0x19c3   : > { %v5905_v12 = vmul.f32 %v7406_v51, %v5631_v61  ;;  %v5906_v20 = vmul.f32 %v7408_v48, %v5632_v56 }
0x19c5   : > { %v5910_v62 = vpack.c.bf16 %v5905_v12, %v5905_v12  ;;  %v5911_v16 = vpack.c.bf16 %v5906_v20, %v5906_v20 }
0x19c7   : > { %5926 = vrot.lane.b32.xlu1 %v5911_v16, %s11927_s21  ;;  %5924 = vrot.lane.b32.xlu0 %v5910_v62, %s11927_s21 }
0x19cb   : > { %5916 = vperm.xlu0 %7372, %v6598_v57  }
0x1a2e   : > { %v5923_v45 = vpop.permute.xlu1 %5922 }
0x1a39   : > { %v5925_v41 = vpop.permute.xlu0 %5924  ;;  %v5927_v46 = vpop.permute.xlu1 %5926 }
0x1a3a   : > { %v5928_v23 = vsel %vm12018_vm3, %v5923_v45, %v5925_v41  ;;  %v5929_v4 = vsel %vm12019_vm5, %v5925_v41, %v5927_v46 }
0x1a3b   : > { %v5934_v42 = vsel %vm12020_vm12, %v5928_v23, 0  ;;  %6599 = vmatprep.subr.msk.bf16.mxu1 %vm12021_vm14, %v5929_v4 }
0x1a3c   : > { %5940 = vmatpush1.bf16.msra.mxu1 %v5934_v42 }
0x1a3f   : > { %6600 = vmatmul.mubr.msk.bf16.vlgmr.msra.gmra.mrb[44].mxu1 %vm12022_vm1, %v6597_v59 }
0x1a4a   : > { %v5917_v34 = vpop.permute.xlu0 %5916 }
0x1b12   : > { %v5973_v11 = vpop.f32.mrb[44].mxu1 }
0x1b13   : > { %v5974_v5 = vadd.f32 %v5973_v11, %v5917_v34  ;;  %v5975_v63 = vpop.f32.mrb[45].mxu1 }
0x1b14   : > { %v5976_v35 = vadd.f32 %v5975_v63, %v5917_v34  ;;  %v5977_v32 = vpop.f32.mrb[46].mxu1 }
0x1b15   : > { %v5980_v0 = vadd.f32 %v5974_v5, %v10879_v10  ;;  %v5978_v6 = vpop.f32.mrb[47].mxu1 }
0x1b16   : > { %v5981_v25 = vadd.f32 %v5976_v35, %v10876_v37 }
0x1b17   : > { %5982 = vst [vmem:[%s487_s23] sm:$0xff] %v5980_v0 }
0x1b18   : > { %5983 = vst [vmem:[%s487_s23 + $0x8] sm:$0xff] %v5981_v25 }
0x1b19 PF: > { %s24_s29 = sadd.s32 1, %s7421_s29  }
0x1b1a   : > { %p21_p4 = scmp.ge.s32.totalorder %s24_s29, 4  }
0x1b1c   :  { %23 = sbr.rel (!%p21_p4) target bundleno = 2 (0x2), region = 189 }

</bundles_post_ra>
